<compile_context>
chip_gen: v5e
topology: v5e:2x2
jax: 0.10.0
libtpu: 0.0.40
codegen_flags: <defaults>
</compile_context>

<pallas_src>
import functools
import math

import jax
import jax.numpy as jnp
from jax.experimental import pallas as pl
from jax.experimental.pallas import tpu as pltpu


# ------------------------- in-kernel building blocks ------------------------

def _layernorm(y, g, b, eps=1e-5):
    """LayerNorm over the last dim, f32 math (matches PyTorch eps=1e-5)."""
    mu = jnp.mean(y, axis=-1, keepdims=True)
    var = jnp.mean((y - mu) ** 2, axis=-1, keepdims=True)
    return (y - mu) * jax.lax.rsqrt(var + eps) * g + b


def _proj(x_f32, w_bf16, b_f32):
    """x @ W + b with bf16 MXU operands and f32 accumulation."""
    return jnp.dot(x_f32.astype(jnp.bfloat16), w_bf16,
                   preferred_element_type=jnp.float32) + b_f32


def _mha(q, k, v, B, Sq, Sk, H, dk, scale):
    """Multi-head attention on 2-D slabs.

    q: [B*Sq, H*dk] f32, k/v: [B*Sk, H*dk] f32 -> [B*Sq, H*dk] f32.
    Unrolled over the tiny (batch, head) pairs; softmax in f32.
    """
    # TODO(synk): masked_fill (attention mask) path unused — forward is run
    # with src_mask=None / tgt_mask=None, matching the module defaults.
    outs = []
    for b in range(B):
        qb = q[b * Sq:(b + 1) * Sq, :]
        kb = k[b * Sk:(b + 1) * Sk, :]
        vb = v[b * Sk:(b + 1) * Sk, :]
        heads = []
        for h in range(H):
            qh = qb[:, h * dk:(h + 1) * dk].astype(jnp.bfloat16)
            kh = kb[:, h * dk:(h + 1) * dk].astype(jnp.bfloat16)
            vh = vb[:, h * dk:(h + 1) * dk].astype(jnp.bfloat16)
            # q @ k.T (contract last dims of both), f32 scores.
            s = jax.lax.dot_general(qh, kh, (((1,), (1,)), ((), ())),
                                    preferred_element_type=jnp.float32) * scale
            m = jnp.max(s, axis=-1, keepdims=True)
            e = jnp.exp(s - m)
            inv = pl.reciprocal(jnp.sum(e, axis=-1, keepdims=True), approx=True)
            p = e * inv
            heads.append(jnp.dot(p.astype(jnp.bfloat16), vh,
                                 preferred_element_type=jnp.float32))
        outs.append(jnp.concatenate(heads, axis=-1))   # [Sq, H*dk]
    return jnp.concatenate(outs, axis=0)               # [B*Sq, H*dk]


# ------------------------------ fused kernels -------------------------------

@functools.lru_cache(maxsize=None)
def _encoder_layer_kernel(B, S, D, H, dff):
    dk = D // H
    scale = 1.0 / math.sqrt(dk)

    def kernel(x_ref, wqkv_ref, bqkv_ref, wo_ref, bo_ref, g1_ref, be1_ref,
               w1_ref, b1_ref, w2_ref, b2_ref, g2_ref, be2_ref, o_ref):
        x = x_ref[...]                                             # [B*S, D]
        # Self-attention (fused QKV projection).
        qkv = _proj(x, wqkv_ref[...], bqkv_ref[...])               # [B*S, 3D]
        attn = _mha(qkv[:, :D], qkv[:, D:2 * D], qkv[:, 2 * D:],
                    B, S, S, H, dk, scale)
        attn = _proj(attn, wo_ref[...], bo_ref[...])
        y = _layernorm(x + attn, g1_ref[...], be1_ref[...])
        # Feed-forward (dropout -> identity).
        hmid = jnp.maximum(_proj(y, w1_ref[...], b1_ref[...]), 0.0)
        f = _proj(hmid, w2_ref[...], b2_ref[...])
        o_ref[...] = _layernorm(y + f, g2_ref[...], be2_ref[...])

    return kernel


@functools.lru_cache(maxsize=None)
def _decoder_layer_kernel(B, St, Ss, D, H, dff):
    dk = D // H
    scale = 1.0 / math.sqrt(dk)

    def kernel(x_ref, enc_ref,
               wqkv_ref, bqkv_ref, wo1_ref, bo1_ref, g1_ref, be1_ref,
               wq_ref, bq_ref, wkv_ref, bkv_ref, wo2_ref, bo2_ref,
               g2_ref, be2_ref,
               w1_ref, b1_ref, w2_ref, b2_ref, g3_ref, be3_ref, o_ref):
        x = x_ref[...]                                             # [B*St, D]
        enc = enc_ref[...]                                         # [B*Ss, D]
        # Self-attention (tgt_mask=None per module defaults -> no causal mask).
        qkv = _proj(x, wqkv_ref[...], bqkv_ref[...])
        attn = _mha(qkv[:, :D], qkv[:, D:2 * D], qkv[:, 2 * D:],
                    B, St, St, H, dk, scale)
        y = _layernorm(x + _proj(attn, wo1_ref[...], bo1_ref[...]),
                       g1_ref[...], be1_ref[...])
        # Cross-attention (Q from decoder stream, fused K/V from encoder out).
        q = _proj(y, wq_ref[...], bq_ref[...])
        kv = _proj(enc, wkv_ref[...], bkv_ref[...])                # [B*Ss, 2D]
        attn = _mha(q, kv[:, :D], kv[:, D:], B, St, Ss, H, dk, scale)
        y = _layernorm(y + _proj(attn, wo2_ref[...], bo2_ref[...]),
                       g2_ref[...], be2_ref[...])
        # Feed-forward.
        hmid = jnp.maximum(_proj(y, w1_ref[...], b1_ref[...]), 0.0)
        f = _proj(hmid, w2_ref[...], b2_ref[...])
        o_ref[...] = _layernorm(y + f, g3_ref[...], be3_ref[...])

    return kernel


def _out_proj_kernel(x_ref, w_ref, b_ref, o_ref):
    # Lane-dense (padded to 128) output projection -> unmasked vector stores.
    o_ref[...] = jnp.dot(x_ref[...].astype(jnp.bfloat16), w_ref[...],
                         preferred_element_type=jnp.float32) + b_ref[...]


# ------------------------------ pallas wrappers ------------------------------

def _full_spec(shape):
    n = len(shape)
    return pl.BlockSpec(shape, lambda i, n=n: (0,) * n)


def _call_fused(kernel, out_shape, arrays):
    return pl.pallas_call(
        kernel,
        out_shape=jax.ShapeDtypeStruct(out_shape, jnp.float32),
        grid=(1,),
        in_specs=[_full_spec(a.shape) for a in arrays],
        out_specs=_full_spec(out_shape),
        compiler_params=pltpu.CompilerParams(
            dimension_semantics=("arbitrary",)),
    )(*arrays)


def encoder_layer(x2d, p, B, S, D, H, dff):
    kernel = _encoder_layer_kernel(B, S, D, H, dff)
    arrays = (x2d,
              p["wqkv"], p["bqkv"], p["wo"], p["bo"], p["ln1_g"], p["ln1_b"],
              p["w1"], p["b1"], p["w2"], p["b2"], p["ln2_g"], p["ln2_b"])
    return _call_fused(kernel, (B * S, D), arrays)


def decoder_layer(x2d, enc2d, p, B, St, Ss, D, H, dff):
    kernel = _decoder_layer_kernel(B, St, Ss, D, H, dff)
    arrays = (x2d, enc2d,
              p["self_wqkv"], p["self_bqkv"], p["self_wo"], p["self_bo"],
              p["ln1_g"], p["ln1_b"],
              p["cross_wq"], p["cross_bq"], p["cross_wkv"], p["cross_bkv"],
              p["cross_wo"], p["cross_bo"], p["ln2_g"], p["ln2_b"],
              p["w1"], p["b1"], p["w2"], p["b2"], p["ln3_g"], p["ln3_b"])
    return _call_fused(kernel, (B * St, D), arrays)


def output_projection(y2d, w_pad, b_pad):
    M = y2d.shape[0]
    Npad = w_pad.shape[1]
    return _call_fused(_out_proj_kernel, (M, Npad), (y2d, w_pad, b_pad))


# ------------------------------ model forward --------------------------------

def positional_encoding(max_len, d_model):
    position = jnp.arange(max_len, dtype=jnp.float32)[:, None]
    div_term = jnp.exp(jnp.arange(0, d_model, 2, dtype=jnp.float32)
                       * (-math.log(10000.0) / d_model))
    pe = jnp.zeros((max_len, d_model), dtype=jnp.float32)
    pe = pe.at[:, 0::2].set(jnp.sin(position * div_term))
    pe = pe.at[:, 1::2].set(jnp.cos(position * div_term))
    return pe


def transformer_forward(src, tgt, params, d_model, num_heads, d_ff, tgt_vocab):
    B, Ss = src.shape
    _, St = tgt.shape
    pe = params["pe"]

    # Embedding + positional encoding kept as XLA glue (tiny gather).
    x = jnp.take(params["src_emb"], src, axis=0) + pe[None, :Ss]
    x2d = x.reshape(B * Ss, d_model)
    for lp in params["enc_layers"]:
        x2d = encoder_layer(x2d, lp, B, Ss, d_model, num_heads, d_ff)
    enc2d = x2d

    y = jnp.take(params["tgt_emb"], tgt, axis=0) + pe[None, :St]
    y2d = y.reshape(B * St, d_model)
    for lp in params["dec_layers"]:
        y2d = decoder_layer(y2d, enc2d, lp, B, St, Ss, d_model, num_heads, d_ff)

    logits_pad = output_projection(y2d, params["out_w"], params["out_b"])
    return logits_pad[:, :tgt_vocab].reshape(B, St, tgt_vocab)


# ------------------------------ parameter init -------------------------------

def _init_linear(key, fan_in, fan_out):
    k1, k2 = jax.random.split(key)
    bound = 1.0 / math.sqrt(fan_in)
    w = jax.random.uniform(k1, (fan_in, fan_out), jnp.float32, -bound, bound)
    b = jax.random.uniform(k2, (fan_out,), jnp.float32, -bound, bound)
    return w, b


def _init_mha_self(key, D):
    kq, kk, kv, ko = jax.random.split(key, 4)
    wq, bq = _init_linear(kq, D, D)
    wk, bk = _init_linear(kk, D, D)
    wv, bv = _init_linear(kv, D, D)
    wo, bo = _init_linear(ko, D, D)
    return {
        "wqkv": jnp.concatenate([wq, wk, wv], axis=1).astype(jnp.bfloat16),
        "bqkv": jnp.concatenate([bq, bk, bv]).reshape(1, 3 * D),
        "wo": wo.astype(jnp.bfloat16),
        "bo": bo.reshape(1, D),
    }


def _init_mha_cross(key, D):
    kq, kk, kv, ko = jax.random.split(key, 4)
    wq, bq = _init_linear(kq, D, D)
    wk, bk = _init_linear(kk, D, D)
    wv, bv = _init_linear(kv, D, D)
    wo, bo = _init_linear(ko, D, D)
    return {
        "wq": wq.astype(jnp.bfloat16), "bq": bq.reshape(1, D),
        "wkv": jnp.concatenate([wk, wv], axis=1).astype(jnp.bfloat16),
        "bkv": jnp.concatenate([bk, bv]).reshape(1, 2 * D),
        "wo": wo.astype(jnp.bfloat16), "bo": bo.reshape(1, D),
    }


def _init_ffn(key, D, dff):
    k1, k2 = jax.random.split(key)
    w1, b1 = _init_linear(k1, D, dff)
    w2, b2 = _init_linear(k2, dff, D)
    return {"w1": w1.astype(jnp.bfloat16), "b1": b1.reshape(1, dff),
            "w2": w2.astype(jnp.bfloat16), "b2": b2.reshape(1, D)}


def _init_enc_layer(key, D, dff):
    k1, k2 = jax.random.split(key)
    mha = _init_mha_self(k1, D)
    p = {"wqkv": mha["wqkv"], "bqkv": mha["bqkv"],
         "wo": mha["wo"], "bo": mha["bo"]}
    p.update(_init_ffn(k2, D, dff))
    ones = jnp.ones((1, D), jnp.float32)
    zeros = jnp.zeros((1, D), jnp.float32)
    p.update({"ln1_g": ones, "ln1_b": zeros, "ln2_g": ones, "ln2_b": zeros})
    return p


def _init_dec_layer(key, D, dff):
    k1, k2, k3 = jax.random.split(key, 3)
    sa = _init_mha_self(k1, D)
    ca = _init_mha_cross(k2, D)
    p = {"self_wqkv": sa["wqkv"], "self_bqkv": sa["bqkv"],
         "self_wo": sa["wo"], "self_bo": sa["bo"],
         "cross_wq": ca["wq"], "cross_bq": ca["bq"],
         "cross_wkv": ca["wkv"], "cross_bkv": ca["bkv"],
         "cross_wo": ca["wo"], "cross_bo": ca["bo"]}
    p.update(_init_ffn(k3, D, dff))
    ones = jnp.ones((1, D), jnp.float32)
    zeros = jnp.zeros((1, D), jnp.float32)
    p.update({"ln1_g": ones, "ln1_b": zeros,
              "ln2_g": ones, "ln2_b": zeros,
              "ln3_g": ones, "ln3_b": zeros})
    return p


def init_transformer(key, src_vocab, tgt_vocab, d_model, num_heads,
                     num_layers, d_ff, max_len):
    keys = jax.random.split(key, 3 + 2 * num_layers)
    params = {
        "src_emb": jax.random.normal(keys[0], (src_vocab, d_model), jnp.float32),
        "tgt_emb": jax.random.normal(keys[1], (tgt_vocab, d_model), jnp.float32),
        "pe": positional_encoding(max_len, d_model),
        "enc_layers": [_init_enc_layer(keys[2 + i], d_model, d_ff)
                       for i in range(num_layers)],
        "dec_layers": [_init_dec_layer(keys[2 + num_layers + i], d_model, d_ff)
                       for i in range(num_layers)],
    }
    ow, ob = _init_linear(keys[-1], d_model, tgt_vocab)
    # Pad the vocab projection to a lane-dense width (multiple of 128).
    vpad = pl.cdiv(tgt_vocab, 128) * 128
    ow_pad = jnp.zeros((d_model, vpad), jnp.float32).at[:, :tgt_vocab].set(ow)
    ob_pad = jnp.zeros((1, vpad), jnp.float32).at[0, :tgt_vocab].set(ob)
    params["out_w"] = ow_pad.astype(jnp.bfloat16)
    params["out_b"] = ob_pad
    return params


# ---------------------------------- main -------------------------------------

if __name__ == "__main__":
    SRC_VOCAB, TGT_VOCAB = 50, 60
    D_MODEL, NUM_HEADS, NUM_LAYERS, D_FF, MAX_LEN = 32, 4, 2, 64, 64
    B, S_SRC, S_TGT = 2, 10, 8

    root = jax.random.PRNGKey(0)
    k_params, k_src, k_tgt = jax.random.split(root, 3)

    params = init_transformer(k_params, SRC_VOCAB, TGT_VOCAB, D_MODEL,
                              NUM_HEADS, NUM_LAYERS, D_FF, MAX_LEN)

    src = jax.random.randint(k_src, (B, S_SRC), 0, SRC_VOCAB, dtype=jnp.int32)
    tgt = jax.random.randint(k_tgt, (B, S_TGT), 0, TGT_VOCAB, dtype=jnp.int32)

    def _fwd(src_tok, tgt_tok, p):
        return transformer_forward(src_tok, tgt_tok, p,
                                   D_MODEL, NUM_HEADS, D_FF, TGT_VOCAB)

    fwd = jax.jit(_fwd)
    logits = fwd(src, tgt, params)
    jax.block_until_ready(logits)
    assert logits.shape == (B, S_TGT, TGT_VOCAB)
    print("KERNEL_OK")
</pallas_src>

<mosaic_0001>
module attributes {stable_mosaic.version = 11 : i64} {
  func.func @kernel(%arg0: i32, %arg1: memref<20x32xf32, #tpu.memory_space<vmem>>, %arg2: memref<32x96xbf16, #tpu.memory_space<vmem>>, %arg3: memref<1x96xf32, #tpu.memory_space<vmem>>, %arg4: memref<32x32xbf16, #tpu.memory_space<vmem>>, %arg5: memref<1x32xf32, #tpu.memory_space<vmem>>, %arg6: memref<1x32xf32, #tpu.memory_space<vmem>>, %arg7: memref<1x32xf32, #tpu.memory_space<vmem>>, %arg8: memref<32x64xbf16, #tpu.memory_space<vmem>>, %arg9: memref<1x64xf32, #tpu.memory_space<vmem>>, %arg10: memref<64x32xbf16, #tpu.memory_space<vmem>>, %arg11: memref<1x32xf32, #tpu.memory_space<vmem>>, %arg12: memref<1x32xf32, #tpu.memory_space<vmem>>, %arg13: memref<1x32xf32, #tpu.memory_space<vmem>>, %arg14: memref<20x32xf32, #tpu.memory_space<vmem>>) attributes {dimension_semantics = [#tpu.dimension_semantics<arbitrary>], iteration_bounds = array<i64: 1>, scalar_prefetch = 0 : i64, scratch_operands = 0 : i64, tpu.core_type = #tpu.core_type<tc>, window_params = [{pipeline_mode = #tpu.pipeline_mode<synchronous>, transform_indices = @transform_0, window_bounds = array<i64: 20, 32>}, {pipeline_mode = #tpu.pipeline_mode<synchronous>, transform_indices = @transform_1, window_bounds = array<i64: 32, 96>}, {pipeline_mode = #tpu.pipeline_mode<synchronous>, transform_indices = @transform_2, window_bounds = array<i64: 1, 96>}, {pipeline_mode = #tpu.pipeline_mode<synchronous>, transform_indices = @transform_3, window_bounds = array<i64: 32, 32>}, {pipeline_mode = #tpu.pipeline_mode<synchronous>, transform_indices = @transform_4, window_bounds = array<i64: 1, 32>}, {pipeline_mode = #tpu.pipeline_mode<synchronous>, transform_indices = @transform_5, window_bounds = array<i64: 1, 32>}, {pipeline_mode = #tpu.pipeline_mode<synchronous>, transform_indices = @transform_6, window_bounds = array<i64: 1, 32>}, {pipeline_mode = #tpu.pipeline_mode<synchronous>, transform_indices = @transform_7, window_bounds = array<i64: 32, 64>}, {pipeline_mode = #tpu.pipeline_mode<synchronous>, transform_indices = @transform_8, window_bounds = array<i64: 1, 64>}, {pipeline_mode = #tpu.pipeline_mode<synchronous>, transform_indices = @transform_9, window_bounds = array<i64: 64, 32>}, {pipeline_mode = #tpu.pipeline_mode<synchronous>, transform_indices = @transform_10, window_bounds = array<i64: 1, 32>}, {pipeline_mode = #tpu.pipeline_mode<synchronous>, transform_indices = @transform_11, window_bounds = array<i64: 1, 32>}, {pipeline_mode = #tpu.pipeline_mode<synchronous>, transform_indices = @transform_12, window_bounds = array<i64: 1, 32>}, {pipeline_mode = #tpu.pipeline_mode<synchronous>, transform_indices = @transform_13, window_bounds = array<i64: 20, 32>}]} {
    %c0 = arith.constant 0 : index
    %c0_0 = arith.constant 0 : index
    %0 = vector.load %arg1[%c0, %c0_0] : memref<20x32xf32, #tpu.memory_space<vmem>>, vector<20x32xf32>
    %c0_1 = arith.constant 0 : index
    %c0_2 = arith.constant 0 : index
    %1 = vector.load %arg2[%c0_1, %c0_2] : memref<32x96xbf16, #tpu.memory_space<vmem>>, vector<32x96xbf16>
    %c0_3 = arith.constant 0 : index
    %c0_4 = arith.constant 0 : index
    %2 = vector.load %arg3[%c0_3, %c0_4] : memref<1x96xf32, #tpu.memory_space<vmem>>, vector<1x96xf32>
    %3 = arith.truncf %0 : vector<20x32xf32> to vector<20x32xbf16>
    %cst = arith.constant dense<0.000000e+00> : vector<20x96xf32>
    %4 = tpu.matmul %3, %1, %cst {dimension_numbers = #tpu.dot_dimension_numbers<[1], [0], [0], [1], [0, 0, 1, 1], [], []>} : vector<20x32xbf16>, vector<32x96xbf16>, vector<20x96xf32> -> vector<20x96xf32>
    %5 = vector.broadcast %2 : vector<1x96xf32> to vector<20x96xf32>
    %6 = arith.addf %4, %5 : vector<20x96xf32>
    %7 = vector.extract_strided_slice %6 {offsets = [0, 0], sizes = [20, 32], strides = [1, 1]} : vector<20x96xf32> to vector<20x32xf32>
    %8 = vector.extract_strided_slice %6 {offsets = [0, 32], sizes = [20, 32], strides = [1, 1]} : vector<20x96xf32> to vector<20x32xf32>
    %9 = vector.extract_strided_slice %6 {offsets = [0, 64], sizes = [20, 32], strides = [1, 1]} : vector<20x96xf32> to vector<20x32xf32>
    %10 = vector.extract_strided_slice %7 {offsets = [0, 0], sizes = [10, 32], strides = [1, 1]} : vector<20x32xf32> to vector<10x32xf32>
    %11 = vector.extract_strided_slice %8 {offsets = [0, 0], sizes = [10, 32], strides = [1, 1]} : vector<20x32xf32> to vector<10x32xf32>
    %12 = vector.extract_strided_slice %9 {offsets = [0, 0], sizes = [10, 32], strides = [1, 1]} : vector<20x32xf32> to vector<10x32xf32>
    %13 = vector.extract_strided_slice %10 {offsets = [0, 0], sizes = [10, 8], strides = [1, 1]} : vector<10x32xf32> to vector<10x8xf32>
    %14 = arith.truncf %13 : vector<10x8xf32> to vector<10x8xbf16>
    %15 = vector.extract_strided_slice %11 {offsets = [0, 0], sizes = [10, 8], strides = [1, 1]} : vector<10x32xf32> to vector<10x8xf32>
    %16 = arith.truncf %15 : vector<10x8xf32> to vector<10x8xbf16>
    %17 = vector.extract_strided_slice %12 {offsets = [0, 0], sizes = [10, 8], strides = [1, 1]} : vector<10x32xf32> to vector<10x8xf32>
    %18 = arith.truncf %17 : vector<10x8xf32> to vector<10x8xbf16>
    %cst_5 = arith.constant dense<0.000000e+00> : vector<10x10xf32>
    %19 = tpu.matmul %14, %16, %cst_5 {dimension_numbers = #tpu.dot_dimension_numbers<[1], [1], [0], [0], [0, 0, 1, 0], [], []>} : vector<10x8xbf16>, vector<10x8xbf16>, vector<10x10xf32> -> vector<10x10xf32>
    %cst_6 = arith.constant 0.353553385 : f32
    %20 = vector.broadcast %cst_6 : f32 to vector<10x10xf32>
    %21 = arith.mulf %19, %20 : vector<10x10xf32>
    %cst_7 = arith.constant dense<0xFF800000> : vector<10xf32>
    %22 = vector.multi_reduction <maximumf>, %21, %cst_7 [1] : vector<10x10xf32> to vector<10xf32>
    %23 = vector.shape_cast %22 : vector<10xf32> to vector<10x1xf32>
    %24 = vector.broadcast %23 : vector<10x1xf32> to vector<10x10xf32>
    %25 = arith.subf %21, %24 : vector<10x10xf32>
    %26 = math.exp %25 : vector<10x10xf32>
    %cst_8 = arith.constant dense<0.000000e+00> : vector<10xf32>
    %27 = vector.multi_reduction <add>, %26, %cst_8 [1] : vector<10x10xf32> to vector<10xf32>
    %28 = vector.shape_cast %27 : vector<10xf32> to vector<10x1xf32>
    %29 = tpu.reciprocal %28 {approx = true} : vector<10x1xf32> -> vector<10x1xf32>
    %30 = vector.broadcast %29 : vector<10x1xf32> to vector<10x10xf32>
    %31 = arith.mulf %26, %30 : vector<10x10xf32>
    %32 = arith.truncf %31 : vector<10x10xf32> to vector<10x10xbf16>
    %cst_9 = arith.constant dense<0.000000e+00> : vector<10x8xf32>
    %33 = tpu.matmul %32, %18, %cst_9 {dimension_numbers = #tpu.dot_dimension_numbers<[1], [0], [0], [1], [0, 0, 1, 1], [], []>} : vector<10x10xbf16>, vector<10x8xbf16>, vector<10x8xf32> -> vector<10x8xf32>
    %34 = vector.extract_strided_slice %10 {offsets = [0, 8], sizes = [10, 8], strides = [1, 1]} : vector<10x32xf32> to vector<10x8xf32>
    %35 = arith.truncf %34 : vector<10x8xf32> to vector<10x8xbf16>
    %36 = vector.extract_strided_slice %11 {offsets = [0, 8], sizes = [10, 8], strides = [1, 1]} : vector<10x32xf32> to vector<10x8xf32>
    %37 = arith.truncf %36 : vector<10x8xf32> to vector<10x8xbf16>
    %38 = vector.extract_strided_slice %12 {offsets = [0, 8], sizes = [10, 8], strides = [1, 1]} : vector<10x32xf32> to vector<10x8xf32>
    %39 = arith.truncf %38 : vector<10x8xf32> to vector<10x8xbf16>
    %cst_10 = arith.constant dense<0.000000e+00> : vector<10x10xf32>
    %40 = tpu.matmul %35, %37, %cst_10 {dimension_numbers = #tpu.dot_dimension_numbers<[1], [1], [0], [0], [0, 0, 1, 0], [], []>} : vector<10x8xbf16>, vector<10x8xbf16>, vector<10x10xf32> -> vector<10x10xf32>
    %cst_11 = arith.constant 0.353553385 : f32
    %41 = vector.broadcast %cst_11 : f32 to vector<10x10xf32>
    %42 = arith.mulf %40, %41 : vector<10x10xf32>
    %cst_12 = arith.constant dense<0xFF800000> : vector<10xf32>
    %43 = vector.multi_reduction <maximumf>, %42, %cst_12 [1] : vector<10x10xf32> to vector<10xf32>
    %44 = vector.shape_cast %43 : vector<10xf32> to vector<10x1xf32>
    %45 = vector.broadcast %44 : vector<10x1xf32> to vector<10x10xf32>
    %46 = arith.subf %42, %45 : vector<10x10xf32>
    %47 = math.exp %46 : vector<10x10xf32>
    %cst_13 = arith.constant dense<0.000000e+00> : vector<10xf32>
    %48 = vector.multi_reduction <add>, %47, %cst_13 [1] : vector<10x10xf32> to vector<10xf32>
    %49 = vector.shape_cast %48 : vector<10xf32> to vector<10x1xf32>
    %50 = tpu.reciprocal %49 {approx = true} : vector<10x1xf32> -> vector<10x1xf32>
    %51 = vector.broadcast %50 : vector<10x1xf32> to vector<10x10xf32>
    %52 = arith.mulf %47, %51 : vector<10x10xf32>
    %53 = arith.truncf %52 : vector<10x10xf32> to vector<10x10xbf16>
    %cst_14 = arith.constant dense<0.000000e+00> : vector<10x8xf32>
    %54 = tpu.matmul %53, %39, %cst_14 {dimension_numbers = #tpu.dot_dimension_numbers<[1], [0], [0], [1], [0, 0, 1, 1], [], []>} : vector<10x10xbf16>, vector<10x8xbf16>, vector<10x8xf32> -> vector<10x8xf32>
    %55 = vector.extract_strided_slice %10 {offsets = [0, 16], sizes = [10, 8], strides = [1, 1]} : vector<10x32xf32> to vector<10x8xf32>
    %56 = arith.truncf %55 : vector<10x8xf32> to vector<10x8xbf16>
    %57 = vector.extract_strided_slice %11 {offsets = [0, 16], sizes = [10, 8], strides = [1, 1]} : vector<10x32xf32> to vector<10x8xf32>
    %58 = arith.truncf %57 : vector<10x8xf32> to vector<10x8xbf16>
    %59 = vector.extract_strided_slice %12 {offsets = [0, 16], sizes = [10, 8], strides = [1, 1]} : vector<10x32xf32> to vector<10x8xf32>
    %60 = arith.truncf %59 : vector<10x8xf32> to vector<10x8xbf16>
    %cst_15 = arith.constant dense<0.000000e+00> : vector<10x10xf32>
    %61 = tpu.matmul %56, %58, %cst_15 {dimension_numbers = #tpu.dot_dimension_numbers<[1], [1], [0], [0], [0, 0, 1, 0], [], []>} : vector<10x8xbf16>, vector<10x8xbf16>, vector<10x10xf32> -> vector<10x10xf32>
    %cst_16 = arith.constant 0.353553385 : f32
    %62 = vector.broadcast %cst_16 : f32 to vector<10x10xf32>
    %63 = arith.mulf %61, %62 : vector<10x10xf32>
    %cst_17 = arith.constant dense<0xFF800000> : vector<10xf32>
    %64 = vector.multi_reduction <maximumf>, %63, %cst_17 [1] : vector<10x10xf32> to vector<10xf32>
    %65 = vector.shape_cast %64 : vector<10xf32> to vector<10x1xf32>
    %66 = vector.broadcast %65 : vector<10x1xf32> to vector<10x10xf32>
    %67 = arith.subf %63, %66 : vector<10x10xf32>
    %68 = math.exp %67 : vector<10x10xf32>
    %cst_18 = arith.constant dense<0.000000e+00> : vector<10xf32>
    %69 = vector.multi_reduction <add>, %68, %cst_18 [1] : vector<10x10xf32> to vector<10xf32>
    %70 = vector.shape_cast %69 : vector<10xf32> to vector<10x1xf32>
    %71 = tpu.reciprocal %70 {approx = true} : vector<10x1xf32> -> vector<10x1xf32>
    %72 = vector.broadcast %71 : vector<10x1xf32> to vector<10x10xf32>
    %73 = arith.mulf %68, %72 : vector<10x10xf32>
    %74 = arith.truncf %73 : vector<10x10xf32> to vector<10x10xbf16>
    %cst_19 = arith.constant dense<0.000000e+00> : vector<10x8xf32>
    %75 = tpu.matmul %74, %60, %cst_19 {dimension_numbers = #tpu.dot_dimension_numbers<[1], [0], [0], [1], [0, 0, 1, 1], [], []>} : vector<10x10xbf16>, vector<10x8xbf16>, vector<10x8xf32> -> vector<10x8xf32>
    %76 = vector.extract_strided_slice %10 {offsets = [0, 24], sizes = [10, 8], strides = [1, 1]} : vector<10x32xf32> to vector<10x8xf32>
    %77 = arith.truncf %76 : vector<10x8xf32> to vector<10x8xbf16>
    %78 = vector.extract_strided_slice %11 {offsets = [0, 24], sizes = [10, 8], strides = [1, 1]} : vector<10x32xf32> to vector<10x8xf32>
    %79 = arith.truncf %78 : vector<10x8xf32> to vector<10x8xbf16>
    %80 = vector.extract_strided_slice %12 {offsets = [0, 24], sizes = [10, 8], strides = [1, 1]} : vector<10x32xf32> to vector<10x8xf32>
    %81 = arith.truncf %80 : vector<10x8xf32> to vector<10x8xbf16>
    %cst_20 = arith.constant dense<0.000000e+00> : vector<10x10xf32>
    %82 = tpu.matmul %77, %79, %cst_20 {dimension_numbers = #tpu.dot_dimension_numbers<[1], [1], [0], [0], [0, 0, 1, 0], [], []>} : vector<10x8xbf16>, vector<10x8xbf16>, vector<10x10xf32> -> vector<10x10xf32>
    %cst_21 = arith.constant 0.353553385 : f32
    %83 = vector.broadcast %cst_21 : f32 to vector<10x10xf32>
    %84 = arith.mulf %82, %83 : vector<10x10xf32>
    %cst_22 = arith.constant dense<0xFF800000> : vector<10xf32>
    %85 = vector.multi_reduction <maximumf>, %84, %cst_22 [1] : vector<10x10xf32> to vector<10xf32>
    %86 = vector.shape_cast %85 : vector<10xf32> to vector<10x1xf32>
    %87 = vector.broadcast %86 : vector<10x1xf32> to vector<10x10xf32>
    %88 = arith.subf %84, %87 : vector<10x10xf32>
    %89 = math.exp %88 : vector<10x10xf32>
    %cst_23 = arith.constant dense<0.000000e+00> : vector<10xf32>
    %90 = vector.multi_reduction <add>, %89, %cst_23 [1] : vector<10x10xf32> to vector<10xf32>
    %91 = vector.shape_cast %90 : vector<10xf32> to vector<10x1xf32>
    %92 = tpu.reciprocal %91 {approx = true} : vector<10x1xf32> -> vector<10x1xf32>
    %93 = vector.broadcast %92 : vector<10x1xf32> to vector<10x10xf32>
    %94 = arith.mulf %89, %93 : vector<10x10xf32>
    %95 = arith.truncf %94 : vector<10x10xf32> to vector<10x10xbf16>
    %cst_24 = arith.constant dense<0.000000e+00> : vector<10x8xf32>
    %96 = tpu.matmul %95, %81, %cst_24 {dimension_numbers = #tpu.dot_dimension_numbers<[1], [0], [0], [1], [0, 0, 1, 1], [], []>} : vector<10x10xbf16>, vector<10x8xbf16>, vector<10x8xf32> -> vector<10x8xf32>
    %97 = tpu.concatenate %33, %54, %75, %96 in 1 : vector<10x8xf32>, vector<10x8xf32>, vector<10x8xf32>, vector<10x8xf32> -> vector<10x32xf32>
    %98 = vector.extract_strided_slice %7 {offsets = [10, 0], sizes = [10, 32], strides = [1, 1]} : vector<20x32xf32> to vector<10x32xf32>
    %99 = vector.extract_strided_slice %8 {offsets = [10, 0], sizes = [10, 32], strides = [1, 1]} : vector<20x32xf32> to vector<10x32xf32>
    %100 = vector.extract_strided_slice %9 {offsets = [10, 0], sizes = [10, 32], strides = [1, 1]} : vector<20x32xf32> to vector<10x32xf32>
    %101 = vector.extract_strided_slice %98 {offsets = [0, 0], sizes = [10, 8], strides = [1, 1]} : vector<10x32xf32> to vector<10x8xf32>
    %102 = arith.truncf %101 : vector<10x8xf32> to vector<10x8xbf16>
    %103 = vector.extract_strided_slice %99 {offsets = [0, 0], sizes = [10, 8], strides = [1, 1]} : vector<10x32xf32> to vector<10x8xf32>
    %104 = arith.truncf %103 : vector<10x8xf32> to vector<10x8xbf16>
    %105 = vector.extract_strided_slice %100 {offsets = [0, 0], sizes = [10, 8], strides = [1, 1]} : vector<10x32xf32> to vector<10x8xf32>
    %106 = arith.truncf %105 : vector<10x8xf32> to vector<10x8xbf16>
    %cst_25 = arith.constant dense<0.000000e+00> : vector<10x10xf32>
    %107 = tpu.matmul %102, %104, %cst_25 {dimension_numbers = #tpu.dot_dimension_numbers<[1], [1], [0], [0], [0, 0, 1, 0], [], []>} : vector<10x8xbf16>, vector<10x8xbf16>, vector<10x10xf32> -> vector<10x10xf32>
    %cst_26 = arith.constant 0.353553385 : f32
    %108 = vector.broadcast %cst_26 : f32 to vector<10x10xf32>
    %109 = arith.mulf %107, %108 : vector<10x10xf32>
    %cst_27 = arith.constant dense<0xFF800000> : vector<10xf32>
    %110 = vector.multi_reduction <maximumf>, %109, %cst_27 [1] : vector<10x10xf32> to vector<10xf32>
    %111 = vector.shape_cast %110 : vector<10xf32> to vector<10x1xf32>
    %112 = vector.broadcast %111 : vector<10x1xf32> to vector<10x10xf32>
    %113 = arith.subf %109, %112 : vector<10x10xf32>
    %114 = math.exp %113 : vector<10x10xf32>
    %cst_28 = arith.constant dense<0.000000e+00> : vector<10xf32>
    %115 = vector.multi_reduction <add>, %114, %cst_28 [1] : vector<10x10xf32> to vector<10xf32>
    %116 = vector.shape_cast %115 : vector<10xf32> to vector<10x1xf32>
    %117 = tpu.reciprocal %116 {approx = true} : vector<10x1xf32> -> vector<10x1xf32>
    %118 = vector.broadcast %117 : vector<10x1xf32> to vector<10x10xf32>
    %119 = arith.mulf %114, %118 : vector<10x10xf32>
    %120 = arith.truncf %119 : vector<10x10xf32> to vector<10x10xbf16>
    %cst_29 = arith.constant dense<0.000000e+00> : vector<10x8xf32>
    %121 = tpu.matmul %120, %106, %cst_29 {dimension_numbers = #tpu.dot_dimension_numbers<[1], [0], [0], [1], [0, 0, 1, 1], [], []>} : vector<10x10xbf16>, vector<10x8xbf16>, vector<10x8xf32> -> vector<10x8xf32>
    %122 = vector.extract_strided_slice %98 {offsets = [0, 8], sizes = [10, 8], strides = [1, 1]} : vector<10x32xf32> to vector<10x8xf32>
    %123 = arith.truncf %122 : vector<10x8xf32> to vector<10x8xbf16>
    %124 = vector.extract_strided_slice %99 {offsets = [0, 8], sizes = [10, 8], strides = [1, 1]} : vector<10x32xf32> to vector<10x8xf32>
    %125 = arith.truncf %124 : vector<10x8xf32> to vector<10x8xbf16>
    %126 = vector.extract_strided_slice %100 {offsets = [0, 8], sizes = [10, 8], strides = [1, 1]} : vector<10x32xf32> to vector<10x8xf32>
    %127 = arith.truncf %126 : vector<10x8xf32> to vector<10x8xbf16>
    %cst_30 = arith.constant dense<0.000000e+00> : vector<10x10xf32>
    %128 = tpu.matmul %123, %125, %cst_30 {dimension_numbers = #tpu.dot_dimension_numbers<[1], [1], [0], [0], [0, 0, 1, 0], [], []>} : vector<10x8xbf16>, vector<10x8xbf16>, vector<10x10xf32> -> vector<10x10xf32>
    %cst_31 = arith.constant 0.353553385 : f32
    %129 = vector.broadcast %cst_31 : f32 to vector<10x10xf32>
    %130 = arith.mulf %128, %129 : vector<10x10xf32>
    %cst_32 = arith.constant dense<0xFF800000> : vector<10xf32>
    %131 = vector.multi_reduction <maximumf>, %130, %cst_32 [1] : vector<10x10xf32> to vector<10xf32>
    %132 = vector.shape_cast %131 : vector<10xf32> to vector<10x1xf32>
    %133 = vector.broadcast %132 : vector<10x1xf32> to vector<10x10xf32>
    %134 = arith.subf %130, %133 : vector<10x10xf32>
    %135 = math.exp %134 : vector<10x10xf32>
    %cst_33 = arith.constant dense<0.000000e+00> : vector<10xf32>
    %136 = vector.multi_reduction <add>, %135, %cst_33 [1] : vector<10x10xf32> to vector<10xf32>
    %137 = vector.shape_cast %136 : vector<10xf32> to vector<10x1xf32>
    %138 = tpu.reciprocal %137 {approx = true} : vector<10x1xf32> -> vector<10x1xf32>
    %139 = vector.broadcast %138 : vector<10x1xf32> to vector<10x10xf32>
    %140 = arith.mulf %135, %139 : vector<10x10xf32>
    %141 = arith.truncf %140 : vector<10x10xf32> to vector<10x10xbf16>
    %cst_34 = arith.constant dense<0.000000e+00> : vector<10x8xf32>
    %142 = tpu.matmul %141, %127, %cst_34 {dimension_numbers = #tpu.dot_dimension_numbers<[1], [0], [0], [1], [0, 0, 1, 1], [], []>} : vector<10x10xbf16>, vector<10x8xbf16>, vector<10x8xf32> -> vector<10x8xf32>
    %143 = vector.extract_strided_slice %98 {offsets = [0, 16], sizes = [10, 8], strides = [1, 1]} : vector<10x32xf32> to vector<10x8xf32>
    %144 = arith.truncf %143 : vector<10x8xf32> to vector<10x8xbf16>
    %145 = vector.extract_strided_slice %99 {offsets = [0, 16], sizes = [10, 8], strides = [1, 1]} : vector<10x32xf32> to vector<10x8xf32>
    %146 = arith.truncf %145 : vector<10x8xf32> to vector<10x8xbf16>
    %147 = vector.extract_strided_slice %100 {offsets = [0, 16], sizes = [10, 8], strides = [1, 1]} : vector<10x32xf32> to vector<10x8xf32>
    %148 = arith.truncf %147 : vector<10x8xf32> to vector<10x8xbf16>
    %cst_35 = arith.constant dense<0.000000e+00> : vector<10x10xf32>
    %149 = tpu.matmul %144, %146, %cst_35 {dimension_numbers = #tpu.dot_dimension_numbers<[1], [1], [0], [0], [0, 0, 1, 0], [], []>} : vector<10x8xbf16>, vector<10x8xbf16>, vector<10x10xf32> -> vector<10x10xf32>
    %cst_36 = arith.constant 0.353553385 : f32
    %150 = vector.broadcast %cst_36 : f32 to vector<10x10xf32>
    %151 = arith.mulf %149, %150 : vector<10x10xf32>
    %cst_37 = arith.constant dense<0xFF800000> : vector<10xf32>
    %152 = vector.multi_reduction <maximumf>, %151, %cst_37 [1] : vector<10x10xf32> to vector<10xf32>
    %153 = vector.shape_cast %152 : vector<10xf32> to vector<10x1xf32>
    %154 = vector.broadcast %153 : vector<10x1xf32> to vector<10x10xf32>
    %155 = arith.subf %151, %154 : vector<10x10xf32>
    %156 = math.exp %155 : vector<10x10xf32>
    %cst_38 = arith.constant dense<0.000000e+00> : vector<10xf32>
    %157 = vector.multi_reduction <add>, %156, %cst_38 [1] : vector<10x10xf32> to vector<10xf32>
    %158 = vector.shape_cast %157 : vector<10xf32> to vector<10x1xf32>
    %159 = tpu.reciprocal %158 {approx = true} : vector<10x1xf32> -> vector<10x1xf32>
    %160 = vector.broadcast %159 : vector<10x1xf32> to vector<10x10xf32>
    %161 = arith.mulf %156, %160 : vector<10x10xf32>
    %162 = arith.truncf %161 : vector<10x10xf32> to vector<10x10xbf16>
    %cst_39 = arith.constant dense<0.000000e+00> : vector<10x8xf32>
    %163 = tpu.matmul %162, %148, %cst_39 {dimension_numbers = #tpu.dot_dimension_numbers<[1], [0], [0], [1], [0, 0, 1, 1], [], []>} : vector<10x10xbf16>, vector<10x8xbf16>, vector<10x8xf32> -> vector<10x8xf32>
    %164 = vector.extract_strided_slice %98 {offsets = [0, 24], sizes = [10, 8], strides = [1, 1]} : vector<10x32xf32> to vector<10x8xf32>
    %165 = arith.truncf %164 : vector<10x8xf32> to vector<10x8xbf16>
    %166 = vector.extract_strided_slice %99 {offsets = [0, 24], sizes = [10, 8], strides = [1, 1]} : vector<10x32xf32> to vector<10x8xf32>
    %167 = arith.truncf %166 : vector<10x8xf32> to vector<10x8xbf16>
    %168 = vector.extract_strided_slice %100 {offsets = [0, 24], sizes = [10, 8], strides = [1, 1]} : vector<10x32xf32> to vector<10x8xf32>
    %169 = arith.truncf %168 : vector<10x8xf32> to vector<10x8xbf16>
    %cst_40 = arith.constant dense<0.000000e+00> : vector<10x10xf32>
    %170 = tpu.matmul %165, %167, %cst_40 {dimension_numbers = #tpu.dot_dimension_numbers<[1], [1], [0], [0], [0, 0, 1, 0], [], []>} : vector<10x8xbf16>, vector<10x8xbf16>, vector<10x10xf32> -> vector<10x10xf32>
    %cst_41 = arith.constant 0.353553385 : f32
    %171 = vector.broadcast %cst_41 : f32 to vector<10x10xf32>
    %172 = arith.mulf %170, %171 : vector<10x10xf32>
    %cst_42 = arith.constant dense<0xFF800000> : vector<10xf32>
    %173 = vector.multi_reduction <maximumf>, %172, %cst_42 [1] : vector<10x10xf32> to vector<10xf32>
    %174 = vector.shape_cast %173 : vector<10xf32> to vector<10x1xf32>
    %175 = vector.broadcast %174 : vector<10x1xf32> to vector<10x10xf32>
    %176 = arith.subf %172, %175 : vector<10x10xf32>
    %177 = math.exp %176 : vector<10x10xf32>
    %cst_43 = arith.constant dense<0.000000e+00> : vector<10xf32>
    %178 = vector.multi_reduction <add>, %177, %cst_43 [1] : vector<10x10xf32> to vector<10xf32>
    %179 = vector.shape_cast %178 : vector<10xf32> to vector<10x1xf32>
    %180 = tpu.reciprocal %179 {approx = true} : vector<10x1xf32> -> vector<10x1xf32>
    %181 = vector.broadcast %180 : vector<10x1xf32> to vector<10x10xf32>
    %182 = arith.mulf %177, %181 : vector<10x10xf32>
    %183 = arith.truncf %182 : vector<10x10xf32> to vector<10x10xbf16>
    %cst_44 = arith.constant dense<0.000000e+00> : vector<10x8xf32>
    %184 = tpu.matmul %183, %169, %cst_44 {dimension_numbers = #tpu.dot_dimension_numbers<[1], [0], [0], [1], [0, 0, 1, 1], [], []>} : vector<10x10xbf16>, vector<10x8xbf16>, vector<10x8xf32> -> vector<10x8xf32>
    %185 = tpu.concatenate %121, %142, %163, %184 in 1 : vector<10x8xf32>, vector<10x8xf32>, vector<10x8xf32>, vector<10x8xf32> -> vector<10x32xf32>
    %186 = tpu.concatenate %97, %185 in 0 : vector<10x32xf32>, vector<10x32xf32> -> vector<20x32xf32>
    %c0_45 = arith.constant 0 : index
    %c0_46 = arith.constant 0 : index
    %187 = vector.load %arg4[%c0_45, %c0_46] : memref<32x32xbf16, #tpu.memory_space<vmem>>, vector<32x32xbf16>
    %c0_47 = arith.constant 0 : index
    %c0_48 = arith.constant 0 : index
    %188 = vector.load %arg5[%c0_47, %c0_48] : memref<1x32xf32, #tpu.memory_space<vmem>>, vector<1x32xf32>
    %189 = arith.truncf %186 : vector<20x32xf32> to vector<20x32xbf16>
    %cst_49 = arith.constant dense<0.000000e+00> : vector<20x32xf32>
    %190 = tpu.matmul %189, %187, %cst_49 {dimension_numbers = #tpu.dot_dimension_numbers<[1], [0], [0], [1], [0, 0, 1, 1], [], []>} : vector<20x32xbf16>, vector<32x32xbf16>, vector<20x32xf32> -> vector<20x32xf32>
    %191 = vector.broadcast %188 : vector<1x32xf32> to vector<20x32xf32>
    %192 = arith.addf %190, %191 : vector<20x32xf32>
    %193 = arith.addf %0, %192 : vector<20x32xf32>
    %c0_50 = arith.constant 0 : index
    %c0_51 = arith.constant 0 : index
    %194 = vector.load %arg6[%c0_50, %c0_51] : memref<1x32xf32, #tpu.memory_space<vmem>>, vector<1x32xf32>
    %c0_52 = arith.constant 0 : index
    %c0_53 = arith.constant 0 : index
    %195 = vector.load %arg7[%c0_52, %c0_53] : memref<1x32xf32, #tpu.memory_space<vmem>>, vector<1x32xf32>
    %cst_54 = arith.constant dense<0.000000e+00> : vector<20xf32>
    %196 = vector.multi_reduction <add>, %193, %cst_54 [1] : vector<20x32xf32> to vector<20xf32>
    %197 = vector.shape_cast %196 : vector<20xf32> to vector<20x1xf32>
    %cst_55 = arith.constant 3.200000e+01 : f32
    %198 = vector.broadcast %cst_55 : f32 to vector<20x1xf32>
    %199 = arith.divf %197, %198 : vector<20x1xf32>
    %200 = vector.broadcast %199 : vector<20x1xf32> to vector<20x32xf32>
    %201 = arith.subf %193, %200 : vector<20x32xf32>
    %202 = arith.mulf %201, %201 : vector<20x32xf32>
    %cst_56 = arith.constant dense<0.000000e+00> : vector<20xf32>
    %203 = vector.multi_reduction <add>, %202, %cst_56 [1] : vector<20x32xf32> to vector<20xf32>
    %204 = vector.shape_cast %203 : vector<20xf32> to vector<20x1xf32>
    %cst_57 = arith.constant 3.200000e+01 : f32
    %205 = vector.broadcast %cst_57 : f32 to vector<20x1xf32>
    %206 = arith.divf %204, %205 : vector<20x1xf32>
    %207 = vector.broadcast %199 : vector<20x1xf32> to vector<20x32xf32>
    %208 = arith.subf %193, %207 : vector<20x32xf32>
    %cst_58 = arith.constant 9.99999974E-6 : f32
    %209 = vector.broadcast %cst_58 : f32 to vector<20x1xf32>
    %210 = arith.addf %206, %209 : vector<20x1xf32>
    %211 = math.rsqrt %210 : vector<20x1xf32>
    %212 = vector.broadcast %211 : vector<20x1xf32> to vector<20x32xf32>
    %213 = arith.mulf %208, %212 : vector<20x32xf32>
    %214 = vector.broadcast %194 : vector<1x32xf32> to vector<20x32xf32>
    %215 = arith.mulf %213, %214 : vector<20x32xf32>
    %216 = vector.broadcast %195 : vector<1x32xf32> to vector<20x32xf32>
    %217 = arith.addf %215, %216 : vector<20x32xf32>
    %c0_59 = arith.constant 0 : index
    %c0_60 = arith.constant 0 : index
    %218 = vector.load %arg8[%c0_59, %c0_60] : memref<32x64xbf16, #tpu.memory_space<vmem>>, vector<32x64xbf16>
    %c0_61 = arith.constant 0 : index
    %c0_62 = arith.constant 0 : index
    %219 = vector.load %arg9[%c0_61, %c0_62] : memref<1x64xf32, #tpu.memory_space<vmem>>, vector<1x64xf32>
    %220 = arith.truncf %217 : vector<20x32xf32> to vector<20x32xbf16>
    %cst_63 = arith.constant dense<0.000000e+00> : vector<20x64xf32>
    %221 = tpu.matmul %220, %218, %cst_63 {dimension_numbers = #tpu.dot_dimension_numbers<[1], [0], [0], [1], [0, 0, 1, 1], [], []>} : vector<20x32xbf16>, vector<32x64xbf16>, vector<20x64xf32> -> vector<20x64xf32>
    %222 = vector.broadcast %219 : vector<1x64xf32> to vector<20x64xf32>
    %223 = arith.addf %221, %222 : vector<20x64xf32>
    %cst_64 = arith.constant 0.000000e+00 : f32
    %224 = vector.broadcast %cst_64 : f32 to vector<20x64xf32>
    %225 = arith.maximumf %223, %224 : vector<20x64xf32>
    %c0_65 = arith.constant 0 : index
    %c0_66 = arith.constant 0 : index
    %226 = vector.load %arg10[%c0_65, %c0_66] : memref<64x32xbf16, #tpu.memory_space<vmem>>, vector<64x32xbf16>
    %c0_67 = arith.constant 0 : index
    %c0_68 = arith.constant 0 : index
    %227 = vector.load %arg11[%c0_67, %c0_68] : memref<1x32xf32, #tpu.memory_space<vmem>>, vector<1x32xf32>
    %228 = arith.truncf %225 : vector<20x64xf32> to vector<20x64xbf16>
    %cst_69 = arith.constant dense<0.000000e+00> : vector<20x32xf32>
    %229 = tpu.matmul %228, %226, %cst_69 {dimension_numbers = #tpu.dot_dimension_numbers<[1], [0], [0], [1], [0, 0, 1, 1], [], []>} : vector<20x64xbf16>, vector<64x32xbf16>, vector<20x32xf32> -> vector<20x32xf32>
    %230 = vector.broadcast %227 : vector<1x32xf32> to vector<20x32xf32>
    %231 = arith.addf %229, %230 : vector<20x32xf32>
    %232 = arith.addf %217, %231 : vector<20x32xf32>
    %c0_70 = arith.constant 0 : index
    %c0_71 = arith.constant 0 : index
    %233 = vector.load %arg12[%c0_70, %c0_71] : memref<1x32xf32, #tpu.memory_space<vmem>>, vector<1x32xf32>
    %c0_72 = arith.constant 0 : index
    %c0_73 = arith.constant 0 : index
    %234 = vector.load %arg13[%c0_72, %c0_73] : memref<1x32xf32, #tpu.memory_space<vmem>>, vector<1x32xf32>
    %cst_74 = arith.constant dense<0.000000e+00> : vector<20xf32>
    %235 = vector.multi_reduction <add>, %232, %cst_74 [1] : vector<20x32xf32> to vector<20xf32>
    %236 = vector.shape_cast %235 : vector<20xf32> to vector<20x1xf32>
    %cst_75 = arith.constant 3.200000e+01 : f32
    %237 = vector.broadcast %cst_75 : f32 to vector<20x1xf32>
    %238 = arith.divf %236, %237 : vector<20x1xf32>
    %239 = vector.broadcast %238 : vector<20x1xf32> to vector<20x32xf32>
    %240 = arith.subf %232, %239 : vector<20x32xf32>
    %241 = arith.mulf %240, %240 : vector<20x32xf32>
    %cst_76 = arith.constant dense<0.000000e+00> : vector<20xf32>
    %242 = vector.multi_reduction <add>, %241, %cst_76 [1] : vector<20x32xf32> to vector<20xf32>
    %243 = vector.shape_cast %242 : vector<20xf32> to vector<20x1xf32>
    %cst_77 = arith.constant 3.200000e+01 : f32
    %244 = vector.broadcast %cst_77 : f32 to vector<20x1xf32>
    %245 = arith.divf %243, %244 : vector<20x1xf32>
    %246 = vector.broadcast %238 : vector<20x1xf32> to vector<20x32xf32>
    %247 = arith.subf %232, %246 : vector<20x32xf32>
    %cst_78 = arith.constant 9.99999974E-6 : f32
    %248 = vector.broadcast %cst_78 : f32 to vector<20x1xf32>
    %249 = arith.addf %245, %248 : vector<20x1xf32>
    %250 = math.rsqrt %249 : vector<20x1xf32>
    %251 = vector.broadcast %250 : vector<20x1xf32> to vector<20x32xf32>
    %252 = arith.mulf %247, %251 : vector<20x32xf32>
    %253 = vector.broadcast %233 : vector<1x32xf32> to vector<20x32xf32>
    %254 = arith.mulf %252, %253 : vector<20x32xf32>
    %255 = vector.broadcast %234 : vector<1x32xf32> to vector<20x32xf32>
    %256 = arith.addf %254, %255 : vector<20x32xf32>
    %c0_79 = arith.constant 0 : index
    %c0_80 = arith.constant 0 : index
    %257 = vector.load %arg14[%c0_79, %c0_80] : memref<20x32xf32, #tpu.memory_space<vmem>>, vector<20x32xf32>
    tpu.vector_store %arg14[%c0_79, %c0_80], %256 {strides = array<i32>} : memref<20x32xf32, #tpu.memory_space<vmem>>, vector<20x32xf32>,
    return
  }
  func.func @transform_0(%arg0: i32) -> (i32, i32) {
    %c0_i32 = arith.constant 0 : i32
    %c0_i32_0 = arith.constant 0 : i32
    %c0_i32_1 = arith.constant 0 : i32
    return %c0_i32, %c0_i32_0 : i32, i32
  }
  func.func @transform_1(%arg0: i32) -> (i32, i32) {
    %c0_i32 = arith.constant 0 : i32
    %c0_i32_0 = arith.constant 0 : i32
    %c0_i32_1 = arith.constant 0 : i32
    return %c0_i32, %c0_i32_0 : i32, i32
  }
  func.func @transform_2(%arg0: i32) -> (i32, i32) {
    %c0_i32 = arith.constant 0 : i32
    %c0_i32_0 = arith.constant 0 : i32
    %c0_i32_1 = arith.constant 0 : i32
    return %c0_i32, %c0_i32_0 : i32, i32
  }
  func.func @transform_3(%arg0: i32) -> (i32, i32) {
    %c0_i32 = arith.constant 0 : i32
    %c0_i32_0 = arith.constant 0 : i32
    %c0_i32_1 = arith.constant 0 : i32
    return %c0_i32, %c0_i32_0 : i32, i32
  }
  func.func @transform_4(%arg0: i32) -> (i32, i32) {
    %c0_i32 = arith.constant 0 : i32
    %c0_i32_0 = arith.constant 0 : i32
    %c0_i32_1 = arith.constant 0 : i32
    return %c0_i32, %c0_i32_0 : i32, i32
  }
  func.func @transform_5(%arg0: i32) -> (i32, i32) {
    %c0_i32 = arith.constant 0 : i32
    %c0_i32_0 = arith.constant 0 : i32
    %c0_i32_1 = arith.constant 0 : i32
    return %c0_i32, %c0_i32_0 : i32, i32
  }
  func.func @transform_6(%arg0: i32) -> (i32, i32) {
    %c0_i32 = arith.constant 0 : i32
    %c0_i32_0 = arith.constant 0 : i32
    %c0_i32_1 = arith.constant 0 : i32
    return %c0_i32, %c0_i32_0 : i32, i32
  }
  func.func @transform_7(%arg0: i32) -> (i32, i32) {
    %c0_i32 = arith.constant 0 : i32
    %c0_i32_0 = arith.constant 0 : i32
    %c0_i32_1 = arith.constant 0 : i32
    return %c0_i32, %c0_i32_0 : i32, i32
  }
  func.func @transform_8(%arg0: i32) -> (i32, i32) {
    %c0_i32 = arith.constant 0 : i32
    %c0_i32_0 = arith.constant 0 : i32
    %c0_i32_1 = arith.constant 0 : i32
    return %c0_i32, %c0_i32_0 : i32, i32
  }
  func.func @transform_9(%arg0: i32) -> (i32, i32) {
    %c0_i32 = arith.constant 0 : i32
    %c0_i32_0 = arith.constant 0 : i32
    %c0_i32_1 = arith.constant 0 : i32
    return %c0_i32, %c0_i32_0 : i32, i32
  }
  func.func @transform_10(%arg0: i32) -> (i32, i32) {
    %c0_i32 = arith.constant 0 : i32
    %c0_i32_0 = arith.constant 0 : i32
    %c0_i32_1 = arith.constant 0 : i32
    return %c0_i32, %c0_i32_0 : i32, i32
  }
  func.func @transform_11(%arg0: i32) -> (i32, i32) {
    %c0_i32 = arith.constant 0 : i32
    %c0_i32_0 = arith.constant 0 : i32
    %c0_i32_1 = arith.constant 0 : i32
    return %c0_i32, %c0_i32_0 : i32, i32
  }
  func.func @transform_12(%arg0: i32) -> (i32, i32) {
    %c0_i32 = arith.constant 0 : i32
    %c0_i32_0 = arith.constant 0 : i32
    %c0_i32_1 = arith.constant 0 : i32
    return %c0_i32, %c0_i32_0 : i32, i32
  }
  func.func @transform_13(%arg0: i32) -> (i32, i32) {
    %c0_i32 = arith.constant 0 : i32
    %c0_i32_0 = arith.constant 0 : i32
    %c0_i32_1 = arith.constant 0 : i32
    return %c0_i32, %c0_i32_0 : i32, i32
  }
}

module attributes {stable_mosaic.version = 11 : i64} {
  func.func @kernel(%arg0: i32, %arg1: memref<16x32xf32, #tpu.memory_space<vmem>>, %arg2: memref<20x32xf32, #tpu.memory_space<vmem>>, %arg3: memref<32x96xbf16, #tpu.memory_space<vmem>>, %arg4: memref<1x96xf32, #tpu.memory_space<vmem>>, %arg5: memref<32x32xbf16, #tpu.memory_space<vmem>>, %arg6: memref<1x32xf32, #tpu.memory_space<vmem>>, %arg7: memref<1x32xf32, #tpu.memory_space<vmem>>, %arg8: memref<1x32xf32, #tpu.memory_space<vmem>>, %arg9: memref<32x32xbf16, #tpu.memory_space<vmem>>, %arg10: memref<1x32xf32, #tpu.memory_space<vmem>>, %arg11: memref<32x64xbf16, #tpu.memory_space<vmem>>, %arg12: memref<1x64xf32, #tpu.memory_space<vmem>>, %arg13: memref<32x32xbf16, #tpu.memory_space<vmem>>, %arg14: memref<1x32xf32, #tpu.memory_space<vmem>>, %arg15: memref<1x32xf32, #tpu.memory_space<vmem>>, %arg16: memref<1x32xf32, #tpu.memory_space<vmem>>, %arg17: memref<32x64xbf16, #tpu.memory_space<vmem>>, %arg18: memref<1x64xf32, #tpu.memory_space<vmem>>, %arg19: memref<64x32xbf16, #tpu.memory_space<vmem>>, %arg20: memref<1x32xf32, #tpu.memory_space<vmem>>, %arg21: memref<1x32xf32, #tpu.memory_space<vmem>>, %arg22: memref<1x32xf32, #tpu.memory_space<vmem>>, %arg23: memref<16x32xf32, #tpu.memory_space<vmem>>) attributes {dimension_semantics = [#tpu.dimension_semantics<arbitrary>], iteration_bounds = array<i64: 1>, scalar_prefetch = 0 : i64, scratch_operands = 0 : i64, tpu.core_type = #tpu.core_type<tc>, window_params = [{pipeline_mode = #tpu.pipeline_mode<synchronous>, transform_indices = @transform_0, window_bounds = array<i64: 16, 32>}, {pipeline_mode = #tpu.pipeline_mode<synchronous>, transform_indices = @transform_1, window_bounds = array<i64: 20, 32>}, {pipeline_mode = #tpu.pipeline_mode<synchronous>, transform_indices = @transform_2, window_bounds = array<i64: 32, 96>}, {pipeline_mode = #tpu.pipeline_mode<synchronous>, transform_indices = @transform_3, window_bounds = array<i64: 1, 96>}, {pipeline_mode = #tpu.pipeline_mode<synchronous>, transform_indices = @transform_4, window_bounds = array<i64: 32, 32>}, {pipeline_mode = #tpu.pipeline_mode<synchronous>, transform_indices = @transform_5, window_bounds = array<i64: 1, 32>}, {pipeline_mode = #tpu.pipeline_mode<synchronous>, transform_indices = @transform_6, window_bounds = array<i64: 1, 32>}, {pipeline_mode = #tpu.pipeline_mode<synchronous>, transform_indices = @transform_7, window_bounds = array<i64: 1, 32>}, {pipeline_mode = #tpu.pipeline_mode<synchronous>, transform_indices = @transform_8, window_bounds = array<i64: 32, 32>}, {pipeline_mode = #tpu.pipeline_mode<synchronous>, transform_indices = @transform_9, window_bounds = array<i64: 1, 32>}, {pipeline_mode = #tpu.pipeline_mode<synchronous>, transform_indices = @transform_10, window_bounds = array<i64: 32, 64>}, {pipeline_mode = #tpu.pipeline_mode<synchronous>, transform_indices = @transform_11, window_bounds = array<i64: 1, 64>}, {pipeline_mode = #tpu.pipeline_mode<synchronous>, transform_indices = @transform_12, window_bounds = array<i64: 32, 32>}, {pipeline_mode = #tpu.pipeline_mode<synchronous>, transform_indices = @transform_13, window_bounds = array<i64: 1, 32>}, {pipeline_mode = #tpu.pipeline_mode<synchronous>, transform_indices = @transform_14, window_bounds = array<i64: 1, 32>}, {pipeline_mode = #tpu.pipeline_mode<synchronous>, transform_indices = @transform_15, window_bounds = array<i64: 1, 32>}, {pipeline_mode = #tpu.pipeline_mode<synchronous>, transform_indices = @transform_16, window_bounds = array<i64: 32, 64>}, {pipeline_mode = #tpu.pipeline_mode<synchronous>, transform_indices = @transform_17, window_bounds = array<i64: 1, 64>}, {pipeline_mode = #tpu.pipeline_mode<synchronous>, transform_indices = @transform_18, window_bounds = array<i64: 64, 32>}, {pipeline_mode = #tpu.pipeline_mode<synchronous>, transform_indices = @transform_19, window_bounds = array<i64: 1, 32>}, {pipeline_mode = #tpu.pipeline_mode<synchronous>, transform_indices = @transform_20, window_bounds = array<i64: 1, 32>}, {pipeline_mode = #tpu.pipeline_mode<synchronous>, transform_indices = @transform_21, window_bounds = array<i64: 1, 32>}, {pipeline_mode = #tpu.pipeline_mode<synchronous>, transform_indices = @transform_22, window_bounds = array<i64: 16, 32>}]} {
    %c0 = arith.constant 0 : index
    %c0_0 = arith.constant 0 : index
    %0 = vector.load %arg1[%c0, %c0_0] : memref<16x32xf32, #tpu.memory_space<vmem>>, vector<16x32xf32>
    %c0_1 = arith.constant 0 : index
    %c0_2 = arith.constant 0 : index
    %1 = vector.load %arg2[%c0_1, %c0_2] : memref<20x32xf32, #tpu.memory_space<vmem>>, vector<20x32xf32>
    %c0_3 = arith.constant 0 : index
    %c0_4 = arith.constant 0 : index
    %2 = vector.load %arg3[%c0_3, %c0_4] : memref<32x96xbf16, #tpu.memory_space<vmem>>, vector<32x96xbf16>
    %c0_5 = arith.constant 0 : index
    %c0_6 = arith.constant 0 : index
    %3 = vector.load %arg4[%c0_5, %c0_6] : memref<1x96xf32, #tpu.memory_space<vmem>>, vector<1x96xf32>
    %4 = arith.truncf %0 : vector<16x32xf32> to vector<16x32xbf16>
    %cst = arith.constant dense<0.000000e+00> : vector<16x96xf32>
    %5 = tpu.matmul %4, %2, %cst {dimension_numbers = #tpu.dot_dimension_numbers<[1], [0], [0], [1], [0, 0, 1, 1], [], []>} : vector<16x32xbf16>, vector<32x96xbf16>, vector<16x96xf32> -> vector<16x96xf32>
    %6 = vector.broadcast %3 : vector<1x96xf32> to vector<16x96xf32>
    %7 = arith.addf %5, %6 : vector<16x96xf32>
    %8 = vector.extract_strided_slice %7 {offsets = [0, 0], sizes = [16, 32], strides = [1, 1]} : vector<16x96xf32> to vector<16x32xf32>
    %9 = vector.extract_strided_slice %7 {offsets = [0, 32], sizes = [16, 32], strides = [1, 1]} : vector<16x96xf32> to vector<16x32xf32>
    %10 = vector.extract_strided_slice %7 {offsets = [0, 64], sizes = [16, 32], strides = [1, 1]} : vector<16x96xf32> to vector<16x32xf32>
    %11 = vector.extract_strided_slice %8 {offsets = [0, 0], sizes = [8, 32], strides = [1, 1]} : vector<16x32xf32> to vector<8x32xf32>
    %12 = vector.extract_strided_slice %9 {offsets = [0, 0], sizes = [8, 32], strides = [1, 1]} : vector<16x32xf32> to vector<8x32xf32>
    %13 = vector.extract_strided_slice %10 {offsets = [0, 0], sizes = [8, 32], strides = [1, 1]} : vector<16x32xf32> to vector<8x32xf32>
    %14 = vector.extract_strided_slice %11 {offsets = [0, 0], sizes = [8, 8], strides = [1, 1]} : vector<8x32xf32> to vector<8x8xf32>
    %15 = arith.truncf %14 : vector<8x8xf32> to vector<8x8xbf16>
    %16 = vector.extract_strided_slice %12 {offsets = [0, 0], sizes = [8, 8], strides = [1, 1]} : vector<8x32xf32> to vector<8x8xf32>
    %17 = arith.truncf %16 : vector<8x8xf32> to vector<8x8xbf16>
    %18 = vector.extract_strided_slice %13 {offsets = [0, 0], sizes = [8, 8], strides = [1, 1]} : vector<8x32xf32> to vector<8x8xf32>
    %19 = arith.truncf %18 : vector<8x8xf32> to vector<8x8xbf16>
    %cst_7 = arith.constant dense<0.000000e+00> : vector<8x8xf32>
    %20 = tpu.matmul %15, %17, %cst_7 {dimension_numbers = #tpu.dot_dimension_numbers<[1], [1], [0], [0], [0, 0, 1, 0], [], []>} : vector<8x8xbf16>, vector<8x8xbf16>, vector<8x8xf32> -> vector<8x8xf32>
    %cst_8 = arith.constant 0.353553385 : f32
    %21 = vector.broadcast %cst_8 : f32 to vector<8x8xf32>
    %22 = arith.mulf %20, %21 : vector<8x8xf32>
    %cst_9 = arith.constant dense<0xFF800000> : vector<8xf32>
    %23 = vector.multi_reduction <maximumf>, %22, %cst_9 [1] : vector<8x8xf32> to vector<8xf32>
    %24 = vector.shape_cast %23 : vector<8xf32> to vector<8x1xf32>
    %25 = vector.broadcast %24 : vector<8x1xf32> to vector<8x8xf32>
    %26 = arith.subf %22, %25 : vector<8x8xf32>
    %27 = math.exp %26 : vector<8x8xf32>
    %cst_10 = arith.constant dense<0.000000e+00> : vector<8xf32>
    %28 = vector.multi_reduction <add>, %27, %cst_10 [1] : vector<8x8xf32> to vector<8xf32>
    %29 = vector.shape_cast %28 : vector<8xf32> to vector<8x1xf32>
    %30 = tpu.reciprocal %29 {approx = true} : vector<8x1xf32> -> vector<8x1xf32>
    %31 = vector.broadcast %30 : vector<8x1xf32> to vector<8x8xf32>
    %32 = arith.mulf %27, %31 : vector<8x8xf32>
    %33 = arith.truncf %32 : vector<8x8xf32> to vector<8x8xbf16>
    %cst_11 = arith.constant dense<0.000000e+00> : vector<8x8xf32>
    %34 = tpu.matmul %33, %19, %cst_11 {dimension_numbers = #tpu.dot_dimension_numbers<[1], [0], [0], [1], [0, 0, 1, 1], [], []>} : vector<8x8xbf16>, vector<8x8xbf16>, vector<8x8xf32> -> vector<8x8xf32>
    %35 = vector.extract_strided_slice %11 {offsets = [0, 8], sizes = [8, 8], strides = [1, 1]} : vector<8x32xf32> to vector<8x8xf32>
    %36 = arith.truncf %35 : vector<8x8xf32> to vector<8x8xbf16>
    %37 = vector.extract_strided_slice %12 {offsets = [0, 8], sizes = [8, 8], strides = [1, 1]} : vector<8x32xf32> to vector<8x8xf32>
    %38 = arith.truncf %37 : vector<8x8xf32> to vector<8x8xbf16>
    %39 = vector.extract_strided_slice %13 {offsets = [0, 8], sizes = [8, 8], strides = [1, 1]} : vector<8x32xf32> to vector<8x8xf32>
    %40 = arith.truncf %39 : vector<8x8xf32> to vector<8x8xbf16>
    %cst_12 = arith.constant dense<0.000000e+00> : vector<8x8xf32>
    %41 = tpu.matmul %36, %38, %cst_12 {dimension_numbers = #tpu.dot_dimension_numbers<[1], [1], [0], [0], [0, 0, 1, 0], [], []>} : vector<8x8xbf16>, vector<8x8xbf16>, vector<8x8xf32> -> vector<8x8xf32>
    %cst_13 = arith.constant 0.353553385 : f32
    %42 = vector.broadcast %cst_13 : f32 to vector<8x8xf32>
    %43 = arith.mulf %41, %42 : vector<8x8xf32>
    %cst_14 = arith.constant dense<0xFF800000> : vector<8xf32>
    %44 = vector.multi_reduction <maximumf>, %43, %cst_14 [1] : vector<8x8xf32> to vector<8xf32>
    %45 = vector.shape_cast %44 : vector<8xf32> to vector<8x1xf32>
    %46 = vector.broadcast %45 : vector<8x1xf32> to vector<8x8xf32>
    %47 = arith.subf %43, %46 : vector<8x8xf32>
    %48 = math.exp %47 : vector<8x8xf32>
    %cst_15 = arith.constant dense<0.000000e+00> : vector<8xf32>
    %49 = vector.multi_reduction <add>, %48, %cst_15 [1] : vector<8x8xf32> to vector<8xf32>
    %50 = vector.shape_cast %49 : vector<8xf32> to vector<8x1xf32>
    %51 = tpu.reciprocal %50 {approx = true} : vector<8x1xf32> -> vector<8x1xf32>
    %52 = vector.broadcast %51 : vector<8x1xf32> to vector<8x8xf32>
    %53 = arith.mulf %48, %52 : vector<8x8xf32>
    %54 = arith.truncf %53 : vector<8x8xf32> to vector<8x8xbf16>
    %cst_16 = arith.constant dense<0.000000e+00> : vector<8x8xf32>
    %55 = tpu.matmul %54, %40, %cst_16 {dimension_numbers = #tpu.dot_dimension_numbers<[1], [0], [0], [1], [0, 0, 1, 1], [], []>} : vector<8x8xbf16>, vector<8x8xbf16>, vector<8x8xf32> -> vector<8x8xf32>
    %56 = vector.extract_strided_slice %11 {offsets = [0, 16], sizes = [8, 8], strides = [1, 1]} : vector<8x32xf32> to vector<8x8xf32>
    %57 = arith.truncf %56 : vector<8x8xf32> to vector<8x8xbf16>
    %58 = vector.extract_strided_slice %12 {offsets = [0, 16], sizes = [8, 8], strides = [1, 1]} : vector<8x32xf32> to vector<8x8xf32>
    %59 = arith.truncf %58 : vector<8x8xf32> to vector<8x8xbf16>
    %60 = vector.extract_strided_slice %13 {offsets = [0, 16], sizes = [8, 8], strides = [1, 1]} : vector<8x32xf32> to vector<8x8xf32>
    %61 = arith.truncf %60 : vector<8x8xf32> to vector<8x8xbf16>
    %cst_17 = arith.constant dense<0.000000e+00> : vector<8x8xf32>
    %62 = tpu.matmul %57, %59, %cst_17 {dimension_numbers = #tpu.dot_dimension_numbers<[1], [1], [0], [0], [0, 0, 1, 0], [], []>} : vector<8x8xbf16>, vector<8x8xbf16>, vector<8x8xf32> -> vector<8x8xf32>
    %cst_18 = arith.constant 0.353553385 : f32
    %63 = vector.broadcast %cst_18 : f32 to vector<8x8xf32>
    %64 = arith.mulf %62, %63 : vector<8x8xf32>
    %cst_19 = arith.constant dense<0xFF800000> : vector<8xf32>
    %65 = vector.multi_reduction <maximumf>, %64, %cst_19 [1] : vector<8x8xf32> to vector<8xf32>
    %66 = vector.shape_cast %65 : vector<8xf32> to vector<8x1xf32>
    %67 = vector.broadcast %66 : vector<8x1xf32> to vector<8x8xf32>
    %68 = arith.subf %64, %67 : vector<8x8xf32>
    %69 = math.exp %68 : vector<8x8xf32>
    %cst_20 = arith.constant dense<0.000000e+00> : vector<8xf32>
    %70 = vector.multi_reduction <add>, %69, %cst_20 [1] : vector<8x8xf32> to vector<8xf32>
    %71 = vector.shape_cast %70 : vector<8xf32> to vector<8x1xf32>
    %72 = tpu.reciprocal %71 {approx = true} : vector<8x1xf32> -> vector<8x1xf32>
    %73 = vector.broadcast %72 : vector<8x1xf32> to vector<8x8xf32>
    %74 = arith.mulf %69, %73 : vector<8x8xf32>
    %75 = arith.truncf %74 : vector<8x8xf32> to vector<8x8xbf16>
    %cst_21 = arith.constant dense<0.000000e+00> : vector<8x8xf32>
    %76 = tpu.matmul %75, %61, %cst_21 {dimension_numbers = #tpu.dot_dimension_numbers<[1], [0], [0], [1], [0, 0, 1, 1], [], []>} : vector<8x8xbf16>, vector<8x8xbf16>, vector<8x8xf32> -> vector<8x8xf32>
    %77 = vector.extract_strided_slice %11 {offsets = [0, 24], sizes = [8, 8], strides = [1, 1]} : vector<8x32xf32> to vector<8x8xf32>
    %78 = arith.truncf %77 : vector<8x8xf32> to vector<8x8xbf16>
    %79 = vector.extract_strided_slice %12 {offsets = [0, 24], sizes = [8, 8], strides = [1, 1]} : vector<8x32xf32> to vector<8x8xf32>
    %80 = arith.truncf %79 : vector<8x8xf32> to vector<8x8xbf16>
    %81 = vector.extract_strided_slice %13 {offsets = [0, 24], sizes = [8, 8], strides = [1, 1]} : vector<8x32xf32> to vector<8x8xf32>
    %82 = arith.truncf %81 : vector<8x8xf32> to vector<8x8xbf16>
    %cst_22 = arith.constant dense<0.000000e+00> : vector<8x8xf32>
    %83 = tpu.matmul %78, %80, %cst_22 {dimension_numbers = #tpu.dot_dimension_numbers<[1], [1], [0], [0], [0, 0, 1, 0], [], []>} : vector<8x8xbf16>, vector<8x8xbf16>, vector<8x8xf32> -> vector<8x8xf32>
    %cst_23 = arith.constant 0.353553385 : f32
    %84 = vector.broadcast %cst_23 : f32 to vector<8x8xf32>
    %85 = arith.mulf %83, %84 : vector<8x8xf32>
    %cst_24 = arith.constant dense<0xFF800000> : vector<8xf32>
    %86 = vector.multi_reduction <maximumf>, %85, %cst_24 [1] : vector<8x8xf32> to vector<8xf32>
    %87 = vector.shape_cast %86 : vector<8xf32> to vector<8x1xf32>
    %88 = vector.broadcast %87 : vector<8x1xf32> to vector<8x8xf32>
    %89 = arith.subf %85, %88 : vector<8x8xf32>
    %90 = math.exp %89 : vector<8x8xf32>
    %cst_25 = arith.constant dense<0.000000e+00> : vector<8xf32>
    %91 = vector.multi_reduction <add>, %90, %cst_25 [1] : vector<8x8xf32> to vector<8xf32>
    %92 = vector.shape_cast %91 : vector<8xf32> to vector<8x1xf32>
    %93 = tpu.reciprocal %92 {approx = true} : vector<8x1xf32> -> vector<8x1xf32>
    %94 = vector.broadcast %93 : vector<8x1xf32> to vector<8x8xf32>
    %95 = arith.mulf %90, %94 : vector<8x8xf32>
    %96 = arith.truncf %95 : vector<8x8xf32> to vector<8x8xbf16>
    %cst_26 = arith.constant dense<0.000000e+00> : vector<8x8xf32>
    %97 = tpu.matmul %96, %82, %cst_26 {dimension_numbers = #tpu.dot_dimension_numbers<[1], [0], [0], [1], [0, 0, 1, 1], [], []>} : vector<8x8xbf16>, vector<8x8xbf16>, vector<8x8xf32> -> vector<8x8xf32>
    %98 = tpu.concatenate %34, %55, %76, %97 in 1 : vector<8x8xf32>, vector<8x8xf32>, vector<8x8xf32>, vector<8x8xf32> -> vector<8x32xf32>
    %99 = vector.extract_strided_slice %8 {offsets = [8, 0], sizes = [8, 32], strides = [1, 1]} : vector<16x32xf32> to vector<8x32xf32>
    %100 = vector.extract_strided_slice %9 {offsets = [8, 0], sizes = [8, 32], strides = [1, 1]} : vector<16x32xf32> to vector<8x32xf32>
    %101 = vector.extract_strided_slice %10 {offsets = [8, 0], sizes = [8, 32], strides = [1, 1]} : vector<16x32xf32> to vector<8x32xf32>
    %102 = vector.extract_strided_slice %99 {offsets = [0, 0], sizes = [8, 8], strides = [1, 1]} : vector<8x32xf32> to vector<8x8xf32>
    %103 = arith.truncf %102 : vector<8x8xf32> to vector<8x8xbf16>
    %104 = vector.extract_strided_slice %100 {offsets = [0, 0], sizes = [8, 8], strides = [1, 1]} : vector<8x32xf32> to vector<8x8xf32>
    %105 = arith.truncf %104 : vector<8x8xf32> to vector<8x8xbf16>
    %106 = vector.extract_strided_slice %101 {offsets = [0, 0], sizes = [8, 8], strides = [1, 1]} : vector<8x32xf32> to vector<8x8xf32>
    %107 = arith.truncf %106 : vector<8x8xf32> to vector<8x8xbf16>
    %cst_27 = arith.constant dense<0.000000e+00> : vector<8x8xf32>
    %108 = tpu.matmul %103, %105, %cst_27 {dimension_numbers = #tpu.dot_dimension_numbers<[1], [1], [0], [0], [0, 0, 1, 0], [], []>} : vector<8x8xbf16>, vector<8x8xbf16>, vector<8x8xf32> -> vector<8x8xf32>
    %cst_28 = arith.constant 0.353553385 : f32
    %109 = vector.broadcast %cst_28 : f32 to vector<8x8xf32>
    %110 = arith.mulf %108, %109 : vector<8x8xf32>
    %cst_29 = arith.constant dense<0xFF800000> : vector<8xf32>
    %111 = vector.multi_reduction <maximumf>, %110, %cst_29 [1] : vector<8x8xf32> to vector<8xf32>
    %112 = vector.shape_cast %111 : vector<8xf32> to vector<8x1xf32>
    %113 = vector.broadcast %112 : vector<8x1xf32> to vector<8x8xf32>
    %114 = arith.subf %110, %113 : vector<8x8xf32>
    %115 = math.exp %114 : vector<8x8xf32>
    %cst_30 = arith.constant dense<0.000000e+00> : vector<8xf32>
    %116 = vector.multi_reduction <add>, %115, %cst_30 [1] : vector<8x8xf32> to vector<8xf32>
    %117 = vector.shape_cast %116 : vector<8xf32> to vector<8x1xf32>
    %118 = tpu.reciprocal %117 {approx = true} : vector<8x1xf32> -> vector<8x1xf32>
    %119 = vector.broadcast %118 : vector<8x1xf32> to vector<8x8xf32>
    %120 = arith.mulf %115, %119 : vector<8x8xf32>
    %121 = arith.truncf %120 : vector<8x8xf32> to vector<8x8xbf16>
    %cst_31 = arith.constant dense<0.000000e+00> : vector<8x8xf32>
    %122 = tpu.matmul %121, %107, %cst_31 {dimension_numbers = #tpu.dot_dimension_numbers<[1], [0], [0], [1], [0, 0, 1, 1], [], []>} : vector<8x8xbf16>, vector<8x8xbf16>, vector<8x8xf32> -> vector<8x8xf32>
    %123 = vector.extract_strided_slice %99 {offsets = [0, 8], sizes = [8, 8], strides = [1, 1]} : vector<8x32xf32> to vector<8x8xf32>
    %124 = arith.truncf %123 : vector<8x8xf32> to vector<8x8xbf16>
    %125 = vector.extract_strided_slice %100 {offsets = [0, 8], sizes = [8, 8], strides = [1, 1]} : vector<8x32xf32> to vector<8x8xf32>
    %126 = arith.truncf %125 : vector<8x8xf32> to vector<8x8xbf16>
    %127 = vector.extract_strided_slice %101 {offsets = [0, 8], sizes = [8, 8], strides = [1, 1]} : vector<8x32xf32> to vector<8x8xf32>
    %128 = arith.truncf %127 : vector<8x8xf32> to vector<8x8xbf16>
    %cst_32 = arith.constant dense<0.000000e+00> : vector<8x8xf32>
    %129 = tpu.matmul %124, %126, %cst_32 {dimension_numbers = #tpu.dot_dimension_numbers<[1], [1], [0], [0], [0, 0, 1, 0], [], []>} : vector<8x8xbf16>, vector<8x8xbf16>, vector<8x8xf32> -> vector<8x8xf32>
    %cst_33 = arith.constant 0.353553385 : f32
    %130 = vector.broadcast %cst_33 : f32 to vector<8x8xf32>
    %131 = arith.mulf %129, %130 : vector<8x8xf32>
    %cst_34 = arith.constant dense<0xFF800000> : vector<8xf32>
    %132 = vector.multi_reduction <maximumf>, %131, %cst_34 [1] : vector<8x8xf32> to vector<8xf32>
    %133 = vector.shape_cast %132 : vector<8xf32> to vector<8x1xf32>
    %134 = vector.broadcast %133 : vector<8x1xf32> to vector<8x8xf32>
    %135 = arith.subf %131, %134 : vector<8x8xf32>
    %136 = math.exp %135 : vector<8x8xf32>
    %cst_35 = arith.constant dense<0.000000e+00> : vector<8xf32>
    %137 = vector.multi_reduction <add>, %136, %cst_35 [1] : vector<8x8xf32> to vector<8xf32>
    %138 = vector.shape_cast %137 : vector<8xf32> to vector<8x1xf32>
    %139 = tpu.reciprocal %138 {approx = true} : vector<8x1xf32> -> vector<8x1xf32>
    %140 = vector.broadcast %139 : vector<8x1xf32> to vector<8x8xf32>
    %141 = arith.mulf %136, %140 : vector<8x8xf32>
    %142 = arith.truncf %141 : vector<8x8xf32> to vector<8x8xbf16>
    %cst_36 = arith.constant dense<0.000000e+00> : vector<8x8xf32>
    %143 = tpu.matmul %142, %128, %cst_36 {dimension_numbers = #tpu.dot_dimension_numbers<[1], [0], [0], [1], [0, 0, 1, 1], [], []>} : vector<8x8xbf16>, vector<8x8xbf16>, vector<8x8xf32> -> vector<8x8xf32>
    %144 = vector.extract_strided_slice %99 {offsets = [0, 16], sizes = [8, 8], strides = [1, 1]} : vector<8x32xf32> to vector<8x8xf32>
    %145 = arith.truncf %144 : vector<8x8xf32> to vector<8x8xbf16>
    %146 = vector.extract_strided_slice %100 {offsets = [0, 16], sizes = [8, 8], strides = [1, 1]} : vector<8x32xf32> to vector<8x8xf32>
    %147 = arith.truncf %146 : vector<8x8xf32> to vector<8x8xbf16>
    %148 = vector.extract_strided_slice %101 {offsets = [0, 16], sizes = [8, 8], strides = [1, 1]} : vector<8x32xf32> to vector<8x8xf32>
    %149 = arith.truncf %148 : vector<8x8xf32> to vector<8x8xbf16>
    %cst_37 = arith.constant dense<0.000000e+00> : vector<8x8xf32>
    %150 = tpu.matmul %145, %147, %cst_37 {dimension_numbers = #tpu.dot_dimension_numbers<[1], [1], [0], [0], [0, 0, 1, 0], [], []>} : vector<8x8xbf16>, vector<8x8xbf16>, vector<8x8xf32> -> vector<8x8xf32>
    %cst_38 = arith.constant 0.353553385 : f32
    %151 = vector.broadcast %cst_38 : f32 to vector<8x8xf32>
    %152 = arith.mulf %150, %151 : vector<8x8xf32>
    %cst_39 = arith.constant dense<0xFF800000> : vector<8xf32>
    %153 = vector.multi_reduction <maximumf>, %152, %cst_39 [1] : vector<8x8xf32> to vector<8xf32>
    %154 = vector.shape_cast %153 : vector<8xf32> to vector<8x1xf32>
    %155 = vector.broadcast %154 : vector<8x1xf32> to vector<8x8xf32>
    %156 = arith.subf %152, %155 : vector<8x8xf32>
    %157 = math.exp %156 : vector<8x8xf32>
    %cst_40 = arith.constant dense<0.000000e+00> : vector<8xf32>
    %158 = vector.multi_reduction <add>, %157, %cst_40 [1] : vector<8x8xf32> to vector<8xf32>
    %159 = vector.shape_cast %158 : vector<8xf32> to vector<8x1xf32>
    %160 = tpu.reciprocal %159 {approx = true} : vector<8x1xf32> -> vector<8x1xf32>
    %161 = vector.broadcast %160 : vector<8x1xf32> to vector<8x8xf32>
    %162 = arith.mulf %157, %161 : vector<8x8xf32>
    %163 = arith.truncf %162 : vector<8x8xf32> to vector<8x8xbf16>
    %cst_41 = arith.constant dense<0.000000e+00> : vector<8x8xf32>
    %164 = tpu.matmul %163, %149, %cst_41 {dimension_numbers = #tpu.dot_dimension_numbers<[1], [0], [0], [1], [0, 0, 1, 1], [], []>} : vector<8x8xbf16>, vector<8x8xbf16>, vector<8x8xf32> -> vector<8x8xf32>
    %165 = vector.extract_strided_slice %99 {offsets = [0, 24], sizes = [8, 8], strides = [1, 1]} : vector<8x32xf32> to vector<8x8xf32>
    %166 = arith.truncf %165 : vector<8x8xf32> to vector<8x8xbf16>
    %167 = vector.extract_strided_slice %100 {offsets = [0, 24], sizes = [8, 8], strides = [1, 1]} : vector<8x32xf32> to vector<8x8xf32>
    %168 = arith.truncf %167 : vector<8x8xf32> to vector<8x8xbf16>
    %169 = vector.extract_strided_slice %101 {offsets = [0, 24], sizes = [8, 8], strides = [1, 1]} : vector<8x32xf32> to vector<8x8xf32>
    %170 = arith.truncf %169 : vector<8x8xf32> to vector<8x8xbf16>
    %cst_42 = arith.constant dense<0.000000e+00> : vector<8x8xf32>
    %171 = tpu.matmul %166, %168, %cst_42 {dimension_numbers = #tpu.dot_dimension_numbers<[1], [1], [0], [0], [0, 0, 1, 0], [], []>} : vector<8x8xbf16>, vector<8x8xbf16>, vector<8x8xf32> -> vector<8x8xf32>
    %cst_43 = arith.constant 0.353553385 : f32
    %172 = vector.broadcast %cst_43 : f32 to vector<8x8xf32>
    %173 = arith.mulf %171, %172 : vector<8x8xf32>
    %cst_44 = arith.constant dense<0xFF800000> : vector<8xf32>
    %174 = vector.multi_reduction <maximumf>, %173, %cst_44 [1] : vector<8x8xf32> to vector<8xf32>
    %175 = vector.shape_cast %174 : vector<8xf32> to vector<8x1xf32>
    %176 = vector.broadcast %175 : vector<8x1xf32> to vector<8x8xf32>
    %177 = arith.subf %173, %176 : vector<8x8xf32>
    %178 = math.exp %177 : vector<8x8xf32>
    %cst_45 = arith.constant dense<0.000000e+00> : vector<8xf32>
    %179 = vector.multi_reduction <add>, %178, %cst_45 [1] : vector<8x8xf32> to vector<8xf32>
    %180 = vector.shape_cast %179 : vector<8xf32> to vector<8x1xf32>
    %181 = tpu.reciprocal %180 {approx = true} : vector<8x1xf32> -> vector<8x1xf32>
    %182 = vector.broadcast %181 : vector<8x1xf32> to vector<8x8xf32>
    %183 = arith.mulf %178, %182 : vector<8x8xf32>
    %184 = arith.truncf %183 : vector<8x8xf32> to vector<8x8xbf16>
    %cst_46 = arith.constant dense<0.000000e+00> : vector<8x8xf32>
    %185 = tpu.matmul %184, %170, %cst_46 {dimension_numbers = #tpu.dot_dimension_numbers<[1], [0], [0], [1], [0, 0, 1, 1], [], []>} : vector<8x8xbf16>, vector<8x8xbf16>, vector<8x8xf32> -> vector<8x8xf32>
    %186 = tpu.concatenate %122, %143, %164, %185 in 1 : vector<8x8xf32>, vector<8x8xf32>, vector<8x8xf32>, vector<8x8xf32> -> vector<8x32xf32>
    %187 = tpu.concatenate %98, %186 in 0 : vector<8x32xf32>, vector<8x32xf32> -> vector<16x32xf32>
    %c0_47 = arith.constant 0 : index
    %c0_48 = arith.constant 0 : index
    %188 = vector.load %arg5[%c0_47, %c0_48] : memref<32x32xbf16, #tpu.memory_space<vmem>>, vector<32x32xbf16>
    %c0_49 = arith.constant 0 : index
    %c0_50 = arith.constant 0 : index
    %189 = vector.load %arg6[%c0_49, %c0_50] : memref<1x32xf32, #tpu.memory_space<vmem>>, vector<1x32xf32>
    %190 = arith.truncf %187 : vector<16x32xf32> to vector<16x32xbf16>
    %cst_51 = arith.constant dense<0.000000e+00> : vector<16x32xf32>
    %191 = tpu.matmul %190, %188, %cst_51 {dimension_numbers = #tpu.dot_dimension_numbers<[1], [0], [0], [1], [0, 0, 1, 1], [], []>} : vector<16x32xbf16>, vector<32x32xbf16>, vector<16x32xf32> -> vector<16x32xf32>
    %192 = vector.broadcast %189 : vector<1x32xf32> to vector<16x32xf32>
    %193 = arith.addf %191, %192 : vector<16x32xf32>
    %194 = arith.addf %0, %193 : vector<16x32xf32>
    %c0_52 = arith.constant 0 : index
    %c0_53 = arith.constant 0 : index
    %195 = vector.load %arg7[%c0_52, %c0_53] : memref<1x32xf32, #tpu.memory_space<vmem>>, vector<1x32xf32>
    %c0_54 = arith.constant 0 : index
    %c0_55 = arith.constant 0 : index
    %196 = vector.load %arg8[%c0_54, %c0_55] : memref<1x32xf32, #tpu.memory_space<vmem>>, vector<1x32xf32>
    %cst_56 = arith.constant dense<0.000000e+00> : vector<16xf32>
    %197 = vector.multi_reduction <add>, %194, %cst_56 [1] : vector<16x32xf32> to vector<16xf32>
    %198 = vector.shape_cast %197 : vector<16xf32> to vector<16x1xf32>
    %cst_57 = arith.constant 3.200000e+01 : f32
    %199 = vector.broadcast %cst_57 : f32 to vector<16x1xf32>
    %200 = arith.divf %198, %199 : vector<16x1xf32>
    %201 = vector.broadcast %200 : vector<16x1xf32> to vector<16x32xf32>
    %202 = arith.subf %194, %201 : vector<16x32xf32>
    %203 = arith.mulf %202, %202 : vector<16x32xf32>
    %cst_58 = arith.constant dense<0.000000e+00> : vector<16xf32>
    %204 = vector.multi_reduction <add>, %203, %cst_58 [1] : vector<16x32xf32> to vector<16xf32>
    %205 = vector.shape_cast %204 : vector<16xf32> to vector<16x1xf32>
    %cst_59 = arith.constant 3.200000e+01 : f32
    %206 = vector.broadcast %cst_59 : f32 to vector<16x1xf32>
    %207 = arith.divf %205, %206 : vector<16x1xf32>
    %208 = vector.broadcast %200 : vector<16x1xf32> to vector<16x32xf32>
    %209 = arith.subf %194, %208 : vector<16x32xf32>
    %cst_60 = arith.constant 9.99999974E-6 : f32
    %210 = vector.broadcast %cst_60 : f32 to vector<16x1xf32>
    %211 = arith.addf %207, %210 : vector<16x1xf32>
    %212 = math.rsqrt %211 : vector<16x1xf32>
    %213 = vector.broadcast %212 : vector<16x1xf32> to vector<16x32xf32>
    %214 = arith.mulf %209, %213 : vector<16x32xf32>
    %215 = vector.broadcast %195 : vector<1x32xf32> to vector<16x32xf32>
    %216 = arith.mulf %214, %215 : vector<16x32xf32>
    %217 = vector.broadcast %196 : vector<1x32xf32> to vector<16x32xf32>
    %218 = arith.addf %216, %217 : vector<16x32xf32>
    %c0_61 = arith.constant 0 : index
    %c0_62 = arith.constant 0 : index
    %219 = vector.load %arg9[%c0_61, %c0_62] : memref<32x32xbf16, #tpu.memory_space<vmem>>, vector<32x32xbf16>
    %c0_63 = arith.constant 0 : index
    %c0_64 = arith.constant 0 : index
    %220 = vector.load %arg10[%c0_63, %c0_64] : memref<1x32xf32, #tpu.memory_space<vmem>>, vector<1x32xf32>
    %221 = arith.truncf %218 : vector<16x32xf32> to vector<16x32xbf16>
    %cst_65 = arith.constant dense<0.000000e+00> : vector<16x32xf32>
    %222 = tpu.matmul %221, %219, %cst_65 {dimension_numbers = #tpu.dot_dimension_numbers<[1], [0], [0], [1], [0, 0, 1, 1], [], []>} : vector<16x32xbf16>, vector<32x32xbf16>, vector<16x32xf32> -> vector<16x32xf32>
    %223 = vector.broadcast %220 : vector<1x32xf32> to vector<16x32xf32>
    %224 = arith.addf %222, %223 : vector<16x32xf32>
    %c0_66 = arith.constant 0 : index
    %c0_67 = arith.constant 0 : index
    %225 = vector.load %arg11[%c0_66, %c0_67] : memref<32x64xbf16, #tpu.memory_space<vmem>>, vector<32x64xbf16>
    %c0_68 = arith.constant 0 : index
    %c0_69 = arith.constant 0 : index
    %226 = vector.load %arg12[%c0_68, %c0_69] : memref<1x64xf32, #tpu.memory_space<vmem>>, vector<1x64xf32>
    %227 = arith.truncf %1 : vector<20x32xf32> to vector<20x32xbf16>
    %cst_70 = arith.constant dense<0.000000e+00> : vector<20x64xf32>
    %228 = tpu.matmul %227, %225, %cst_70 {dimension_numbers = #tpu.dot_dimension_numbers<[1], [0], [0], [1], [0, 0, 1, 1], [], []>} : vector<20x32xbf16>, vector<32x64xbf16>, vector<20x64xf32> -> vector<20x64xf32>
    %229 = vector.broadcast %226 : vector<1x64xf32> to vector<20x64xf32>
    %230 = arith.addf %228, %229 : vector<20x64xf32>
    %231 = vector.extract_strided_slice %230 {offsets = [0, 0], sizes = [20, 32], strides = [1, 1]} : vector<20x64xf32> to vector<20x32xf32>
    %232 = vector.extract_strided_slice %230 {offsets = [0, 32], sizes = [20, 32], strides = [1, 1]} : vector<20x64xf32> to vector<20x32xf32>
    %233 = vector.extract_strided_slice %224 {offsets = [0, 0], sizes = [8, 32], strides = [1, 1]} : vector<16x32xf32> to vector<8x32xf32>
    %234 = vector.extract_strided_slice %231 {offsets = [0, 0], sizes = [10, 32], strides = [1, 1]} : vector<20x32xf32> to vector<10x32xf32>
    %235 = vector.extract_strided_slice %232 {offsets = [0, 0], sizes = [10, 32], strides = [1, 1]} : vector<20x32xf32> to vector<10x32xf32>
    %236 = vector.extract_strided_slice %233 {offsets = [0, 0], sizes = [8, 8], strides = [1, 1]} : vector<8x32xf32> to vector<8x8xf32>
    %237 = arith.truncf %236 : vector<8x8xf32> to vector<8x8xbf16>
    %238 = vector.extract_strided_slice %234 {offsets = [0, 0], sizes = [10, 8], strides = [1, 1]} : vector<10x32xf32> to vector<10x8xf32>
    %239 = arith.truncf %238 : vector<10x8xf32> to vector<10x8xbf16>
    %240 = vector.extract_strided_slice %235 {offsets = [0, 0], sizes = [10, 8], strides = [1, 1]} : vector<10x32xf32> to vector<10x8xf32>
    %241 = arith.truncf %240 : vector<10x8xf32> to vector<10x8xbf16>
    %cst_71 = arith.constant dense<0.000000e+00> : vector<8x10xf32>
    %242 = tpu.matmul %237, %239, %cst_71 {dimension_numbers = #tpu.dot_dimension_numbers<[1], [1], [0], [0], [0, 0, 1, 0], [], []>} : vector<8x8xbf16>, vector<10x8xbf16>, vector<8x10xf32> -> vector<8x10xf32>
    %cst_72 = arith.constant 0.353553385 : f32
    %243 = vector.broadcast %cst_72 : f32 to vector<8x10xf32>
    %244 = arith.mulf %242, %243 : vector<8x10xf32>
    %cst_73 = arith.constant dense<0xFF800000> : vector<8xf32>
    %245 = vector.multi_reduction <maximumf>, %244, %cst_73 [1] : vector<8x10xf32> to vector<8xf32>
    %246 = vector.shape_cast %245 : vector<8xf32> to vector<8x1xf32>
    %247 = vector.broadcast %246 : vector<8x1xf32> to vector<8x10xf32>
    %248 = arith.subf %244, %247 : vector<8x10xf32>
    %249 = math.exp %248 : vector<8x10xf32>
    %cst_74 = arith.constant dense<0.000000e+00> : vector<8xf32>
    %250 = vector.multi_reduction <add>, %249, %cst_74 [1] : vector<8x10xf32> to vector<8xf32>
    %251 = vector.shape_cast %250 : vector<8xf32> to vector<8x1xf32>
    %252 = tpu.reciprocal %251 {approx = true} : vector<8x1xf32> -> vector<8x1xf32>
    %253 = vector.broadcast %252 : vector<8x1xf32> to vector<8x10xf32>
    %254 = arith.mulf %249, %253 : vector<8x10xf32>
    %255 = arith.truncf %254 : vector<8x10xf32> to vector<8x10xbf16>
    %cst_75 = arith.constant dense<0.000000e+00> : vector<8x8xf32>
    %256 = tpu.matmul %255, %241, %cst_75 {dimension_numbers = #tpu.dot_dimension_numbers<[1], [0], [0], [1], [0, 0, 1, 1], [], []>} : vector<8x10xbf16>, vector<10x8xbf16>, vector<8x8xf32> -> vector<8x8xf32>
    %257 = vector.extract_strided_slice %233 {offsets = [0, 8], sizes = [8, 8], strides = [1, 1]} : vector<8x32xf32> to vector<8x8xf32>
    %258 = arith.truncf %257 : vector<8x8xf32> to vector<8x8xbf16>
    %259 = vector.extract_strided_slice %234 {offsets = [0, 8], sizes = [10, 8], strides = [1, 1]} : vector<10x32xf32> to vector<10x8xf32>
    %260 = arith.truncf %259 : vector<10x8xf32> to vector<10x8xbf16>
    %261 = vector.extract_strided_slice %235 {offsets = [0, 8], sizes = [10, 8], strides = [1, 1]} : vector<10x32xf32> to vector<10x8xf32>
    %262 = arith.truncf %261 : vector<10x8xf32> to vector<10x8xbf16>
    %cst_76 = arith.constant dense<0.000000e+00> : vector<8x10xf32>
    %263 = tpu.matmul %258, %260, %cst_76 {dimension_numbers = #tpu.dot_dimension_numbers<[1], [1], [0], [0], [0, 0, 1, 0], [], []>} : vector<8x8xbf16>, vector<10x8xbf16>, vector<8x10xf32> -> vector<8x10xf32>
    %cst_77 = arith.constant 0.353553385 : f32
    %264 = vector.broadcast %cst_77 : f32 to vector<8x10xf32>
    %265 = arith.mulf %263, %264 : vector<8x10xf32>
    %cst_78 = arith.constant dense<0xFF800000> : vector<8xf32>
    %266 = vector.multi_reduction <maximumf>, %265, %cst_78 [1] : vector<8x10xf32> to vector<8xf32>
    %267 = vector.shape_cast %266 : vector<8xf32> to vector<8x1xf32>
    %268 = vector.broadcast %267 : vector<8x1xf32> to vector<8x10xf32>
    %269 = arith.subf %265, %268 : vector<8x10xf32>
    %270 = math.exp %269 : vector<8x10xf32>
    %cst_79 = arith.constant dense<0.000000e+00> : vector<8xf32>
    %271 = vector.multi_reduction <add>, %270, %cst_79 [1] : vector<8x10xf32> to vector<8xf32>
    %272 = vector.shape_cast %271 : vector<8xf32> to vector<8x1xf32>
    %273 = tpu.reciprocal %272 {approx = true} : vector<8x1xf32> -> vector<8x1xf32>
    %274 = vector.broadcast %273 : vector<8x1xf32> to vector<8x10xf32>
    %275 = arith.mulf %270, %274 : vector<8x10xf32>
    %276 = arith.truncf %275 : vector<8x10xf32> to vector<8x10xbf16>
    %cst_80 = arith.constant dense<0.000000e+00> : vector<8x8xf32>
    %277 = tpu.matmul %276, %262, %cst_80 {dimension_numbers = #tpu.dot_dimension_numbers<[1], [0], [0], [1], [0, 0, 1, 1], [], []>} : vector<8x10xbf16>, vector<10x8xbf16>, vector<8x8xf32> -> vector<8x8xf32>
    %278 = vector.extract_strided_slice %233 {offsets = [0, 16], sizes = [8, 8], strides = [1, 1]} : vector<8x32xf32> to vector<8x8xf32>
    %279 = arith.truncf %278 : vector<8x8xf32> to vector<8x8xbf16>
    %280 = vector.extract_strided_slice %234 {offsets = [0, 16], sizes = [10, 8], strides = [1, 1]} : vector<10x32xf32> to vector<10x8xf32>
    %281 = arith.truncf %280 : vector<10x8xf32> to vector<10x8xbf16>
    %282 = vector.extract_strided_slice %235 {offsets = [0, 16], sizes = [10, 8], strides = [1, 1]} : vector<10x32xf32> to vector<10x8xf32>
    %283 = arith.truncf %282 : vector<10x8xf32> to vector<10x8xbf16>
    %cst_81 = arith.constant dense<0.000000e+00> : vector<8x10xf32>
    %284 = tpu.matmul %279, %281, %cst_81 {dimension_numbers = #tpu.dot_dimension_numbers<[1], [1], [0], [0], [0, 0, 1, 0], [], []>} : vector<8x8xbf16>, vector<10x8xbf16>, vector<8x10xf32> -> vector<8x10xf32>
    %cst_82 = arith.constant 0.353553385 : f32
    %285 = vector.broadcast %cst_82 : f32 to vector<8x10xf32>
    %286 = arith.mulf %284, %285 : vector<8x10xf32>
    %cst_83 = arith.constant dense<0xFF800000> : vector<8xf32>
    %287 = vector.multi_reduction <maximumf>, %286, %cst_83 [1] : vector<8x10xf32> to vector<8xf32>
    %288 = vector.shape_cast %287 : vector<8xf32> to vector<8x1xf32>
    %289 = vector.broadcast %288 : vector<8x1xf32> to vector<8x10xf32>
    %290 = arith.subf %286, %289 : vector<8x10xf32>
    %291 = math.exp %290 : vector<8x10xf32>
    %cst_84 = arith.constant dense<0.000000e+00> : vector<8xf32>
    %292 = vector.multi_reduction <add>, %291, %cst_84 [1] : vector<8x10xf32> to vector<8xf32>
    %293 = vector.shape_cast %292 : vector<8xf32> to vector<8x1xf32>
    %294 = tpu.reciprocal %293 {approx = true} : vector<8x1xf32> -> vector<8x1xf32>
    %295 = vector.broadcast %294 : vector<8x1xf32> to vector<8x10xf32>
    %296 = arith.mulf %291, %295 : vector<8x10xf32>
    %297 = arith.truncf %296 : vector<8x10xf32> to vector<8x10xbf16>
    %cst_85 = arith.constant dense<0.000000e+00> : vector<8x8xf32>
    %298 = tpu.matmul %297, %283, %cst_85 {dimension_numbers = #tpu.dot_dimension_numbers<[1], [0], [0], [1], [0, 0, 1, 1], [], []>} : vector<8x10xbf16>, vector<10x8xbf16>, vector<8x8xf32> -> vector<8x8xf32>
    %299 = vector.extract_strided_slice %233 {offsets = [0, 24], sizes = [8, 8], strides = [1, 1]} : vector<8x32xf32> to vector<8x8xf32>
    %300 = arith.truncf %299 : vector<8x8xf32> to vector<8x8xbf16>
    %301 = vector.extract_strided_slice %234 {offsets = [0, 24], sizes = [10, 8], strides = [1, 1]} : vector<10x32xf32> to vector<10x8xf32>
    %302 = arith.truncf %301 : vector<10x8xf32> to vector<10x8xbf16>
    %303 = vector.extract_strided_slice %235 {offsets = [0, 24], sizes = [10, 8], strides = [1, 1]} : vector<10x32xf32> to vector<10x8xf32>
    %304 = arith.truncf %303 : vector<10x8xf32> to vector<10x8xbf16>
    %cst_86 = arith.constant dense<0.000000e+00> : vector<8x10xf32>
    %305 = tpu.matmul %300, %302, %cst_86 {dimension_numbers = #tpu.dot_dimension_numbers<[1], [1], [0], [0], [0, 0, 1, 0], [], []>} : vector<8x8xbf16>, vector<10x8xbf16>, vector<8x10xf32> -> vector<8x10xf32>
    %cst_87 = arith.constant 0.353553385 : f32
    %306 = vector.broadcast %cst_87 : f32 to vector<8x10xf32>
    %307 = arith.mulf %305, %306 : vector<8x10xf32>
    %cst_88 = arith.constant dense<0xFF800000> : vector<8xf32>
    %308 = vector.multi_reduction <maximumf>, %307, %cst_88 [1] : vector<8x10xf32> to vector<8xf32>
    %309 = vector.shape_cast %308 : vector<8xf32> to vector<8x1xf32>
    %310 = vector.broadcast %309 : vector<8x1xf32> to vector<8x10xf32>
    %311 = arith.subf %307, %310 : vector<8x10xf32>
    %312 = math.exp %311 : vector<8x10xf32>
    %cst_89 = arith.constant dense<0.000000e+00> : vector<8xf32>
    %313 = vector.multi_reduction <add>, %312, %cst_89 [1] : vector<8x10xf32> to vector<8xf32>
    %314 = vector.shape_cast %313 : vector<8xf32> to vector<8x1xf32>
    %315 = tpu.reciprocal %314 {approx = true} : vector<8x1xf32> -> vector<8x1xf32>
    %316 = vector.broadcast %315 : vector<8x1xf32> to vector<8x10xf32>
    %317 = arith.mulf %312, %316 : vector<8x10xf32>
    %318 = arith.truncf %317 : vector<8x10xf32> to vector<8x10xbf16>
    %cst_90 = arith.constant dense<0.000000e+00> : vector<8x8xf32>
    %319 = tpu.matmul %318, %304, %cst_90 {dimension_numbers = #tpu.dot_dimension_numbers<[1], [0], [0], [1], [0, 0, 1, 1], [], []>} : vector<8x10xbf16>, vector<10x8xbf16>, vector<8x8xf32> -> vector<8x8xf32>
    %320 = tpu.concatenate %256, %277, %298, %319 in 1 : vector<8x8xf32>, vector<8x8xf32>, vector<8x8xf32>, vector<8x8xf32> -> vector<8x32xf32>
    %321 = vector.extract_strided_slice %224 {offsets = [8, 0], sizes = [8, 32], strides = [1, 1]} : vector<16x32xf32> to vector<8x32xf32>
    %322 = vector.extract_strided_slice %231 {offsets = [10, 0], sizes = [10, 32], strides = [1, 1]} : vector<20x32xf32> to vector<10x32xf32>
    %323 = vector.extract_strided_slice %232 {offsets = [10, 0], sizes = [10, 32], strides = [1, 1]} : vector<20x32xf32> to vector<10x32xf32>
    %324 = vector.extract_strided_slice %321 {offsets = [0, 0], sizes = [8, 8], strides = [1, 1]} : vector<8x32xf32> to vector<8x8xf32>
    %325 = arith.truncf %324 : vector<8x8xf32> to vector<8x8xbf16>
    %326 = vector.extract_strided_slice %322 {offsets = [0, 0], sizes = [10, 8], strides = [1, 1]} : vector<10x32xf32> to vector<10x8xf32>
    %327 = arith.truncf %326 : vector<10x8xf32> to vector<10x8xbf16>
    %328 = vector.extract_strided_slice %323 {offsets = [0, 0], sizes = [10, 8], strides = [1, 1]} : vector<10x32xf32> to vector<10x8xf32>
    %329 = arith.truncf %328 : vector<10x8xf32> to vector<10x8xbf16>
    %cst_91 = arith.constant dense<0.000000e+00> : vector<8x10xf32>
    %330 = tpu.matmul %325, %327, %cst_91 {dimension_numbers = #tpu.dot_dimension_numbers<[1], [1], [0], [0], [0, 0, 1, 0], [], []>} : vector<8x8xbf16>, vector<10x8xbf16>, vector<8x10xf32> -> vector<8x10xf32>
    %cst_92 = arith.constant 0.353553385 : f32
    %331 = vector.broadcast %cst_92 : f32 to vector<8x10xf32>
    %332 = arith.mulf %330, %331 : vector<8x10xf32>
    %cst_93 = arith.constant dense<0xFF800000> : vector<8xf32>
    %333 = vector.multi_reduction <maximumf>, %332, %cst_93 [1] : vector<8x10xf32> to vector<8xf32>
    %334 = vector.shape_cast %333 : vector<8xf32> to vector<8x1xf32>
    %335 = vector.broadcast %334 : vector<8x1xf32> to vector<8x10xf32>
    %336 = arith.subf %332, %335 : vector<8x10xf32>
    %337 = math.exp %336 : vector<8x10xf32>
    %cst_94 = arith.constant dense<0.000000e+00> : vector<8xf32>
    %338 = vector.multi_reduction <add>, %337, %cst_94 [1] : vector<8x10xf32> to vector<8xf32>
    %339 = vector.shape_cast %338 : vector<8xf32> to vector<8x1xf32>
    %340 = tpu.reciprocal %339 {approx = true} : vector<8x1xf32> -> vector<8x1xf32>
    %341 = vector.broadcast %340 : vector<8x1xf32> to vector<8x10xf32>
    %342 = arith.mulf %337, %341 : vector<8x10xf32>
    %343 = arith.truncf %342 : vector<8x10xf32> to vector<8x10xbf16>
    %cst_95 = arith.constant dense<0.000000e+00> : vector<8x8xf32>
    %344 = tpu.matmul %343, %329, %cst_95 {dimension_numbers = #tpu.dot_dimension_numbers<[1], [0], [0], [1], [0, 0, 1, 1], [], []>} : vector<8x10xbf16>, vector<10x8xbf16>, vector<8x8xf32> -> vector<8x8xf32>
    %345 = vector.extract_strided_slice %321 {offsets = [0, 8], sizes = [8, 8], strides = [1, 1]} : vector<8x32xf32> to vector<8x8xf32>
    %346 = arith.truncf %345 : vector<8x8xf32> to vector<8x8xbf16>
    %347 = vector.extract_strided_slice %322 {offsets = [0, 8], sizes = [10, 8], strides = [1, 1]} : vector<10x32xf32> to vector<10x8xf32>
    %348 = arith.truncf %347 : vector<10x8xf32> to vector<10x8xbf16>
    %349 = vector.extract_strided_slice %323 {offsets = [0, 8], sizes = [10, 8], strides = [1, 1]} : vector<10x32xf32> to vector<10x8xf32>
    %350 = arith.truncf %349 : vector<10x8xf32> to vector<10x8xbf16>
    %cst_96 = arith.constant dense<0.000000e+00> : vector<8x10xf32>
    %351 = tpu.matmul %346, %348, %cst_96 {dimension_numbers = #tpu.dot_dimension_numbers<[1], [1], [0], [0], [0, 0, 1, 0], [], []>} : vector<8x8xbf16>, vector<10x8xbf16>, vector<8x10xf32> -> vector<8x10xf32>
    %cst_97 = arith.constant 0.353553385 : f32
    %352 = vector.broadcast %cst_97 : f32 to vector<8x10xf32>
    %353 = arith.mulf %351, %352 : vector<8x10xf32>
    %cst_98 = arith.constant dense<0xFF800000> : vector<8xf32>
    %354 = vector.multi_reduction <maximumf>, %353, %cst_98 [1] : vector<8x10xf32> to vector<8xf32>
    %355 = vector.shape_cast %354 : vector<8xf32> to vector<8x1xf32>
    %356 = vector.broadcast %355 : vector<8x1xf32> to vector<8x10xf32>
    %357 = arith.subf %353, %356 : vector<8x10xf32>
    %358 = math.exp %357 : vector<8x10xf32>
    %cst_99 = arith.constant dense<0.000000e+00> : vector<8xf32>
    %359 = vector.multi_reduction <add>, %358, %cst_99 [1] : vector<8x10xf32> to vector<8xf32>
    %360 = vector.shape_cast %359 : vector<8xf32> to vector<8x1xf32>
    %361 = tpu.reciprocal %360 {approx = true} : vector<8x1xf32> -> vector<8x1xf32>
    %362 = vector.broadcast %361 : vector<8x1xf32> to vector<8x10xf32>
    %363 = arith.mulf %358, %362 : vector<8x10xf32>
    %364 = arith.truncf %363 : vector<8x10xf32> to vector<8x10xbf16>
    %cst_100 = arith.constant dense<0.000000e+00> : vector<8x8xf32>
    %365 = tpu.matmul %364, %350, %cst_100 {dimension_numbers = #tpu.dot_dimension_numbers<[1], [0], [0], [1], [0, 0, 1, 1], [], []>} : vector<8x10xbf16>, vector<10x8xbf16>, vector<8x8xf32> -> vector<8x8xf32>
    %366 = vector.extract_strided_slice %321 {offsets = [0, 16], sizes = [8, 8], strides = [1, 1]} : vector<8x32xf32> to vector<8x8xf32>
    %367 = arith.truncf %366 : vector<8x8xf32> to vector<8x8xbf16>
    %368 = vector.extract_strided_slice %322 {offsets = [0, 16], sizes = [10, 8], strides = [1, 1]} : vector<10x32xf32> to vector<10x8xf32>
    %369 = arith.truncf %368 : vector<10x8xf32> to vector<10x8xbf16>
    %370 = vector.extract_strided_slice %323 {offsets = [0, 16], sizes = [10, 8], strides = [1, 1]} : vector<10x32xf32> to vector<10x8xf32>
    %371 = arith.truncf %370 : vector<10x8xf32> to vector<10x8xbf16>
    %cst_101 = arith.constant dense<0.000000e+00> : vector<8x10xf32>
    %372 = tpu.matmul %367, %369, %cst_101 {dimension_numbers = #tpu.dot_dimension_numbers<[1], [1], [0], [0], [0, 0, 1, 0], [], []>} : vector<8x8xbf16>, vector<10x8xbf16>, vector<8x10xf32> -> vector<8x10xf32>
    %cst_102 = arith.constant 0.353553385 : f32
    %373 = vector.broadcast %cst_102 : f32 to vector<8x10xf32>
    %374 = arith.mulf %372, %373 : vector<8x10xf32>
    %cst_103 = arith.constant dense<0xFF800000> : vector<8xf32>
    %375 = vector.multi_reduction <maximumf>, %374, %cst_103 [1] : vector<8x10xf32> to vector<8xf32>
    %376 = vector.shape_cast %375 : vector<8xf32> to vector<8x1xf32>
    %377 = vector.broadcast %376 : vector<8x1xf32> to vector<8x10xf32>
    %378 = arith.subf %374, %377 : vector<8x10xf32>
    %379 = math.exp %378 : vector<8x10xf32>
    %cst_104 = arith.constant dense<0.000000e+00> : vector<8xf32>
    %380 = vector.multi_reduction <add>, %379, %cst_104 [1] : vector<8x10xf32> to vector<8xf32>
    %381 = vector.shape_cast %380 : vector<8xf32> to vector<8x1xf32>
    %382 = tpu.reciprocal %381 {approx = true} : vector<8x1xf32> -> vector<8x1xf32>
    %383 = vector.broadcast %382 : vector<8x1xf32> to vector<8x10xf32>
    %384 = arith.mulf %379, %383 : vector<8x10xf32>
    %385 = arith.truncf %384 : vector<8x10xf32> to vector<8x10xbf16>
    %cst_105 = arith.constant dense<0.000000e+00> : vector<8x8xf32>
    %386 = tpu.matmul %385, %371, %cst_105 {dimension_numbers = #tpu.dot_dimension_numbers<[1], [0], [0], [1], [0, 0, 1, 1], [], []>} : vector<8x10xbf16>, vector<10x8xbf16>, vector<8x8xf32> -> vector<8x8xf32>
    %387 = vector.extract_strided_slice %321 {offsets = [0, 24], sizes = [8, 8], strides = [1, 1]} : vector<8x32xf32> to vector<8x8xf32>
    %388 = arith.truncf %387 : vector<8x8xf32> to vector<8x8xbf16>
    %389 = vector.extract_strided_slice %322 {offsets = [0, 24], sizes = [10, 8], strides = [1, 1]} : vector<10x32xf32> to vector<10x8xf32>
    %390 = arith.truncf %389 : vector<10x8xf32> to vector<10x8xbf16>
    %391 = vector.extract_strided_slice %323 {offsets = [0, 24], sizes = [10, 8], strides = [1, 1]} : vector<10x32xf32> to vector<10x8xf32>
    %392 = arith.truncf %391 : vector<10x8xf32> to vector<10x8xbf16>
    %cst_106 = arith.constant dense<0.000000e+00> : vector<8x10xf32>
    %393 = tpu.matmul %388, %390, %cst_106 {dimension_numbers = #tpu.dot_dimension_numbers<[1], [1], [0], [0], [0, 0, 1, 0], [], []>} : vector<8x8xbf16>, vector<10x8xbf16>, vector<8x10xf32> -> vector<8x10xf32>
    %cst_107 = arith.constant 0.353553385 : f32
    %394 = vector.broadcast %cst_107 : f32 to vector<8x10xf32>
    %395 = arith.mulf %393, %394 : vector<8x10xf32>
    %cst_108 = arith.constant dense<0xFF800000> : vector<8xf32>
    %396 = vector.multi_reduction <maximumf>, %395, %cst_108 [1] : vector<8x10xf32> to vector<8xf32>
    %397 = vector.shape_cast %396 : vector<8xf32> to vector<8x1xf32>
    %398 = vector.broadcast %397 : vector<8x1xf32> to vector<8x10xf32>
    %399 = arith.subf %395, %398 : vector<8x10xf32>
    %400 = math.exp %399 : vector<8x10xf32>
    %cst_109 = arith.constant dense<0.000000e+00> : vector<8xf32>
    %401 = vector.multi_reduction <add>, %400, %cst_109 [1] : vector<8x10xf32> to vector<8xf32>
    %402 = vector.shape_cast %401 : vector<8xf32> to vector<8x1xf32>
    %403 = tpu.reciprocal %402 {approx = true} : vector<8x1xf32> -> vector<8x1xf32>
    %404 = vector.broadcast %403 : vector<8x1xf32> to vector<8x10xf32>
    %405 = arith.mulf %400, %404 : vector<8x10xf32>
    %406 = arith.truncf %405 : vector<8x10xf32> to vector<8x10xbf16>
    %cst_110 = arith.constant dense<0.000000e+00> : vector<8x8xf32>
    %407 = tpu.matmul %406, %392, %cst_110 {dimension_numbers = #tpu.dot_dimension_numbers<[1], [0], [0], [1], [0, 0, 1, 1], [], []>} : vector<8x10xbf16>, vector<10x8xbf16>, vector<8x8xf32> -> vector<8x8xf32>
    %408 = tpu.concatenate %344, %365, %386, %407 in 1 : vector<8x8xf32>, vector<8x8xf32>, vector<8x8xf32>, vector<8x8xf32> -> vector<8x32xf32>
    %409 = tpu.concatenate %320, %408 in 0 : vector<8x32xf32>, vector<8x32xf32> -> vector<16x32xf32>
    %c0_111 = arith.constant 0 : index
    %c0_112 = arith.constant 0 : index
    %410 = vector.load %arg13[%c0_111, %c0_112] : memref<32x32xbf16, #tpu.memory_space<vmem>>, vector<32x32xbf16>
    %c0_113 = arith.constant 0 : index
    %c0_114 = arith.constant 0 : index
    %411 = vector.load %arg14[%c0_113, %c0_114] : memref<1x32xf32, #tpu.memory_space<vmem>>, vector<1x32xf32>
    %412 = arith.truncf %409 : vector<16x32xf32> to vector<16x32xbf16>
    %cst_115 = arith.constant dense<0.000000e+00> : vector<16x32xf32>
    %413 = tpu.matmul %412, %410, %cst_115 {dimension_numbers = #tpu.dot_dimension_numbers<[1], [0], [0], [1], [0, 0, 1, 1], [], []>} : vector<16x32xbf16>, vector<32x32xbf16>, vector<16x32xf32> -> vector<16x32xf32>
    %414 = vector.broadcast %411 : vector<1x32xf32> to vector<16x32xf32>
    %415 = arith.addf %413, %414 : vector<16x32xf32>
    %416 = arith.addf %218, %415 : vector<16x32xf32>
    %c0_116 = arith.constant 0 : index
    %c0_117 = arith.constant 0 : index
    %417 = vector.load %arg15[%c0_116, %c0_117] : memref<1x32xf32, #tpu.memory_space<vmem>>, vector<1x32xf32>
    %c0_118 = arith.constant 0 : index
    %c0_119 = arith.constant 0 : index
    %418 = vector.load %arg16[%c0_118, %c0_119] : memref<1x32xf32, #tpu.memory_space<vmem>>, vector<1x32xf32>
    %cst_120 = arith.constant dense<0.000000e+00> : vector<16xf32>
    %419 = vector.multi_reduction <add>, %416, %cst_120 [1] : vector<16x32xf32> to vector<16xf32>
    %420 = vector.shape_cast %419 : vector<16xf32> to vector<16x1xf32>
    %cst_121 = arith.constant 3.200000e+01 : f32
    %421 = vector.broadcast %cst_121 : f32 to vector<16x1xf32>
    %422 = arith.divf %420, %421 : vector<16x1xf32>
    %423 = vector.broadcast %422 : vector<16x1xf32> to vector<16x32xf32>
    %424 = arith.subf %416, %423 : vector<16x32xf32>
    %425 = arith.mulf %424, %424 : vector<16x32xf32>
    %cst_122 = arith.constant dense<0.000000e+00> : vector<16xf32>
    %426 = vector.multi_reduction <add>, %425, %cst_122 [1] : vector<16x32xf32> to vector<16xf32>
    %427 = vector.shape_cast %426 : vector<16xf32> to vector<16x1xf32>
    %cst_123 = arith.constant 3.200000e+01 : f32
    %428 = vector.broadcast %cst_123 : f32 to vector<16x1xf32>
    %429 = arith.divf %427, %428 : vector<16x1xf32>
    %430 = vector.broadcast %422 : vector<16x1xf32> to vector<16x32xf32>
    %431 = arith.subf %416, %430 : vector<16x32xf32>
    %cst_124 = arith.constant 9.99999974E-6 : f32
    %432 = vector.broadcast %cst_124 : f32 to vector<16x1xf32>
    %433 = arith.addf %429, %432 : vector<16x1xf32>
    %434 = math.rsqrt %433 : vector<16x1xf32>
    %435 = vector.broadcast %434 : vector<16x1xf32> to vector<16x32xf32>
    %436 = arith.mulf %431, %435 : vector<16x32xf32>
    %437 = vector.broadcast %417 : vector<1x32xf32> to vector<16x32xf32>
    %438 = arith.mulf %436, %437 : vector<16x32xf32>
    %439 = vector.broadcast %418 : vector<1x32xf32> to vector<16x32xf32>
    %440 = arith.addf %438, %439 : vector<16x32xf32>
    %c0_125 = arith.constant 0 : index
    %c0_126 = arith.constant 0 : index
    %441 = vector.load %arg17[%c0_125, %c0_126] : memref<32x64xbf16, #tpu.memory_space<vmem>>, vector<32x64xbf16>
    %c0_127 = arith.constant 0 : index
    %c0_128 = arith.constant 0 : index
    %442 = vector.load %arg18[%c0_127, %c0_128] : memref<1x64xf32, #tpu.memory_space<vmem>>, vector<1x64xf32>
    %443 = arith.truncf %440 : vector<16x32xf32> to vector<16x32xbf16>
    %cst_129 = arith.constant dense<0.000000e+00> : vector<16x64xf32>
    %444 = tpu.matmul %443, %441, %cst_129 {dimension_numbers = #tpu.dot_dimension_numbers<[1], [0], [0], [1], [0, 0, 1, 1], [], []>} : vector<16x32xbf16>, vector<32x64xbf16>, vector<16x64xf32> -> vector<16x64xf32>
    %445 = vector.broadcast %442 : vector<1x64xf32> to vector<16x64xf32>
    %446 = arith.addf %444, %445 : vector<16x64xf32>
    %cst_130 = arith.constant 0.000000e+00 : f32
    %447 = vector.broadcast %cst_130 : f32 to vector<16x64xf32>
    %448 = arith.maximumf %446, %447 : vector<16x64xf32>
    %c0_131 = arith.constant 0 : index
    %c0_132 = arith.constant 0 : index
    %449 = vector.load %arg19[%c0_131, %c0_132] : memref<64x32xbf16, #tpu.memory_space<vmem>>, vector<64x32xbf16>
    %c0_133 = arith.constant 0 : index
    %c0_134 = arith.constant 0 : index
    %450 = vector.load %arg20[%c0_133, %c0_134] : memref<1x32xf32, #tpu.memory_space<vmem>>, vector<1x32xf32>
    %451 = arith.truncf %448 : vector<16x64xf32> to vector<16x64xbf16>
    %cst_135 = arith.constant dense<0.000000e+00> : vector<16x32xf32>
    %452 = tpu.matmul %451, %449, %cst_135 {dimension_numbers = #tpu.dot_dimension_numbers<[1], [0], [0], [1], [0, 0, 1, 1], [], []>} : vector<16x64xbf16>, vector<64x32xbf16>, vector<16x32xf32> -> vector<16x32xf32>
    %453 = vector.broadcast %450 : vector<1x32xf32> to vector<16x32xf32>
    %454 = arith.addf %452, %453 : vector<16x32xf32>
    %455 = arith.addf %440, %454 : vector<16x32xf32>
    %c0_136 = arith.constant 0 : index
    %c0_137 = arith.constant 0 : index
    %456 = vector.load %arg21[%c0_136, %c0_137] : memref<1x32xf32, #tpu.memory_space<vmem>>, vector<1x32xf32>
    %c0_138 = arith.constant 0 : index
    %c0_139 = arith.constant 0 : index
    %457 = vector.load %arg22[%c0_138, %c0_139] : memref<1x32xf32, #tpu.memory_space<vmem>>, vector<1x32xf32>
    %cst_140 = arith.constant dense<0.000000e+00> : vector<16xf32>
    %458 = vector.multi_reduction <add>, %455, %cst_140 [1] : vector<16x32xf32> to vector<16xf32>
    %459 = vector.shape_cast %458 : vector<16xf32> to vector<16x1xf32>
    %cst_141 = arith.constant 3.200000e+01 : f32
    %460 = vector.broadcast %cst_141 : f32 to vector<16x1xf32>
    %461 = arith.divf %459, %460 : vector<16x1xf32>
    %462 = vector.broadcast %461 : vector<16x1xf32> to vector<16x32xf32>
    %463 = arith.subf %455, %462 : vector<16x32xf32>
    %464 = arith.mulf %463, %463 : vector<16x32xf32>
    %cst_142 = arith.constant dense<0.000000e+00> : vector<16xf32>
    %465 = vector.multi_reduction <add>, %464, %cst_142 [1] : vector<16x32xf32> to vector<16xf32>
    %466 = vector.shape_cast %465 : vector<16xf32> to vector<16x1xf32>
    %cst_143 = arith.constant 3.200000e+01 : f32
    %467 = vector.broadcast %cst_143 : f32 to vector<16x1xf32>
    %468 = arith.divf %466, %467 : vector<16x1xf32>
    %469 = vector.broadcast %461 : vector<16x1xf32> to vector<16x32xf32>
    %470 = arith.subf %455, %469 : vector<16x32xf32>
    %cst_144 = arith.constant 9.99999974E-6 : f32
    %471 = vector.broadcast %cst_144 : f32 to vector<16x1xf32>
    %472 = arith.addf %468, %471 : vector<16x1xf32>
    %473 = math.rsqrt %472 : vector<16x1xf32>
    %474 = vector.broadcast %473 : vector<16x1xf32> to vector<16x32xf32>
    %475 = arith.mulf %470, %474 : vector<16x32xf32>
    %476 = vector.broadcast %456 : vector<1x32xf32> to vector<16x32xf32>
    %477 = arith.mulf %475, %476 : vector<16x32xf32>
    %478 = vector.broadcast %457 : vector<1x32xf32> to vector<16x32xf32>
    %479 = arith.addf %477, %478 : vector<16x32xf32>
    %c0_145 = arith.constant 0 : index
    %c0_146 = arith.constant 0 : index
    %480 = vector.load %arg23[%c0_145, %c0_146] : memref<16x32xf32, #tpu.memory_space<vmem>>, vector<16x32xf32>
    tpu.vector_store %arg23[%c0_145, %c0_146], %479 {strides = array<i32>} : memref<16x32xf32, #tpu.memory_space<vmem>>, vector<16x32xf32>,
    return
  }
  func.func @transform_0(%arg0: i32) -> (i32, i32) {
    %c0_i32 = arith.constant 0 : i32
    %c0_i32_0 = arith.constant 0 : i32
    %c0_i32_1 = arith.constant 0 : i32
    return %c0_i32, %c0_i32_0 : i32, i32
  }
  func.func @transform_1(%arg0: i32) -> (i32, i32) {
    %c0_i32 = arith.constant 0 : i32
    %c0_i32_0 = arith.constant 0 : i32
    %c0_i32_1 = arith.constant 0 : i32
    return %c0_i32, %c0_i32_0 : i32, i32
  }
  func.func @transform_2(%arg0: i32) -> (i32, i32) {
    %c0_i32 = arith.constant 0 : i32
    %c0_i32_0 = arith.constant 0 : i32
    %c0_i32_1 = arith.constant 0 : i32
    return %c0_i32, %c0_i32_0 : i32, i32
  }
  func.func @transform_3(%arg0: i32) -> (i32, i32) {
    %c0_i32 = arith.constant 0 : i32
    %c0_i32_0 = arith.constant 0 : i32
    %c0_i32_1 = arith.constant 0 : i32
    return %c0_i32, %c0_i32_0 : i32, i32
  }
  func.func @transform_4(%arg0: i32) -> (i32, i32) {
    %c0_i32 = arith.constant 0 : i32
    %c0_i32_0 = arith.constant 0 : i32
    %c0_i32_1 = arith.constant 0 : i32
    return %c0_i32, %c0_i32_0 : i32, i32
  }
  func.func @transform_5(%arg0: i32) -> (i32, i32) {
    %c0_i32 = arith.constant 0 : i32
    %c0_i32_0 = arith.constant 0 : i32
    %c0_i32_1 = arith.constant 0 : i32
    return %c0_i32, %c0_i32_0 : i32, i32
  }
  func.func @transform_6(%arg0: i32) -> (i32, i32) {
    %c0_i32 = arith.constant 0 : i32
    %c0_i32_0 = arith.constant 0 : i32
    %c0_i32_1 = arith.constant 0 : i32
    return %c0_i32, %c0_i32_0 : i32, i32
  }
  func.func @transform_7(%arg0: i32) -> (i32, i32) {
    %c0_i32 = arith.constant 0 : i32
    %c0_i32_0 = arith.constant 0 : i32
    %c0_i32_1 = arith.constant 0 : i32
    return %c0_i32, %c0_i32_0 : i32, i32
  }
  func.func @transform_8(%arg0: i32) -> (i32, i32) {
    %c0_i32 = arith.constant 0 : i32
    %c0_i32_0 = arith.constant 0 : i32
    %c0_i32_1 = arith.constant 0 : i32
    return %c0_i32, %c0_i32_0 : i32, i32
  }
  func.func @transform_9(%arg0: i32) -> (i32, i32) {
    %c0_i32 = arith.constant 0 : i32
    %c0_i32_0 = arith.constant 0 : i32
    %c0_i32_1 = arith.constant 0 : i32
    return %c0_i32, %c0_i32_0 : i32, i32
  }
  func.func @transform_10(%arg0: i32) -> (i32, i32) {
    %c0_i32 = arith.constant 0 : i32
    %c0_i32_0 = arith.constant 0 : i32
    %c0_i32_1 = arith.constant 0 : i32
    return %c0_i32, %c0_i32_0 : i32, i32
  }
  func.func @transform_11(%arg0: i32) -> (i32, i32) {
    %c0_i32 = arith.constant 0 : i32
    %c0_i32_0 = arith.constant 0 : i32
    %c0_i32_1 = arith.constant 0 : i32
    return %c0_i32, %c0_i32_0 : i32, i32
  }
  func.func @transform_12(%arg0: i32) -> (i32, i32) {
    %c0_i32 = arith.constant 0 : i32
    %c0_i32_0 = arith.constant 0 : i32
    %c0_i32_1 = arith.constant 0 : i32
    return %c0_i32, %c0_i32_0 : i32, i32
  }
  func.func @transform_13(%arg0: i32) -> (i32, i32) {
    %c0_i32 = arith.constant 0 : i32
    %c0_i32_0 = arith.constant 0 : i32
    %c0_i32_1 = arith.constant 0 : i32
    return %c0_i32, %c0_i32_0 : i32, i32
  }
  func.func @transform_14(%arg0: i32) -> (i32, i32) {
    %c0_i32 = arith.constant 0 : i32
    %c0_i32_0 = arith.constant 0 : i32
    %c0_i32_1 = arith.constant 0 : i32
    return %c0_i32, %c0_i32_0 : i32, i32
  }
  func.func @transform_15(%arg0: i32) -> (i32, i32) {
    %c0_i32 = arith.constant 0 : i32
    %c0_i32_0 = arith.constant 0 : i32
    %c0_i32_1 = arith.constant 0 : i32
    return %c0_i32, %c0_i32_0 : i32, i32
  }
  func.func @transform_16(%arg0: i32) -> (i32, i32) {
    %c0_i32 = arith.constant 0 : i32
    %c0_i32_0 = arith.constant 0 : i32
    %c0_i32_1 = arith.constant 0 : i32
    return %c0_i32, %c0_i32_0 : i32, i32
  }
  func.func @transform_17(%arg0: i32) -> (i32, i32) {
    %c0_i32 = arith.constant 0 : i32
    %c0_i32_0 = arith.constant 0 : i32
    %c0_i32_1 = arith.constant 0 : i32
    return %c0_i32, %c0_i32_0 : i32, i32
  }
  func.func @transform_18(%arg0: i32) -> (i32, i32) {
    %c0_i32 = arith.constant 0 : i32
    %c0_i32_0 = arith.constant 0 : i32
    %c0_i32_1 = arith.constant 0 : i32
    return %c0_i32, %c0_i32_0 : i32, i32
  }
  func.func @transform_19(%arg0: i32) -> (i32, i32) {
    %c0_i32 = arith.constant 0 : i32
    %c0_i32_0 = arith.constant 0 : i32
    %c0_i32_1 = arith.constant 0 : i32
    return %c0_i32, %c0_i32_0 : i32, i32
  }
  func.func @transform_20(%arg0: i32) -> (i32, i32) {
    %c0_i32 = arith.constant 0 : i32
    %c0_i32_0 = arith.constant 0 : i32
    %c0_i32_1 = arith.constant 0 : i32
    return %c0_i32, %c0_i32_0 : i32, i32
  }
  func.func @transform_21(%arg0: i32) -> (i32, i32) {
    %c0_i32 = arith.constant 0 : i32
    %c0_i32_0 = arith.constant 0 : i32
    %c0_i32_1 = arith.constant 0 : i32
    return %c0_i32, %c0_i32_0 : i32, i32
  }
  func.func @transform_22(%arg0: i32) -> (i32, i32) {
    %c0_i32 = arith.constant 0 : i32
    %c0_i32_0 = arith.constant 0 : i32
    %c0_i32_1 = arith.constant 0 : i32
    return %c0_i32, %c0_i32_0 : i32, i32
  }
}

module attributes {stable_mosaic.version = 11 : i64} {
  func.func @_out_proj_kernel(%arg0: i32, %arg1: memref<16x32xf32, #tpu.memory_space<vmem>>, %arg2: memref<32x128xbf16, #tpu.memory_space<vmem>>, %arg3: memref<1x128xf32, #tpu.memory_space<vmem>>, %arg4: memref<16x128xf32, #tpu.memory_space<vmem>>) attributes {dimension_semantics = [#tpu.dimension_semantics<arbitrary>], iteration_bounds = array<i64: 1>, scalar_prefetch = 0 : i64, scratch_operands = 0 : i64, tpu.core_type = #tpu.core_type<tc>, window_params = [{pipeline_mode = #tpu.pipeline_mode<synchronous>, transform_indices = @transform_0, window_bounds = array<i64: 16, 32>}, {pipeline_mode = #tpu.pipeline_mode<synchronous>, transform_indices = @transform_1, window_bounds = array<i64: 32, 128>}, {pipeline_mode = #tpu.pipeline_mode<synchronous>, transform_indices = @transform_2, window_bounds = array<i64: 1, 128>}, {pipeline_mode = #tpu.pipeline_mode<synchronous>, transform_indices = @transform_3, window_bounds = array<i64: 16, 128>}]} {
    %c0 = arith.constant 0 : index
    %c0_0 = arith.constant 0 : index
    %0 = vector.load %arg1[%c0, %c0_0] : memref<16x32xf32, #tpu.memory_space<vmem>>, vector<16x32xf32>
    %1 = arith.truncf %0 : vector<16x32xf32> to vector<16x32xbf16>
    %c0_1 = arith.constant 0 : index
    %c0_2 = arith.constant 0 : index
    %2 = vector.load %arg2[%c0_1, %c0_2] : memref<32x128xbf16, #tpu.memory_space<vmem>>, vector<32x128xbf16>
    %cst = arith.constant dense<0.000000e+00> : vector<16x128xf32>
    %3 = tpu.matmul %1, %2, %cst {dimension_numbers = #tpu.dot_dimension_numbers<[1], [0], [0], [1], [0, 0, 1, 1], [], []>} : vector<16x32xbf16>, vector<32x128xbf16>, vector<16x128xf32> -> vector<16x128xf32>
    %c0_3 = arith.constant 0 : index
    %c0_4 = arith.constant 0 : index
    %4 = vector.load %arg3[%c0_3, %c0_4] : memref<1x128xf32, #tpu.memory_space<vmem>>, vector<1x128xf32>
    %5 = vector.broadcast %4 : vector<1x128xf32> to vector<16x128xf32>
    %6 = arith.addf %3, %5 : vector<16x128xf32>
    %c0_5 = arith.constant 0 : index
    %c0_6 = arith.constant 0 : index
    %7 = vector.load %arg4[%c0_5, %c0_6] : memref<16x128xf32, #tpu.memory_space<vmem>>, vector<16x128xf32>
    tpu.vector_store %arg4[%c0_5, %c0_6], %6 {strides = array<i32>} : memref<16x128xf32, #tpu.memory_space<vmem>>, vector<16x128xf32>,
    return
  }
  func.func @transform_0(%arg0: i32) -> (i32, i32) {
    %c0_i32 = arith.constant 0 : i32
    %c0_i32_0 = arith.constant 0 : i32
    %c0_i32_1 = arith.constant 0 : i32
    return %c0_i32, %c0_i32_0 : i32, i32
  }
  func.func @transform_1(%arg0: i32) -> (i32, i32) {
    %c0_i32 = arith.constant 0 : i32
    %c0_i32_0 = arith.constant 0 : i32
    %c0_i32_1 = arith.constant 0 : i32
    return %c0_i32, %c0_i32_0 : i32, i32
  }
  func.func @transform_2(%arg0: i32) -> (i32, i32) {
    %c0_i32 = arith.constant 0 : i32
    %c0_i32_0 = arith.constant 0 : i32
    %c0_i32_1 = arith.constant 0 : i32
    return %c0_i32, %c0_i32_0 : i32, i32
  }
  func.func @transform_3(%arg0: i32) -> (i32, i32) {
    %c0_i32 = arith.constant 0 : i32
    %c0_i32_0 = arith.constant 0 : i32
    %c0_i32_1 = arith.constant 0 : i32
    return %c0_i32, %c0_i32_0 : i32, i32
  }
}

module attributes {stable_mosaic.version = 11 : i64} {
  func.func @kernel(%arg0: i32, %arg1: memref<16x32xf32, #tpu.memory_space<vmem>>, %arg2: memref<20x32xf32, #tpu.memory_space<vmem>>, %arg3: memref<32x96xbf16, #tpu.memory_space<vmem>>, %arg4: memref<1x96xf32, #tpu.memory_space<vmem>>, %arg5: memref<32x32xbf16, #tpu.memory_space<vmem>>, %arg6: memref<1x32xf32, #tpu.memory_space<vmem>>, %arg7: memref<1x32xf32, #tpu.memory_space<vmem>>, %arg8: memref<1x32xf32, #tpu.memory_space<vmem>>, %arg9: memref<32x32xbf16, #tpu.memory_space<vmem>>, %arg10: memref<1x32xf32, #tpu.memory_space<vmem>>, %arg11: memref<32x64xbf16, #tpu.memory_space<vmem>>, %arg12: memref<1x64xf32, #tpu.memory_space<vmem>>, %arg13: memref<32x32xbf16, #tpu.memory_space<vmem>>, %arg14: memref<1x32xf32, #tpu.memory_space<vmem>>, %arg15: memref<1x32xf32, #tpu.memory_space<vmem>>, %arg16: memref<1x32xf32, #tpu.memory_space<vmem>>, %arg17: memref<32x64xbf16, #tpu.memory_space<vmem>>, %arg18: memref<1x64xf32, #tpu.memory_space<vmem>>, %arg19: memref<64x32xbf16, #tpu.memory_space<vmem>>, %arg20: memref<1x32xf32, #tpu.memory_space<vmem>>, %arg21: memref<1x32xf32, #tpu.memory_space<vmem>>, %arg22: memref<1x32xf32, #tpu.memory_space<vmem>>, %arg23: memref<16x32xf32, #tpu.memory_space<vmem>>) attributes {dimension_semantics = [#tpu.dimension_semantics<arbitrary>], iteration_bounds = array<i64: 1>, scalar_prefetch = 0 : i64, scratch_operands = 0 : i64, tpu.core_type = #tpu.core_type<tc>, window_params = [{pipeline_mode = #tpu.pipeline_mode<synchronous>, transform_indices = @transform_0, window_bounds = array<i64: 16, 32>}, {pipeline_mode = #tpu.pipeline_mode<synchronous>, transform_indices = @transform_1, window_bounds = array<i64: 20, 32>}, {pipeline_mode = #tpu.pipeline_mode<synchronous>, transform_indices = @transform_2, window_bounds = array<i64: 32, 96>}, {pipeline_mode = #tpu.pipeline_mode<synchronous>, transform_indices = @transform_3, window_bounds = array<i64: 1, 96>}, {pipeline_mode = #tpu.pipeline_mode<synchronous>, transform_indices = @transform_4, window_bounds = array<i64: 32, 32>}, {pipeline_mode = #tpu.pipeline_mode<synchronous>, transform_indices = @transform_5, window_bounds = array<i64: 1, 32>}, {pipeline_mode = #tpu.pipeline_mode<synchronous>, transform_indices = @transform_6, window_bounds = array<i64: 1, 32>}, {pipeline_mode = #tpu.pipeline_mode<synchronous>, transform_indices = @transform_7, window_bounds = array<i64: 1, 32>}, {pipeline_mode = #tpu.pipeline_mode<synchronous>, transform_indices = @transform_8, window_bounds = array<i64: 32, 32>}, {pipeline_mode = #tpu.pipeline_mode<synchronous>, transform_indices = @transform_9, window_bounds = array<i64: 1, 32>}, {pipeline_mode = #tpu.pipeline_mode<synchronous>, transform_indices = @transform_10, window_bounds = array<i64: 32, 64>}, {pipeline_mode = #tpu.pipeline_mode<synchronous>, transform_indices = @transform_11, window_bounds = array<i64: 1, 64>}, {pipeline_mode = #tpu.pipeline_mode<synchronous>, transform_indices = @transform_12, window_bounds = array<i64: 32, 32>}, {pipeline_mode = #tpu.pipeline_mode<synchronous>, transform_indices = @transform_13, window_bounds = array<i64: 1, 32>}, {pipeline_mode = #tpu.pipeline_mode<synchronous>, transform_indices = @transform_14, window_bounds = array<i64: 1, 32>}, {pipeline_mode = #tpu.pipeline_mode<synchronous>, transform_indices = @transform_15, window_bounds = array<i64: 1, 32>}, {pipeline_mode = #tpu.pipeline_mode<synchronous>, transform_indices = @transform_16, window_bounds = array<i64: 32, 64>}, {pipeline_mode = #tpu.pipeline_mode<synchronous>, transform_indices = @transform_17, window_bounds = array<i64: 1, 64>}, {pipeline_mode = #tpu.pipeline_mode<synchronous>, transform_indices = @transform_18, window_bounds = array<i64: 64, 32>}, {pipeline_mode = #tpu.pipeline_mode<synchronous>, transform_indices = @transform_19, window_bounds = array<i64: 1, 32>}, {pipeline_mode = #tpu.pipeline_mode<synchronous>, transform_indices = @transform_20, window_bounds = array<i64: 1, 32>}, {pipeline_mode = #tpu.pipeline_mode<synchronous>, transform_indices = @transform_21, window_bounds = array<i64: 1, 32>}, {pipeline_mode = #tpu.pipeline_mode<synchronous>, transform_indices = @transform_22, window_bounds = array<i64: 16, 32>}]} {
    %c0 = arith.constant 0 : index
    %c0_0 = arith.constant 0 : index
    %0 = vector.load %arg1[%c0, %c0_0] : memref<16x32xf32, #tpu.memory_space<vmem>>, vector<16x32xf32>
    %c0_1 = arith.constant 0 : index
    %c0_2 = arith.constant 0 : index
    %1 = vector.load %arg2[%c0_1, %c0_2] : memref<20x32xf32, #tpu.memory_space<vmem>>, vector<20x32xf32>
    %c0_3 = arith.constant 0 : index
    %c0_4 = arith.constant 0 : index
    %2 = vector.load %arg3[%c0_3, %c0_4] : memref<32x96xbf16, #tpu.memory_space<vmem>>, vector<32x96xbf16>
    %c0_5 = arith.constant 0 : index
    %c0_6 = arith.constant 0 : index
    %3 = vector.load %arg4[%c0_5, %c0_6] : memref<1x96xf32, #tpu.memory_space<vmem>>, vector<1x96xf32>
    %4 = arith.truncf %0 : vector<16x32xf32> to vector<16x32xbf16>
    %cst = arith.constant dense<0.000000e+00> : vector<16x96xf32>
    %5 = tpu.matmul %4, %2, %cst {dimension_numbers = #tpu.dot_dimension_numbers<[1], [0], [0], [1], [0, 0, 1, 1], [], []>} : vector<16x32xbf16>, vector<32x96xbf16>, vector<16x96xf32> -> vector<16x96xf32>
    %6 = vector.broadcast %3 : vector<1x96xf32> to vector<16x96xf32>
    %7 = arith.addf %5, %6 : vector<16x96xf32>
    %8 = vector.extract_strided_slice %7 {offsets = [0, 0], sizes = [16, 32], strides = [1, 1]} : vector<16x96xf32> to vector<16x32xf32>
    %9 = vector.extract_strided_slice %7 {offsets = [0, 32], sizes = [16, 32], strides = [1, 1]} : vector<16x96xf32> to vector<16x32xf32>
    %10 = vector.extract_strided_slice %7 {offsets = [0, 64], sizes = [16, 32], strides = [1, 1]} : vector<16x96xf32> to vector<16x32xf32>
    %11 = vector.extract_strided_slice %8 {offsets = [0, 0], sizes = [8, 32], strides = [1, 1]} : vector<16x32xf32> to vector<8x32xf32>
    %12 = vector.extract_strided_slice %9 {offsets = [0, 0], sizes = [8, 32], strides = [1, 1]} : vector<16x32xf32> to vector<8x32xf32>
    %13 = vector.extract_strided_slice %10 {offsets = [0, 0], sizes = [8, 32], strides = [1, 1]} : vector<16x32xf32> to vector<8x32xf32>
    %14 = vector.extract_strided_slice %11 {offsets = [0, 0], sizes = [8, 8], strides = [1, 1]} : vector<8x32xf32> to vector<8x8xf32>
    %15 = arith.truncf %14 : vector<8x8xf32> to vector<8x8xbf16>
    %16 = vector.extract_strided_slice %12 {offsets = [0, 0], sizes = [8, 8], strides = [1, 1]} : vector<8x32xf32> to vector<8x8xf32>
    %17 = arith.truncf %16 : vector<8x8xf32> to vector<8x8xbf16>
    %18 = vector.extract_strided_slice %13 {offsets = [0, 0], sizes = [8, 8], strides = [1, 1]} : vector<8x32xf32> to vector<8x8xf32>
    %19 = arith.truncf %18 : vector<8x8xf32> to vector<8x8xbf16>
    %cst_7 = arith.constant dense<0.000000e+00> : vector<8x8xf32>
    %20 = tpu.matmul %15, %17, %cst_7 {dimension_numbers = #tpu.dot_dimension_numbers<[1], [1], [0], [0], [0, 0, 1, 0], [], []>} : vector<8x8xbf16>, vector<8x8xbf16>, vector<8x8xf32> -> vector<8x8xf32>
    %cst_8 = arith.constant 0.353553385 : f32
    %21 = vector.broadcast %cst_8 : f32 to vector<8x8xf32>
    %22 = arith.mulf %20, %21 : vector<8x8xf32>
    %cst_9 = arith.constant dense<0xFF800000> : vector<8xf32>
    %23 = vector.multi_reduction <maximumf>, %22, %cst_9 [1] : vector<8x8xf32> to vector<8xf32>
    %24 = vector.shape_cast %23 : vector<8xf32> to vector<8x1xf32>
    %25 = vector.broadcast %24 : vector<8x1xf32> to vector<8x8xf32>
    %26 = arith.subf %22, %25 : vector<8x8xf32>
    %27 = math.exp %26 : vector<8x8xf32>
    %cst_10 = arith.constant dense<0.000000e+00> : vector<8xf32>
    %28 = vector.multi_reduction <add>, %27, %cst_10 [1] : vector<8x8xf32> to vector<8xf32>
    %29 = vector.shape_cast %28 : vector<8xf32> to vector<8x1xf32>
    %30 = tpu.reciprocal %29 {approx = true} : vector<8x1xf32> -> vector<8x1xf32>
    %31 = vector.broadcast %30 : vector<8x1xf32> to vector<8x8xf32>
    %32 = arith.mulf %27, %31 : vector<8x8xf32>
    %33 = arith.truncf %32 : vector<8x8xf32> to vector<8x8xbf16>
    %cst_11 = arith.constant dense<0.000000e+00> : vector<8x8xf32>
    %34 = tpu.matmul %33, %19, %cst_11 {dimension_numbers = #tpu.dot_dimension_numbers<[1], [0], [0], [1], [0, 0, 1, 1], [], []>} : vector<8x8xbf16>, vector<8x8xbf16>, vector<8x8xf32> -> vector<8x8xf32>
    %35 = vector.extract_strided_slice %11 {offsets = [0, 8], sizes = [8, 8], strides = [1, 1]} : vector<8x32xf32> to vector<8x8xf32>
    %36 = arith.truncf %35 : vector<8x8xf32> to vector<8x8xbf16>
    %37 = vector.extract_strided_slice %12 {offsets = [0, 8], sizes = [8, 8], strides = [1, 1]} : vector<8x32xf32> to vector<8x8xf32>
    %38 = arith.truncf %37 : vector<8x8xf32> to vector<8x8xbf16>
    %39 = vector.extract_strided_slice %13 {offsets = [0, 8], sizes = [8, 8], strides = [1, 1]} : vector<8x32xf32> to vector<8x8xf32>
    %40 = arith.truncf %39 : vector<8x8xf32> to vector<8x8xbf16>
    %cst_12 = arith.constant dense<0.000000e+00> : vector<8x8xf32>
    %41 = tpu.matmul %36, %38, %cst_12 {dimension_numbers = #tpu.dot_dimension_numbers<[1], [1], [0], [0], [0, 0, 1, 0], [], []>} : vector<8x8xbf16>, vector<8x8xbf16>, vector<8x8xf32> -> vector<8x8xf32>
    %cst_13 = arith.constant 0.353553385 : f32
    %42 = vector.broadcast %cst_13 : f32 to vector<8x8xf32>
    %43 = arith.mulf %41, %42 : vector<8x8xf32>
    %cst_14 = arith.constant dense<0xFF800000> : vector<8xf32>
    %44 = vector.multi_reduction <maximumf>, %43, %cst_14 [1] : vector<8x8xf32> to vector<8xf32>
    %45 = vector.shape_cast %44 : vector<8xf32> to vector<8x1xf32>
    %46 = vector.broadcast %45 : vector<8x1xf32> to vector<8x8xf32>
    %47 = arith.subf %43, %46 : vector<8x8xf32>
    %48 = math.exp %47 : vector<8x8xf32>
    %cst_15 = arith.constant dense<0.000000e+00> : vector<8xf32>
    %49 = vector.multi_reduction <add>, %48, %cst_15 [1] : vector<8x8xf32> to vector<8xf32>
    %50 = vector.shape_cast %49 : vector<8xf32> to vector<8x1xf32>
    %51 = tpu.reciprocal %50 {approx = true} : vector<8x1xf32> -> vector<8x1xf32>
    %52 = vector.broadcast %51 : vector<8x1xf32> to vector<8x8xf32>
    %53 = arith.mulf %48, %52 : vector<8x8xf32>
    %54 = arith.truncf %53 : vector<8x8xf32> to vector<8x8xbf16>
    %cst_16 = arith.constant dense<0.000000e+00> : vector<8x8xf32>
    %55 = tpu.matmul %54, %40, %cst_16 {dimension_numbers = #tpu.dot_dimension_numbers<[1], [0], [0], [1], [0, 0, 1, 1], [], []>} : vector<8x8xbf16>, vector<8x8xbf16>, vector<8x8xf32> -> vector<8x8xf32>
    %56 = vector.extract_strided_slice %11 {offsets = [0, 16], sizes = [8, 8], strides = [1, 1]} : vector<8x32xf32> to vector<8x8xf32>
    %57 = arith.truncf %56 : vector<8x8xf32> to vector<8x8xbf16>
    %58 = vector.extract_strided_slice %12 {offsets = [0, 16], sizes = [8, 8], strides = [1, 1]} : vector<8x32xf32> to vector<8x8xf32>
    %59 = arith.truncf %58 : vector<8x8xf32> to vector<8x8xbf16>
    %60 = vector.extract_strided_slice %13 {offsets = [0, 16], sizes = [8, 8], strides = [1, 1]} : vector<8x32xf32> to vector<8x8xf32>
    %61 = arith.truncf %60 : vector<8x8xf32> to vector<8x8xbf16>
    %cst_17 = arith.constant dense<0.000000e+00> : vector<8x8xf32>
    %62 = tpu.matmul %57, %59, %cst_17 {dimension_numbers = #tpu.dot_dimension_numbers<[1], [1], [0], [0], [0, 0, 1, 0], [], []>} : vector<8x8xbf16>, vector<8x8xbf16>, vector<8x8xf32> -> vector<8x8xf32>
    %cst_18 = arith.constant 0.353553385 : f32
    %63 = vector.broadcast %cst_18 : f32 to vector<8x8xf32>
    %64 = arith.mulf %62, %63 : vector<8x8xf32>
    %cst_19 = arith.constant dense<0xFF800000> : vector<8xf32>
    %65 = vector.multi_reduction <maximumf>, %64, %cst_19 [1] : vector<8x8xf32> to vector<8xf32>
    %66 = vector.shape_cast %65 : vector<8xf32> to vector<8x1xf32>
    %67 = vector.broadcast %66 : vector<8x1xf32> to vector<8x8xf32>
    %68 = arith.subf %64, %67 : vector<8x8xf32>
    %69 = math.exp %68 : vector<8x8xf32>
    %cst_20 = arith.constant dense<0.000000e+00> : vector<8xf32>
    %70 = vector.multi_reduction <add>, %69, %cst_20 [1] : vector<8x8xf32> to vector<8xf32>
    %71 = vector.shape_cast %70 : vector<8xf32> to vector<8x1xf32>
    %72 = tpu.reciprocal %71 {approx = true} : vector<8x1xf32> -> vector<8x1xf32>
    %73 = vector.broadcast %72 : vector<8x1xf32> to vector<8x8xf32>
    %74 = arith.mulf %69, %73 : vector<8x8xf32>
    %75 = arith.truncf %74 : vector<8x8xf32> to vector<8x8xbf16>
    %cst_21 = arith.constant dense<0.000000e+00> : vector<8x8xf32>
    %76 = tpu.matmul %75, %61, %cst_21 {dimension_numbers = #tpu.dot_dimension_numbers<[1], [0], [0], [1], [0, 0, 1, 1], [], []>} : vector<8x8xbf16>, vector<8x8xbf16>, vector<8x8xf32> -> vector<8x8xf32>
    %77 = vector.extract_strided_slice %11 {offsets = [0, 24], sizes = [8, 8], strides = [1, 1]} : vector<8x32xf32> to vector<8x8xf32>
    %78 = arith.truncf %77 : vector<8x8xf32> to vector<8x8xbf16>
    %79 = vector.extract_strided_slice %12 {offsets = [0, 24], sizes = [8, 8], strides = [1, 1]} : vector<8x32xf32> to vector<8x8xf32>
    %80 = arith.truncf %79 : vector<8x8xf32> to vector<8x8xbf16>
    %81 = vector.extract_strided_slice %13 {offsets = [0, 24], sizes = [8, 8], strides = [1, 1]} : vector<8x32xf32> to vector<8x8xf32>
    %82 = arith.truncf %81 : vector<8x8xf32> to vector<8x8xbf16>
    %cst_22 = arith.constant dense<0.000000e+00> : vector<8x8xf32>
    %83 = tpu.matmul %78, %80, %cst_22 {dimension_numbers = #tpu.dot_dimension_numbers<[1], [1], [0], [0], [0, 0, 1, 0], [], []>} : vector<8x8xbf16>, vector<8x8xbf16>, vector<8x8xf32> -> vector<8x8xf32>
    %cst_23 = arith.constant 0.353553385 : f32
    %84 = vector.broadcast %cst_23 : f32 to vector<8x8xf32>
    %85 = arith.mulf %83, %84 : vector<8x8xf32>
    %cst_24 = arith.constant dense<0xFF800000> : vector<8xf32>
    %86 = vector.multi_reduction <maximumf>, %85, %cst_24 [1] : vector<8x8xf32> to vector<8xf32>
    %87 = vector.shape_cast %86 : vector<8xf32> to vector<8x1xf32>
    %88 = vector.broadcast %87 : vector<8x1xf32> to vector<8x8xf32>
    %89 = arith.subf %85, %88 : vector<8x8xf32>
    %90 = math.exp %89 : vector<8x8xf32>
    %cst_25 = arith.constant dense<0.000000e+00> : vector<8xf32>
    %91 = vector.multi_reduction <add>, %90, %cst_25 [1] : vector<8x8xf32> to vector<8xf32>
    %92 = vector.shape_cast %91 : vector<8xf32> to vector<8x1xf32>
    %93 = tpu.reciprocal %92 {approx = true} : vector<8x1xf32> -> vector<8x1xf32>
    %94 = vector.broadcast %93 : vector<8x1xf32> to vector<8x8xf32>
    %95 = arith.mulf %90, %94 : vector<8x8xf32>
    %96 = arith.truncf %95 : vector<8x8xf32> to vector<8x8xbf16>
    %cst_26 = arith.constant dense<0.000000e+00> : vector<8x8xf32>
    %97 = tpu.matmul %96, %82, %cst_26 {dimension_numbers = #tpu.dot_dimension_numbers<[1], [0], [0], [1], [0, 0, 1, 1], [], []>} : vector<8x8xbf16>, vector<8x8xbf16>, vector<8x8xf32> -> vector<8x8xf32>
    %98 = tpu.concatenate %34, %55, %76, %97 in 1 : vector<8x8xf32>, vector<8x8xf32>, vector<8x8xf32>, vector<8x8xf32> -> vector<8x32xf32>
    %99 = vector.extract_strided_slice %8 {offsets = [8, 0], sizes = [8, 32], strides = [1, 1]} : vector<16x32xf32> to vector<8x32xf32>
    %100 = vector.extract_strided_slice %9 {offsets = [8, 0], sizes = [8, 32], strides = [1, 1]} : vector<16x32xf32> to vector<8x32xf32>
    %101 = vector.extract_strided_slice %10 {offsets = [8, 0], sizes = [8, 32], strides = [1, 1]} : vector<16x32xf32> to vector<8x32xf32>
    %102 = vector.extract_strided_slice %99 {offsets = [0, 0], sizes = [8, 8], strides = [1, 1]} : vector<8x32xf32> to vector<8x8xf32>
    %103 = arith.truncf %102 : vector<8x8xf32> to vector<8x8xbf16>
    %104 = vector.extract_strided_slice %100 {offsets = [0, 0], sizes = [8, 8], strides = [1, 1]} : vector<8x32xf32> to vector<8x8xf32>
    %105 = arith.truncf %104 : vector<8x8xf32> to vector<8x8xbf16>
    %106 = vector.extract_strided_slice %101 {offsets = [0, 0], sizes = [8, 8], strides = [1, 1]} : vector<8x32xf32> to vector<8x8xf32>
    %107 = arith.truncf %106 : vector<8x8xf32> to vector<8x8xbf16>
    %cst_27 = arith.constant dense<0.000000e+00> : vector<8x8xf32>
    %108 = tpu.matmul %103, %105, %cst_27 {dimension_numbers = #tpu.dot_dimension_numbers<[1], [1], [0], [0], [0, 0, 1, 0], [], []>} : vector<8x8xbf16>, vector<8x8xbf16>, vector<8x8xf32> -> vector<8x8xf32>
    %cst_28 = arith.constant 0.353553385 : f32
    %109 = vector.broadcast %cst_28 : f32 to vector<8x8xf32>
    %110 = arith.mulf %108, %109 : vector<8x8xf32>
    %cst_29 = arith.constant dense<0xFF800000> : vector<8xf32>
    %111 = vector.multi_reduction <maximumf>, %110, %cst_29 [1] : vector<8x8xf32> to vector<8xf32>
    %112 = vector.shape_cast %111 : vector<8xf32> to vector<8x1xf32>
    %113 = vector.broadcast %112 : vector<8x1xf32> to vector<8x8xf32>
    %114 = arith.subf %110, %113 : vector<8x8xf32>
    %115 = math.exp %114 : vector<8x8xf32>
    %cst_30 = arith.constant dense<0.000000e+00> : vector<8xf32>
    %116 = vector.multi_reduction <add>, %115, %cst_30 [1] : vector<8x8xf32> to vector<8xf32>
    %117 = vector.shape_cast %116 : vector<8xf32> to vector<8x1xf32>
    %118 = tpu.reciprocal %117 {approx = true} : vector<8x1xf32> -> vector<8x1xf32>
    %119 = vector.broadcast %118 : vector<8x1xf32> to vector<8x8xf32>
    %120 = arith.mulf %115, %119 : vector<8x8xf32>
    %121 = arith.truncf %120 : vector<8x8xf32> to vector<8x8xbf16>
    %cst_31 = arith.constant dense<0.000000e+00> : vector<8x8xf32>
    %122 = tpu.matmul %121, %107, %cst_31 {dimension_numbers = #tpu.dot_dimension_numbers<[1], [0], [0], [1], [0, 0, 1, 1], [], []>} : vector<8x8xbf16>, vector<8x8xbf16>, vector<8x8xf32> -> vector<8x8xf32>
    %123 = vector.extract_strided_slice %99 {offsets = [0, 8], sizes = [8, 8], strides = [1, 1]} : vector<8x32xf32> to vector<8x8xf32>
    %124 = arith.truncf %123 : vector<8x8xf32> to vector<8x8xbf16>
    %125 = vector.extract_strided_slice %100 {offsets = [0, 8], sizes = [8, 8], strides = [1, 1]} : vector<8x32xf32> to vector<8x8xf32>
    %126 = arith.truncf %125 : vector<8x8xf32> to vector<8x8xbf16>
    %127 = vector.extract_strided_slice %101 {offsets = [0, 8], sizes = [8, 8], strides = [1, 1]} : vector<8x32xf32> to vector<8x8xf32>
    %128 = arith.truncf %127 : vector<8x8xf32> to vector<8x8xbf16>
    %cst_32 = arith.constant dense<0.000000e+00> : vector<8x8xf32>
    %129 = tpu.matmul %124, %126, %cst_32 {dimension_numbers = #tpu.dot_dimension_numbers<[1], [1], [0], [0], [0, 0, 1, 0], [], []>} : vector<8x8xbf16>, vector<8x8xbf16>, vector<8x8xf32> -> vector<8x8xf32>
    %cst_33 = arith.constant 0.353553385 : f32
    %130 = vector.broadcast %cst_33 : f32 to vector<8x8xf32>
    %131 = arith.mulf %129, %130 : vector<8x8xf32>
    %cst_34 = arith.constant dense<0xFF800000> : vector<8xf32>
    %132 = vector.multi_reduction <maximumf>, %131, %cst_34 [1] : vector<8x8xf32> to vector<8xf32>
    %133 = vector.shape_cast %132 : vector<8xf32> to vector<8x1xf32>
    %134 = vector.broadcast %133 : vector<8x1xf32> to vector<8x8xf32>
    %135 = arith.subf %131, %134 : vector<8x8xf32>
    %136 = math.exp %135 : vector<8x8xf32>
    %cst_35 = arith.constant dense<0.000000e+00> : vector<8xf32>
    %137 = vector.multi_reduction <add>, %136, %cst_35 [1] : vector<8x8xf32> to vector<8xf32>
    %138 = vector.shape_cast %137 : vector<8xf32> to vector<8x1xf32>
    %139 = tpu.reciprocal %138 {approx = true} : vector<8x1xf32> -> vector<8x1xf32>
    %140 = vector.broadcast %139 : vector<8x1xf32> to vector<8x8xf32>
    %141 = arith.mulf %136, %140 : vector<8x8xf32>
    %142 = arith.truncf %141 : vector<8x8xf32> to vector<8x8xbf16>
    %cst_36 = arith.constant dense<0.000000e+00> : vector<8x8xf32>
    %143 = tpu.matmul %142, %128, %cst_36 {dimension_numbers = #tpu.dot_dimension_numbers<[1], [0], [0], [1], [0, 0, 1, 1], [], []>} : vector<8x8xbf16>, vector<8x8xbf16>, vector<8x8xf32> -> vector<8x8xf32>
    %144 = vector.extract_strided_slice %99 {offsets = [0, 16], sizes = [8, 8], strides = [1, 1]} : vector<8x32xf32> to vector<8x8xf32>
    %145 = arith.truncf %144 : vector<8x8xf32> to vector<8x8xbf16>
    %146 = vector.extract_strided_slice %100 {offsets = [0, 16], sizes = [8, 8], strides = [1, 1]} : vector<8x32xf32> to vector<8x8xf32>
    %147 = arith.truncf %146 : vector<8x8xf32> to vector<8x8xbf16>
    %148 = vector.extract_strided_slice %101 {offsets = [0, 16], sizes = [8, 8], strides = [1, 1]} : vector<8x32xf32> to vector<8x8xf32>
    %149 = arith.truncf %148 : vector<8x8xf32> to vector<8x8xbf16>
    %cst_37 = arith.constant dense<0.000000e+00> : vector<8x8xf32>
    %150 = tpu.matmul %145, %147, %cst_37 {dimension_numbers = #tpu.dot_dimension_numbers<[1], [1], [0], [0], [0, 0, 1, 0], [], []>} : vector<8x8xbf16>, vector<8x8xbf16>, vector<8x8xf32> -> vector<8x8xf32>
    %cst_38 = arith.constant 0.353553385 : f32
    %151 = vector.broadcast %cst_38 : f32 to vector<8x8xf32>
    %152 = arith.mulf %150, %151 : vector<8x8xf32>
    %cst_39 = arith.constant dense<0xFF800000> : vector<8xf32>
    %153 = vector.multi_reduction <maximumf>, %152, %cst_39 [1] : vector<8x8xf32> to vector<8xf32>
    %154 = vector.shape_cast %153 : vector<8xf32> to vector<8x1xf32>
    %155 = vector.broadcast %154 : vector<8x1xf32> to vector<8x8xf32>
    %156 = arith.subf %152, %155 : vector<8x8xf32>
    %157 = math.exp %156 : vector<8x8xf32>
    %cst_40 = arith.constant dense<0.000000e+00> : vector<8xf32>
    %158 = vector.multi_reduction <add>, %157, %cst_40 [1] : vector<8x8xf32> to vector<8xf32>
    %159 = vector.shape_cast %158 : vector<8xf32> to vector<8x1xf32>
    %160 = tpu.reciprocal %159 {approx = true} : vector<8x1xf32> -> vector<8x1xf32>
    %161 = vector.broadcast %160 : vector<8x1xf32> to vector<8x8xf32>
    %162 = arith.mulf %157, %161 : vector<8x8xf32>
    %163 = arith.truncf %162 : vector<8x8xf32> to vector<8x8xbf16>
    %cst_41 = arith.constant dense<0.000000e+00> : vector<8x8xf32>
    %164 = tpu.matmul %163, %149, %cst_41 {dimension_numbers = #tpu.dot_dimension_numbers<[1], [0], [0], [1], [0, 0, 1, 1], [], []>} : vector<8x8xbf16>, vector<8x8xbf16>, vector<8x8xf32> -> vector<8x8xf32>
    %165 = vector.extract_strided_slice %99 {offsets = [0, 24], sizes = [8, 8], strides = [1, 1]} : vector<8x32xf32> to vector<8x8xf32>
    %166 = arith.truncf %165 : vector<8x8xf32> to vector<8x8xbf16>
    %167 = vector.extract_strided_slice %100 {offsets = [0, 24], sizes = [8, 8], strides = [1, 1]} : vector<8x32xf32> to vector<8x8xf32>
    %168 = arith.truncf %167 : vector<8x8xf32> to vector<8x8xbf16>
    %169 = vector.extract_strided_slice %101 {offsets = [0, 24], sizes = [8, 8], strides = [1, 1]} : vector<8x32xf32> to vector<8x8xf32>
    %170 = arith.truncf %169 : vector<8x8xf32> to vector<8x8xbf16>
    %cst_42 = arith.constant dense<0.000000e+00> : vector<8x8xf32>
    %171 = tpu.matmul %166, %168, %cst_42 {dimension_numbers = #tpu.dot_dimension_numbers<[1], [1], [0], [0], [0, 0, 1, 0], [], []>} : vector<8x8xbf16>, vector<8x8xbf16>, vector<8x8xf32> -> vector<8x8xf32>
    %cst_43 = arith.constant 0.353553385 : f32
    %172 = vector.broadcast %cst_43 : f32 to vector<8x8xf32>
    %173 = arith.mulf %171, %172 : vector<8x8xf32>
    %cst_44 = arith.constant dense<0xFF800000> : vector<8xf32>
    %174 = vector.multi_reduction <maximumf>, %173, %cst_44 [1] : vector<8x8xf32> to vector<8xf32>
    %175 = vector.shape_cast %174 : vector<8xf32> to vector<8x1xf32>
    %176 = vector.broadcast %175 : vector<8x1xf32> to vector<8x8xf32>
    %177 = arith.subf %173, %176 : vector<8x8xf32>
    %178 = math.exp %177 : vector<8x8xf32>
    %cst_45 = arith.constant dense<0.000000e+00> : vector<8xf32>
    %179 = vector.multi_reduction <add>, %178, %cst_45 [1] : vector<8x8xf32> to vector<8xf32>
    %180 = vector.shape_cast %179 : vector<8xf32> to vector<8x1xf32>
    %181 = tpu.reciprocal %180 {approx = true} : vector<8x1xf32> -> vector<8x1xf32>
    %182 = vector.broadcast %181 : vector<8x1xf32> to vector<8x8xf32>
    %183 = arith.mulf %178, %182 : vector<8x8xf32>
    %184 = arith.truncf %183 : vector<8x8xf32> to vector<8x8xbf16>
    %cst_46 = arith.constant dense<0.000000e+00> : vector<8x8xf32>
    %185 = tpu.matmul %184, %170, %cst_46 {dimension_numbers = #tpu.dot_dimension_numbers<[1], [0], [0], [1], [0, 0, 1, 1], [], []>} : vector<8x8xbf16>, vector<8x8xbf16>, vector<8x8xf32> -> vector<8x8xf32>
    %186 = tpu.concatenate %122, %143, %164, %185 in 1 : vector<8x8xf32>, vector<8x8xf32>, vector<8x8xf32>, vector<8x8xf32> -> vector<8x32xf32>
    %187 = tpu.concatenate %98, %186 in 0 : vector<8x32xf32>, vector<8x32xf32> -> vector<16x32xf32>
    %c0_47 = arith.constant 0 : index
    %c0_48 = arith.constant 0 : index
    %188 = vector.load %arg5[%c0_47, %c0_48] : memref<32x32xbf16, #tpu.memory_space<vmem>>, vector<32x32xbf16>
    %c0_49 = arith.constant 0 : index
    %c0_50 = arith.constant 0 : index
    %189 = vector.load %arg6[%c0_49, %c0_50] : memref<1x32xf32, #tpu.memory_space<vmem>>, vector<1x32xf32>
    %190 = arith.truncf %187 : vector<16x32xf32> to vector<16x32xbf16>
    %cst_51 = arith.constant dense<0.000000e+00> : vector<16x32xf32>
    %191 = tpu.matmul %190, %188, %cst_51 {dimension_numbers = #tpu.dot_dimension_numbers<[1], [0], [0], [1], [0, 0, 1, 1], [], []>} : vector<16x32xbf16>, vector<32x32xbf16>, vector<16x32xf32> -> vector<16x32xf32>
    %192 = vector.broadcast %189 : vector<1x32xf32> to vector<16x32xf32>
    %193 = arith.addf %191, %192 : vector<16x32xf32>
    %194 = arith.addf %0, %193 : vector<16x32xf32>
    %c0_52 = arith.constant 0 : index
    %c0_53 = arith.constant 0 : index
    %195 = vector.load %arg7[%c0_52, %c0_53] : memref<1x32xf32, #tpu.memory_space<vmem>>, vector<1x32xf32>
    %c0_54 = arith.constant 0 : index
    %c0_55 = arith.constant 0 : index
    %196 = vector.load %arg8[%c0_54, %c0_55] : memref<1x32xf32, #tpu.memory_space<vmem>>, vector<1x32xf32>
    %cst_56 = arith.constant dense<0.000000e+00> : vector<16xf32>
    %197 = vector.multi_reduction <add>, %194, %cst_56 [1] : vector<16x32xf32> to vector<16xf32>
    %198 = vector.shape_cast %197 : vector<16xf32> to vector<16x1xf32>
    %cst_57 = arith.constant 3.200000e+01 : f32
    %199 = vector.broadcast %cst_57 : f32 to vector<16x1xf32>
    %200 = arith.divf %198, %199 : vector<16x1xf32>
    %201 = vector.broadcast %200 : vector<16x1xf32> to vector<16x32xf32>
    %202 = arith.subf %194, %201 : vector<16x32xf32>
    %203 = arith.mulf %202, %202 : vector<16x32xf32>
    %cst_58 = arith.constant dense<0.000000e+00> : vector<16xf32>
    %204 = vector.multi_reduction <add>, %203, %cst_58 [1] : vector<16x32xf32> to vector<16xf32>
    %205 = vector.shape_cast %204 : vector<16xf32> to vector<16x1xf32>
    %cst_59 = arith.constant 3.200000e+01 : f32
    %206 = vector.broadcast %cst_59 : f32 to vector<16x1xf32>
    %207 = arith.divf %205, %206 : vector<16x1xf32>
    %208 = vector.broadcast %200 : vector<16x1xf32> to vector<16x32xf32>
    %209 = arith.subf %194, %208 : vector<16x32xf32>
    %cst_60 = arith.constant 9.99999974E-6 : f32
    %210 = vector.broadcast %cst_60 : f32 to vector<16x1xf32>
    %211 = arith.addf %207, %210 : vector<16x1xf32>
    %212 = math.rsqrt %211 : vector<16x1xf32>
    %213 = vector.broadcast %212 : vector<16x1xf32> to vector<16x32xf32>
    %214 = arith.mulf %209, %213 : vector<16x32xf32>
    %215 = vector.broadcast %195 : vector<1x32xf32> to vector<16x32xf32>
    %216 = arith.mulf %214, %215 : vector<16x32xf32>
    %217 = vector.broadcast %196 : vector<1x32xf32> to vector<16x32xf32>
    %218 = arith.addf %216, %217 : vector<16x32xf32>
    %c0_61 = arith.constant 0 : index
    %c0_62 = arith.constant 0 : index
    %219 = vector.load %arg9[%c0_61, %c0_62] : memref<32x32xbf16, #tpu.memory_space<vmem>>, vector<32x32xbf16>
    %c0_63 = arith.constant 0 : index
    %c0_64 = arith.constant 0 : index
    %220 = vector.load %arg10[%c0_63, %c0_64] : memref<1x32xf32, #tpu.memory_space<vmem>>, vector<1x32xf32>
    %221 = arith.truncf %218 : vector<16x32xf32> to vector<16x32xbf16>
    %cst_65 = arith.constant dense<0.000000e+00> : vector<16x32xf32>
    %222 = tpu.matmul %221, %219, %cst_65 {dimension_numbers = #tpu.dot_dimension_numbers<[1], [0], [0], [1], [0, 0, 1, 1], [], []>} : vector<16x32xbf16>, vector<32x32xbf16>, vector<16x32xf32> -> vector<16x32xf32>
    %223 = vector.broadcast %220 : vector<1x32xf32> to vector<16x32xf32>
    %224 = arith.addf %222, %223 : vector<16x32xf32>
    %c0_66 = arith.constant 0 : index
    %c0_67 = arith.constant 0 : index
    %225 = vector.load %arg11[%c0_66, %c0_67] : memref<32x64xbf16, #tpu.memory_space<vmem>>, vector<32x64xbf16>
    %c0_68 = arith.constant 0 : index
    %c0_69 = arith.constant 0 : index
    %226 = vector.load %arg12[%c0_68, %c0_69] : memref<1x64xf32, #tpu.memory_space<vmem>>, vector<1x64xf32>
    %227 = arith.truncf %1 : vector<20x32xf32> to vector<20x32xbf16>
    %cst_70 = arith.constant dense<0.000000e+00> : vector<20x64xf32>
    %228 = tpu.matmul %227, %225, %cst_70 {dimension_numbers = #tpu.dot_dimension_numbers<[1], [0], [0], [1], [0, 0, 1, 1], [], []>} : vector<20x32xbf16>, vector<32x64xbf16>, vector<20x64xf32> -> vector<20x64xf32>
    %229 = vector.broadcast %226 : vector<1x64xf32> to vector<20x64xf32>
    %230 = arith.addf %228, %229 : vector<20x64xf32>
    %231 = vector.extract_strided_slice %230 {offsets = [0, 0], sizes = [20, 32], strides = [1, 1]} : vector<20x64xf32> to vector<20x32xf32>
    %232 = vector.extract_strided_slice %230 {offsets = [0, 32], sizes = [20, 32], strides = [1, 1]} : vector<20x64xf32> to vector<20x32xf32>
    %233 = vector.extract_strided_slice %224 {offsets = [0, 0], sizes = [8, 32], strides = [1, 1]} : vector<16x32xf32> to vector<8x32xf32>
    %234 = vector.extract_strided_slice %231 {offsets = [0, 0], sizes = [10, 32], strides = [1, 1]} : vector<20x32xf32> to vector<10x32xf32>
    %235 = vector.extract_strided_slice %232 {offsets = [0, 0], sizes = [10, 32], strides = [1, 1]} : vector<20x32xf32> to vector<10x32xf32>
    %236 = vector.extract_strided_slice %233 {offsets = [0, 0], sizes = [8, 8], strides = [1, 1]} : vector<8x32xf32> to vector<8x8xf32>
    %237 = arith.truncf %236 : vector<8x8xf32> to vector<8x8xbf16>
    %238 = vector.extract_strided_slice %234 {offsets = [0, 0], sizes = [10, 8], strides = [1, 1]} : vector<10x32xf32> to vector<10x8xf32>
    %239 = arith.truncf %238 : vector<10x8xf32> to vector<10x8xbf16>
    %240 = vector.extract_strided_slice %235 {offsets = [0, 0], sizes = [10, 8], strides = [1, 1]} : vector<10x32xf32> to vector<10x8xf32>
    %241 = arith.truncf %240 : vector<10x8xf32> to vector<10x8xbf16>
    %cst_71 = arith.constant dense<0.000000e+00> : vector<8x10xf32>
    %242 = tpu.matmul %237, %239, %cst_71 {dimension_numbers = #tpu.dot_dimension_numbers<[1], [1], [0], [0], [0, 0, 1, 0], [], []>} : vector<8x8xbf16>, vector<10x8xbf16>, vector<8x10xf32> -> vector<8x10xf32>
    %cst_72 = arith.constant 0.353553385 : f32
    %243 = vector.broadcast %cst_72 : f32 to vector<8x10xf32>
    %244 = arith.mulf %242, %243 : vector<8x10xf32>
    %cst_73 = arith.constant dense<0xFF800000> : vector<8xf32>
    %245 = vector.multi_reduction <maximumf>, %244, %cst_73 [1] : vector<8x10xf32> to vector<8xf32>
    %246 = vector.shape_cast %245 : vector<8xf32> to vector<8x1xf32>
    %247 = vector.broadcast %246 : vector<8x1xf32> to vector<8x10xf32>
    %248 = arith.subf %244, %247 : vector<8x10xf32>
    %249 = math.exp %248 : vector<8x10xf32>
    %cst_74 = arith.constant dense<0.000000e+00> : vector<8xf32>
    %250 = vector.multi_reduction <add>, %249, %cst_74 [1] : vector<8x10xf32> to vector<8xf32>
    %251 = vector.shape_cast %250 : vector<8xf32> to vector<8x1xf32>
    %252 = tpu.reciprocal %251 {approx = true} : vector<8x1xf32> -> vector<8x1xf32>
    %253 = vector.broadcast %252 : vector<8x1xf32> to vector<8x10xf32>
    %254 = arith.mulf %249, %253 : vector<8x10xf32>
    %255 = arith.truncf %254 : vector<8x10xf32> to vector<8x10xbf16>
    %cst_75 = arith.constant dense<0.000000e+00> : vector<8x8xf32>
    %256 = tpu.matmul %255, %241, %cst_75 {dimension_numbers = #tpu.dot_dimension_numbers<[1], [0], [0], [1], [0, 0, 1, 1], [], []>} : vector<8x10xbf16>, vector<10x8xbf16>, vector<8x8xf32> -> vector<8x8xf32>
    %257 = vector.extract_strided_slice %233 {offsets = [0, 8], sizes = [8, 8], strides = [1, 1]} : vector<8x32xf32> to vector<8x8xf32>
    %258 = arith.truncf %257 : vector<8x8xf32> to vector<8x8xbf16>
    %259 = vector.extract_strided_slice %234 {offsets = [0, 8], sizes = [10, 8], strides = [1, 1]} : vector<10x32xf32> to vector<10x8xf32>
    %260 = arith.truncf %259 : vector<10x8xf32> to vector<10x8xbf16>
    %261 = vector.extract_strided_slice %235 {offsets = [0, 8], sizes = [10, 8], strides = [1, 1]} : vector<10x32xf32> to vector<10x8xf32>
    %262 = arith.truncf %261 : vector<10x8xf32> to vector<10x8xbf16>
    %cst_76 = arith.constant dense<0.000000e+00> : vector<8x10xf32>
    %263 = tpu.matmul %258, %260, %cst_76 {dimension_numbers = #tpu.dot_dimension_numbers<[1], [1], [0], [0], [0, 0, 1, 0], [], []>} : vector<8x8xbf16>, vector<10x8xbf16>, vector<8x10xf32> -> vector<8x10xf32>
    %cst_77 = arith.constant 0.353553385 : f32
    %264 = vector.broadcast %cst_77 : f32 to vector<8x10xf32>
    %265 = arith.mulf %263, %264 : vector<8x10xf32>
    %cst_78 = arith.constant dense<0xFF800000> : vector<8xf32>
    %266 = vector.multi_reduction <maximumf>, %265, %cst_78 [1] : vector<8x10xf32> to vector<8xf32>
    %267 = vector.shape_cast %266 : vector<8xf32> to vector<8x1xf32>
    %268 = vector.broadcast %267 : vector<8x1xf32> to vector<8x10xf32>
    %269 = arith.subf %265, %268 : vector<8x10xf32>
    %270 = math.exp %269 : vector<8x10xf32>
    %cst_79 = arith.constant dense<0.000000e+00> : vector<8xf32>
    %271 = vector.multi_reduction <add>, %270, %cst_79 [1] : vector<8x10xf32> to vector<8xf32>
    %272 = vector.shape_cast %271 : vector<8xf32> to vector<8x1xf32>
    %273 = tpu.reciprocal %272 {approx = true} : vector<8x1xf32> -> vector<8x1xf32>
    %274 = vector.broadcast %273 : vector<8x1xf32> to vector<8x10xf32>
    %275 = arith.mulf %270, %274 : vector<8x10xf32>
    %276 = arith.truncf %275 : vector<8x10xf32> to vector<8x10xbf16>
    %cst_80 = arith.constant dense<0.000000e+00> : vector<8x8xf32>
    %277 = tpu.matmul %276, %262, %cst_80 {dimension_numbers = #tpu.dot_dimension_numbers<[1], [0], [0], [1], [0, 0, 1, 1], [], []>} : vector<8x10xbf16>, vector<10x8xbf16>, vector<8x8xf32> -> vector<8x8xf32>
    %278 = vector.extract_strided_slice %233 {offsets = [0, 16], sizes = [8, 8], strides = [1, 1]} : vector<8x32xf32> to vector<8x8xf32>
    %279 = arith.truncf %278 : vector<8x8xf32> to vector<8x8xbf16>
    %280 = vector.extract_strided_slice %234 {offsets = [0, 16], sizes = [10, 8], strides = [1, 1]} : vector<10x32xf32> to vector<10x8xf32>
    %281 = arith.truncf %280 : vector<10x8xf32> to vector<10x8xbf16>
    %282 = vector.extract_strided_slice %235 {offsets = [0, 16], sizes = [10, 8], strides = [1, 1]} : vector<10x32xf32> to vector<10x8xf32>
    %283 = arith.truncf %282 : vector<10x8xf32> to vector<10x8xbf16>
    %cst_81 = arith.constant dense<0.000000e+00> : vector<8x10xf32>
    %284 = tpu.matmul %279, %281, %cst_81 {dimension_numbers = #tpu.dot_dimension_numbers<[1], [1], [0], [0], [0, 0, 1, 0], [], []>} : vector<8x8xbf16>, vector<10x8xbf16>, vector<8x10xf32> -> vector<8x10xf32>
    %cst_82 = arith.constant 0.353553385 : f32
    %285 = vector.broadcast %cst_82 : f32 to vector<8x10xf32>
    %286 = arith.mulf %284, %285 : vector<8x10xf32>
    %cst_83 = arith.constant dense<0xFF800000> : vector<8xf32>
    %287 = vector.multi_reduction <maximumf>, %286, %cst_83 [1] : vector<8x10xf32> to vector<8xf32>
    %288 = vector.shape_cast %287 : vector<8xf32> to vector<8x1xf32>
    %289 = vector.broadcast %288 : vector<8x1xf32> to vector<8x10xf32>
    %290 = arith.subf %286, %289 : vector<8x10xf32>
    %291 = math.exp %290 : vector<8x10xf32>
    %cst_84 = arith.constant dense<0.000000e+00> : vector<8xf32>
    %292 = vector.multi_reduction <add>, %291, %cst_84 [1] : vector<8x10xf32> to vector<8xf32>
    %293 = vector.shape_cast %292 : vector<8xf32> to vector<8x1xf32>
    %294 = tpu.reciprocal %293 {approx = true} : vector<8x1xf32> -> vector<8x1xf32>
    %295 = vector.broadcast %294 : vector<8x1xf32> to vector<8x10xf32>
    %296 = arith.mulf %291, %295 : vector<8x10xf32>
    %297 = arith.truncf %296 : vector<8x10xf32> to vector<8x10xbf16>
    %cst_85 = arith.constant dense<0.000000e+00> : vector<8x8xf32>
    %298 = tpu.matmul %297, %283, %cst_85 {dimension_numbers = #tpu.dot_dimension_numbers<[1], [0], [0], [1], [0, 0, 1, 1], [], []>} : vector<8x10xbf16>, vector<10x8xbf16>, vector<8x8xf32> -> vector<8x8xf32>
    %299 = vector.extract_strided_slice %233 {offsets = [0, 24], sizes = [8, 8], strides = [1, 1]} : vector<8x32xf32> to vector<8x8xf32>
    %300 = arith.truncf %299 : vector<8x8xf32> to vector<8x8xbf16>
    %301 = vector.extract_strided_slice %234 {offsets = [0, 24], sizes = [10, 8], strides = [1, 1]} : vector<10x32xf32> to vector<10x8xf32>
    %302 = arith.truncf %301 : vector<10x8xf32> to vector<10x8xbf16>
    %303 = vector.extract_strided_slice %235 {offsets = [0, 24], sizes = [10, 8], strides = [1, 1]} : vector<10x32xf32> to vector<10x8xf32>
    %304 = arith.truncf %303 : vector<10x8xf32> to vector<10x8xbf16>
    %cst_86 = arith.constant dense<0.000000e+00> : vector<8x10xf32>
    %305 = tpu.matmul %300, %302, %cst_86 {dimension_numbers = #tpu.dot_dimension_numbers<[1], [1], [0], [0], [0, 0, 1, 0], [], []>} : vector<8x8xbf16>, vector<10x8xbf16>, vector<8x10xf32> -> vector<8x10xf32>
    %cst_87 = arith.constant 0.353553385 : f32
    %306 = vector.broadcast %cst_87 : f32 to vector<8x10xf32>
    %307 = arith.mulf %305, %306 : vector<8x10xf32>
    %cst_88 = arith.constant dense<0xFF800000> : vector<8xf32>
    %308 = vector.multi_reduction <maximumf>, %307, %cst_88 [1] : vector<8x10xf32> to vector<8xf32>
    %309 = vector.shape_cast %308 : vector<8xf32> to vector<8x1xf32>
    %310 = vector.broadcast %309 : vector<8x1xf32> to vector<8x10xf32>
    %311 = arith.subf %307, %310 : vector<8x10xf32>
    %312 = math.exp %311 : vector<8x10xf32>
    %cst_89 = arith.constant dense<0.000000e+00> : vector<8xf32>
    %313 = vector.multi_reduction <add>, %312, %cst_89 [1] : vector<8x10xf32> to vector<8xf32>
    %314 = vector.shape_cast %313 : vector<8xf32> to vector<8x1xf32>
    %315 = tpu.reciprocal %314 {approx = true} : vector<8x1xf32> -> vector<8x1xf32>
    %316 = vector.broadcast %315 : vector<8x1xf32> to vector<8x10xf32>
    %317 = arith.mulf %312, %316 : vector<8x10xf32>
    %318 = arith.truncf %317 : vector<8x10xf32> to vector<8x10xbf16>
    %cst_90 = arith.constant dense<0.000000e+00> : vector<8x8xf32>
    %319 = tpu.matmul %318, %304, %cst_90 {dimension_numbers = #tpu.dot_dimension_numbers<[1], [0], [0], [1], [0, 0, 1, 1], [], []>} : vector<8x10xbf16>, vector<10x8xbf16>, vector<8x8xf32> -> vector<8x8xf32>
    %320 = tpu.concatenate %256, %277, %298, %319 in 1 : vector<8x8xf32>, vector<8x8xf32>, vector<8x8xf32>, vector<8x8xf32> -> vector<8x32xf32>
    %321 = vector.extract_strided_slice %224 {offsets = [8, 0], sizes = [8, 32], strides = [1, 1]} : vector<16x32xf32> to vector<8x32xf32>
    %322 = vector.extract_strided_slice %231 {offsets = [10, 0], sizes = [10, 32], strides = [1, 1]} : vector<20x32xf32> to vector<10x32xf32>
    %323 = vector.extract_strided_slice %232 {offsets = [10, 0], sizes = [10, 32], strides = [1, 1]} : vector<20x32xf32> to vector<10x32xf32>
    %324 = vector.extract_strided_slice %321 {offsets = [0, 0], sizes = [8, 8], strides = [1, 1]} : vector<8x32xf32> to vector<8x8xf32>
    %325 = arith.truncf %324 : vector<8x8xf32> to vector<8x8xbf16>
    %326 = vector.extract_strided_slice %322 {offsets = [0, 0], sizes = [10, 8], strides = [1, 1]} : vector<10x32xf32> to vector<10x8xf32>
    %327 = arith.truncf %326 : vector<10x8xf32> to vector<10x8xbf16>
    %328 = vector.extract_strided_slice %323 {offsets = [0, 0], sizes = [10, 8], strides = [1, 1]} : vector<10x32xf32> to vector<10x8xf32>
    %329 = arith.truncf %328 : vector<10x8xf32> to vector<10x8xbf16>
    %cst_91 = arith.constant dense<0.000000e+00> : vector<8x10xf32>
    %330 = tpu.matmul %325, %327, %cst_91 {dimension_numbers = #tpu.dot_dimension_numbers<[1], [1], [0], [0], [0, 0, 1, 0], [], []>} : vector<8x8xbf16>, vector<10x8xbf16>, vector<8x10xf32> -> vector<8x10xf32>
    %cst_92 = arith.constant 0.353553385 : f32
    %331 = vector.broadcast %cst_92 : f32 to vector<8x10xf32>
    %332 = arith.mulf %330, %331 : vector<8x10xf32>
    %cst_93 = arith.constant dense<0xFF800000> : vector<8xf32>
    %333 = vector.multi_reduction <maximumf>, %332, %cst_93 [1] : vector<8x10xf32> to vector<8xf32>
    %334 = vector.shape_cast %333 : vector<8xf32> to vector<8x1xf32>
    %335 = vector.broadcast %334 : vector<8x1xf32> to vector<8x10xf32>
    %336 = arith.subf %332, %335 : vector<8x10xf32>
    %337 = math.exp %336 : vector<8x10xf32>
    %cst_94 = arith.constant dense<0.000000e+00> : vector<8xf32>
    %338 = vector.multi_reduction <add>, %337, %cst_94 [1] : vector<8x10xf32> to vector<8xf32>
    %339 = vector.shape_cast %338 : vector<8xf32> to vector<8x1xf32>
    %340 = tpu.reciprocal %339 {approx = true} : vector<8x1xf32> -> vector<8x1xf32>
    %341 = vector.broadcast %340 : vector<8x1xf32> to vector<8x10xf32>
    %342 = arith.mulf %337, %341 : vector<8x10xf32>
    %343 = arith.truncf %342 : vector<8x10xf32> to vector<8x10xbf16>
    %cst_95 = arith.constant dense<0.000000e+00> : vector<8x8xf32>
    %344 = tpu.matmul %343, %329, %cst_95 {dimension_numbers = #tpu.dot_dimension_numbers<[1], [0], [0], [1], [0, 0, 1, 1], [], []>} : vector<8x10xbf16>, vector<10x8xbf16>, vector<8x8xf32> -> vector<8x8xf32>
    %345 = vector.extract_strided_slice %321 {offsets = [0, 8], sizes = [8, 8], strides = [1, 1]} : vector<8x32xf32> to vector<8x8xf32>
    %346 = arith.truncf %345 : vector<8x8xf32> to vector<8x8xbf16>
    %347 = vector.extract_strided_slice %322 {offsets = [0, 8], sizes = [10, 8], strides = [1, 1]} : vector<10x32xf32> to vector<10x8xf32>
    %348 = arith.truncf %347 : vector<10x8xf32> to vector<10x8xbf16>
    %349 = vector.extract_strided_slice %323 {offsets = [0, 8], sizes = [10, 8], strides = [1, 1]} : vector<10x32xf32> to vector<10x8xf32>
    %350 = arith.truncf %349 : vector<10x8xf32> to vector<10x8xbf16>
    %cst_96 = arith.constant dense<0.000000e+00> : vector<8x10xf32>
    %351 = tpu.matmul %346, %348, %cst_96 {dimension_numbers = #tpu.dot_dimension_numbers<[1], [1], [0], [0], [0, 0, 1, 0], [], []>} : vector<8x8xbf16>, vector<10x8xbf16>, vector<8x10xf32> -> vector<8x10xf32>
    %cst_97 = arith.constant 0.353553385 : f32
    %352 = vector.broadcast %cst_97 : f32 to vector<8x10xf32>
    %353 = arith.mulf %351, %352 : vector<8x10xf32>
    %cst_98 = arith.constant dense<0xFF800000> : vector<8xf32>
    %354 = vector.multi_reduction <maximumf>, %353, %cst_98 [1] : vector<8x10xf32> to vector<8xf32>
    %355 = vector.shape_cast %354 : vector<8xf32> to vector<8x1xf32>
    %356 = vector.broadcast %355 : vector<8x1xf32> to vector<8x10xf32>
    %357 = arith.subf %353, %356 : vector<8x10xf32>
    %358 = math.exp %357 : vector<8x10xf32>
    %cst_99 = arith.constant dense<0.000000e+00> : vector<8xf32>
    %359 = vector.multi_reduction <add>, %358, %cst_99 [1] : vector<8x10xf32> to vector<8xf32>
    %360 = vector.shape_cast %359 : vector<8xf32> to vector<8x1xf32>
    %361 = tpu.reciprocal %360 {approx = true} : vector<8x1xf32> -> vector<8x1xf32>
    %362 = vector.broadcast %361 : vector<8x1xf32> to vector<8x10xf32>
    %363 = arith.mulf %358, %362 : vector<8x10xf32>
    %364 = arith.truncf %363 : vector<8x10xf32> to vector<8x10xbf16>
    %cst_100 = arith.constant dense<0.000000e+00> : vector<8x8xf32>
    %365 = tpu.matmul %364, %350, %cst_100 {dimension_numbers = #tpu.dot_dimension_numbers<[1], [0], [0], [1], [0, 0, 1, 1], [], []>} : vector<8x10xbf16>, vector<10x8xbf16>, vector<8x8xf32> -> vector<8x8xf32>
    %366 = vector.extract_strided_slice %321 {offsets = [0, 16], sizes = [8, 8], strides = [1, 1]} : vector<8x32xf32> to vector<8x8xf32>
    %367 = arith.truncf %366 : vector<8x8xf32> to vector<8x8xbf16>
    %368 = vector.extract_strided_slice %322 {offsets = [0, 16], sizes = [10, 8], strides = [1, 1]} : vector<10x32xf32> to vector<10x8xf32>
    %369 = arith.truncf %368 : vector<10x8xf32> to vector<10x8xbf16>
    %370 = vector.extract_strided_slice %323 {offsets = [0, 16], sizes = [10, 8], strides = [1, 1]} : vector<10x32xf32> to vector<10x8xf32>
    %371 = arith.truncf %370 : vector<10x8xf32> to vector<10x8xbf16>
    %cst_101 = arith.constant dense<0.000000e+00> : vector<8x10xf32>
    %372 = tpu.matmul %367, %369, %cst_101 {dimension_numbers = #tpu.dot_dimension_numbers<[1], [1], [0], [0], [0, 0, 1, 0], [], []>} : vector<8x8xbf16>, vector<10x8xbf16>, vector<8x10xf32> -> vector<8x10xf32>
    %cst_102 = arith.constant 0.353553385 : f32
    %373 = vector.broadcast %cst_102 : f32 to vector<8x10xf32>
    %374 = arith.mulf %372, %373 : vector<8x10xf32>
    %cst_103 = arith.constant dense<0xFF800000> : vector<8xf32>
    %375 = vector.multi_reduction <maximumf>, %374, %cst_103 [1] : vector<8x10xf32> to vector<8xf32>
    %376 = vector.shape_cast %375 : vector<8xf32> to vector<8x1xf32>
    %377 = vector.broadcast %376 : vector<8x1xf32> to vector<8x10xf32>
    %378 = arith.subf %374, %377 : vector<8x10xf32>
    %379 = math.exp %378 : vector<8x10xf32>
    %cst_104 = arith.constant dense<0.000000e+00> : vector<8xf32>
    %380 = vector.multi_reduction <add>, %379, %cst_104 [1] : vector<8x10xf32> to vector<8xf32>
    %381 = vector.shape_cast %380 : vector<8xf32> to vector<8x1xf32>
    %382 = tpu.reciprocal %381 {approx = true} : vector<8x1xf32> -> vector<8x1xf32>
    %383 = vector.broadcast %382 : vector<8x1xf32> to vector<8x10xf32>
    %384 = arith.mulf %379, %383 : vector<8x10xf32>
    %385 = arith.truncf %384 : vector<8x10xf32> to vector<8x10xbf16>
    %cst_105 = arith.constant dense<0.000000e+00> : vector<8x8xf32>
    %386 = tpu.matmul %385, %371, %cst_105 {dimension_numbers = #tpu.dot_dimension_numbers<[1], [0], [0], [1], [0, 0, 1, 1], [], []>} : vector<8x10xbf16>, vector<10x8xbf16>, vector<8x8xf32> -> vector<8x8xf32>
    %387 = vector.extract_strided_slice %321 {offsets = [0, 24], sizes = [8, 8], strides = [1, 1]} : vector<8x32xf32> to vector<8x8xf32>
    %388 = arith.truncf %387 : vector<8x8xf32> to vector<8x8xbf16>
    %389 = vector.extract_strided_slice %322 {offsets = [0, 24], sizes = [10, 8], strides = [1, 1]} : vector<10x32xf32> to vector<10x8xf32>
    %390 = arith.truncf %389 : vector<10x8xf32> to vector<10x8xbf16>
    %391 = vector.extract_strided_slice %323 {offsets = [0, 24], sizes = [10, 8], strides = [1, 1]} : vector<10x32xf32> to vector<10x8xf32>
    %392 = arith.truncf %391 : vector<10x8xf32> to vector<10x8xbf16>
    %cst_106 = arith.constant dense<0.000000e+00> : vector<8x10xf32>
    %393 = tpu.matmul %388, %390, %cst_106 {dimension_numbers = #tpu.dot_dimension_numbers<[1], [1], [0], [0], [0, 0, 1, 0], [], []>} : vector<8x8xbf16>, vector<10x8xbf16>, vector<8x10xf32> -> vector<8x10xf32>
    %cst_107 = arith.constant 0.353553385 : f32
    %394 = vector.broadcast %cst_107 : f32 to vector<8x10xf32>
    %395 = arith.mulf %393, %394 : vector<8x10xf32>
    %cst_108 = arith.constant dense<0xFF800000> : vector<8xf32>
    %396 = vector.multi_reduction <maximumf>, %395, %cst_108 [1] : vector<8x10xf32> to vector<8xf32>
    %397 = vector.shape_cast %396 : vector<8xf32> to vector<8x1xf32>
    %398 = vector.broadcast %397 : vector<8x1xf32> to vector<8x10xf32>
    %399 = arith.subf %395, %398 : vector<8x10xf32>
    %400 = math.exp %399 : vector<8x10xf32>
    %cst_109 = arith.constant dense<0.000000e+00> : vector<8xf32>
    %401 = vector.multi_reduction <add>, %400, %cst_109 [1] : vector<8x10xf32> to vector<8xf32>
    %402 = vector.shape_cast %401 : vector<8xf32> to vector<8x1xf32>
    %403 = tpu.reciprocal %402 {approx = true} : vector<8x1xf32> -> vector<8x1xf32>
    %404 = vector.broadcast %403 : vector<8x1xf32> to vector<8x10xf32>
    %405 = arith.mulf %400, %404 : vector<8x10xf32>
    %406 = arith.truncf %405 : vector<8x10xf32> to vector<8x10xbf16>
    %cst_110 = arith.constant dense<0.000000e+00> : vector<8x8xf32>
    %407 = tpu.matmul %406, %392, %cst_110 {dimension_numbers = #tpu.dot_dimension_numbers<[1], [0], [0], [1], [0, 0, 1, 1], [], []>} : vector<8x10xbf16>, vector<10x8xbf16>, vector<8x8xf32> -> vector<8x8xf32>
    %408 = tpu.concatenate %344, %365, %386, %407 in 1 : vector<8x8xf32>, vector<8x8xf32>, vector<8x8xf32>, vector<8x8xf32> -> vector<8x32xf32>
    %409 = tpu.concatenate %320, %408 in 0 : vector<8x32xf32>, vector<8x32xf32> -> vector<16x32xf32>
    %c0_111 = arith.constant 0 : index
    %c0_112 = arith.constant 0 : index
    %410 = vector.load %arg13[%c0_111, %c0_112] : memref<32x32xbf16, #tpu.memory_space<vmem>>, vector<32x32xbf16>
    %c0_113 = arith.constant 0 : index
    %c0_114 = arith.constant 0 : index
    %411 = vector.load %arg14[%c0_113, %c0_114] : memref<1x32xf32, #tpu.memory_space<vmem>>, vector<1x32xf32>
    %412 = arith.truncf %409 : vector<16x32xf32> to vector<16x32xbf16>
    %cst_115 = arith.constant dense<0.000000e+00> : vector<16x32xf32>
    %413 = tpu.matmul %412, %410, %cst_115 {dimension_numbers = #tpu.dot_dimension_numbers<[1], [0], [0], [1], [0, 0, 1, 1], [], []>} : vector<16x32xbf16>, vector<32x32xbf16>, vector<16x32xf32> -> vector<16x32xf32>
    %414 = vector.broadcast %411 : vector<1x32xf32> to vector<16x32xf32>
    %415 = arith.addf %413, %414 : vector<16x32xf32>
    %416 = arith.addf %218, %415 : vector<16x32xf32>
    %c0_116 = arith.constant 0 : index
    %c0_117 = arith.constant 0 : index
    %417 = vector.load %arg15[%c0_116, %c0_117] : memref<1x32xf32, #tpu.memory_space<vmem>>, vector<1x32xf32>
    %c0_118 = arith.constant 0 : index
    %c0_119 = arith.constant 0 : index
    %418 = vector.load %arg16[%c0_118, %c0_119] : memref<1x32xf32, #tpu.memory_space<vmem>>, vector<1x32xf32>
    %cst_120 = arith.constant dense<0.000000e+00> : vector<16xf32>
    %419 = vector.multi_reduction <add>, %416, %cst_120 [1] : vector<16x32xf32> to vector<16xf32>
    %420 = vector.shape_cast %419 : vector<16xf32> to vector<16x1xf32>
    %cst_121 = arith.constant 3.200000e+01 : f32
    %421 = vector.broadcast %cst_121 : f32 to vector<16x1xf32>
    %422 = arith.divf %420, %421 : vector<16x1xf32>
    %423 = vector.broadcast %422 : vector<16x1xf32> to vector<16x32xf32>
    %424 = arith.subf %416, %423 : vector<16x32xf32>
    %425 = arith.mulf %424, %424 : vector<16x32xf32>
    %cst_122 = arith.constant dense<0.000000e+00> : vector<16xf32>
    %426 = vector.multi_reduction <add>, %425, %cst_122 [1] : vector<16x32xf32> to vector<16xf32>
    %427 = vector.shape_cast %426 : vector<16xf32> to vector<16x1xf32>
    %cst_123 = arith.constant 3.200000e+01 : f32
    %428 = vector.broadcast %cst_123 : f32 to vector<16x1xf32>
    %429 = arith.divf %427, %428 : vector<16x1xf32>
    %430 = vector.broadcast %422 : vector<16x1xf32> to vector<16x32xf32>
    %431 = arith.subf %416, %430 : vector<16x32xf32>
    %cst_124 = arith.constant 9.99999974E-6 : f32
    %432 = vector.broadcast %cst_124 : f32 to vector<16x1xf32>
    %433 = arith.addf %429, %432 : vector<16x1xf32>
    %434 = math.rsqrt %433 : vector<16x1xf32>
    %435 = vector.broadcast %434 : vector<16x1xf32> to vector<16x32xf32>
    %436 = arith.mulf %431, %435 : vector<16x32xf32>
    %437 = vector.broadcast %417 : vector<1x32xf32> to vector<16x32xf32>
    %438 = arith.mulf %436, %437 : vector<16x32xf32>
    %439 = vector.broadcast %418 : vector<1x32xf32> to vector<16x32xf32>
    %440 = arith.addf %438, %439 : vector<16x32xf32>
    %c0_125 = arith.constant 0 : index
    %c0_126 = arith.constant 0 : index
    %441 = vector.load %arg17[%c0_125, %c0_126] : memref<32x64xbf16, #tpu.memory_space<vmem>>, vector<32x64xbf16>
    %c0_127 = arith.constant 0 : index
    %c0_128 = arith.constant 0 : index
    %442 = vector.load %arg18[%c0_127, %c0_128] : memref<1x64xf32, #tpu.memory_space<vmem>>, vector<1x64xf32>
    %443 = arith.truncf %440 : vector<16x32xf32> to vector<16x32xbf16>
    %cst_129 = arith.constant dense<0.000000e+00> : vector<16x64xf32>
    %444 = tpu.matmul %443, %441, %cst_129 {dimension_numbers = #tpu.dot_dimension_numbers<[1], [0], [0], [1], [0, 0, 1, 1], [], []>} : vector<16x32xbf16>, vector<32x64xbf16>, vector<16x64xf32> -> vector<16x64xf32>
    %445 = vector.broadcast %442 : vector<1x64xf32> to vector<16x64xf32>
    %446 = arith.addf %444, %445 : vector<16x64xf32>
    %cst_130 = arith.constant 0.000000e+00 : f32
    %447 = vector.broadcast %cst_130 : f32 to vector<16x64xf32>
    %448 = arith.maximumf %446, %447 : vector<16x64xf32>
    %c0_131 = arith.constant 0 : index
    %c0_132 = arith.constant 0 : index
    %449 = vector.load %arg19[%c0_131, %c0_132] : memref<64x32xbf16, #tpu.memory_space<vmem>>, vector<64x32xbf16>
    %c0_133 = arith.constant 0 : index
    %c0_134 = arith.constant 0 : index
    %450 = vector.load %arg20[%c0_133, %c0_134] : memref<1x32xf32, #tpu.memory_space<vmem>>, vector<1x32xf32>
    %451 = arith.truncf %448 : vector<16x64xf32> to vector<16x64xbf16>
    %cst_135 = arith.constant dense<0.000000e+00> : vector<16x32xf32>
    %452 = tpu.matmul %451, %449, %cst_135 {dimension_numbers = #tpu.dot_dimension_numbers<[1], [0], [0], [1], [0, 0, 1, 1], [], []>} : vector<16x64xbf16>, vector<64x32xbf16>, vector<16x32xf32> -> vector<16x32xf32>
    %453 = vector.broadcast %450 : vector<1x32xf32> to vector<16x32xf32>
    %454 = arith.addf %452, %453 : vector<16x32xf32>
    %455 = arith.addf %440, %454 : vector<16x32xf32>
    %c0_136 = arith.constant 0 : index
    %c0_137 = arith.constant 0 : index
    %456 = vector.load %arg21[%c0_136, %c0_137] : memref<1x32xf32, #tpu.memory_space<vmem>>, vector<1x32xf32>
    %c0_138 = arith.constant 0 : index
    %c0_139 = arith.constant 0 : index
    %457 = vector.load %arg22[%c0_138, %c0_139] : memref<1x32xf32, #tpu.memory_space<vmem>>, vector<1x32xf32>
    %cst_140 = arith.constant dense<0.000000e+00> : vector<16xf32>
    %458 = vector.multi_reduction <add>, %455, %cst_140 [1] : vector<16x32xf32> to vector<16xf32>
    %459 = vector.shape_cast %458 : vector<16xf32> to vector<16x1xf32>
    %cst_141 = arith.constant 3.200000e+01 : f32
    %460 = vector.broadcast %cst_141 : f32 to vector<16x1xf32>
    %461 = arith.divf %459, %460 : vector<16x1xf32>
    %462 = vector.broadcast %461 : vector<16x1xf32> to vector<16x32xf32>
    %463 = arith.subf %455, %462 : vector<16x32xf32>
    %464 = arith.mulf %463, %463 : vector<16x32xf32>
    %cst_142 = arith.constant dense<0.000000e+00> : vector<16xf32>
    %465 = vector.multi_reduction <add>, %464, %cst_142 [1] : vector<16x32xf32> to vector<16xf32>
    %466 = vector.shape_cast %465 : vector<16xf32> to vector<16x1xf32>
    %cst_143 = arith.constant 3.200000e+01 : f32
    %467 = vector.broadcast %cst_143 : f32 to vector<16x1xf32>
    %468 = arith.divf %466, %467 : vector<16x1xf32>
    %469 = vector.broadcast %461 : vector<16x1xf32> to vector<16x32xf32>
    %470 = arith.subf %455, %469 : vector<16x32xf32>
    %cst_144 = arith.constant 9.99999974E-6 : f32
    %471 = vector.broadcast %cst_144 : f32 to vector<16x1xf32>
    %472 = arith.addf %468, %471 : vector<16x1xf32>
    %473 = math.rsqrt %472 : vector<16x1xf32>
    %474 = vector.broadcast %473 : vector<16x1xf32> to vector<16x32xf32>
    %475 = arith.mulf %470, %474 : vector<16x32xf32>
    %476 = vector.broadcast %456 : vector<1x32xf32> to vector<16x32xf32>
    %477 = arith.mulf %475, %476 : vector<16x32xf32>
    %478 = vector.broadcast %457 : vector<1x32xf32> to vector<16x32xf32>
    %479 = arith.addf %477, %478 : vector<16x32xf32>
    %c0_145 = arith.constant 0 : index
    %c0_146 = arith.constant 0 : index
    %480 = vector.load %arg23[%c0_145, %c0_146] : memref<16x32xf32, #tpu.memory_space<vmem>>, vector<16x32xf32>
    tpu.vector_store %arg23[%c0_145, %c0_146], %479 {strides = array<i32>} : memref<16x32xf32, #tpu.memory_space<vmem>>, vector<16x32xf32>,
    return
  }
  func.func @transform_0(%arg0: i32) -> (i32, i32) {
    %c0_i32 = arith.constant 0 : i32
    %c0_i32_0 = arith.constant 0 : i32
    %c0_i32_1 = arith.constant 0 : i32
    return %c0_i32, %c0_i32_0 : i32, i32
  }
  func.func @transform_1(%arg0: i32) -> (i32, i32) {
    %c0_i32 = arith.constant 0 : i32
    %c0_i32_0 = arith.constant 0 : i32
    %c0_i32_1 = arith.constant 0 : i32
    return %c0_i32, %c0_i32_0 : i32, i32
  }
  func.func @transform_2(%arg0: i32) -> (i32, i32) {
    %c0_i32 = arith.constant 0 : i32
    %c0_i32_0 = arith.constant 0 : i32
    %c0_i32_1 = arith.constant 0 : i32
    return %c0_i32, %c0_i32_0 : i32, i32
  }
  func.func @transform_3(%arg0: i32) -> (i32, i32) {
    %c0_i32 = arith.constant 0 : i32
    %c0_i32_0 = arith.constant 0 : i32
    %c0_i32_1 = arith.constant 0 : i32
    return %c0_i32, %c0_i32_0 : i32, i32
  }
  func.func @transform_4(%arg0: i32) -> (i32, i32) {
    %c0_i32 = arith.constant 0 : i32
    %c0_i32_0 = arith.constant 0 : i32
    %c0_i32_1 = arith.constant 0 : i32
    return %c0_i32, %c0_i32_0 : i32, i32
  }
  func.func @transform_5(%arg0: i32) -> (i32, i32) {
    %c0_i32 = arith.constant 0 : i32
    %c0_i32_0 = arith.constant 0 : i32
    %c0_i32_1 = arith.constant 0 : i32
    return %c0_i32, %c0_i32_0 : i32, i32
  }
  func.func @transform_6(%arg0: i32) -> (i32, i32) {
    %c0_i32 = arith.constant 0 : i32
    %c0_i32_0 = arith.constant 0 : i32
    %c0_i32_1 = arith.constant 0 : i32
    return %c0_i32, %c0_i32_0 : i32, i32
  }
  func.func @transform_7(%arg0: i32) -> (i32, i32) {
    %c0_i32 = arith.constant 0 : i32
    %c0_i32_0 = arith.constant 0 : i32
    %c0_i32_1 = arith.constant 0 : i32
    return %c0_i32, %c0_i32_0 : i32, i32
  }
  func.func @transform_8(%arg0: i32) -> (i32, i32) {
    %c0_i32 = arith.constant 0 : i32
    %c0_i32_0 = arith.constant 0 : i32
    %c0_i32_1 = arith.constant 0 : i32
    return %c0_i32, %c0_i32_0 : i32, i32
  }
  func.func @transform_9(%arg0: i32) -> (i32, i32) {
    %c0_i32 = arith.constant 0 : i32
    %c0_i32_0 = arith.constant 0 : i32
    %c0_i32_1 = arith.constant 0 : i32
    return %c0_i32, %c0_i32_0 : i32, i32
  }
  func.func @transform_10(%arg0: i32) -> (i32, i32) {
    %c0_i32 = arith.constant 0 : i32
    %c0_i32_0 = arith.constant 0 : i32
    %c0_i32_1 = arith.constant 0 : i32
    return %c0_i32, %c0_i32_0 : i32, i32
  }
  func.func @transform_11(%arg0: i32) -> (i32, i32) {
    %c0_i32 = arith.constant 0 : i32
    %c0_i32_0 = arith.constant 0 : i32
    %c0_i32_1 = arith.constant 0 : i32
    return %c0_i32, %c0_i32_0 : i32, i32
  }
  func.func @transform_12(%arg0: i32) -> (i32, i32) {
    %c0_i32 = arith.constant 0 : i32
    %c0_i32_0 = arith.constant 0 : i32
    %c0_i32_1 = arith.constant 0 : i32
    return %c0_i32, %c0_i32_0 : i32, i32
  }
  func.func @transform_13(%arg0: i32) -> (i32, i32) {
    %c0_i32 = arith.constant 0 : i32
    %c0_i32_0 = arith.constant 0 : i32
    %c0_i32_1 = arith.constant 0 : i32
    return %c0_i32, %c0_i32_0 : i32, i32
  }
  func.func @transform_14(%arg0: i32) -> (i32, i32) {
    %c0_i32 = arith.constant 0 : i32
    %c0_i32_0 = arith.constant 0 : i32
    %c0_i32_1 = arith.constant 0 : i32
    return %c0_i32, %c0_i32_0 : i32, i32
  }
  func.func @transform_15(%arg0: i32) -> (i32, i32) {
    %c0_i32 = arith.constant 0 : i32
    %c0_i32_0 = arith.constant 0 : i32
    %c0_i32_1 = arith.constant 0 : i32
    return %c0_i32, %c0_i32_0 : i32, i32
  }
  func.func @transform_16(%arg0: i32) -> (i32, i32) {
    %c0_i32 = arith.constant 0 : i32
    %c0_i32_0 = arith.constant 0 : i32
    %c0_i32_1 = arith.constant 0 : i32
    return %c0_i32, %c0_i32_0 : i32, i32
  }
  func.func @transform_17(%arg0: i32) -> (i32, i32) {
    %c0_i32 = arith.constant 0 : i32
    %c0_i32_0 = arith.constant 0 : i32
    %c0_i32_1 = arith.constant 0 : i32
    return %c0_i32, %c0_i32_0 : i32, i32
  }
  func.func @transform_18(%arg0: i32) -> (i32, i32) {
    %c0_i32 = arith.constant 0 : i32
    %c0_i32_0 = arith.constant 0 : i32
    %c0_i32_1 = arith.constant 0 : i32
    return %c0_i32, %c0_i32_0 : i32, i32
  }
  func.func @transform_19(%arg0: i32) -> (i32, i32) {
    %c0_i32 = arith.constant 0 : i32
    %c0_i32_0 = arith.constant 0 : i32
    %c0_i32_1 = arith.constant 0 : i32
    return %c0_i32, %c0_i32_0 : i32, i32
  }
  func.func @transform_20(%arg0: i32) -> (i32, i32) {
    %c0_i32 = arith.constant 0 : i32
    %c0_i32_0 = arith.constant 0 : i32
    %c0_i32_1 = arith.constant 0 : i32
    return %c0_i32, %c0_i32_0 : i32, i32
  }
  func.func @transform_21(%arg0: i32) -> (i32, i32) {
    %c0_i32 = arith.constant 0 : i32
    %c0_i32_0 = arith.constant 0 : i32
    %c0_i32_1 = arith.constant 0 : i32
    return %c0_i32, %c0_i32_0 : i32, i32
  }
  func.func @transform_22(%arg0: i32) -> (i32, i32) {
    %c0_i32 = arith.constant 0 : i32
    %c0_i32_0 = arith.constant 0 : i32
    %c0_i32_1 = arith.constant 0 : i32
    return %c0_i32, %c0_i32_0 : i32, i32
  }
}

</mosaic_0001>

<bundles_post_ra>
// kernel: _fwd.9
= control target key start
LH: loop header
LB: loop body
LE: loop exit
PB: predicated region body
PF: predicated region fallthrough
CT: control target
= control target key end

     0   :  { %8 = vsyncpa [#allocation3], 0  ;;  %s116_s15 = smov [#allocation2]   ;;  %s158_s0 = inlined_call_operand.vmem [shape: f32[16,32], index: 0, kind: input, shape index: {}]   ;;  %s159_s1 = inlined_call_operand.vmem [shape: bf16[32,128], index: 1, kind: input, shape index: {}]   ;;  %s160_s2 = inlined_call_operand.hbm [shape: f32[1,128], index: 2, kind: input, shape index: {}]   ;;  %s161_s3 = inlined_call_operand.vmem [shape: f32[16,128], index: 3, kind: output, shape index: {}]  }
   0x1   :  { %s18_s14 = sshll.u32 %s160_s2, 4  ;;  %s20_s16 = sshll.u32 %s116_s15, 4  ;;  %s19_s14 = int_to_ptr.hbm [resolvable:$true] %s18_s14  ;;  %s21_s16 = int_to_ptr.vmem [resolvable:$true] %s20_s16 }
   0x2   :  { %23 = dma.hbm_to_vmem [thread:$0]  %s19_s14, 16, %s21_s16, [#allocation3]  }
   0x3   :  { %114 = dma.done.wait [#allocation3], 16  }
   0x4   :  { %115 = vsyncadd [#allocation3], 4294967280  ;;  %v87_v0 = vld [vmem:[%s159_s1 + $0x8] sm:$0xff]  ;;  %v86_v1 = vld [vmem:[%s159_s1] sm:$0xff]  ;;  %vm52_vm0 = vcmask 261120  }
   0x5   :  { %62 = vmatpush.bf16.msra.mxu0 %v87_v0  ;;  %v29_v2 = vld [vmem:[%s158_s0] sm:$0xff]  ;;  %v30_v3 = vld [vmem:[%s158_s0 + $0x8] sm:$0xff] }
   0x6   :  { %v31_v4 = vpack.c.bf16 %v30_v3, %v29_v2  ;;  %v89_v5 = vld [vmem:[#allocation2] ss:$0 sm:$0xff] }
   0x9   :  { %63 = vmatpush.bf16.msra.mxu0 %v86_v1 }
   0xc   :  { %85 = vmatmul.msk.bf16.vlgmr.msra.gmra.mxu0 %vm52_vm0, %v31_v4 }
  0x89   :  { %v65_v6 = vpop.f32.mrf.mxu0 }
  0x8a   :  { %v66_v7 = vadd.f32 %v89_v5, %v65_v6 }
  0x8c   :  { %70 = vst [vmem:[%s161_s3] sm:$0xff] %v66_v7 }
  0x91   :  { %v67_v8 = vpop.f32.mrf.mxu0 }
  0x92   :  { %v68_v9 = vadd.f32 %v89_v5, %v67_v8 }
  0x94   :  { %71 = vst [vmem:[%s161_s3 + $0x8] sm:$0xff] %v68_v9 }
  0x95   :  { %76 = vsyncpa [#allocation3], 1 }

// kernel: _fwd.5
= control target key start
LH: loop header
LB: loop body
LE: loop exit
PB: predicated region body
PF: predicated region fallthrough
CT: control target
= control target key end

     0   :  { %vm70_vm0 = vcmask 261120   ;;  %s1268_s19 = smov 80   ;;  %s1270_s20 = smov 120   ;;  %vm99_vm1 = vcmask 64512   ;;  %vm122_vm2 = vcmask 80896   ;;  %vm126_vm3 = vcmask 74752   ;;  %s1705_s1 = inlined_call_operand.vmem [shape: bf16[32,96], index: 1, kind: input, shape index: {}]   ;;  %s1706_s0 = inlined_call_operand.vmem [shape: f32[20,32], index: 0, kind: input, shape index: {}]   ;;  %s1707_s2 = inlined_call_operand.vmem [shape: f32[1,96], index: 2, kind: input, shape index: {}]   ;;  %s1708_s4 = inlined_call_operand.vmem [shape: f32[1,32], index: 4, kind: input, shape index: {}]   ;;  %s1709_s3 = inlined_call_operand.vmem [shape: bf16[32,32], index: 3, kind: input, shape index: {}]   ;;  %s1710_s5 = inlined_call_operand.vmem [shape: f32[1,32], index: 5, kind: input, shape index: {}]   ;;  %s1711_s6 = inlined_call_operand.vmem [shape: f32[1,32], index: 6, kind: input, shape index: {}]   ;;  %s1712_s8 = inlined_call_operand.vmem [shape: f32[1,64], index: 8, kind: input, shape index: {}]   ;;  %s1713_s7 = inlined_call_operand.vmem [shape: bf16[32,64], index: 7, kind: input, shape index: {}]   ;;  %s1714_s10 = inlined_call_operand.vmem [shape: f32[1,32], index: 10, kind: input, shape index: {}]   ;;  %s1715_s9 = inlined_call_operand.vmem [shape: bf16[64,32], index: 9, kind: input, shape index: {}]   ;;  %s1716_s11 = inlined_call_operand.vmem [shape: f32[1,32], index: 11, kind: input, shape index: {}]   ;;  %s1717_s12 = inlined_call_operand.vmem [shape: f32[1,32], index: 12, kind: input, shape index: {}]   ;;  %s1718_s13 = inlined_call_operand.vmem [shape: f32[20,32], index: 13, kind: output, shape index: {}]  }
   0x1   :  { %v1143_v0 = vld [vmem:[%s1705_s1 + $0x8] sm:$0xff]  ;;  %v1142_v1 = vld [vmem:[%s1705_s1] sm:$0xff]  ;;  %v1375_v5 = vld [vmem:[%s1706_s0 + $0x10] sm:$0xf]  ;;  %s1271_s21 = smov 96   ;;  %s1273_s22 = smov 112  }
   0x2   :  { %83 = vmatpush.bf16.msra.mxu0 %v1143_v0  ;;  %v1362_v2 = vld [vmem:[%s1706_s0] sm:$0xff]  ;;  %v1367_v3 = vld [vmem:[%s1706_s0 + $0x8] sm:$0xff]  ;;  %v54_v6 = vpack.c.bf16 %v1375_v5, %v1375_v5  ;;  %s1269_s0 = smov 88   ;;  %s1274_s23 = smov 104   ;;  %vm152_vm4 = vcmask 1044480   ;;  %vm409_vm5 = vcmask 130048  }
   0x3   :  { %v53_v4 = vpack.c.bf16 %v1367_v3, %v1362_v2  ;;  %v1182_v8 = vld [vmem:[%s1707_s2] ss:$0 sm:$0xff]  ;;  %s1272_s2 = smov 72   ;;  %s1275_s24 = smov 56   ;;  %vm412_vm6 = vcmask 195584   ;;  %vm732_vm7 = vcmask 1041408  }
   0x4   :  { %s1276_s25 = smov 40   ;;  %s1277_s26 = smov 64   ;;  %vm796_vm8 = vcmask 257024  }
   0x5   :  { %s1278_s27 = smov 48   ;;  %s1279_s28 = smov 8  }
   0x6   :  { %84 = vmatpush.bf16.msra.mxu0 %v1142_v1  ;;  %s1280_s29 = smov 16   ;;  %s1281_s30 = smov 24  }
   0x9   :  { %1086 = vmatmul.msk.bf16.vlgmr.msra.gmra.mxu0 %vm70_vm0, %v53_v4 }
  0x19   :  { %1087 = vmatmul.msk.bf16.gmra.mxu0 %vm70_vm0, %v54_v6 }
  0x86   :  { %v86_v7 = vpop.f32.mrf.mxu0 }
  0x87   :  { %v87_v10 = vadd.f32 %v1182_v8, %v86_v7 }
  0x8e   :  { %v88_v9 = vpop.f32.mrf.mxu0 }
  0x8f   :  { %v89_v11 = vadd.f32 %v1182_v8, %v88_v9 }
  0x91   :  { %v1383_v12 = vpack.c.bf16 %v89_v11, %v87_v10 }
  0x93   :  { %243 = vrot.lane.b32.xlu2 %v1383_v12, %s1268_s19  ;;  %172 = vrot.lane.b32.xlu0 %v1383_v12, %s1269_s0 }
  0x96   :  { %v91_v13 = vpop.f32.mrf.mxu0 }
  0x97   :  { %v92_v15 = vadd.f32 %v1182_v8, %v91_v13 }
  0x99   :  { %v415_v16 = vpack.c.bf16 %v92_v15, %v89_v11 }
  0x9b   :  { %170 = vrot.lane.b32.xlu0 %v1383_v12, %s1270_s20  ;;  %v1397_v17 = vrot.slane %v415_v16, 1 }
  0x9e   :  { %v93_v14 = vpop.f32.mrf.mxu0 }
  0xa3   :  { %97 = vrot.lane.b32.xlu0 %v1383_v12, %s1271_s21 }
  0xab   :  { %314 = vrot.lane.b32.xlu0 %v1383_v12, %s1272_s2 }
  0xb3   :  { %241 = vrot.lane.b32.xlu0 %v1383_v12, %s1273_s22 }
  0xbb   :  { %312 = vrot.lane.b32.xlu0 %v1383_v12, %s1274_s23 }
  0xc3   :  { %487 = vrot.lane.b32.xlu0 %v1397_v17, %s1270_s20 }
  0xcb   :  { %558 = vrot.lane.b32.xlu0 %v1397_v17, %s1273_s22 }
  0xed   :  { %v244_v21 = vpop.permute.xlu2 %243 }
  0xee   :  { %v249_v24 = vsel %vm99_vm1, %v244_v21, 0 }
 0x105   :  { %v173_v18 = vpop.permute.xlu0 %172 }
 0x106   :  { %v178_v19 = vsel %vm99_vm1, %v173_v18, 0 }
 0x107   :  { %187 = vmatpush.bf16.xpose.msra.mxu3 %v178_v19 }
 0x10d   :  { %v171_v20 = vpop.permute.xlu0 %170 }
 0x10e   :  { %1090 = vmatmul.msk.bf16.vlgmr.msra.gmra.mxu3 %vm99_vm1, %v171_v20 }
 0x115   :  { %v98_v22 = vpop.permute.xlu0 %97 }
 0x116   :  { %v104_v23 = vsel %vm99_vm1, %v98_v22, 0 }
 0x117   :  { %113 = vmatpush.bf16.xpose.msra.mxu1 %v104_v23 }
 0x11d   :  { %v315_v25 = vpop.permute.xlu0 %314 }
 0x11e   :  { %1088 = vmatmul.msk.bf16.vlgmr.msra.gmra.mxu1 %vm99_vm1, %v1383_v12  ;;  %v320_v55 = vsel %vm99_vm1, %v315_v25, 0 }
 0x11f   :  { %258 = vmatpush.bf16.xpose.msrb.mxu1 %v249_v24 }
 0x125   :  { %v242_v26 = vpop.permute.xlu0 %241 }
 0x12d   :  { %v313_v7 = vpop.permute.xlu0 %312 }
 0x12e   :  { %1092 = vmatmul.msk.bf16.vlgmr.msrb.gmra.mxu1 %vm99_vm1, %v242_v26 }
 0x135   :  { %v488_v11 = vpop.permute.xlu0 %487 }
 0x13d   :  { %v559_v15 = vpop.permute.xlu0 %558 }
 0x191   :  { %v189_v27 = vpop.f32.mrf.mxu3 }
 0x192   :  { %v194_v28 = vmul.f32 0.35355338, %v189_v27 }
 0x194   :  { %v196_v29 = vsel %vm122_vm2, %v194_v28, -inf }
 0x195   :  { %197 = vmax.xlane.f32.xlu1 %v196_v29 }
 0x199   :  { %v191_v30 = vpop.f32.mrf.mxu3 }
 0x19a   :  { %v195_v31 = vmul.f32 0.35355338, %v191_v30 }
 0x19b   :  { %v115_v32 = vpop.f32.mrf.mxu1 }
 0x19c   :  { %v199_v33 = vsel %vm126_vm3, %v195_v31, -inf  ;;  %v1420_v38 = vmul.f32 0.35355338, %v115_v32 }
 0x19d   :  { %200 = vmax.xlane.f32.xlu1 %v199_v33 }
 0x19e   :  { %v123_v39 = vsel %vm122_vm2, %v1420_v38, -inf }
 0x1a3   :  { %v117_v34 = vpop.f32.mrf.mxu1 }
 0x1a4   :  { %v1410_v35 = vmul.f32 0.35355338, %v117_v34 }
 0x1a6   :  { %v127_v36 = vsel %vm126_vm3, %v1410_v35, -inf }
 0x1a7   :  { %128 = vmax.xlane.f32.xlu0 %v127_v36 }
 0x1ab   :  { %v260_v37 = vpop.f32.mrf.mxu1 }
 0x1ac   :  { %v1438_v56 = vmul.f32 0.35355338, %v260_v37 }
 0x1ae   :  { %v267_v57 = vsel %vm122_vm2, %v1438_v56, -inf }
 0x1b3   :  { %v262_v40 = vpop.f32.mrf.mxu1 }
 0x1b4   :  { %v1424_v41 = vmul.f32 0.35355338, %v262_v40 }
 0x1b6   :  { %219 = vrot.lane.b32.xlu1 %v1383_v12, %s1275_s24  ;;  %v270_v42 = vsel %vm126_vm3, %v1424_v41, -inf }
 0x1be   :  { %489 = vrot.lane.b32.xlu1 %v1397_v17, %s1269_s0 }
 0x1c6   :  { %631 = vrot.lane.b32.xlu1 %v1397_v17, %s1272_s2 }
 0x1f0   :  { %124 = vmax.xlane.f32.xlu1 %v123_v39 }
 0x1f8   :  { %271 = vmax.xlane.f32.xlu1 %v270_v42 }
 0x208   :  { %v198_v43 = vpop.xlane.xlu1 %197 }
 0x209   :  { %v202_v44 = vsub.f32 %v194_v28, %v198_v43 }
 0x20b   :  { %v204_v45 = vmul.f32 1.442695, %v202_v44 }
 0x20d   :  { %1190 = vpow2.f32 %v204_v45 }
 0x210   :  { %v201_v46 = vpop.xlane.xlu1 %200 }
 0x211   :  { %v203_v47 = vsub.f32 %v195_v31, %v201_v46 }
 0x213   :  { %v1191_v48 = vpop.eup %1190  ;;  %v206_v49 = vmul.f32 1.442695, %v203_v47 }
 0x214   :  { %v208_v50 = vsel %vm122_vm2, %v1191_v48, 0.0 }
 0x215   :  { %1192 = vpow2.f32 %v206_v49  ;;  %209 = vadd.xlane.f32.xlu2 %v208_v50 }
 0x21a   :  { %v129_v18 = vpop.xlane.xlu0 %128 }
 0x21b   :  { %v1193_v51 = vpop.eup %1192  ;;  %v131_v19 = vsub.f32 %v1410_v35, %v129_v18 }
 0x21c   :  { %v211_v52 = vsel %vm126_vm3, %v1193_v51, 0.0 }
 0x21d   :  { %212 = vadd.xlane.f32.xlu2 %v211_v52  ;;  %v134_v20 = vmul.f32 1.442695, %v131_v19 }
 0x228   :  { %v220_v53 = vpop.permute.xlu1 %219 }
 0x229   :  { %v225_v54 = vsel %vm152_vm4, %v220_v53, 0 }
 0x22a   :  { %234 = vmatpush.bf16.msra.mxu2 %v225_v54 }
 0x22e   :  { %329 = vmatpush.bf16.xpose.msrb.mxu2 %v320_v55 }
 0x230   :  { %v490_v1 = vpop.permute.xlu1 %489 }
 0x231   :  { %v495_v8 = vsel %vm99_vm1, %v490_v1, 0 }
 0x235   :  { %418 = vrot.lane.b32.xlu2 %v1397_v17, %s1271_s21 }
 0x238   :  { %v632_v13 = vpop.permute.xlu1 %631 }
 0x239   :  { %v637_v14 = vsel %vm99_vm1, %v632_v13, 0 }
 0x23d   :  { %560 = vrot.lane.b32.xlu2 %v1397_v17, %s1268_s19 }
 0x245   :  { %629 = vrot.lane.b32.xlu2 %v1397_v17, %s1274_s23 }
 0x263   :  { %v125_v29 = vpop.xlane.xlu1 %124 }
 0x264   :  { %v130_v32 = vsub.f32 %v1420_v38, %v125_v29 }
 0x266   :  { %v132_v34 = vmul.f32 1.442695, %v130_v32 }
 0x26b   :  { %v272_v45 = vpop.xlane.xlu1 %271 }
 0x26c   :  { %v274_v46 = vsub.f32 %v1424_v41, %v272_v45 }
 0x26e   :  { %268 = vmax.xlane.f32.xlu2 %v267_v57  ;;  %v277_v47 = vmul.f32 1.442695, %v274_v46 }
 0x288   :  { %v210_v58 = vpop.xlane.xlu2 %209 }
 0x289   :  { %1194 = vrcp.f32 %v210_v58 }
 0x28f   :  { %v1195_v60 = vpop.eup %1194 }
 0x290   :  { %v213_v59 = vpop.xlane.xlu2 %212  ;;  %v216_v63 = vmul.f32 %v1195_v60, %v1191_v48 }
 0x291   :  { %1196 = vrcp.f32 %v213_v59 }
 0x292   :  { %1198 = vpow2.f32 %v134_v20 }
 0x293   :  { %1200 = vpow2.f32 %v132_v34 }
 0x294   :  { %1202 = vpow2.f32 %v277_v47 }
 0x297   :  { %v1197_v61 = vpop.eup %1196 }
 0x298   :  { %v419_v62 = vpop.permute.xlu2 %418  ;;  %v217_v0 = vmul.f32 %v1197_v61, %v1193_v51  ;;  %v1458_v24 = vpop.eup %1198 }
 0x299   :  { %v424_v4 = vsel %vm99_vm1, %v419_v62, 0  ;;  %v139_v28 = vsel %vm126_vm3, %v1458_v24, 0.0  ;;  %v1477_v40 = vpop.eup %1200 }
 0x29a   :  { %433 = vmatpush.bf16.xpose.msra.mxu1 %v424_v4  ;;  %v218_v6 = vpack.c.bf16 %v217_v0, %v216_v63  ;;  %v136_v38 = vsel %vm122_vm2, %v1477_v40, 0.0  ;;  %v1490_v49 = vpop.eup %1202 }
 0x29b   :  { %v282_v52 = vsel %vm126_vm3, %v1490_v49, 0.0 }
 0x29c   :  { %1091 = vmatmul.msk.bf16.vlgmr.msra.gmra.mxu2 %vm122_vm2, %v218_v6 }
 0x29d   :  { %504 = vmatpush.bf16.xpose.msra.mxu2 %v495_v8 }
 0x2a0   :  { %v561_v9 = vpop.permute.xlu2 %560 }
 0x2a1   :  { %v566_v10 = vsel %vm99_vm1, %v561_v9, 0  ;;  %1096 = vmatmul.msk.bf16.vlgmr.msra.gmra.mxu1 %vm99_vm1, %v1397_v17 }
 0x2a2   :  { %575 = vmatpush.bf16.xpose.msrb.mxu1 %v566_v10 }
 0x2a8   :  { %v630_v16 = vpop.permute.xlu2 %629 }
 0x2ac   :  { %1094 = vmatmul.msk.bf16.vlgmr.msrb.gmra.mxu2 %vm99_vm1, %v313_v7 }
 0x2ad   :  { %646 = vmatpush.bf16.xpose.msrb.mxu2 %v637_v14 }
 0x2b1   :  { %1100 = vmatmul.msk.bf16.vlgmr.msrb.gmra.mxu1 %vm99_vm1, %v559_v15 }
 0x2bc   :  { %1098 = vmatmul.msk.bf16.vlgmr.msra.gmra.mxu2 %vm99_vm1, %v488_v11 }
 0x2cc   :  { %1102 = vmatmul.msk.bf16.vlgmr.msrb.gmra.mxu2 %vm99_vm1, %v630_v16 }
 0x2e1   :  { %v269_v50 = vpop.xlane.xlu2 %268 }
 0x2e2   :  { %v273_v53 = vsub.f32 %v1438_v56, %v269_v50 }
 0x2e4   :  { %v275_v55 = vmul.f32 1.442695, %v273_v53 }
 0x2e6   :  { %1204 = vpow2.f32 %v275_v55 }
 0x2ec   :  { %v1505_v60 = vpop.eup %1204 }
 0x2ed   :  { %v279_v61 = vsel %vm122_vm2, %v1505_v60, 0.0 }
 0x31e   :  { %v435_v21 = vpop.f32.mrf.mxu1 }
 0x31f   :  { %v1454_v22 = vmul.f32 0.35355338, %v435_v21  ;;  %v1473_v37 = vpop.f32.mrf.mxu2 }
 0x321   :  { %v442_v23 = vsel %vm122_vm2, %v1454_v22, -inf }
 0x322   :  { %443 = vmax.xlane.f32.xlu1 %v442_v23 }
 0x326   :  { %v437_v25 = vpop.f32.mrf.mxu1 }
 0x327   :  { %v1460_v26 = vmul.f32 0.35355338, %v437_v25  ;;  %v1481_v42 = vpop.f32.mrf.mxu2 }
 0x329   :  { %v445_v27 = vsel %vm126_vm3, %v1460_v26, -inf }
 0x32a   :  { %446 = vmax.xlane.f32.xlu2 %v445_v27  ;;  %140 = vadd.xlane.f32.xlu1 %v139_v28 }
 0x32e   :  { %v577_v30 = vpop.f32.mrf.mxu1 }
 0x32f   :  { %v1466_v31 = vmul.f32 0.35355338, %v577_v30  ;;  %v331_v43 = vpop.f32.mrf.mxu2 }
 0x330   :  { %v1495_v54 = vmul.f32 0.35355338, %v331_v43 }
 0x331   :  { %v584_v33 = vsel %vm122_vm2, %v1466_v31, -inf }
 0x332   :  { %585 = vmax.xlane.f32.xlu2 %v584_v33  ;;  %v338_v41 = vsel %vm122_vm2, %v1495_v54, -inf }
 0x336   :  { %v579_v35 = vpop.f32.mrf.mxu1 }
 0x337   :  { %v1471_v36 = vmul.f32 0.35355338, %v579_v35  ;;  %v333_v44 = vpop.f32.mrf.mxu2 }
 0x338   :  { %v1511_v62 = vmul.f32 0.35355338, %v333_v44 }
 0x339   :  { %v587_v39 = vsel %vm126_vm3, %v1471_v36, -inf }
 0x33a   :  { %588 = vmax.xlane.f32.xlu0 %v587_v39  ;;  %v341_v63 = vsel %vm126_vm3, %v1511_v62, -inf }
 0x33f   :  { %v506_v48 = vpop.f32.mrf.mxu2 }
 0x340   :  { %v1531_v20 = vmul.f32 0.35355338, %v506_v48 }
 0x342   :  { %137 = vadd.xlane.f32.xlu0 %v136_v38  ;;  %v513_v25 = vsel %vm122_vm2, %v1531_v20, -inf }
 0x343   :  { %361 = vrot.lane.b32.xlu1 %v1383_v12, %s1276_s25 }
 0x347   :  { %v508_v51 = vpop.f32.mrf.mxu2 }
 0x34a   :  { %147 = vrot.lane.b32.xlu2 %v1383_v12, %s1277_s26 }
 0x34f   :  { %v648_v58 = vpop.f32.mrf.mxu2 }
 0x350   :  { %v1503_v59 = vmul.f32 0.35355338, %v648_v58 }
 0x352   :  { %v655_v56 = vsel %vm122_vm2, %v1503_v59, -inf }
 0x356   :  { %290 = vrot.lane.b32.xlu0 %v1383_v12, %s1278_s27  ;;  %v1497_v12 = vmul.f32 0.35355338, %v508_v51 }
 0x357   :  { %v650_v11 = vpop.f32.mrf.mxu2 }
 0x358   :  { %v516_v57 = vsel %vm126_vm3, %v1497_v12, -inf  ;;  %v1521_v13 = vmul.f32 0.35355338, %v650_v11 }
 0x35a   :  { %v658_v16 = vsel %vm126_vm3, %v1521_v13, -inf }
 0x36d   :  { %283 = vadd.xlane.f32.xlu1 %v282_v52 }
 0x373   :  { %339 = vmax.xlane.f32.xlu2 %v338_v41 }
 0x375   :  { %517 = vmax.xlane.f32.xlu1 %v516_v57 }
 0x37d   :  { %656 = vmax.xlane.f32.xlu1 %v655_v56 }
 0x380   :  { %280 = vadd.xlane.f32.xlu0 %v279_v61 }
 0x388   :  { %342 = vmax.xlane.f32.xlu0 %v341_v63 }
 0x395   :  { %v444_v0 = vpop.xlane.xlu1 %443 }
 0x396   :  { %v448_v1 = vsub.f32 %v1454_v22, %v444_v0 }
 0x398   :  { %v450_v4 = vmul.f32 1.442695, %v448_v1 }
 0x39a   :  { %1206 = vpow2.f32 %v450_v4 }
 0x39d   :  { %v447_v6 = vpop.xlane.xlu2 %446  ;;  %v141_v19 = vpop.xlane.xlu1 %140 }
 0x39e   :  { %v449_v7 = vsub.f32 %v1460_v26, %v447_v6 }
 0x3a0   :  { %v1517_v8 = vpop.eup %1206  ;;  %v452_v9 = vmul.f32 1.442695, %v449_v7 }
 0x3a1   :  { %v454_v10 = vsel %vm122_vm2, %v1517_v8, 0.0 }
 0x3a2   :  { %1208 = vpow2.f32 %v452_v9  ;;  %455 = vadd.xlane.f32.xlu2 %v454_v10 }
 0x3a3   :  { %1210 = vrcp.f32 %v141_v19 }
 0x3a5   :  { %v1523_v14 = vpop.xlane.xlu2 %585 }
 0x3a8   :  { %v1525_v15 = vpop.eup %1208 }
 0x3a9   :  { %v457_v18 = vsel %vm126_vm3, %v1525_v15, 0.0  ;;  %v1211_v29 = vpop.eup %1210 }
 0x3aa   :  { %659 = vmax.xlane.f32.xlu2 %v658_v16  ;;  %458 = vadd.xlane.f32.xlu0 %v457_v18  ;;  %v145_v32 = vmul.f32 %v1211_v29, %v1458_v24 }
 0x3ad   :  { %v148_v21 = vpop.permute.xlu2 %147  ;;  %v1533_v22 = vpop.xlane.xlu0 %588 }
 0x3ae   :  { %v154_v23 = vsel %vm152_vm4, %v148_v21, 0  ;;  %v590_v21 = vsub.f32 %v1466_v31, %v1523_v14 }
 0x3af   :  { %163 = vmatpush.bf16.msrb.mxu0 %v154_v23 }
 0x3b2   :  { %514 = vmax.xlane.f32.xlu0 %v513_v25  ;;  %v592_v25 = vmul.f32 1.442695, %v590_v21 }
 0x3b5   :  { %v362_v26 = vpop.permute.xlu1 %361  ;;  %v138_v27 = vpop.xlane.xlu0 %137 }
 0x3b6   :  { %v367_v28 = vsel %vm152_vm4, %v362_v26, 0  ;;  %1212 = vrcp.f32 %v138_v27 }
 0x3b7   :  { %376 = vmatpush.bf16.msra.mxu0 %v367_v28 }
 0x3bc   :  { %v1213_v30 = vpop.eup %1212 }
 0x3bd   :  { %v144_v33 = vmul.f32 %v1213_v30, %v1477_v40 }
 0x3bf   :  { %v146_v34 = vpack.c.bf16 %v145_v32, %v144_v33 }
 0x3c1   :  { %1089 = vmatmul.msk.bf16.vlgmr.msrb.gmra.mxu0 %vm122_vm2, %v146_v34 }
 0x3c8   :  { %v291_v35 = vpop.permute.xlu0 %290 }
 0x3c9   :  { %v296_v39 = vsel %vm152_vm4, %v291_v35, 0 }
 0x3ca   :  { %305 = vmatpush.bf16.msrb.mxu3 %v296_v39 }
 0x3e0   :  { %v284_v38 = vpop.xlane.xlu1 %283 }
 0x3e6   :  { %v340_v43 = vpop.xlane.xlu2 %339 }
 0x3e7   :  { %v344_v44 = vsub.f32 %v1495_v54, %v340_v43 }
 0x3e8   :  { %v518_v45 = vpop.xlane.xlu1 %517 }
 0x3e9   :  { %v346_v46 = vmul.f32 1.442695, %v344_v44  ;;  %v520_v47 = vsub.f32 %v1497_v12, %v518_v45 }
 0x3eb   :  { %1214 = vpow2.f32 %v346_v46  ;;  %v523_v48 = vmul.f32 1.442695, %v520_v47 }
 0x3ed   :  { %1216 = vpow2.f32 %v523_v48 }
 0x3ee   :  { %1218 = vrcp.f32 %v284_v38 }
 0x3f0   :  { %v657_v1 = vpop.xlane.xlu1 %656 }
 0x3f1   :  { %v1545_v24 = vpop.eup %1214  ;;  %v661_v9 = vsub.f32 %v1503_v59, %v657_v1 }
 0x3f2   :  { %v350_v40 = vsel %vm122_vm2, %v1545_v24, 0.0 }
 0x3f3   :  { %v1549_v50 = vpop.eup %1216  ;;  %351 = vadd.xlane.f32.xlu0 %v350_v40  ;;  %v281_v51 = vpop.xlane.xlu0 %280  ;;  %v663_v23 = vmul.f32 1.442695, %v661_v9 }
 0x3f4   :  { %1220 = vrcp.f32 %v281_v51  ;;  %v528_v52 = vsel %vm126_vm3, %v1549_v50, 0.0  ;;  %v1219_v53 = vpop.eup %1218 }
 0x3f5   :  { %529 = vadd.xlane.f32.xlu2 %v528_v52  ;;  %v288_v12 = vmul.f32 %v1219_v53, %v1490_v49 }
 0x3fa   :  { %v1221_v54 = vpop.eup %1220 }
 0x3fb   :  { %v287_v55 = vmul.f32 %v1221_v54, %v1505_v60  ;;  %v343_v41 = vpop.xlane.xlu0 %342 }
 0x3fc   :  { %v345_v57 = vsub.f32 %v1511_v62, %v343_v41 }
 0x3fd   :  { %v289_v58 = vpack.c.bf16 %v288_v12, %v287_v55 }
 0x3fe   :  { %v348_v56 = vmul.f32 1.442695, %v345_v57 }
 0x3ff   :  { %1093 = vmatmul.msk.bf16.vlgmr.msrb.gmra.mxu3 %vm122_vm2, %v289_v58 }
 0x400   :  { %1222 = vpow2.f32 %v348_v56 }
 0x406   :  { %v1557_v61 = vpop.eup %1222 }
 0x407   :  { %536 = vrot.lane.b32.xlu0 %v1397_v17, %s1275_s24  ;;  %v353_v63 = vsel %vm126_vm3, %v1557_v61, 0.0 }
 0x408   :  { %354 = vadd.xlane.f32.xlu1 %v353_v63 }
 0x40d   :  { %465 = vrot.lane.b32.xlu2 %v1397_v17, %s1277_s26 }
 0x415   :  { %v456_v49 = vpop.xlane.xlu2 %455 }
 0x416   :  { %1224 = vrcp.f32 %v456_v49 }
 0x41c   :  { %v1225_v4 = vpop.eup %1224 }
 0x41d   :  { %v660_v60 = vpop.xlane.xlu2 %659  ;;  %v459_v62 = vpop.xlane.xlu0 %458  ;;  %v462_v10 = vmul.f32 %v1225_v4, %v1517_v8  ;;  %v591_v8 = vsub.f32 %v1471_v36, %v1533_v22 }
 0x41e   :  { %1226 = vrcp.f32 %v459_v62  ;;  %v662_v0 = vsub.f32 %v1521_v13, %v660_v60 }
 0x41f   :  { %v594_v31 = vmul.f32 1.442695, %v591_v8 }
 0x420   :  { %v665_v6 = vmul.f32 1.442695, %v662_v0 }
 0x422   :  { %1228 = vpow2.f32 %v665_v6 }
 0x424   :  { %v1227_v7 = vpop.eup %1226 }
 0x425   :  { %v463_v11 = vmul.f32 %v1227_v7, %v1525_v15  ;;  %v515_v16 = vpop.xlane.xlu0 %514 }
 0x426   :  { %v519_v18 = vsub.f32 %v1531_v20, %v515_v16 }
 0x427   :  { %v464_v19 = vpack.c.bf16 %v463_v11, %v462_v10 }
 0x428   :  { %v521_v13 = vmul.f32 1.442695, %v519_v18  ;;  %v1572_v26 = vpop.eup %1228 }
 0x429   :  { %v670_v15 = vsel %vm126_vm3, %v1572_v26, 0.0 }
 0x42a   :  { %1230 = vpow2.f32 %v521_v13 }
 0x42b   :  { %1232 = vpow2.f32 %v663_v23 }
 0x42c   :  { %1234 = vpow2.f32 %v592_v25 }
 0x42d   :  { %1236 = vpow2.f32 %v594_v31  ;;  %v1144_v31 = vld [vmem:[%s1709_s3] sm:$0xff] }
 0x430   :  { %v1231_v59 = vpop.eup %1230 }
 0x431   :  { %671 = vadd.xlane.f32.xlu0 %v670_v15  ;;  %v525_v20 = vsel %vm122_vm2, %v1231_v59, 0.0  ;;  %v1233_v27 = vpop.eup %1232 }
 0x432   :  { %526 = vadd.xlane.f32.xlu1 %v525_v20  ;;  %v667_v14 = vsel %vm122_vm2, %v1233_v27, 0.0  ;;  %v1235_v28 = vpop.eup %1234 }
 0x433   :  { %v596_v29 = vsel %vm122_vm2, %v1235_v28, 0.0  ;;  %v1237_v30 = vpop.eup %1236 }
 0x434   :  { %v599_v36 = vsel %vm126_vm3, %v1237_v30, 0.0 }
 0x436   :  { %668 = vadd.xlane.f32.xlu2 %v667_v14 }
 0x43a   :  { %597 = vadd.xlane.f32.xlu1 %v596_v29 }
 0x43e   :  { %v165_v7 = vpop.f32.mrf.mxu0 }
 0x442   :  { %600 = vadd.xlane.f32.xlu1 %v599_v36 }
 0x446   :  { %v167_v9 = vpop.f32.mrf.mxu0 }
 0x45b   :  { %607 = vrot.lane.b32.xlu1 %v1397_v17, %s1278_s27 }
 0x463   :  { %678 = vrot.lane.b32.xlu1 %v1397_v17, %s1276_s25 }
 0x466   :  { %v352_v33 = vpop.xlane.xlu0 %351 }
 0x467   :  { %1238 = vrcp.f32 %v352_v33 }
 0x468   :  { %v530_v22 = vpop.xlane.xlu2 %529 }
 0x46d   :  { %v1239_v43 = vpop.eup %1238 }
 0x46e   :  { %v358_v45 = vmul.f32 %v1239_v43, %v1545_v24 }
 0x470   :  { %v466_v32 = vpop.permute.xlu2 %465 }
 0x471   :  { %v471_v34 = vsel %vm152_vm4, %v466_v32, 0 }
 0x472   :  { %480 = vmatpush.bf16.msra.mxu3 %v471_v34 }
 0x475   :  { %1097 = vmatmul.msk.bf16.vlgmr.msra.gmra.mxu3 %vm122_vm2, %v464_v19 }
 0x479   :  { %v537_v35 = vpop.permute.xlu0 %536 }
 0x47a   :  { %v542_v39 = vsel %vm152_vm4, %v537_v35, 0 }
 0x47b   :  { %v355_v38 = vpop.xlane.xlu1 %354  ;;  %551 = vmatpush.bf16.msrb.mxu0 %v542_v39 }
 0x47c   :  { %1240 = vrcp.f32 %v355_v38 }
 0x47d   :  { %1242 = vrcp.f32 %v530_v22 }
 0x482   :  { %v1241_v44 = vpop.eup %1240  ;;  %v307_v19 = vpop.f32.mrf.mxu3 }
 0x483   :  { %v359_v17 = vmul.f32 %v1241_v44, %v1557_v61  ;;  %v1243_v48 = vpop.eup %1242 }
 0x484   :  { %v534_v51 = vmul.f32 %v1243_v48, %v1549_v50 }
 0x485   :  { %v360_v46 = vpack.c.bf16 %v359_v17, %v358_v45 }
 0x487   :  { %1095 = vmatmul.msk.bf16.vlgmr.msra.gmra.mxu0 %vm122_vm2, %v360_v46 }
 0x48a   :  { %v309_v21 = vpop.f32.mrf.mxu3 }
 0x4a4   :  { %v672_v41 = vpop.xlane.xlu0 %671 }
 0x4a5   :  { %v527_v47 = vpop.xlane.xlu1 %526 }
 0x4a6   :  { %1244 = vrcp.f32 %v527_v47 }
 0x4a9   :  { %v669_v24 = vpop.xlane.xlu2 %668 }
 0x4ac   :  { %v1245_v40 = vpop.eup %1244 }
 0x4ad   :  { %v533_v52 = vmul.f32 %v1245_v40, %v1231_v59  ;;  %v598_v54 = vpop.xlane.xlu1 %597 }
 0x4af   :  { %v535_v53 = vpack.c.bf16 %v534_v51, %v533_v52 }
 0x4b1   :  { %1099 = vmatmul.msk.bf16.vlgmr.msrb.gmra.mxu0 %vm122_vm2, %v535_v53 }
 0x4b5   :  { %v601_v12 = vpop.xlane.xlu1 %600 }
 0x4b6   :  { %1246 = vrcp.f32 %v601_v12 }
 0x4b7   :  { %1248 = vrcp.f32 %v598_v54 }
 0x4b8   :  { %1250 = vrcp.f32 %v669_v24 }
 0x4b9   :  { %1252 = vrcp.f32 %v672_v41 }
 0x4bc   :  { %v1247_v55 = vpop.eup %1246 }
 0x4bd   :  { %v1249_v57 = vpop.eup %1248  ;;  %v605_v58 = vmul.f32 %v1247_v55, %v1237_v30 }
 0x4be   :  { %v604_v61 = vmul.f32 %v1249_v57, %v1235_v28  ;;  %v1251_v49 = vpop.eup %1250 }
 0x4bf   :  { %v1253_v60 = vpop.eup %1252  ;;  %v675_v62 = vmul.f32 %v1251_v49, %v1233_v27 }
 0x4c0   :  { %v606_v50 = vpack.c.bf16 %v605_v58, %v604_v61  ;;  %v676_v1 = vmul.f32 %v1253_v60, %v1572_v26 }
 0x4c2   :  { %v677_v6 = vpack.c.bf16 %v676_v1, %v675_v62 }
 0x4cd   :  { %v608_v56 = vpop.permute.xlu1 %607 }
 0x4ce   :  { %v613_v63 = vsel %vm152_vm4, %v608_v56, 0 }
 0x4cf   :  { %622 = vmatpush.bf16.msrb.mxu3 %v613_v63  ;;  %v1183_v63 = vld [vmem:[%s1708_s4] ss:$0 sm:$0xff] }
 0x4d2   :  { %1101 = vmatmul.msk.bf16.vlgmr.msrb.gmra.mxu3 %vm122_vm2, %v606_v50 }
 0x4d5   :  { %v679_v0 = vpop.permute.xlu1 %678 }
 0x4d6   :  { %v684_v4 = vsel %vm152_vm4, %v679_v0, 0  ;;  %vm963_vm4 = vcmask 523264  }
 0x4d7   :  { %693 = vmatpush.bf16.msra.mxu0 %v684_v4 }
 0x4da   :  { %1103 = vmatmul.msk.bf16.vlgmr.msra.gmra.mxu0 %vm122_vm2, %v677_v6 }
 0x4f8   :  { %v482_v23 = vpop.f32.mrf.mxu3 }
 0x500   :  { %v484_v13 = vpop.f32.mrf.mxu3 }
 0x504   :  { %v378_v10 = vpop.f32.mrf.mxu0 }
 0x50c   :  { %v380_v11 = vpop.f32.mrf.mxu0 }
 0x52e   :  { %v553_v16 = vpop.f32.mrf.mxu0 }
 0x52f   :  { %v1172_v18 = vpack.i.bf16 %v1481_v42, %v553_v16 }
 0x531   :  { %1173 = vrot.lane.b32.xlu1 %v1172_v18, %s1279_s28 }
 0x536   :  { %v555_v25 = vpop.f32.mrf.mxu0 }
 0x539   :  { %385 = vrot.lane.b32.xlu1 %v1473_v37, %s1279_s28  ;;  %v1145_v37 = vld [vmem:[%s1709_s3 + $0x8] sm:$0xff] }
 0x53a   :  { %773 = vmatpush.bf16.msra.mxu1 %v1145_v37 }
 0x53e   :  { %774 = vmatpush.bf16.msra.mxu1 %v1144_v31 }
 0x541   :  { %393 = vrot.lane.b32.xlu1 %v307_v19, %s1280_s29 }
 0x549   :  { %401 = vrot.lane.b32.xlu1 %v378_v10, %s1281_s30 }
 0x555   :  { %v624_v26 = vpop.f32.mrf.mxu3 }
 0x556   :  { %v1167_v59 = vpack.i.bf16 %v309_v21, %v624_v26 }
 0x557   :  { %v695_v8 = vpop.f32.mrf.mxu0 }
 0x558   :  { %v1177_v15 = vpack.i.bf16 %v380_v11, %v695_v8  ;;  %1168 = vrot.lane.b32.xlu2 %v1167_v59, %s1280_s29 }
 0x55a   :  { %1178 = vrot.lane.b32.xlu0 %v1177_v15, %s1281_s30 }
 0x55d   :  { %v626_v42 = vpop.f32.mrf.mxu3 }
 0x55f   :  { %v697_v20 = vpop.f32.mrf.mxu0 }
 0x560   :  { %712 = vrot.lane.b32.xlu2 %v626_v42, %s1280_s29  ;;  %720 = vrot.lane.b32.xlu1 %v697_v20, %s1281_s30 }
 0x562   :  { %704 = vrot.lane.b32.xlu0 %v555_v25, %s1279_s28 }
 0x5a3   :  { %v1174_v27 = vpop.permute.xlu1 %1173 }
 0x5a4   :  { %v1175_v30 = vunpack.i.l.bf16 %v1174_v27  ;;  %v1176_v22 = vunpack.i.h.bf16 %v1174_v27 }
 0x5a6   :  { %v724_v34 = vsel %vm99_vm1, %v482_v23, %v1175_v30  ;;  %v408_v43 = vsel %vm99_vm1, %v167_v9, %v1176_v22 }
 0x5ab   :  { %v386_v14 = vpop.permute.xlu1 %385 }
 0x5ac   :  { %v407_v17 = vsel %vm99_vm1, %v165_v7, %v386_v14 }
 0x5b2   :  { %v1169_v29 = vpop.permute.xlu2 %1168 }
 0x5b3   :  { %v394_v28 = vpop.permute.xlu1 %393  ;;  %v1170_v36 = vunpack.i.l.bf16 %v1169_v29  ;;  %v1171_v32 = vunpack.i.h.bf16 %v1169_v29 }
 0x5b4   :  { %v410_v48 = vsel %vm409_vm5, %v407_v17, %v394_v28 }
 0x5b5   :  { %v726_v38 = vsel %vm409_vm5, %v724_v34, %v1170_v36  ;;  %v411_v46 = vsel %vm409_vm5, %v408_v43, %v1171_v32  ;;  %v1147_v36 = vld [vmem:[%s1713_s7 + $0x8] sm:$0xff]  ;;  %v1146_v34 = vld [vmem:[%s1713_s7] sm:$0xff] }
 0x5b6   :  { %910 = vmatpush.bf16.msra.mxu3 %v1147_v36 }
 0x5ba   :  { %v713_v12 = vpop.permute.xlu2 %712  ;;  %911 = vmatpush.bf16.msra.mxu3 %v1146_v34 }
 0x5bb   :  { %v402_v44 = vpop.permute.xlu1 %401 }
 0x5bc   :  { %v413_v51 = vsel %vm412_vm6, %v410_v48, %v402_v44 }
 0x5cc   :  { %v1179_v33 = vpop.permute.xlu0 %1178 }
 0x5cd   :  { %v1181_v35 = vunpack.i.h.bf16 %v1179_v33  ;;  %v1180_v39 = vunpack.i.l.bf16 %v1179_v33 }
 0x5cf   :  { %v728_v45 = vsel %vm412_vm6, %v726_v38, %v1180_v39  ;;  %v414_v40 = vsel %vm412_vm6, %v411_v46, %v1181_v35 }
 0x5d0   :  { %v733_v47 = vrot.slane %v728_v45, 6 }
 0x5d2   :  { %v738_v52 = vsel %vm732_vm7, %v414_v40, %v733_v47  ;;  %v721_v41 = vpop.permute.xlu1 %720 }
 0x5d3   :  { %v744_v53 = vpack.c.bf16 %v738_v52, %v413_v51 }
 0x5d4   :  { %v705_v54 = vpop.permute.xlu0 %704 }
 0x5d5   :  { %v725_v24 = vsel %vm99_vm1, %v484_v13, %v705_v54  ;;  %1112 = vmatmul.msk.bf16.vlgmr.msra.gmra.mxu1 %vm70_vm0, %v744_v53 }
 0x5d6   :  { %v727_v55 = vsel %vm409_vm5, %v725_v24, %v713_v12 }
 0x5d7   :  { %v729_v57 = vsel %vm412_vm6, %v727_v55, %v721_v41 }
 0x5d8   :  { %v734_v58 = vrot.slane %v729_v57, 6  ;;  %v1184_v57 = vld [vmem:[%s1710_s5] ss:$0 sm:$0xff] }
 0x5da   :  { %v735_v56 = vsel %vm732_vm7, %v733_v47, %v734_v58 }
 0x5db   :  { %v745_v61 = vpack.c.bf16 %v735_v56, %v735_v56 }
 0x5e5   :  { %1113 = vmatmul.msk.bf16.gmra.mxu1 %vm70_vm0, %v745_v61 }
 0x652   :  { %v776_v50 = vpop.f32.mrf.mxu1 }
 0x653   :  { %v777_v49 = vadd.f32 %v1183_v63, %v776_v50 }
 0x655   :  { %v785_v60 = vadd.f32 %v777_v49, %v1362_v2  ;;  %v1282_v2 = vmov 32.0   ;;  %v1185_v49 = vld [vmem:[%s1711_s6] ss:$0 sm:$0xff] }
 0x656   :  { %1254 = vrcp.f32 %v1282_v2 }
 0x657   :  { %v790_v62 = vsel %vm70_vm0, %v785_v60, 0.0 }
 0x658   :  { %791 = vadd.xlane.f32.xlu0 %v790_v62 }
 0x65a   :  { %v778_v0 = vpop.f32.mrf.mxu1 }
 0x65b   :  { %v779_v1 = vadd.f32 %v1183_v63, %v778_v0 }
 0x65c   :  { %v1255_v18 = vpop.eup %1254 }
 0x65d   :  { %v786_v4 = vadd.f32 %v779_v1, %v1367_v3  ;;  %v801_v19 = vmul.f32 32.0, %v1255_v18  ;;  %vm805_vm9 = vweird.f32 %v1255_v18 }
 0x65f   :  { %v793_v6 = vsel %vm70_vm0, %v786_v4, 0.0  ;;  %v802_v21 = vsub.f32 1.0, %v801_v19 }
 0x660   :  { %794 = vadd.xlane.f32.xlu2 %v793_v6 }
 0x661   :  { %v803_v23 = vmul.f32 %v1255_v18, %v802_v21  ;;  %v1151_v21 = vld [vmem:[%s1715_s9 + $0x18] sm:$0xff] }
 0x662   :  { %v781_v7 = vpop.f32.mrf.mxu1  ;;  %974 = vmatpush.bf16.msra.mxu2 %v1151_v21  ;;  %v1188_v21 = vld [vmem:[%s1716_s11] ss:$0 sm:$0xff] }
 0x663   :  { %v782_v9 = vadd.f32 %v1183_v63, %v781_v7  ;;  %v804_v13 = vadd.f32 %v1255_v18, %v803_v23  ;;  %v1150_v23 = vld [vmem:[%s1715_s9 + $0x10] sm:$0xff] }
 0x665   :  { %v787_v10 = vadd.f32 %v782_v9, %v1375_v5  ;;  %v1632_v3 = vsel %vm805_vm9, %v1255_v18, %v804_v13  ;;  %v1149_v13 = vld [vmem:[%s1715_s9 + $0x8] sm:$0xff] }
 0x666   :  { %975 = vmatpush.bf16.msra.mxu2 %v1150_v23 }
 0x667   :  { %v797_v11 = vsel %vm796_vm8, %v787_v10, 0.0 }
 0x668   :  { %798 = vadd.xlane.f32.xlu1 %v797_v11 }
 0x66a   :  { %v783_v16 = vpop.f32.mrf.mxu1  ;;  %976 = vmatpush.bf16.msra.mxu2 %v1149_v13 }
 0x6cb   :  { %v792_v25 = vpop.xlane.xlu0 %791 }
 0x6cc   :  { %v807_v26 = vmul.f32 %v1632_v3, %v792_v25  ;;  %v1148_v25 = vld [vmem:[%s1715_s9] sm:$0xff] }
 0x6cd   :  { %977 = vmatpush.bf16.msra.mxu2 %v1148_v25  ;;  %v1189_v25 = vld [vmem:[%s1717_s12] ss:$0 sm:$0xff] }
 0x6ce   :  { %v810_v59 = vsub.f32 %v785_v60, %v807_v26 }
 0x6d0   :  { %v813_v8 = vmul.f32 %v810_v59, %v810_v59 }
 0x6d2   :  { %v816_v5 = vsel %vm70_vm0, %v813_v8, 0.0 }
 0x6d3   :  { %v795_v15 = vpop.xlane.xlu2 %794  ;;  %817 = vadd.xlane.f32.xlu0 %v816_v5 }
 0x6d4   :  { %v808_v42 = vmul.f32 %v1632_v3, %v795_v15 }
 0x6d6   :  { %v811_v20 = vsub.f32 %v786_v4, %v808_v42 }
 0x6d8   :  { %v814_v37 = vmul.f32 %v811_v20, %v811_v20 }
 0x6da   :  { %v819_v27 = vsel %vm70_vm0, %v814_v37, 0.0 }
 0x6db   :  { %820 = vadd.xlane.f32.xlu2 %v819_v27  ;;  %v799_v31 = vpop.xlane.xlu1 %798 }
 0x6dc   :  { %v809_v14 = vmul.f32 %v1632_v3, %v799_v31 }
 0x6de   :  { %v812_v28 = vsub.f32 %v787_v10, %v809_v14 }
 0x6e0   :  { %v815_v29 = vmul.f32 %v812_v28, %v812_v28 }
 0x6e2   :  { %v822_v30 = vsel %vm796_vm8, %v815_v29, 0.0 }
 0x6e3   :  { %823 = vadd.xlane.f32.xlu1 %v822_v30  ;;  %v1187_v30 = vld [vmem:[%s1714_s10] ss:$0 sm:$0xff] }
 0x746   :  { %v818_v22 = vpop.xlane.xlu0 %817 }
 0x747   :  { %v825_v32 = vmul.f32 %v818_v22, %v1632_v3 }
 0x749   :  { %v828_v33 = vadd.f32 1e-05, %v825_v32 }
 0x74b   :  { %1256 = vrsqrt.f32 %v828_v33  ;;  %vm837_vm11 = vweird.f32 %v828_v33 }
 0x74e   :  { %v821_v35 = vpop.xlane.xlu2 %820 }
 0x74f   :  { %v826_v39 = vmul.f32 %v821_v35, %v1632_v3 }
 0x751   :  { %v1257_v38 = vpop.eup %1256  ;;  %v829_v43 = vadd.f32 1e-05, %v826_v39 }
 0x752   :  { %v832_v44 = vmul.f32 %v1257_v38, %v828_v33  ;;  %vm838_vm10 = vweird.f32 %v1257_v38 }
 0x753   :  { %1258 = vrsqrt.f32 %v829_v43  ;;  %vm839_vm12 = vmor %vm837_vm11, %vm838_vm10  ;;  %vm847_vm14 = vweird.f32 %v829_v43 }
 0x754   :  { %v833_v45 = vmul.f32 %v1257_v38, %v832_v44 }
 0x756   :  { %v834_v17 = vmul.f32 0.5, %v833_v45  ;;  %v824_v46 = vpop.xlane.xlu1 %823 }
 0x757   :  { %v827_v47 = vmul.f32 %v824_v46, %v1632_v3 }
 0x758   :  { %v835_v48 = vsub.f32 1.5, %v834_v17 }
 0x759   :  { %v1259_v40 = vpop.eup %1258  ;;  %v830_v51 = vadd.f32 1e-05, %v827_v47 }
 0x75a   :  { %v836_v52 = vmul.f32 %v1257_v38, %v835_v48  ;;  %v842_v53 = vmul.f32 %v1259_v40, %v829_v43  ;;  %vm848_vm13 = vweird.f32 %v1259_v40 }
 0x75b   :  { %1260 = vrsqrt.f32 %v830_v51  ;;  %vm849_vm15 = vmor %vm847_vm14, %vm848_vm13  ;;  %vm857_vm2 = vweird.f32 %v830_v51 }
 0x75c   :  { %v843_v54 = vmul.f32 %v1259_v40, %v842_v53  ;;  %v840_v12 = vsel %vm839_vm12, %v1257_v38, %v836_v52 }
 0x75d   :  { %v861_v58 = vmul.f32 %v840_v12, %v810_v59  ;;  %v1186_v59 = vld [vmem:[%s1712_s8] ss:$0 sm:$0xff] }
 0x75e   :  { %v844_v24 = vmul.f32 0.5, %v843_v54 }
 0x75f   :  { %v867_v60 = vmul.f32 %v1184_v57, %v861_v58 }
 0x760   :  { %v845_v55 = vsub.f32 1.5, %v844_v24 }
 0x761   :  { %v1261_v41 = vpop.eup %1260  ;;  %v873_v6 = vadd.f32 %v1185_v49, %v867_v60 }
 0x762   :  { %v846_v56 = vmul.f32 %v1259_v40, %v845_v55  ;;  %v852_v61 = vmul.f32 %v1261_v41, %v830_v51  ;;  %vm858_vm1 = vweird.f32 %v1261_v41 }
 0x763   :  { %vm859_vm3 = vmor %vm857_vm2, %vm858_vm1 }
 0x764   :  { %v850_v63 = vsel %vm849_vm15, %v1259_v40, %v846_v56  ;;  %v853_v50 = vmul.f32 %v1261_v41, %v852_v61 }
 0x765   :  { %v862_v62 = vmul.f32 %v850_v63, %v811_v20 }
 0x766   :  { %v854_v0 = vmul.f32 0.5, %v853_v50 }
 0x767   :  { %v868_v1 = vmul.f32 %v1184_v57, %v862_v62 }
 0x768   :  { %v855_v4 = vsub.f32 1.5, %v854_v0 }
 0x769   :  { %v874_v7 = vadd.f32 %v1185_v49, %v868_v1 }
 0x76a   :  { %v856_v9 = vmul.f32 %v1261_v41, %v855_v4 }
 0x76b   :  { %v881_v10 = vpack.c.bf16 %v874_v7, %v873_v6 }
 0x76c   :  { %v860_v11 = vsel %vm859_vm3, %v1261_v41, %v856_v9 }
 0x76d   :  { %1122 = vmatmul.msk.bf16.vlgmr.msra.gmra.mxu3 %vm70_vm0, %v881_v10  ;;  %v863_v16 = vmul.f32 %v860_v11, %v812_v28 }
 0x76f   :  { %v869_v2 = vmul.f32 %v1184_v57, %v863_v16 }
 0x771   :  { %v875_v18 = vadd.f32 %v1185_v49, %v869_v2 }
 0x773   :  { %v882_v19 = vpack.c.bf16 %v875_v18, %v875_v18 }
 0x77d   :  { %1123 = vmatmul.msk.bf16.gmra.mxu3 %vm70_vm0, %v882_v19 }
 0x7f0   :  { %v913_v26 = vpop.f32.mrf.mxu3 }
 0x7f1   :  { %v914_v8 = vadd.f32 %v1186_v59, %v913_v26 }
 0x7f3   :  { %v922_v42 = vmax.f32 %v914_v8, 0.0 }
 0x7f8   :  { %v915_v5 = vpop.f32.mrf.mxu3 }
 0x7f9   :  { %v916_v15 = vadd.f32 %v1186_v59, %v915_v5 }
 0x7fb   :  { %v923_v20 = vmax.f32 %v916_v15, 0.0 }
 0x7fd   :  { %v934_v37 = vpack.c.bf16 %v923_v20, %v922_v42 }
 0x7ff   :  { %1140 = vmatmul.msk.bf16.vlgmr.msra.gmra.mxu2 %vm963_vm4, %v934_v37 }
 0x800   :  { %v918_v27 = vpop.f32.mrf.mxu3 }
 0x801   :  { %v919_v31 = vadd.f32 %v1186_v59, %v918_v27 }
 0x803   :  { %v924_v28 = vmax.f32 %v919_v31, 0.0 }
 0x805   :  { %v935_v29 = vpack.c.bf16 %v924_v28, %v924_v28 }
 0x808   :  { %v920_v14 = vpop.f32.mrf.mxu3 }
 0x80f   :  { %1141 = vmatmul.msk.bf16.gmra.mxu2 %vm963_vm4, %v935_v29 }
 0x882   :  { %v979_v36 = vpop.f32.mrf.mxu2 }
 0x883   :  { %v980_v22 = vadd.f32 %v1187_v30, %v979_v36 }
 0x885   :  { %v988_v32 = vadd.f32 %v980_v22, %v873_v6 }
 0x887   :  { %v993_v33 = vsel %vm70_vm0, %v988_v32, 0.0 }
 0x888   :  { %994 = vadd.xlane.f32.xlu0 %v993_v33 }
 0x88a   :  { %v981_v34 = vpop.f32.mrf.mxu2 }
 0x88b   :  { %v982_v35 = vadd.f32 %v1187_v30, %v981_v34 }
 0x88d   :  { %v989_v39 = vadd.f32 %v982_v35, %v874_v7 }
 0x88f   :  { %v996_v38 = vsel %vm70_vm0, %v989_v39, 0.0 }
 0x890   :  { %997 = vadd.xlane.f32.xlu2 %v996_v38 }
 0x892   :  { %v984_v43 = vpop.f32.mrf.mxu2 }
 0x893   :  { %v985_v44 = vadd.f32 %v1187_v30, %v984_v43 }
 0x895   :  { %v990_v45 = vadd.f32 %v985_v44, %v875_v18 }
 0x897   :  { %v999_v17 = vsel %vm796_vm8, %v990_v45, 0.0 }
 0x898   :  { %1000 = vadd.xlane.f32.xlu1 %v999_v17 }
 0x89a   :  { %v986_v46 = vpop.f32.mrf.mxu2 }
 0x8fb   :  { %v995_v47 = vpop.xlane.xlu0 %994 }
 0x8fc   :  { %v1002_v48 = vmul.f32 %v995_v47, %v1632_v3 }
 0x8fe   :  { %v1005_v40 = vsub.f32 %v988_v32, %v1002_v48 }
 0x900   :  { %v1008_v51 = vmul.f32 %v1005_v40, %v1005_v40 }
 0x902   :  { %v1011_v52 = vsel %vm70_vm0, %v1008_v51, 0.0 }
 0x903   :  { %v998_v53 = vpop.xlane.xlu2 %997  ;;  %1012 = vadd.xlane.f32.xlu0 %v1011_v52 }
 0x904   :  { %v1003_v54 = vmul.f32 %v998_v53, %v1632_v3 }
 0x906   :  { %v1006_v12 = vsub.f32 %v989_v39, %v1003_v54 }
 0x908   :  { %v1009_v24 = vmul.f32 %v1006_v12, %v1006_v12 }
 0x90a   :  { %v1014_v55 = vsel %vm70_vm0, %v1009_v24, 0.0 }
 0x90b   :  { %1015 = vadd.xlane.f32.xlu2 %v1014_v55  ;;  %v1001_v41 = vpop.xlane.xlu1 %1000 }
 0x90c   :  { %v1004_v57 = vmul.f32 %v1001_v41, %v1632_v3 }
 0x90e   :  { %v1007_v58 = vsub.f32 %v990_v45, %v1004_v57 }
 0x910   :  { %v1010_v56 = vmul.f32 %v1007_v58, %v1007_v58 }
 0x912   :  { %v1017_v61 = vsel %vm796_vm8, %v1010_v56, 0.0 }
 0x913   :  { %1018 = vadd.xlane.f32.xlu1 %v1017_v61 }
 0x976   :  { %v1013_v63 = vpop.xlane.xlu0 %1012 }
 0x977   :  { %v1020_v50 = vmul.f32 %v1013_v63, %v1632_v3 }
 0x979   :  { %v1023_v49 = vadd.f32 1e-05, %v1020_v50 }
 0x97b   :  { %1262 = vrsqrt.f32 %v1023_v49  ;;  %vm1032_vm6 = vweird.f32 %v1023_v49 }
 0x97e   :  { %v1016_v60 = vpop.xlane.xlu2 %1015 }
 0x97f   :  { %v1021_v62 = vmul.f32 %v1016_v60, %v1632_v3 }
 0x981   :  { %v1263_v0 = vpop.eup %1262  ;;  %v1024_v1 = vadd.f32 1e-05, %v1021_v62 }
 0x982   :  { %v1027_v4 = vmul.f32 %v1263_v0, %v1023_v49  ;;  %vm1033_vm5 = vweird.f32 %v1263_v0 }
 0x983   :  { %1264 = vrsqrt.f32 %v1024_v1  ;;  %vm1034_vm7 = vmor %vm1032_vm6, %vm1033_vm5  ;;  %vm1042_vm10 = vweird.f32 %v1024_v1 }
 0x984   :  { %v1028_v6 = vmul.f32 %v1263_v0, %v1027_v4 }
 0x986   :  { %v1029_v7 = vmul.f32 0.5, %v1028_v6  ;;  %v1019_v9 = vpop.xlane.xlu1 %1018 }
 0x987   :  { %v1022_v10 = vmul.f32 %v1019_v9, %v1632_v3 }
 0x988   :  { %v1030_v11 = vsub.f32 1.5, %v1029_v7 }
 0x989   :  { %v1265_v16 = vpop.eup %1264  ;;  %v1025_v2 = vadd.f32 1e-05, %v1022_v10 }
 0x98a   :  { %v1031_v18 = vmul.f32 %v1263_v0, %v1030_v11  ;;  %v1037_v19 = vmul.f32 %v1265_v16, %v1024_v1  ;;  %vm1043_vm9 = vweird.f32 %v1265_v16 }
 0x98b   :  { %1266 = vrsqrt.f32 %v1025_v2  ;;  %vm1044_vm11 = vmor %vm1042_vm10, %vm1043_vm9  ;;  %vm1052_vm13 = vweird.f32 %v1025_v2 }
 0x98c   :  { %v1035_v23 = vsel %vm1034_vm7, %v1263_v0, %v1031_v18  ;;  %v1038_v13 = vmul.f32 %v1265_v16, %v1037_v19 }
 0x98d   :  { %v1056_v3 = vmul.f32 %v1035_v23, %v1005_v40 }
 0x98e   :  { %v1039_v26 = vmul.f32 0.5, %v1038_v13 }
 0x98f   :  { %v1062_v59 = vmul.f32 %v1188_v21, %v1056_v3 }
 0x990   :  { %v1040_v8 = vsub.f32 1.5, %v1039_v26 }
 0x991   :  { %v1267_v5 = vpop.eup %1266  ;;  %v1068_v15 = vadd.f32 %v1189_v25, %v1062_v59 }
 0x992   :  { %v1041_v42 = vmul.f32 %v1265_v16, %v1040_v8  ;;  %v1047_v20 = vmul.f32 %v1267_v5, %v1025_v2  ;;  %vm1053_vm12 = vweird.f32 %v1267_v5 }
 0x993   :  { %1071 = vst.msk [vmem:[%s1718_s13] sm:$0xff] %vm70_vm0, %v1068_v15  ;;  %vm1054_vm14 = vmor %vm1052_vm13, %vm1053_vm12 }
 0x994   :  { %v1045_v37 = vsel %vm1044_vm11, %v1265_v16, %v1041_v42  ;;  %v1048_v27 = vmul.f32 %v1267_v5, %v1047_v20 }
 0x995   :  { %v1057_v31 = vmul.f32 %v1045_v37, %v1006_v12 }
 0x996   :  { %v1049_v14 = vmul.f32 0.5, %v1048_v27 }
 0x997   :  { %v1063_v28 = vmul.f32 %v1188_v21, %v1057_v31 }
 0x998   :  { %v1050_v29 = vsub.f32 1.5, %v1049_v14 }
 0x999   :  { %v1069_v30 = vadd.f32 %v1189_v25, %v1063_v28 }
 0x99a   :  { %v1051_v36 = vmul.f32 %v1267_v5, %v1050_v29 }
 0x99b   :  { %1072 = vst.msk [vmem:[%s1718_s13 + $0x8] sm:$0xff] %vm70_vm0, %v1069_v30 }
 0x99c   :  { %v1055_v22 = vsel %vm1054_vm14, %v1267_v5, %v1051_v36 }
 0x99d   :  { %v1058_v32 = vmul.f32 %v1055_v22, %v1007_v58 }
 0x99f   :  { %v1064_v33 = vmul.f32 %v1188_v21, %v1058_v32 }
 0x9a1   :  { %v1070_v34 = vadd.f32 %v1189_v25, %v1064_v33 }
 0x9a3   :  { %1073 = vst.msk [vmem:[%s1718_s13 + $0x10] sm:$0xf] %vm796_vm8, %v1070_v34 }

// kernel: _fwd.7
= control target key start
LH: loop header
LB: loop body
LE: loop exit
PB: predicated region body
PF: predicated region fallthrough
CT: control target
= control target key end

     0   :  { %vm98_vm0 = vcmask 261120   ;;  %s1794_s27 = smov 120   ;;  %s1796_s28 = smov 80   ;;  %vm120_vm1 = vcmask 64512   ;;  %vm158_vm2 = vcmask 1043456   ;;  %vm359_vm3 = vcmask 130048   ;;  %s2335_s2 = inlined_call_operand.vmem [shape: bf16[32,96], index: 2, kind: input, shape index: {}]   ;;  %s2336_s0 = inlined_call_operand.vmem [shape: f32[16,32], index: 0, kind: input, shape index: {}]   ;;  %s2337_s3 = inlined_call_operand.vmem [shape: f32[1,96], index: 3, kind: input, shape index: {}]   ;;  %s2338_s5 = inlined_call_operand.vmem [shape: f32[1,32], index: 5, kind: input, shape index: {}]   ;;  %s2339_s4 = inlined_call_operand.vmem [shape: bf16[32,32], index: 4, kind: input, shape index: {}]   ;;  %s2340_s6 = inlined_call_operand.vmem [shape: f32[1,32], index: 6, kind: input, shape index: {}]   ;;  %s2341_s7 = inlined_call_operand.vmem [shape: f32[1,32], index: 7, kind: input, shape index: {}]   ;;  %s2342_s10 = inlined_call_operand.vmem [shape: bf16[32,64], index: 10, kind: input, shape index: {}]   ;;  %s2343_s1 = inlined_call_operand.vmem [shape: f32[20,32], index: 1, kind: input, shape index: {}]   ;;  %s2344_s11 = inlined_call_operand.vmem [shape: f32[1,64], index: 11, kind: input, shape index: {}]   ;;  %s2345_s9 = inlined_call_operand.vmem [shape: f32[1,32], index: 9, kind: input, shape index: {}]   ;;  %s2346_s8 = inlined_call_operand.vmem [shape: bf16[32,32], index: 8, kind: input, shape index: {}]   ;;  %s2347_s13 = inlined_call_operand.vmem [shape: f32[1,32], index: 13, kind: input, shape index: {}]   ;;  %s2348_s12 = inlined_call_operand.vmem [shape: bf16[32,32], index: 12, kind: input, shape index: {}]   ;;  %s2349_s14 = inlined_call_operand.vmem [shape: f32[1,32], index: 14, kind: input, shape index: {}]   ;;  %s2350_s15 = inlined_call_operand.vmem [shape: f32[1,32], index: 15, kind: input, shape index: {}]   ;;  %s2351_s17 = inlined_call_operand.vmem [shape: f32[1,64], index: 17, kind: input, shape index: {}]   ;;  %s2352_s16 = inlined_call_operand.vmem [shape: bf16[32,64], index: 16, kind: input, shape index: {}]   ;;  %s2353_s19 = inlined_call_operand.vmem [shape: f32[1,32], index: 19, kind: input, shape index: {}]   ;;  %s2354_s18 = inlined_call_operand.vmem [shape: bf16[64,32], index: 18, kind: input, shape index: {}]   ;;  %s2355_s20 = inlined_call_operand.vmem [shape: f32[1,32], index: 20, kind: input, shape index: {}]   ;;  %s2356_s21 = inlined_call_operand.vmem [shape: f32[1,32], index: 21, kind: input, shape index: {}]   ;;  %s2357_s22 = inlined_call_operand.vmem [shape: f32[16,32], index: 22, kind: output, shape index: {}]  }
   0x1   :  { %2364 = sst [smem:[#allocation2_spill]] %s2335_s2  ;;  %s1798_s30 = smov 88   ;;  %vm361_vm4 = vcmask 195584   ;;  %vm834_vm12 = vcmask 1044480   ;;  %vm815_vm13 = vcmask 80896  }
   0x2   :  { %2365 = sst [smem:[#allocation3_spill]] %s2336_s0  ;;  %s1800_s2 = smov 56  }
   0x3   :  { %2366 = sst [smem:[#allocation4_spill]] %s2337_s3  ;;  %s1793_s3 = smov 104  }
   0x4   :  { %2367 = sst [smem:[#allocation5_spill]] %s2338_s5  ;;  %s1795_s5 = smov 96  }
   0x5   :  { %2368 = sst [smem:[#allocation6_spill]] %s2339_s4  ;;  %s1799_s4 = smov 112  }
   0x6   :  { %2369 = sst [smem:[#allocation7_spill]] %s2340_s6  ;;  %s1801_s23 = smov 64  }
   0x7   :  { %2370 = sst [smem:[#allocation8_spill]] %s2341_s7  ;;  %s1803_s6 = smov 40  }
   0x8   :  { %s2371_s29 = sld [smem:[#allocation2_spill]]  ;;  %s2363_s24 = smov 8  }
   0x9   :  { %s2372_s0 = sld [smem:[#allocation3_spill]]  ;;  %s2361_s7 = smov 16  }
   0xa   :  { %s2373_s26 = sld [smem:[#allocation4_spill]]  ;;  %s2362_s25 = smov 24  }
   0xe   :  { %v1642_v0 = vld [vmem:[%s2371_s29 + $0x8] sm:$0xff]  ;;  %v1641_v1 = vld [vmem:[%s2371_s29] sm:$0xff]  ;;  %s1797_s29 = smov 72  }
   0xf   :  { %108 = vmatpush.bf16.msra.mxu0 %v1642_v0  ;;  %v1932_v2 = vld [vmem:[%s2372_s0] sm:$0xff]  ;;  %v1937_v3 = vld [vmem:[%s2372_s0 + $0x8] sm:$0xff]  ;;  %s1802_s0 = smov 48  }
  0x10   :  { %v82_v4 = vpack.c.bf16 %v1937_v3, %v1932_v2  ;;  %v1702_v5 = vld [vmem:[%s2373_s26] ss:$0 sm:$0xff] }
  0x13   :  { %109 = vmatpush.bf16.msra.mxu0 %v1641_v1 }
  0x16   :  { %1545 = vmatmul.msk.bf16.vlgmr.msra.gmra.mxu0 %vm98_vm0, %v82_v4 }
  0x93   :  { %v111_v6 = vpop.f32.mrf.mxu0 }
  0x94   :  { %v112_v7 = vadd.f32 %v1702_v5, %v111_v6 }
  0x96   :  { %v1945_v8 = vpack.c.bf16 %v112_v7, %v112_v7 }
  0x98   :  { %289 = vrot.lane.b32.xlu2 %v1945_v8, %s1793_s3  ;;  %175 = vrot.lane.b32.xlu1 %v1945_v8, %s1794_s27 }
  0x99   :  { %118 = vrot.lane.b32.xlu0 %v1945_v8, %s1795_s5 }
  0x9b   :  { %v113_v9 = vpop.f32.mrf.mxu0 }
  0x9c   :  { %v114_v10 = vadd.f32 %v1702_v5, %v113_v9 }
  0x9e   :  { %v1959_v11 = vpack.c.bf16 %v114_v10, %v114_v10 }
  0xa0   :  { %234 = vrot.lane.b32.xlu2 %v1945_v8, %s1796_s28  ;;  %291 = vrot.lane.b32.xlu1 %v1945_v8, %s1797_s29 }
  0xa1   :  { %177 = vrot.lane.b32.xlu0 %v1945_v8, %s1798_s30 }
  0xa8   :  { %420 = vrot.lane.b32.xlu2 %v1959_v11, %s1794_s27  ;;  %232 = vrot.lane.b32.xlu1 %v1945_v8, %s1799_s4 }
  0xa9   :  { %422 = vrot.lane.b32.xlu0 %v1959_v11, %s1798_s30 }
  0xb0   :  { %534 = vrot.lane.b32.xlu2 %v1959_v11, %s1793_s3  ;;  %536 = vrot.lane.b32.xlu1 %v1959_v11, %s1797_s29 }
  0xb1   :  { %365 = vrot.lane.b32.xlu0 %v1959_v11, %s1795_s5 }
  0xb8   :  { %477 = vrot.lane.b32.xlu1 %v1959_v11, %s1799_s4 }
  0xb9   :  { %479 = vrot.lane.b32.xlu0 %v1959_v11, %s1796_s28 }
  0xc0   :  { %211 = vrot.lane.b32.xlu1 %v1945_v8, %s1800_s2 }
  0xf2   :  { %v290_v12 = vpop.permute.xlu2 %289 }
  0xfa   :  { %v235_v13 = vpop.permute.xlu2 %234 }
  0xfb   :  { %v240_v14 = vsel %vm120_vm1, %v235_v13, 0 }
  0xfc   :  { %249 = vmatpush.bf16.xpose.msrb.mxu0 %v240_v14 }
 0x102   :  { %v421_v31 = vpop.permute.xlu2 %420 }
 0x10a   :  { %v176_v15 = vpop.permute.xlu1 %175  ;;  %v535_v33 = vpop.permute.xlu2 %534 }
 0x10b   :  { %v119_v16 = vpop.permute.xlu0 %118 }
 0x10c   :  { %v125_v17 = vsel %vm120_vm1, %v119_v16, 0 }
 0x10d   :  { %134 = vmatpush.bf16.xpose.msra.mxu1 %v125_v17 }
 0x112   :  { %v292_v18 = vpop.permute.xlu1 %291 }
 0x113   :  { %v178_v19 = vpop.permute.xlu0 %177  ;;  %v297_v20 = vsel %vm120_vm1, %v292_v18, 0 }
 0x114   :  { %1546 = vmatmul.msk.bf16.vlgmr.msra.gmra.mxu1 %vm120_vm1, %v1945_v8  ;;  %v183_v21 = vsel %vm120_vm1, %v178_v19, 0 }
 0x115   :  { %192 = vmatpush.bf16.xpose.msra.mxu3 %v183_v21 }
 0x11a   :  { %v233_v22 = vpop.permute.xlu1 %232 }
 0x11b   :  { %v423_v23 = vpop.permute.xlu0 %422  ;;  %1550 = vmatmul.msk.bf16.vlgmr.msrb.gmra.mxu0 %vm120_vm1, %v233_v22 }
 0x11c   :  { %v428_v24 = vsel %vm120_vm1, %v423_v23, 0  ;;  %1548 = vmatmul.msk.bf16.vlgmr.msra.gmra.mxu3 %vm120_vm1, %v176_v15 }
 0x11d   :  { %306 = vmatpush.bf16.xpose.msrb.mxu3 %v297_v20 }
 0x122   :  { %v537_v27 = vpop.permute.xlu1 %536 }
 0x123   :  { %v366_v25 = vpop.permute.xlu0 %365  ;;  %v542_v29 = vsel %vm120_vm1, %v537_v27, 0 }
 0x124   :  { %v371_v26 = vsel %vm120_vm1, %v366_v25, 0 }
 0x125   :  { %437 = vmatpush.bf16.xpose.msra.mxu3 %v428_v24  ;;  %380 = vmatpush.bf16.xpose.msra.mxu0 %v371_v26 }
 0x12a   :  { %v478_v32 = vpop.permute.xlu1 %477 }
 0x12b   :  { %v480_v28 = vpop.permute.xlu0 %479 }
 0x12c   :  { %v485_v30 = vsel %vm120_vm1, %v480_v28, 0  ;;  %1552 = vmatmul.msk.bf16.vlgmr.msrb.gmra.mxu3 %vm120_vm1, %v290_v12  ;;  %1554 = vmatmul.msk.bf16.vlgmr.msra.gmra.mxu0 %vm120_vm1, %v1959_v11 }
 0x12d   :  { %551 = vmatpush.bf16.xpose.msrb.mxu3 %v542_v29  ;;  %494 = vmatpush.bf16.xpose.msrb.mxu0 %v485_v30 }
 0x132   :  { %v212_v15 = vpop.permute.xlu1 %211 }
 0x133   :  { %v217_v20 = vsel %vm158_vm2, %v212_v15, 0 }
 0x13c   :  { %1556 = vmatmul.msk.bf16.vlgmr.msra.gmra.mxu3 %vm120_vm1, %v421_v31  ;;  %1558 = vmatmul.msk.bf16.vlgmr.msrb.gmra.mxu0 %vm120_vm1, %v478_v32 }
 0x14c   :  { %1560 = vmatmul.msk.bf16.vlgmr.msrb.gmra.mxu3 %vm120_vm1, %v535_v33 }
 0x191   :  { %v136_v34 = vpop.f32.mrf.mxu1 }
 0x192   :  { %v140_v35 = vmul.f32 0.35355338, %v136_v34 }
 0x194   :  { %v141_v36 = vsel %vm120_vm1, %v140_v35, -inf }
 0x195   :  { %142 = vmax.xlane.f32.xlu2 %v141_v36 }
 0x198   :  { %v251_v37 = vpop.f32.mrf.mxu0 }
 0x199   :  { %v138_v38 = vpop.f32.mrf.mxu1  ;;  %v255_v39 = vmul.f32 0.35355338, %v251_v37 }
 0x19b   :  { %v256_v40 = vsel %vm120_vm1, %v255_v39, -inf }
 0x19d   :  { %257 = vmax.xlane.f32.xlu2 %v256_v40 }
 0x19f   :  { %v194_v41 = vpop.f32.mrf.mxu3 }
 0x1a0   :  { %v198_v42 = vmul.f32 0.35355338, %v194_v41  ;;  %v253_v43 = vpop.f32.mrf.mxu0 }
 0x1a2   :  { %v199_v44 = vsel %vm120_vm1, %v198_v42, -inf }
 0x1a3   :  { %200 = vmax.xlane.f32.xlu0 %v199_v44 }
 0x1a7   :  { %v196_v45 = vpop.f32.mrf.mxu3 }
 0x1a9   :  { %v382_v46 = vpop.f32.mrf.mxu0 }
 0x1aa   :  { %v2000_v47 = vmul.f32 0.35355338, %v382_v46 }
 0x1ac   :  { %v387_v48 = vsel %vm120_vm1, %v2000_v47, -inf }
 0x1ad   :  { %388 = vmax.xlane.f32.xlu1 %v387_v48 }
 0x1af   :  { %v308_v49 = vpop.f32.mrf.mxu3 }
 0x1b0   :  { %v2004_v50 = vmul.f32 0.35355338, %v308_v49 }
 0x1b1   :  { %v384_v51 = vpop.f32.mrf.mxu0 }
 0x1b2   :  { %v313_v52 = vsel %vm120_vm1, %v2004_v50, -inf }
 0x1b5   :  { %153 = vrot.lane.b32.xlu2 %v1945_v8, %s1801_s23  ;;  %314 = vmax.xlane.f32.xlu1 %v313_v52 }
 0x1b7   :  { %v310_v53 = vpop.f32.mrf.mxu3 }
 0x1b9   :  { %v496_v54 = vpop.f32.mrf.mxu0 }
 0x1ba   :  { %v500_v55 = vmul.f32 0.35355338, %v496_v54 }
 0x1bc   :  { %v501_v56 = vsel %vm120_vm1, %v500_v55, -inf }
 0x1bd   :  { %502 = vmax.xlane.f32.xlu0 %v501_v56 }
 0x1bf   :  { %v439_v57 = vpop.f32.mrf.mxu3 }
 0x1c0   :  { %v443_v0 = vmul.f32 0.35355338, %v439_v57 }
 0x1c1   :  { %v498_v58 = vpop.f32.mrf.mxu0 }
 0x1c2   :  { %v444_v1 = vsel %vm120_vm1, %v443_v0, -inf }
 0x1c7   :  { %v441_v59 = vpop.f32.mrf.mxu3 }
 0x1ce   :  { %268 = vrot.lane.b32.xlu1 %v1945_v8, %s1802_s0 }
 0x1cf   :  { %v553_v60 = vpop.f32.mrf.mxu3 }
 0x1d0   :  { %v557_v61 = vmul.f32 0.35355338, %v553_v60 }
 0x1d2   :  { %v558_v62 = vsel %vm120_vm1, %v557_v61, -inf }
 0x1d3   :  { %559 = vmax.xlane.f32.xlu0 %v558_v62 }
 0x1d7   :  { %v555_v63 = vpop.f32.mrf.mxu3 }
 0x1de   :  { %445 = vmax.xlane.f32.xlu2 %v444_v1 }
 0x208   :  { %v143_v4 = vpop.xlane.xlu2 %142 }
 0x209   :  { %v144_v5 = vsub.f32 %v140_v35, %v143_v4 }
 0x20b   :  { %v145_v6 = vmul.f32 1.442695, %v144_v5 }
 0x20d   :  { %1715 = vpow2.f32 %v145_v6 }
 0x210   :  { %v258_v7 = vpop.xlane.xlu2 %257 }
 0x211   :  { %v259_v9 = vsub.f32 %v255_v39, %v258_v7 }
 0x213   :  { %v2015_v10 = vpop.eup %1715  ;;  %v260_v12 = vmul.f32 1.442695, %v259_v9 }
 0x214   :  { %v147_v13 = vsel %vm120_vm1, %v2015_v10, 0.0 }
 0x215   :  { %1717 = vpow2.f32 %v260_v12  ;;  %148 = vadd.xlane.f32.xlu0 %v147_v13 }
 0x216   :  { %v201_v14 = vpop.xlane.xlu0 %200 }
 0x217   :  { %v202_v16 = vsub.f32 %v198_v42, %v201_v14 }
 0x218   :  { %v154_v17 = vpop.permute.xlu2 %153 }
 0x219   :  { %v203_v18 = vmul.f32 1.442695, %v202_v16  ;;  %v160_v19 = vsel %vm158_vm2, %v154_v17, 0 }
 0x21a   :  { %169 = vmatpush.bf16.msra.mxu2 %v160_v19 }
 0x21b   :  { %v2021_v21 = vpop.eup %1717  ;;  %1719 = vpow2.f32 %v203_v18 }
 0x21c   :  { %v262_v22 = vsel %vm120_vm1, %v2021_v21, 0.0 }
 0x21d   :  { %263 = vadd.xlane.f32.xlu2 %v262_v22 }
 0x21e   :  { %226 = vmatpush.bf16.msrb.mxu2 %v217_v20 }
 0x220   :  { %v389_v25 = vpop.xlane.xlu1 %388 }
 0x221   :  { %v2025_v23 = vpop.eup %1719  ;;  %v390_v28 = vsub.f32 %v2000_v47, %v389_v25 }
 0x222   :  { %v205_v24 = vsel %vm120_vm1, %v2025_v23, 0.0 }
 0x223   :  { %206 = vadd.xlane.f32.xlu1 %v205_v24  ;;  %v391_v30 = vmul.f32 1.442695, %v390_v28 }
 0x225   :  { %1721 = vpow2.f32 %v391_v30 }
 0x228   :  { %v315_v26 = vpop.xlane.xlu1 %314 }
 0x229   :  { %325 = vrot.lane.b32.xlu0 %v1945_v8, %s1803_s6  ;;  %v316_v32 = vsub.f32 %v2004_v50, %v315_v26 }
 0x22b   :  { %v317_v33 = vmul.f32 1.442695, %v316_v32  ;;  %v1722_v35 = vpop.eup %1721 }
 0x22c   :  { %v393_v39 = vsel %vm120_vm1, %v1722_v35, 0.0 }
 0x22d   :  { %1723 = vpow2.f32 %v317_v33 }
 0x230   :  { %v503_v31 = vpop.xlane.xlu0 %502 }
 0x231   :  { %v504_v8 = vsub.f32 %v500_v55, %v503_v31 }
 0x233   :  { %v505_v36 = vmul.f32 1.442695, %v504_v8  ;;  %v1724_v42 = vpop.eup %1723 }
 0x234   :  { %v319_v45 = vsel %vm120_vm1, %v1724_v42, 0.0 }
 0x235   :  { %456 = vrot.lane.b32.xlu2 %v1959_v11, %s1800_s2  ;;  %1725 = vpow2.f32 %v505_v36  ;;  %s2376_s2 = sld [smem:[#allocation7_spill]] }
 0x23b   :  { %v2039_v44 = vpop.eup %1725 }
 0x23c   :  { %399 = vrot.lane.b32.xlu1 %v1959_v11, %s1801_s23  ;;  %v507_v46 = vsel %vm120_vm1, %v2039_v44, 0.0  ;;  %s2374_s23 = sld [smem:[#allocation6_spill]] }
 0x240   :  { %v269_v27 = vpop.permute.xlu1 %268 }
 0x241   :  { %v274_v29 = vsel %vm158_vm2, %v269_v27, 0 }
 0x242   :  { %283 = vmatpush.bf16.msrb.mxu1 %v274_v29 }
 0x246   :  { %v560_v34 = vpop.xlane.xlu0 %559 }
 0x247   :  { %v561_v37 = vsub.f32 %v557_v61, %v560_v34 }
 0x249   :  { %v562_v41 = vmul.f32 1.442695, %v561_v37 }
 0x24b   :  { %1727 = vpow2.f32 %v562_v41 }
 0x251   :  { %v446_v38 = vpop.xlane.xlu2 %445  ;;  %v2044_v47 = vpop.eup %1727 }
 0x252   :  { %v447_v40 = vsub.f32 %v443_v0, %v446_v38  ;;  %v564_v49 = vsel %vm120_vm1, %v2044_v47, 0.0 }
 0x253   :  { %394 = vadd.xlane.f32.xlu0 %v393_v39 }
 0x254   :  { %v448_v43 = vmul.f32 1.442695, %v447_v40 }
 0x256   :  { %1729 = vpow2.f32 %v448_v43 }
 0x25b   :  { %320 = vadd.xlane.f32.xlu0 %v319_v45 }
 0x25c   :  { %v1730_v48 = vpop.eup %1729 }
 0x25d   :  { %v450_v50 = vsel %vm120_vm1, %v1730_v48, 0.0 }
 0x25e   :  { %508 = vadd.xlane.f32.xlu2 %v507_v46 }
 0x263   :  { %565 = vadd.xlane.f32.xlu0 %v564_v49 }
 0x266   :  { %451 = vadd.xlane.f32.xlu1 %v450_v50  ;;  %v1644_v50 = vld [vmem:[%s2374_s23 + $0x8] sm:$0xff] }
 0x267   :  { %636 = vmatpush.bf16.msra.mxu0 %v1644_v50 }
 0x277   :  { %570 = vrot.lane.b32.xlu0 %v1959_v11, %s1803_s6 }
 0x27f   :  { %513 = vrot.lane.b32.xlu1 %v1959_v11, %s1802_s0 }
 0x288   :  { %v149_v51 = vpop.xlane.xlu0 %148 }
 0x289   :  { %1731 = vrcp.f32 %v149_v51  ;;  %v1643_v51 = vld [vmem:[%s2374_s23] sm:$0xff]  ;;  %s2375_s23 = sld [smem:[#allocation5_spill]] }
 0x28a   :  { %637 = vmatpush.bf16.msra.mxu0 %v1643_v51 }
 0x28f   :  { %v1732_v52 = vpop.eup %1731 }
 0x290   :  { %v264_v53 = vpop.xlane.xlu2 %263  ;;  %v151_v54 = vmul.f32 %v1732_v52, %v2015_v10 }
 0x291   :  { %1733 = vrcp.f32 %v264_v53 }
 0x292   :  { %v152_v55 = vpack.c.bf16 %v151_v54, %v151_v54 }
 0x294   :  { %1547 = vmatmul.msk.bf16.vlgmr.msra.gmra.mxu2 %vm120_vm1, %v152_v55 }
 0x296   :  { %v207_v56 = vpop.xlane.xlu1 %206 }
 0x297   :  { %v1734_v57 = vpop.eup %1733  ;;  %1735 = vrcp.f32 %v207_v56 }
 0x298   :  { %v266_v58 = vmul.f32 %v1734_v57, %v2021_v21  ;;  %v457_v63 = vpop.permute.xlu2 %456 }
 0x299   :  { %v462_v1 = vsel %vm158_vm2, %v457_v63, 0 }
 0x29a   :  { %v267_v59 = vpack.c.bf16 %v266_v58, %v266_v58 }
 0x29b   :  { %v326_v60 = vpop.permute.xlu0 %325 }
 0x29c   :  { %v331_v61 = vsel %vm158_vm2, %v326_v60, 0  ;;  %1551 = vmatmul.msk.bf16.vlgmr.msrb.gmra.mxu1 %vm120_vm1, %v267_v59 }
 0x29d   :  { %v1736_v11 = vpop.eup %1735  ;;  %340 = vmatpush.bf16.msra.mxu2 %v331_v61 }
 0x29e   :  { %v209_v62 = vmul.f32 %v1736_v11, %v2025_v23 }
 0x2a0   :  { %v210_v0 = vpack.c.bf16 %v209_v62, %v209_v62 }
 0x2a4   :  { %1549 = vmatmul.msk.bf16.vlgmr.msrb.gmra.mxu2 %vm120_vm1, %v210_v0 }
 0x2a5   :  { %471 = vmatpush.bf16.msrb.mxu2 %v462_v1 }
 0x2ae   :  { %v400_v4 = vpop.permute.xlu1 %399 }
 0x2af   :  { %v405_v5 = vsel %vm158_vm2, %v400_v4, 0 }
 0x2b0   :  { %414 = vmatpush.bf16.msra.mxu1 %v405_v5  ;;  %v1703_v5 = vld [vmem:[%s2375_s23] ss:$0 sm:$0xff] }
 0x2c6   :  { %v395_v6 = vpop.xlane.xlu0 %394 }
 0x2c7   :  { %1737 = vrcp.f32 %v395_v6 }
 0x2cd   :  { %v1738_v7 = vpop.eup %1737 }
 0x2ce   :  { %v397_v9 = vmul.f32 %v1738_v7, %v1722_v35  ;;  %v321_v10 = vpop.xlane.xlu0 %320 }
 0x2cf   :  { %1739 = vrcp.f32 %v321_v10 }
 0x2d0   :  { %v398_v12 = vpack.c.bf16 %v397_v9, %v397_v9 }
 0x2d1   :  { %v509_v19 = vpop.xlane.xlu2 %508 }
 0x2d2   :  { %1555 = vmatmul.msk.bf16.vlgmr.msra.gmra.mxu1 %vm120_vm1, %v398_v12 }
 0x2d5   :  { %v1740_v13 = vpop.eup %1739 }
 0x2d6   :  { %v323_v14 = vmul.f32 %v1740_v13, %v1724_v42  ;;  %v566_v18 = vpop.xlane.xlu0 %565 }
 0x2d8   :  { %v324_v15 = vpack.c.bf16 %v323_v14, %v323_v14 }
 0x2d9   :  { %v452_v16 = vpop.xlane.xlu1 %451 }
 0x2da   :  { %1553 = vmatmul.msk.bf16.vlgmr.msra.gmra.mxu2 %vm120_vm1, %v324_v15  ;;  %1741 = vrcp.f32 %v452_v16  ;;  %v1807_v16 = vmov 32.0  }
 0x2db   :  { %1743 = vrcp.f32 %v509_v19  ;;  %v1648_v19 = vld [vmem:[%s2342_s10 + $0x8] sm:$0xff] }
 0x2dc   :  { %1745 = vrcp.f32 %v566_v18  ;;  %781 = vmatpush.bf16.msra.mxu3 %v1648_v19 }
 0x2dd   :  { %1747 = vrcp.f32 %v1807_v16  ;;  %v1707_v16 = vld [vmem:[%s2345_s9] ss:$0 sm:$0xff]  ;;  %s2378_s9 = smov 8  }
 0x2e0   :  { %v1742_v17 = vpop.eup %1741 }
 0x2e1   :  { %v454_v20 = vmul.f32 %v1742_v17, %v1730_v48  ;;  %v1744_v24 = vpop.eup %1743 }
 0x2e2   :  { %v511_v25 = vmul.f32 %v1744_v24, %v2039_v44  ;;  %v1746_v26 = vpop.eup %1745 }
 0x2e3   :  { %v455_v21 = vpack.c.bf16 %v454_v20, %v454_v20  ;;  %v568_v30 = vmul.f32 %v1746_v26, %v2044_v47  ;;  %v1748_v17 = vpop.eup %1747 }
 0x2e4   :  { %v512_v29 = vpack.c.bf16 %v511_v25, %v511_v25  ;;  %v655_v18 = vmul.f32 32.0, %v1748_v17  ;;  %vm659_vm5 = vweird.f32 %v1748_v17 }
 0x2e5   :  { %v569_v31 = vpack.c.bf16 %v568_v30, %v568_v30 }
 0x2e6   :  { %v656_v20 = vsub.f32 1.0, %v655_v18 }
 0x2e9   :  { %v571_v22 = vpop.permute.xlu0 %570 }
 0x2ea   :  { %v576_v23 = vsel %vm158_vm2, %v571_v22, 0  ;;  %1557 = vmatmul.msk.bf16.vlgmr.msrb.gmra.mxu2 %vm120_vm1, %v455_v21  ;;  %v75_v21 = vld [vmem:[%s2343_s1 + $0x8] sm:$0xff] }
 0x2eb   :  { %585 = vmatpush.bf16.msra.mxu2 %v576_v23  ;;  %v657_v23 = vmul.f32 %v1748_v17, %v656_v20 }
 0x2ed   :  { %v658_v24 = vadd.f32 %v1748_v17, %v657_v23 }
 0x2ef   :  { %v2107_v25 = vsel %vm659_vm5, %v1748_v17, %v658_v24  ;;  %vm1455_vm5 = vcmask 523264  }
 0x2f1   :  { %v514_v27 = vpop.permute.xlu1 %513 }
 0x2f2   :  { %v519_v28 = vsel %vm158_vm2, %v514_v27, 0 }
 0x2f3   :  { %528 = vmatpush.bf16.msrb.mxu1 %v519_v28 }
 0x2f6   :  { %1559 = vmatmul.msk.bf16.vlgmr.msrb.gmra.mxu1 %vm120_vm1, %v512_v29 }
 0x2fa   :  { %1561 = vmatmul.msk.bf16.vlgmr.msra.gmra.mxu2 %vm120_vm1, %v569_v31 }
 0x317   :  { %v171_v32 = vpop.f32.mrf.mxu2 }
 0x319   :  { %v285_v8 = vpop.f32.mrf.mxu1 }
 0x31f   :  { %v173_v33 = vpop.f32.mrf.mxu2 }
 0x321   :  { %v287_v34 = vpop.f32.mrf.mxu1 }
 0x327   :  { %v228_v35 = vpop.f32.mrf.mxu2 }
 0x32f   :  { %v230_v36 = vpop.f32.mrf.mxu2 }
 0x34f   :  { %v416_v37 = vpop.f32.mrf.mxu1 }
 0x357   :  { %v418_v38 = vpop.f32.mrf.mxu1 }
 0x35d   :  { %v342_v39 = vpop.f32.mrf.mxu2 }
 0x365   :  { %v344_v40 = vpop.f32.mrf.mxu2 }
 0x36d   :  { %v473_v41 = vpop.f32.mrf.mxu2 }
 0x36e   :  { %v1677_v42 = vpack.i.bf16 %v473_v41, %v228_v35  ;;  %v76_v35 = vld [vmem:[%s2343_s1 + $0x10] sm:$0xf]  ;;  %v1645_v41 = vld [vmem:[%s2346_s8] sm:$0xff] }
 0x36f   :  { %v753_v36 = vpack.c.bf16 %v76_v35, %v76_v35 }
 0x370   :  { %1678 = vrot.lane.b32.xlu0 %v1677_v42, %s2363_s24  ;;  %s2377_s24 = sld [smem:[#allocation8_spill]] }
 0x373   :  { %v530_v43 = vpop.f32.mrf.mxu1 }
 0x374   :  { %v1672_v44 = vpack.i.bf16 %v530_v43, %v285_v8 }
 0x375   :  { %v475_v45 = vpop.f32.mrf.mxu2 }
 0x376   :  { %1673 = vrot.lane.b32.xlu1 %v1672_v44, %s2361_s7  ;;  %v1706_v45 = vld [vmem:[%s2344_s11] ss:$0 sm:$0xff] }
 0x37b   :  { %v532_v46 = vpop.f32.mrf.mxu1 }
 0x37d   :  { %v587_v47 = vpop.f32.mrf.mxu2 }
 0x37e   :  { %v1682_v48 = vpack.i.bf16 %v587_v47, %v342_v39 }
 0x380   :  { %1683 = vrot.lane.b32.xlu0 %v1682_v48, %s2362_s25 }
 0x385   :  { %v589_v49 = vpop.f32.mrf.mxu2 }
 0x3e2   :  { %v1679_v52 = vpop.permute.xlu0 %1678 }
 0x3e3   :  { %v1681_v54 = vunpack.i.h.bf16 %v1679_v52  ;;  %v1680_v55 = vunpack.i.l.bf16 %v1679_v52 }
 0x3e5   :  { %v603_v59 = vsel %vm120_vm1, %v416_v37, %v1681_v54  ;;  %v358_v60 = vsel %vm120_vm1, %v171_v32, %v1680_v55  ;;  %v1646_v37 = vld [vmem:[%s2346_s8 + $0x8] sm:$0xff] }
 0x3e6   :  { %739 = vmatpush.bf16.msra.mxu1 %v1646_v37 }
 0x3e8   :  { %v1674_v53 = vpop.permute.xlu1 %1673 }
 0x3e9   :  { %v1676_v56 = vunpack.i.h.bf16 %v1674_v53  ;;  %v1675_v57 = vunpack.i.l.bf16 %v1674_v53 }
 0x3ea   :  { %740 = vmatpush.bf16.msra.mxu1 %v1645_v41 }
 0x3eb   :  { %v360_v62 = vsel %vm359_vm3, %v358_v60, %v1675_v57  ;;  %v604_v63 = vsel %vm359_vm3, %v603_v59, %v1676_v56 }
 0x3f2   :  { %v1684_v58 = vpop.permute.xlu0 %1683 }
 0x3f3   :  { %v1686_v61 = vunpack.i.h.bf16 %v1684_v58  ;;  %v1685_v11 = vunpack.i.l.bf16 %v1684_v58 }
 0x3f5   :  { %v362_v0 = vsel %vm361_vm4, %v360_v62, %v1685_v11  ;;  %v605_v1 = vsel %vm361_vm4, %v604_v63, %v1686_v61  ;;  %v1704_v62 = vld [vmem:[%s2376_s2] ss:$0 sm:$0xff] }
 0x3f6   :  { %v611_v4 = vpack.c.bf16 %v605_v1, %v362_v0 }
 0x3f8   :  { %1570 = vmatmul.msk.bf16.vlgmr.msra.gmra.mxu0 %vm98_vm0, %v611_v4  ;;  %v1705_v4 = vld [vmem:[%s2377_s24] ss:$0 sm:$0xff] }
 0x475   :  { %v639_v6 = vpop.f32.mrf.mxu0 }
 0x476   :  { %v640_v7 = vadd.f32 %v1703_v5, %v639_v6 }
 0x478   :  { %v644_v9 = vadd.f32 %v640_v7, %v1932_v2  ;;  %v1647_v2 = vld [vmem:[%s2342_s10] sm:$0xff] }
 0x479   :  { %782 = vmatpush.bf16.msra.mxu3 %v1647_v2 }
 0x47a   :  { %v648_v10 = vsel %vm98_vm0, %v644_v9, 0.0 }
 0x47b   :  { %649 = vadd.xlane.f32.xlu1 %v648_v10 }
 0x47d   :  { %v641_v12 = vpop.f32.mrf.mxu0 }
 0x47e   :  { %v642_v13 = vadd.f32 %v1703_v5, %v641_v12 }
 0x480   :  { %v645_v14 = vadd.f32 %v642_v13, %v1937_v3  ;;  %v74_v3 = vld [vmem:[%s2343_s1] sm:$0xff] }
 0x481   :  { %v752_v22 = vpack.c.bf16 %v75_v21, %v74_v3 }
 0x482   :  { %v651_v15 = vsel %vm98_vm0, %v645_v14, 0.0 }
 0x483   :  { %652 = vadd.xlane.f32.xlu2 %v651_v15  ;;  %1588 = vmatmul.msk.bf16.vlgmr.msra.gmra.mxu3 %vm98_vm0, %v752_v22 }
 0x493   :  { %1589 = vmatmul.msk.bf16.gmra.mxu3 %vm98_vm0, %v753_v36 }
 0x4ee   :  { %v650_v26 = vpop.xlane.xlu1 %649 }
 0x4ef   :  { %v661_v27 = vmul.f32 %v2107_v25, %v650_v26 }
 0x4f1   :  { %v663_v28 = vsub.f32 %v644_v9, %v661_v27 }
 0x4f3   :  { %v665_v29 = vmul.f32 %v663_v28, %v663_v28 }
 0x4f5   :  { %v667_v30 = vsel %vm98_vm0, %v665_v29, 0.0 }
 0x4f6   :  { %v653_v31 = vpop.xlane.xlu2 %652  ;;  %668 = vadd.xlane.f32.xlu0 %v667_v30 }
 0x4f7   :  { %v662_v32 = vmul.f32 %v2107_v25, %v653_v31 }
 0x4f9   :  { %v664_v8 = vsub.f32 %v645_v14, %v662_v32 }
 0x4fb   :  { %v666_v33 = vmul.f32 %v664_v8, %v664_v8 }
 0x4fd   :  { %v670_v34 = vsel %vm98_vm0, %v666_v33, 0.0 }
 0x4fe   :  { %671 = vadd.xlane.f32.xlu2 %v670_v34 }
 0x506   :  { %v784_v42 = vpop.f32.mrf.mxu3 }
 0x507   :  { %v785_v50 = vadd.f32 %v1706_v45, %v784_v42 }
 0x50e   :  { %v786_v51 = vpop.f32.mrf.mxu3 }
 0x50f   :  { %v787_v53 = vadd.f32 %v1706_v45, %v786_v51 }
 0x511   :  { %v2128_v55 = vpack.c.bf16 %v787_v53, %v785_v50 }
 0x513   :  { %829 = vrot.lane.b32.xlu1 %v2128_v55, %s1795_s5  ;;  %v799_v13 = vsel %vm120_vm1, %v2128_v55, 0 }
 0x514   :  { %808 = vmatpush.bf16.xpose.msrb.mxu2 %v799_v13 }
 0x516   :  { %v789_v14 = vpop.f32.mrf.mxu3 }
 0x517   :  { %v790_v22 = vadd.f32 %v1706_v45, %v789_v14 }
 0x519   :  { %v1039_v24 = vpack.c.bf16 %v790_v22, %v787_v53 }
 0x51b   :  { %v2159_v26 = vrot.slane %v1039_v24, 1 }
 0x51e   :  { %v791_v15 = vpop.f32.mrf.mxu3 }
 0x569   :  { %v669_v38 = vpop.xlane.xlu0 %668 }
 0x56a   :  { %v673_v39 = vmul.f32 %v669_v38, %v2107_v25 }
 0x56c   :  { %v675_v40 = vadd.f32 1e-05, %v673_v39 }
 0x56e   :  { %1749 = vrsqrt.f32 %v675_v40  ;;  %vm683_vm7 = vweird.f32 %v675_v40 }
 0x571   :  { %v672_v43 = vpop.xlane.xlu2 %671 }
 0x572   :  { %v674_v44 = vmul.f32 %v672_v43, %v2107_v25 }
 0x574   :  { %v1750_v46 = vpop.eup %1749  ;;  %v676_v47 = vadd.f32 1e-05, %v674_v44 }
 0x575   :  { %v678_v48 = vmul.f32 %v1750_v46, %v675_v40  ;;  %vm684_vm6 = vweird.f32 %v1750_v46 }
 0x576   :  { %1751 = vrsqrt.f32 %v676_v47  ;;  %vm685_vm8 = vmor %vm683_vm7, %vm684_vm6  ;;  %vm693_vm10 = vweird.f32 %v676_v47 }
 0x577   :  { %v679_v49 = vmul.f32 %v1750_v46, %v678_v48 }
 0x579   :  { %v680_v52 = vmul.f32 0.5, %v679_v49 }
 0x57b   :  { %v681_v54 = vsub.f32 1.5, %v680_v52  ;;  %v1046_v52 = vsel %vm120_vm1, %v2159_v26, 0 }
 0x57c   :  { %v1752_v56 = vpop.eup %1751 }
 0x57d   :  { %v682_v57 = vmul.f32 %v1750_v46, %v681_v54  ;;  %v688_v58 = vmul.f32 %v1752_v56, %v676_v47  ;;  %vm694_vm9 = vweird.f32 %v1752_v56 }
 0x57e   :  { %vm695_vm11 = vmor %vm693_vm10, %vm694_vm9 }
 0x57f   :  { %v689_v59 = vmul.f32 %v1752_v56, %v688_v58  ;;  %v686_v60 = vsel %vm685_vm8, %v1750_v46, %v682_v57 }
 0x580   :  { %v697_v63 = vmul.f32 %v686_v60, %v663_v28 }
 0x581   :  { %v690_v61 = vmul.f32 0.5, %v689_v59 }
 0x582   :  { %v702_v5 = vmul.f32 %v1704_v62, %v697_v63 }
 0x583   :  { %v691_v11 = vsub.f32 1.5, %v690_v61 }
 0x584   :  { %v2138_v9 = vadd.f32 %v1705_v4, %v702_v5 }
 0x585   :  { %v692_v0 = vmul.f32 %v1752_v56, %v691_v11  ;;  %v830_v17 = vpop.permute.xlu1 %829 }
 0x586   :  { %v836_v18 = vsel %vm834_vm12, %v830_v17, 0 }
 0x587   :  { %v696_v1 = vsel %vm695_vm11, %v1752_v56, %v692_v0  ;;  %845 = vmatpush.bf16.msrb.mxu0 %v836_v18 }
 0x588   :  { %v698_v6 = vmul.f32 %v696_v1, %v664_v8 }
 0x58a   :  { %v703_v7 = vmul.f32 %v1704_v62, %v698_v6 }
 0x58c   :  { %v2140_v10 = vadd.f32 %v1705_v4, %v703_v7 }
 0x58e   :  { %v714_v12 = vpack.c.bf16 %v2140_v10, %v2138_v9 }
 0x590   :  { %1579 = vmatmul.msk.bf16.vlgmr.msra.gmra.mxu1 %vm98_vm0, %v714_v12 }
 0x60d   :  { %v742_v19 = vpop.f32.mrf.mxu1 }
 0x60e   :  { %v743_v20 = vadd.f32 %v1707_v16, %v742_v19 }
 0x610   :  { %v793_v2 = vpack.c.bf16 %v743_v20, %v743_v20 }
 0x612   :  { %852 = vrot.lane.b32.xlu0 %v793_v2, %s1794_s27  ;;  %1590 = vmatmul.msk.bf16.vlgmr.msrb.gmra.mxu2 %vm120_vm1, %v793_v2 }
 0x615   :  { %v744_v3 = vpop.f32.mrf.mxu1 }
 0x616   :  { %v745_v21 = vadd.f32 %v1707_v16, %v744_v3 }
 0x618   :  { %v2155_v23 = vpack.c.bf16 %v745_v21, %v745_v21 }
 0x61a   :  { %911 = vrot.lane.b32.xlu0 %v2128_v55, %s1799_s4 }
 0x622   :  { %1096 = vrot.lane.b32.xlu0 %v2155_v23, %s1794_s27 }
 0x62a   :  { %1155 = vrot.lane.b32.xlu0 %v2159_v26, %s1799_s4 }
 0x684   :  { %v853_v27 = vpop.permute.xlu0 %852 }
 0x68c   :  { %v912_v28 = vpop.permute.xlu0 %911 }
 0x68d   :  { %v917_v29 = vsel %vm120_vm1, %v912_v28, 0 }
 0x68e   :  { %926 = vmatpush.bf16.xpose.msra.mxu0 %v917_v29 }
 0x694   :  { %v1097_v45 = vpop.permute.xlu0 %1096 }
 0x695   :  { %v810_v30 = vpop.f32.mrf.mxu2 }
 0x696   :  { %v814_v31 = vmul.f32 0.35355338, %v810_v30 }
 0x698   :  { %v816_v32 = vsel %vm815_vm13, %v814_v31, -inf }
 0x699   :  { %817 = vmax.xlane.f32.xlu2 %v816_v32 }
 0x69c   :  { %v1156_v59 = vpop.permute.xlu0 %1155 }
 0x69d   :  { %v812_v8 = vpop.f32.mrf.mxu2  ;;  %v1161_v60 = vsel %vm120_vm1, %v1156_v59, 0 }
 0x6b1   :  { %854 = vrot.lane.b32.xlu2 %v2128_v55, %s1794_s27 }
 0x6b9   :  { %968 = vrot.lane.b32.xlu2 %v2128_v55, %s1793_s3 }
 0x6c1   :  { %966 = vrot.lane.b32.xlu2 %v793_v2, %s1793_s3 }
 0x6c9   :  { %1098 = vrot.lane.b32.xlu2 %v2159_v26, %s1794_s27  ;;  %s2380_s27 = smov 16  }
 0x6d1   :  { %1212 = vrot.lane.b32.xlu2 %v2159_v26, %s1793_s3 }
 0x6d9   :  { %1153 = vrot.lane.b32.xlu2 %v2155_v23, %s1799_s4 }
 0x70c   :  { %v818_v33 = vpop.xlane.xlu2 %817 }
 0x70d   :  { %v819_v34 = vsub.f32 %v814_v31, %v818_v33 }
 0x70f   :  { %v820_v35 = vmul.f32 1.442695, %v819_v34 }
 0x711   :  { %1753 = vpow2.f32 %v820_v35 }
 0x714   :  { %v855_v36 = vpop.permute.xlu2 %854 }
 0x715   :  { %v860_v37 = vsel %vm120_vm1, %v855_v36, 0 }
 0x716   :  { %869 = vmatpush.bf16.xpose.msrb.mxu1 %v860_v37 }
 0x717   :  { %v1754_v38 = vpop.eup %1753 }
 0x718   :  { %v822_v39 = vsel %vm815_vm13, %v1754_v38, 0.0 }
 0x719   :  { %823 = vadd.xlane.f32.xlu1 %v822_v39 }
 0x71c   :  { %v969_v40 = vpop.permute.xlu2 %968 }
 0x71d   :  { %v974_v41 = vsel %vm120_vm1, %v969_v40, 0  ;;  %1592 = vmatmul.msk.bf16.vlgmr.msrb.gmra.mxu1 %vm120_vm1, %v853_v27 }
 0x71e   :  { %983 = vmatpush.bf16.xpose.msrb.mxu3 %v974_v41 }
 0x724   :  { %v967_v42 = vpop.permute.xlu2 %966 }
 0x725   :  { %1596 = vmatmul.msk.bf16.vlgmr.msrb.gmra.mxu3 %vm120_vm1, %v967_v42 }
 0x72c   :  { %v1099_v43 = vpop.permute.xlu2 %1098 }
 0x72d   :  { %v1104_v44 = vsel %vm120_vm1, %v1099_v43, 0 }
 0x72e   :  { %1113 = vmatpush.bf16.xpose.msra.mxu3 %v1104_v44 }
 0x732   :  { %909 = vrot.lane.b32.xlu1 %v793_v2, %s1799_s4 }
 0x734   :  { %v1213_v46 = vpop.permute.xlu2 %1212 }
 0x735   :  { %v1218_v47 = vsel %vm120_vm1, %v1213_v46, 0  ;;  %1600 = vmatmul.msk.bf16.vlgmr.msra.gmra.mxu3 %vm120_vm1, %v1097_v45 }
 0x736   :  { %1227 = vmatpush.bf16.xpose.msrb.mxu3 %v1218_v47 }
 0x73a   :  { %1210 = vrot.lane.b32.xlu1 %v2155_v23, %s1793_s3  ;;  %s2379_s3 = smov 24  }
 0x73c   :  { %v1154_v7 = vpop.permute.xlu2 %1153 }
 0x78c   :  { %v824_v48 = vpop.xlane.xlu1 %823 }
 0x78d   :  { %1755 = vrcp.f32 %v824_v48 }
 0x793   :  { %v1756_v49 = vpop.eup %1755 }
 0x794   :  { %v826_v50 = vmul.f32 %v1756_v49, %v1754_v38 }
 0x796   :  { %v827_v51 = vpack.c.bf16 %v826_v50, %v826_v50 }
 0x798   :  { %1591 = vmatmul.msk.bf16.vlgmr.msrb.gmra.mxu0 %vm815_vm13, %v827_v51 }
 0x799   :  { %1055 = vmatpush.bf16.xpose.msrb.mxu0 %v1046_v52 }
 0x79a   :  { %v871_v53 = vpop.f32.mrf.mxu1 }
 0x79b   :  { %v875_v54 = vmul.f32 0.35355338, %v871_v53 }
 0x79d   :  { %v876_v56 = vsel %vm815_vm13, %v875_v54, -inf }
 0x79e   :  { %877 = vmax.xlane.f32.xlu1 %v876_v56 }
 0x7a2   :  { %v873_v57 = vpop.f32.mrf.mxu1 }
 0x7a4   :  { %v910_v58 = vpop.permute.xlu1 %909 }
 0x7a8   :  { %1594 = vmatmul.msk.bf16.vlgmr.msra.gmra.mxu0 %vm120_vm1, %v910_v58  ;;  %v985_v61 = vpop.f32.mrf.mxu3 }
 0x7a9   :  { %v989_v11 = vmul.f32 0.35355338, %v985_v61  ;;  %1170 = vmatpush.bf16.xpose.msra.mxu0 %v1161_v60 }
 0x7ab   :  { %v990_v62 = vsel %vm815_vm13, %v989_v11, -inf }
 0x7ac   :  { %991 = vmax.xlane.f32.xlu0 %v990_v62  ;;  %v1211_v63 = vpop.permute.xlu1 %1210 }
 0x7ad   :  { %1604 = vmatmul.msk.bf16.vlgmr.msrb.gmra.mxu3 %vm120_vm1, %v1211_v63 }
 0x7b0   :  { %v987_v0 = vpop.f32.mrf.mxu3 }
 0x7b8   :  { %1598 = vmatmul.msk.bf16.vlgmr.msrb.gmra.mxu0 %vm120_vm1, %v2155_v23  ;;  %v1115_v1 = vpop.f32.mrf.mxu3 }
 0x7b9   :  { %v1119_v4 = vmul.f32 0.35355338, %v1115_v1 }
 0x7bb   :  { %v1120_v5 = vsel %vm815_vm13, %v1119_v4, -inf }
 0x7bc   :  { %1121 = vmax.xlane.f32.xlu1 %v1120_v5 }
 0x7c0   :  { %v1117_v6 = vpop.f32.mrf.mxu3 }
 0x7c8   :  { %1602 = vmatmul.msk.bf16.vlgmr.msra.gmra.mxu0 %vm120_vm1, %v1154_v7 }
 0x811   :  { %v878_v12 = vpop.xlane.xlu1 %877 }
 0x812   :  { %v879_v13 = vsub.f32 %v875_v54, %v878_v12 }
 0x814   :  { %v880_v14 = vmul.f32 1.442695, %v879_v13 }
 0x815   :  { %v2199_v15 = vpop.f32.mrf.mxu0 }
 0x816   :  { %1757 = vpow2.f32 %v880_v14 }
 0x81c   :  { %v1758_v16 = vpop.eup %1757 }
 0x81d   :  { %v849_v17 = vpop.f32.mrf.mxu0  ;;  %v882_v18 = vsel %vm815_vm13, %v1758_v16, 0.0 }
 0x81e   :  { %883 = vadd.xlane.f32.xlu1 %v882_v18 }
 0x81f   :  { %v992_v19 = vpop.xlane.xlu0 %991 }
 0x820   :  { %v993_v20 = vsub.f32 %v989_v11, %v992_v19 }
 0x822   :  { %v994_v2 = vmul.f32 1.442695, %v993_v20 }
 0x824   :  { %1759 = vpow2.f32 %v994_v2 }
 0x825   :  { %v928_v3 = vpop.f32.mrf.mxu0 }
 0x826   :  { %v932_v31 = vmul.f32 0.35355338, %v928_v3 }
 0x828   :  { %v933_v33 = vsel %vm815_vm13, %v932_v31, -inf }
 0x82a   :  { %v2202_v21 = vpop.eup %1759 }
 0x82b   :  { %v996_v22 = vsel %vm815_vm13, %v2202_v21, 0.0 }
 0x82c   :  { %997 = vadd.xlane.f32.xlu1 %v996_v22 }
 0x82d   :  { %v930_v23 = vpop.f32.mrf.mxu0 }
 0x82f   :  { %v1122_v39 = vpop.xlane.xlu1 %1121 }
 0x830   :  { %v1229_v24 = vpop.f32.mrf.mxu3  ;;  %v1123_v40 = vsub.f32 %v1119_v4, %v1122_v39 }
 0x831   :  { %v1233_v27 = vmul.f32 0.35355338, %v1229_v24 }
 0x832   :  { %v1124_v41 = vmul.f32 1.442695, %v1123_v40 }
 0x833   :  { %v1234_v28 = vsel %vm815_vm13, %v1233_v27, -inf }
 0x834   :  { %1235 = vmax.xlane.f32.xlu2 %v1234_v28  ;;  %1761 = vpow2.f32 %v1124_v41 }
 0x835   :  { %v1057_v29 = vpop.f32.mrf.mxu0 }
 0x836   :  { %v1061_v30 = vmul.f32 0.35355338, %v1057_v29 }
 0x838   :  { %v1231_v32 = vpop.f32.mrf.mxu3  ;;  %v1062_v8 = vsel %vm815_vm13, %v1061_v30, -inf }
 0x839   :  { %1063 = vmax.xlane.f32.xlu0 %v1062_v8 }
 0x83a   :  { %v2220_v42 = vpop.eup %1761 }
 0x83b   :  { %v1126_v43 = vsel %vm815_vm13, %v2220_v42, 0.0 }
 0x83c   :  { %934 = vmax.xlane.f32.xlu2 %v933_v33 }
 0x83d   :  { %v1059_v34 = vpop.f32.mrf.mxu0 }
 0x845   :  { %v1172_v35 = vpop.f32.mrf.mxu0  ;;  %1002 = vrot.lane.b32.xlu1 %v2128_v55, %s1797_s29 }
 0x846   :  { %v1176_v36 = vmul.f32 0.35355338, %v1172_v35 }
 0x848   :  { %v1177_v37 = vsel %vm815_vm13, %v1176_v36, -inf }
 0x849   :  { %1178 = vmax.xlane.f32.xlu0 %v1177_v37 }
 0x84d   :  { %v1174_v38 = vpop.f32.mrf.mxu0  ;;  %1132 = vrot.lane.b32.xlu1 %v2159_v26, %s1798_s30 }
 0x854   :  { %888 = vrot.lane.b32.xlu2 %v2128_v55, %s1798_s30 }
 0x855   :  { %1074 = vrot.lane.b32.xlu1 %v2159_v26, %s1795_s5 }
 0x85d   :  { %945 = vrot.lane.b32.xlu0 %v2128_v55, %s1796_s28 }
 0x87d   :  { %1127 = vadd.xlane.f32.xlu2 %v1126_v43 }
 0x891   :  { %v884_v44 = vpop.xlane.xlu1 %883 }
 0x89f   :  { %v998_v48 = vpop.xlane.xlu1 %997 }
 0x8a7   :  { %v1236_v45 = vpop.xlane.xlu2 %1235 }
 0x8a8   :  { %v1237_v46 = vsub.f32 %v1233_v27, %v1236_v45 }
 0x8aa   :  { %v1238_v47 = vmul.f32 1.442695, %v1237_v46 }
 0x8ac   :  { %1763 = vpow2.f32 %v1238_v47  ;;  %v1064_v49 = vpop.xlane.xlu0 %1063 }
 0x8ad   :  { %1765 = vrcp.f32 %v884_v44  ;;  %v1065_v52 = vsub.f32 %v1061_v30, %v1064_v49 }
 0x8af   :  { %v935_v50 = vpop.xlane.xlu2 %934  ;;  %v1066_v58 = vmul.f32 1.442695, %v1065_v52 }
 0x8b0   :  { %v936_v55 = vsub.f32 %v932_v31, %v935_v50 }
 0x8b2   :  { %v2224_v51 = vpop.eup %1763  ;;  %v937_v53 = vmul.f32 1.442695, %v936_v55 }
 0x8b3   :  { %v1766_v54 = vpop.eup %1765  ;;  %v1240_v56 = vsel %vm815_vm13, %v2224_v51, 0.0 }
 0x8b4   :  { %1767 = vpow2.f32 %v937_v53  ;;  %1241 = vadd.xlane.f32.xlu1 %v1240_v56  ;;  %v886_v57 = vmul.f32 %v1766_v54, %v1758_v16 }
 0x8b5   :  { %1769 = vpow2.f32 %v1066_v58 }
 0x8b6   :  { %v887_v63 = vpack.c.bf16 %v886_v57, %v886_v57  ;;  %1771 = vrcp.f32 %v998_v48 }
 0x8b7   :  { %v889_v59 = vpop.permute.xlu2 %888  ;;  %v1003_v60 = vpop.permute.xlu1 %1002 }
 0x8b8   :  { %v894_v61 = vsel %vm834_vm12, %v889_v59, 0  ;;  %v1008_v11 = vsel %vm834_vm12, %v1003_v60, 0 }
 0x8b9   :  { %903 = vmatpush.bf16.msra.mxu2 %v894_v61 }
 0x8ba   :  { %v1768_v62 = vpop.eup %1767 }
 0x8bb   :  { %v939_v0 = vsel %vm815_vm13, %v1768_v62, 0.0  ;;  %v1770_v7 = vpop.eup %1769 }
 0x8bc   :  { %v1179_v1 = vpop.xlane.xlu0 %1178  ;;  %940 = vadd.xlane.f32.xlu0 %v939_v0  ;;  %1593 = vmatmul.msk.bf16.vlgmr.msra.gmra.mxu2 %vm815_vm13, %v887_v63  ;;  %v1772_v13 = vpop.eup %1771  ;;  %v1068_v14 = vsel %vm815_vm13, %v1770_v7, 0.0  ;;  %v1649_v63 = vld [vmem:[%s2348_s12] sm:$0xff] }
 0x8bd   :  { %1017 = vmatpush.bf16.msrb.mxu2 %v1008_v11  ;;  %v1180_v4 = vsub.f32 %v1176_v36, %v1179_v1  ;;  %v1000_v16 = vmul.f32 %v1772_v13, %v2202_v21 }
 0x8bf   :  { %v1181_v5 = vmul.f32 1.442695, %v1180_v4  ;;  %v1133_v6 = vpop.permute.xlu1 %1132  ;;  %v1001_v19 = vpack.c.bf16 %v1000_v16, %v1000_v16 }
 0x8c0   :  { %v1138_v12 = vsel %vm834_vm12, %v1133_v6, 0 }
 0x8c1   :  { %1773 = vpow2.f32 %v1181_v5  ;;  %1147 = vmatpush.bf16.msra.mxu2 %v1138_v12 }
 0x8c4   :  { %1069 = vadd.xlane.f32.xlu0 %v1068_v14 }
 0x8c7   :  { %v1774_v17 = vpop.eup %1773  ;;  %v1075_v20 = vpop.permute.xlu1 %1074 }
 0x8c8   :  { %v1183_v18 = vsel %vm815_vm13, %v1774_v17, 0.0  ;;  %v1080_v22 = vsel %vm834_vm12, %v1075_v20, 0 }
 0x8c9   :  { %1184 = vadd.xlane.f32.xlu2 %v1183_v18 }
 0x8cc   :  { %1597 = vmatmul.msk.bf16.vlgmr.msrb.gmra.mxu2 %vm815_vm13, %v1001_v19 }
 0x8cf   :  { %v946_v2 = vpop.permute.xlu0 %945 }
 0x8d0   :  { %v951_v3 = vsel %vm834_vm12, %v946_v2, 0 }
 0x8d1   :  { %960 = vmatpush.bf16.msra.mxu1 %v951_v3 }
 0x8d5   :  { %1089 = vmatpush.bf16.msrb.mxu1 %v1080_v22  ;;  %v1708_v22 = vld [vmem:[%s2347_s13] ss:$0 sm:$0xff] }
 0x8d8   :  { %1189 = vrot.lane.b32.xlu0 %v2159_v26, %s1796_s28 }
 0x8e1   :  { %1246 = vrot.lane.b32.xlu2 %v2159_v26, %s1797_s29 }
 0x8f0   :  { %v1128_v21 = vpop.xlane.xlu2 %1127 }
 0x8f1   :  { %1775 = vrcp.f32 %v1128_v21 }
 0x8f7   :  { %v1776_v23 = vpop.eup %1775 }
 0x8f8   :  { %v1130_v24 = vmul.f32 %v1776_v23, %v2220_v42 }
 0x8fa   :  { %v1131_v27 = vpack.c.bf16 %v1130_v24, %v1130_v24 }
 0x8fc   :  { %1601 = vmatmul.msk.bf16.vlgmr.msra.gmra.mxu2 %vm815_vm13, %v1131_v27 }
 0x927   :  { %v1242_v30 = vpop.xlane.xlu1 %1241 }
 0x92f   :  { %v941_v28 = vpop.xlane.xlu0 %940 }
 0x930   :  { %1777 = vrcp.f32 %v941_v28 }
 0x931   :  { %1779 = vrcp.f32 %v1242_v30 }
 0x936   :  { %v1778_v29 = vpop.eup %1777 }
 0x937   :  { %v943_v31 = vmul.f32 %v1778_v29, %v1768_v62  ;;  %v1070_v8 = vpop.xlane.xlu0 %1069  ;;  %v1780_v34 = vpop.eup %1779  ;;  %v1650_v62 = vld [vmem:[%s2348_s12 + $0x8] sm:$0xff] }
 0x938   :  { %1781 = vrcp.f32 %v1070_v8  ;;  %v1244_v36 = vmul.f32 %v1780_v34, %v2224_v51  ;;  %1312 = vmatpush.bf16.msrb.mxu0 %v1650_v62 }
 0x939   :  { %v944_v32 = vpack.c.bf16 %v943_v31, %v943_v31 }
 0x93a   :  { %v1245_v40 = vpack.c.bf16 %v1244_v36, %v1244_v36 }
 0x93b   :  { %1595 = vmatmul.msk.bf16.vlgmr.msra.gmra.mxu1 %vm815_vm13, %v944_v32 }
 0x93c   :  { %v1185_v26 = vpop.xlane.xlu2 %1184  ;;  %1313 = vmatpush.bf16.msrb.mxu0 %v1649_v63 }
 0x93d   :  { %1783 = vrcp.f32 %v1185_v26 }
 0x93e   :  { %v1782_v35 = vpop.eup %1781 }
 0x93f   :  { %v905_v33 = vpop.f32.mrf.mxu2  ;;  %v1072_v38 = vmul.f32 %v1782_v35, %v1770_v7 }
 0x941   :  { %v1073_v42 = vpack.c.bf16 %v1072_v38, %v1072_v38 }
 0x943   :  { %v1784_v46 = vpop.eup %1783 }
 0x944   :  { %v1247_v37 = vpop.permute.xlu2 %1246  ;;  %v1187_v47 = vmul.f32 %v1784_v46, %v1774_v17 }
 0x945   :  { %v1252_v39 = vsel %vm834_vm12, %v1247_v37, 0 }
 0x946   :  { %1261 = vmatpush.bf16.msrb.mxu2 %v1252_v39  ;;  %v1188_v49 = vpack.c.bf16 %v1187_v47, %v1187_v47 }
 0x947   :  { %v907_v41 = vpop.f32.mrf.mxu2 }
 0x948   :  { %v1651_v41 = vld [vmem:[%s2352_s16] sm:$0xff] }
 0x949   :  { %1605 = vmatmul.msk.bf16.vlgmr.msrb.gmra.mxu2 %vm815_vm13, %v1245_v40 }
 0x94a   :  { %v1190_v43 = vpop.permute.xlu0 %1189 }
 0x94b   :  { %v1195_v44 = vsel %vm834_vm12, %v1190_v43, 0  ;;  %1599 = vmatmul.msk.bf16.vlgmr.msrb.gmra.mxu1 %vm815_vm13, %v1073_v42 }
 0x94c   :  { %1204 = vmatpush.bf16.msra.mxu1 %v1195_v44 }
 0x94f   :  { %v1019_v45 = vpop.f32.mrf.mxu2 }
 0x957   :  { %v1021_v48 = vpop.f32.mrf.mxu2 }
 0x95b   :  { %1603 = vmatmul.msk.bf16.vlgmr.msra.gmra.mxu1 %vm815_vm13, %v1188_v49 }
 0x97f   :  { %v1149_v50 = vpop.f32.mrf.mxu2 }
 0x980   :  { %v1687_v55 = vpack.i.bf16 %v1149_v50, %v905_v33 }
 0x982   :  { %1688 = vrot.lane.b32.xlu2 %v1687_v55, %s2378_s9 }
 0x987   :  { %v1151_v51 = vpop.f32.mrf.mxu2 }
 0x9b8   :  { %v962_v52 = vpop.f32.mrf.mxu1 }
 0x9c0   :  { %v964_v53 = vpop.f32.mrf.mxu1 }
 0x9c8   :  { %v1091_v54 = vpop.f32.mrf.mxu1 }
 0x9cc   :  { %v1263_v56 = vpop.f32.mrf.mxu2 }
 0x9cd   :  { %v1697_v57 = vpack.i.bf16 %v1263_v56, %v1019_v45 }
 0x9cf   :  { %1698 = vrot.lane.b32.xlu1 %v1697_v57, %s2379_s3  ;;  %v1709_v57 = vld [vmem:[%s2349_s14] ss:$0 sm:$0xff] }
 0x9d0   :  { %v1093_v58 = vpop.f32.mrf.mxu1 }
 0x9d4   :  { %v1265_v59 = vpop.f32.mrf.mxu2 }
 0x9d8   :  { %v1206_v60 = vpop.f32.mrf.mxu1 }
 0x9d9   :  { %v1692_v61 = vpack.i.bf16 %v1206_v60, %v962_v52 }
 0x9db   :  { %1693 = vrot.lane.b32.xlu0 %v1692_v61, %s2380_s27  ;;  %v1710_v61 = vld [vmem:[%s2350_s15] ss:$0 sm:$0xff] }
 0x9dc   :  { %v1689_v0 = vpop.permute.xlu2 %1688 }
 0x9dd   :  { %v1691_v1 = vunpack.i.h.bf16 %v1689_v0  ;;  %v1690_v4 = vunpack.i.l.bf16 %v1689_v0 }
 0x9df   :  { %v1035_v13 = vsel %vm120_vm1, %v2199_v15, %v1690_v4  ;;  %v1279_v14 = vsel %vm120_vm1, %v1091_v54, %v1691_v1 }
 0x9e0   :  { %v1208_v11 = vpop.f32.mrf.mxu1 }
 0xa41   :  { %v1699_v5 = vpop.permute.xlu1 %1698 }
 0xa42   :  { %v1701_v16 = vunpack.i.h.bf16 %v1699_v5  ;;  %v1700_v17 = vunpack.i.l.bf16 %v1699_v5  ;;  %v1656_v5 = vld [vmem:[%s2354_s18 + $0x18] sm:$0xff] }
 0xa43   :  { %1463 = vmatpush.bf16.msra.mxu3 %v1656_v5 }
 0xa4d   :  { %v1694_v6 = vpop.permute.xlu0 %1693 }
 0xa4e   :  { %v1696_v7 = vunpack.i.h.bf16 %v1694_v6  ;;  %v1695_v12 = vunpack.i.l.bf16 %v1694_v6  ;;  %v1655_v6 = vld [vmem:[%s2354_s18 + $0x10] sm:$0xff] }
 0xa4f   :  { %1464 = vmatpush.bf16.msra.mxu3 %v1655_v6 }
 0xa50   :  { %v1280_v18 = vsel %vm359_vm3, %v1279_v14, %v1696_v7  ;;  %v1036_v19 = vsel %vm359_vm3, %v1035_v13, %v1695_v12  ;;  %v1654_v7 = vld [vmem:[%s2354_s18 + $0x8] sm:$0xff]  ;;  %v1653_v12 = vld [vmem:[%s2354_s18] sm:$0xff] }
 0xa51   :  { %v1037_v20 = vsel %vm361_vm4, %v1036_v19, %v1700_v17  ;;  %v1281_v2 = vsel %vm361_vm4, %v1280_v18, %v1701_v16  ;;  %v1711_v14 = vld [vmem:[%s2351_s17] ss:$0 sm:$0xff] }
 0xa52   :  { %v1287_v3 = vpack.c.bf16 %v1281_v2, %v1037_v20 }
 0xa53   :  { %1465 = vmatpush.bf16.msra.mxu3 %v1654_v7 }
 0xa54   :  { %1614 = vmatmul.msk.bf16.vlgmr.msrb.gmra.mxu0 %vm98_vm0, %v1287_v3  ;;  %v1712_v3 = vld [vmem:[%s2353_s19] ss:$0 sm:$0xff] }
 0xa57   :  { %1466 = vmatpush.bf16.msra.mxu3 %v1653_v12 }
 0xad1   :  { %v1315_v15 = vpop.f32.mrf.mxu0 }
 0xad2   :  { %v1316_v21 = vadd.f32 %v1708_v22, %v1315_v15 }
 0xad4   :  { %v1320_v23 = vadd.f32 %v1316_v21, %v2138_v9 }
 0xad6   :  { %v1324_v24 = vsel %vm98_vm0, %v1320_v23, 0.0 }
 0xad7   :  { %1325 = vadd.xlane.f32.xlu2 %v1324_v24 }
 0xad9   :  { %v1317_v27 = vpop.f32.mrf.mxu0 }
 0xada   :  { %v1318_v28 = vadd.f32 %v1708_v22, %v1317_v27 }
 0xadc   :  { %v1321_v29 = vadd.f32 %v1318_v28, %v2140_v10  ;;  %v1652_v10 = vld [vmem:[%s2352_s16 + $0x8] sm:$0xff] }
 0xadd   :  { %1408 = vmatpush.bf16.msrb.mxu1 %v1652_v10 }
 0xade   :  { %v1327_v30 = vsel %vm98_vm0, %v1321_v29, 0.0 }
 0xadf   :  { %1328 = vadd.xlane.f32.xlu0 %v1327_v30 }
 0xae1   :  { %1409 = vmatpush.bf16.msrb.mxu1 %v1651_v41 }
 0xb4a   :  { %v1326_v31 = vpop.xlane.xlu2 %1325 }
 0xb4b   :  { %v1330_v32 = vmul.f32 %v1326_v31, %v2107_v25 }
 0xb4d   :  { %v1332_v8 = vsub.f32 %v1320_v23, %v1330_v32 }
 0xb4f   :  { %v1334_v26 = vmul.f32 %v1332_v8, %v1332_v8 }
 0xb51   :  { %v1336_v33 = vsel %vm98_vm0, %v1334_v26, 0.0 }
 0xb52   :  { %v1329_v34 = vpop.xlane.xlu0 %1328  ;;  %1337 = vadd.xlane.f32.xlu1 %v1336_v33 }
 0xb53   :  { %v1331_v9 = vmul.f32 %v1329_v34, %v2107_v25 }
 0xb55   :  { %v1333_v35 = vsub.f32 %v1321_v29, %v1331_v9 }
 0xb57   :  { %v1335_v36 = vmul.f32 %v1333_v35, %v1333_v35 }
 0xb59   :  { %v1339_v37 = vsel %vm98_vm0, %v1335_v36, 0.0 }
 0xb5a   :  { %1340 = vadd.xlane.f32.xlu2 %v1339_v37 }
 0xbc5   :  { %v1338_v38 = vpop.xlane.xlu1 %1337 }
 0xbc6   :  { %v1342_v39 = vmul.f32 %v1338_v38, %v2107_v25 }
 0xbc8   :  { %v1344_v40 = vadd.f32 1e-05, %v1342_v39 }
 0xbca   :  { %1785 = vrsqrt.f32 %v1344_v40  ;;  %vm1352_vm15 = vweird.f32 %v1344_v40 }
 0xbcd   :  { %v1341_v42 = vpop.xlane.xlu2 %1340 }
 0xbce   :  { %v1343_v43 = vmul.f32 %v1341_v42, %v2107_v25 }
 0xbd0   :  { %v1786_v44 = vpop.eup %1785  ;;  %v1345_v45 = vadd.f32 1e-05, %v1343_v43 }
 0xbd1   :  { %v1347_v46 = vmul.f32 %v1786_v44, %v1344_v40  ;;  %vm1353_vm14 = vweird.f32 %v1786_v44 }
 0xbd2   :  { %1787 = vrsqrt.f32 %v1345_v45  ;;  %vm1354_vm1 = vmor %vm1352_vm15, %vm1353_vm14  ;;  %vm1362_vm3 = vweird.f32 %v1345_v45 }
 0xbd3   :  { %v1348_v47 = vmul.f32 %v1786_v44, %v1347_v46 }
 0xbd5   :  { %v1349_v48 = vmul.f32 0.5, %v1348_v47 }
 0xbd7   :  { %v1350_v49 = vsub.f32 1.5, %v1349_v48 }
 0xbd8   :  { %v1788_v50 = vpop.eup %1787 }
 0xbd9   :  { %v1351_v55 = vmul.f32 %v1786_v44, %v1350_v49  ;;  %v1357_v51 = vmul.f32 %v1788_v50, %v1345_v45  ;;  %vm1363_vm2 = vweird.f32 %v1788_v50 }
 0xbda   :  { %vm1364_vm4 = vmor %vm1362_vm3, %vm1363_vm2 }
 0xbdb   :  { %v1358_v52 = vmul.f32 %v1788_v50, %v1357_v51  ;;  %v1355_v53 = vsel %vm1354_vm1, %v1786_v44, %v1351_v55 }
 0xbdc   :  { %v1366_v58 = vmul.f32 %v1355_v53, %v1332_v8 }
 0xbdd   :  { %v1359_v54 = vmul.f32 0.5, %v1358_v52 }
 0xbde   :  { %v1371_v11 = vmul.f32 %v1709_v57, %v1366_v58 }
 0xbdf   :  { %v1360_v56 = vsub.f32 1.5, %v1359_v54 }
 0xbe0   :  { %v1376_v0 = vadd.f32 %v1710_v61, %v1371_v11 }
 0xbe1   :  { %v1361_v59 = vmul.f32 %v1788_v50, %v1360_v56 }
 0xbe3   :  { %v1365_v60 = vsel %vm1364_vm4, %v1788_v50, %v1361_v59  ;;  %v1713_v50 = vld [vmem:[%s2355_s20] ss:$0 sm:$0xff] }
 0xbe4   :  { %v1367_v62 = vmul.f32 %v1365_v60, %v1333_v35 }
 0xbe6   :  { %v1372_v63 = vmul.f32 %v1709_v57, %v1367_v62 }
 0xbe8   :  { %v1377_v1 = vadd.f32 %v1710_v61, %v1372_v63 }
 0xbea   :  { %v1383_v4 = vpack.c.bf16 %v1377_v1, %v1376_v0 }
 0xbec   :  { %1623 = vmatmul.msk.bf16.vlgmr.msrb.gmra.mxu1 %vm98_vm0, %v1383_v4 }
 0xc69   :  { %v1411_v13 = vpop.f32.mrf.mxu1 }
 0xc6a   :  { %v1412_v16 = vadd.f32 %v1711_v14, %v1411_v13 }
 0xc6c   :  { %v1416_v19 = vmax.f32 %v1412_v16, 0.0 }
 0xc71   :  { %v1413_v17 = vpop.f32.mrf.mxu1 }
 0xc72   :  { %v1414_v18 = vadd.f32 %v1711_v14, %v1413_v17 }
 0xc74   :  { %v1417_v20 = vmax.f32 %v1414_v18, 0.0 }
 0xc76   :  { %v1427_v2 = vpack.c.bf16 %v1417_v20, %v1416_v19 }
 0xc78   :  { %1640 = vmatmul.msk.bf16.vlgmr.msra.gmra.mxu3 %vm1455_vm5, %v1427_v2 }
 0xcfb   :  { %v1468_v22 = vpop.f32.mrf.mxu3 }
 0xcfc   :  { %v1469_v15 = vadd.f32 %v1712_v3, %v1468_v22 }
 0xcfe   :  { %v1473_v21 = vadd.f32 %v1469_v15, %v1376_v0 }
 0xd00   :  { %v1477_v23 = vsel %vm98_vm0, %v1473_v21, 0.0 }
 0xd01   :  { %1478 = vadd.xlane.f32.xlu0 %v1477_v23 }
 0xd03   :  { %v1470_v24 = vpop.f32.mrf.mxu3 }
 0xd04   :  { %v1471_v27 = vadd.f32 %v1712_v3, %v1470_v24 }
 0xd06   :  { %v1474_v28 = vadd.f32 %v1471_v27, %v1377_v1 }
 0xd08   :  { %v1480_v29 = vsel %vm98_vm0, %v1474_v28, 0.0 }
 0xd09   :  { %1481 = vadd.xlane.f32.xlu2 %v1480_v29 }
 0xd74   :  { %v1479_v30 = vpop.xlane.xlu0 %1478 }
 0xd75   :  { %v1483_v31 = vmul.f32 %v1479_v30, %v2107_v25 }
 0xd77   :  { %v1485_v32 = vsub.f32 %v1473_v21, %v1483_v31 }
 0xd79   :  { %v1487_v8 = vmul.f32 %v1485_v32, %v1485_v32 }
 0xd7b   :  { %v1489_v26 = vsel %vm98_vm0, %v1487_v8, 0.0 }
 0xd7c   :  { %v1482_v33 = vpop.xlane.xlu2 %1481  ;;  %1490 = vadd.xlane.f32.xlu0 %v1489_v26 }
 0xd7d   :  { %v1484_v34 = vmul.f32 %v1482_v33, %v2107_v25 }
 0xd7f   :  { %v1486_v9 = vsub.f32 %v1474_v28, %v1484_v34 }
 0xd81   :  { %v1488_v35 = vmul.f32 %v1486_v9, %v1486_v9 }
 0xd83   :  { %v1492_v36 = vsel %vm98_vm0, %v1488_v35, 0.0 }
 0xd84   :  { %1493 = vadd.xlane.f32.xlu2 %v1492_v36 }
 0xdef   :  { %v1491_v37 = vpop.xlane.xlu0 %1490 }
 0xdf0   :  { %v1495_v10 = vmul.f32 %v1491_v37, %v2107_v25 }
 0xdf2   :  { %v1497_v38 = vadd.f32 1e-05, %v1495_v10 }
 0xdf4   :  { %1789 = vrsqrt.f32 %v1497_v38  ;;  %vm1505_vm7 = vweird.f32 %v1497_v38 }
 0xdf7   :  { %v1494_v39 = vpop.xlane.xlu2 %1493 }
 0xdf8   :  { %v1496_v40 = vmul.f32 %v1494_v39, %v2107_v25  ;;  %v1714_v25 = vld [vmem:[%s2356_s21] ss:$0 sm:$0xff] }
 0xdfa   :  { %v1790_v41 = vpop.eup %1789  ;;  %v1498_v42 = vadd.f32 1e-05, %v1496_v40 }
 0xdfb   :  { %v1500_v43 = vmul.f32 %v1790_v41, %v1497_v38  ;;  %vm1506_vm6 = vweird.f32 %v1790_v41 }
 0xdfc   :  { %1791 = vrsqrt.f32 %v1498_v42  ;;  %vm1507_vm8 = vmor %vm1505_vm7, %vm1506_vm6  ;;  %vm1515_vm10 = vweird.f32 %v1498_v42 }
 0xdfd   :  { %v1501_v44 = vmul.f32 %v1790_v41, %v1500_v43 }
 0xdff   :  { %v1502_v45 = vmul.f32 0.5, %v1501_v44 }
 0xe01   :  { %v1503_v46 = vsub.f32 1.5, %v1502_v45 }
 0xe02   :  { %v1792_v47 = vpop.eup %1791 }
 0xe03   :  { %v1504_v48 = vmul.f32 %v1790_v41, %v1503_v46  ;;  %v1510_v49 = vmul.f32 %v1792_v47, %v1498_v42  ;;  %vm1516_vm9 = vweird.f32 %v1792_v47 }
 0xe04   :  { %vm1517_vm11 = vmor %vm1515_vm10, %vm1516_vm9 }
 0xe05   :  { %v1508_v55 = vsel %vm1507_vm8, %v1790_v41, %v1504_v48  ;;  %v1511_v51 = vmul.f32 %v1792_v47, %v1510_v49 }
 0xe06   :  { %v1519_v52 = vmul.f32 %v1508_v55, %v1485_v32 }
 0xe07   :  { %v1512_v53 = vmul.f32 0.5, %v1511_v51 }
 0xe08   :  { %v1524_v54 = vmul.f32 %v1713_v50, %v1519_v52 }
 0xe09   :  { %v1513_v56 = vsub.f32 1.5, %v1512_v53 }
 0xe0a   :  { %v1529_v57 = vadd.f32 %v1714_v25, %v1524_v54 }
 0xe0b   :  { %v1514_v58 = vmul.f32 %v1792_v47, %v1513_v56 }
 0xe0c   :  { %1531 = vst.msk [vmem:[%s2357_s22] sm:$0xff] %vm98_vm0, %v1529_v57 }
 0xe0d   :  { %v1518_v59 = vsel %vm1517_vm11, %v1792_v47, %v1514_v58 }
 0xe0e   :  { %v1520_v60 = vmul.f32 %v1518_v59, %v1486_v9 }
 0xe10   :  { %v1525_v61 = vmul.f32 %v1713_v50, %v1520_v60 }
 0xe12   :  { %v1530_v11 = vadd.f32 %v1714_v25, %v1525_v61 }
 0xe14   :  { %1532 = vst.msk [vmem:[%s2357_s22 + $0x8] sm:$0xff] %vm98_vm0, %v1530_v11 }

// kernel: _fwd.8
= control target key start
LH: loop header
LB: loop body
LE: loop exit
PB: predicated region body
PF: predicated region fallthrough
CT: control target
= control target key end

     0   :  { %s2378_s0 = inlined_call_operand.vmem [shape: f32[16,32], index: 0, kind: input, shape index: {}]   ;;  %s2379_s1 = inlined_call_operand.vmem [shape: f32[20,32], index: 1, kind: input, shape index: {}]   ;;  %s2380_s2 = inlined_call_operand.vmem [shape: bf16[32,96], index: 2, kind: input, shape index: {}]   ;;  %s2381_s3 = inlined_call_operand.vmem [shape: f32[1,96], index: 3, kind: input, shape index: {}]   ;;  %s2382_s4 = inlined_call_operand.vmem [shape: bf16[32,32], index: 4, kind: input, shape index: {}]   ;;  %s2383_s5 = inlined_call_operand.vmem [shape: f32[1,32], index: 5, kind: input, shape index: {}]   ;;  %s2384_s6 = inlined_call_operand.vmem [shape: f32[1,32], index: 6, kind: input, shape index: {}]   ;;  %s2385_s7 = inlined_call_operand.vmem [shape: f32[1,32], index: 7, kind: input, shape index: {}]   ;;  %s2386_s8 = inlined_call_operand.vmem [shape: bf16[32,32], index: 8, kind: input, shape index: {}]   ;;  %s2387_s9 = inlined_call_operand.vmem [shape: f32[1,32], index: 9, kind: input, shape index: {}]   ;;  %s2388_s10 = inlined_call_operand.vmem [shape: bf16[32,64], index: 10, kind: input, shape index: {}]   ;;  %s2389_s11 = inlined_call_operand.vmem [shape: f32[1,64], index: 11, kind: input, shape index: {}]   ;;  %s2390_s12 = inlined_call_operand.vmem [shape: bf16[32,32], index: 12, kind: input, shape index: {}]   ;;  %s2391_s13 = inlined_call_operand.vmem [shape: f32[1,32], index: 13, kind: input, shape index: {}]   ;;  %s2392_s14 = inlined_call_operand.vmem [shape: f32[1,32], index: 14, kind: input, shape index: {}]   ;;  %s2393_s15 = inlined_call_operand.vmem [shape: f32[1,32], index: 15, kind: input, shape index: {}]   ;;  %s2394_s16 = inlined_call_operand.vmem [shape: bf16[32,64], index: 16, kind: input, shape index: {}]   ;;  %s2395_s17 = inlined_call_operand.vmem [shape: f32[1,64], index: 17, kind: input, shape index: {}]   ;;  %s2396_s18 = inlined_call_operand.vmem [shape: bf16[64,32], index: 18, kind: input, shape index: {}]   ;;  %s2397_s19 = inlined_call_operand.vmem [shape: f32[1,32], index: 19, kind: input, shape index: {}]   ;;  %s2398_s20 = inlined_call_operand.vmem [shape: f32[1,32], index: 20, kind: input, shape index: {}]   ;;  %s2399_s21 = inlined_call_operand.hbm [shape: f32[1,32], index: 21, kind: input, shape index: {}]   ;;  %s2400_s22 = inlined_call_operand.vmem [shape: f32[16,32], index: 22, kind: output, shape index: {}]  }
   0x1   :  { %2408 = sst [smem:[#allocation5_spill]] %s2378_s0 }
   0x2   :  { %2409 = sst [smem:[#allocation6_spill]] %s2379_s1 }
   0x3   :  { %2410 = sst [smem:[#allocation7_spill]] %s2380_s2 }
   0x4   :  { %2411 = sst [smem:[#allocation8_spill]] %s2381_s3 }
   0x5   :  { %2412 = sst [smem:[#allocation9_spill]] %s2382_s4 }
   0x6   :  { %2413 = sst [smem:[#allocation10_spill]] %s2383_s5 }
   0x7   :  { %2414 = sst [smem:[#allocation11_spill]] %s2384_s6 }
   0x8   :  { %27 = vsyncpa [#allocation3], 0  ;;  %s75_s29 = sshll.u32 %s2399_s21, 4  ;;  %s1835_s30 = smov [#allocation2]   ;;  %s76_s29 = int_to_ptr.hbm [resolvable:$true] %s75_s29 }
   0x9   :  { %s77_s4 = sshll.u32 %s1835_s30, 4  ;;  %s78_s4 = int_to_ptr.vmem [resolvable:$true] %s77_s4 }
   0xa   :  { %80 = dma.hbm_to_vmem [thread:$0]  %s76_s29, 16, %s78_s4, [#allocation3]  }
   0xb   :  { %1833 = dma.done.wait [#allocation3], 16  }
   0xc   :  { %1834 = vsyncadd [#allocation3], 4294967280  ;;  %s2415_s1 = sld [smem:[#allocation7_spill]]  ;;  %vm112_vm0 = vcmask 261120   ;;  %s1836_s29 = smov 104   ;;  %vm134_vm1 = vcmask 64512  }
   0xd   :  { %s2416_s26 = sld [smem:[#allocation5_spill]]  ;;  %s1837_s30 = smov 120   ;;  %vm172_vm2 = vcmask 1043456   ;;  %vm373_vm3 = vcmask 130048   ;;  %vm375_vm4 = vcmask 195584   ;;  %vm848_vm12 = vcmask 1044480  }
   0xe   :  { %s2417_s28 = sld [smem:[#allocation8_spill]]  ;;  %s1838_s4 = smov 96   ;;  %vm829_vm13 = vcmask 80896  }
   0xf   :  { %s1839_s0 = smov 80   ;;  %s1840_s23 = smov 72  }
  0x10   :  { %s1842_s5 = smov 112   ;;  %s1843_s24 = smov 56  }
  0x11   :  { %s1844_s6 = smov 64   ;;  %s1845_s25 = smov 48  }
  0x12   :  { %v1657_v0 = vld [vmem:[%s2415_s1 + $0x8] sm:$0xff]  ;;  %v1656_v1 = vld [vmem:[%s2415_s1] sm:$0xff]  ;;  %s1841_s1 = smov 88   ;;  %s2407_s21 = smov 8  }
  0x13   :  { %v1978_v2 = vld [vmem:[%s2416_s26] sm:$0xff]  ;;  %v1983_v3 = vld [vmem:[%s2416_s26 + $0x8] sm:$0xff]  ;;  %122 = vmatpush.bf16.msra.mxu0 %v1657_v0  ;;  %s1846_s26 = smov 40   ;;  %s2405_s2 = smov 16  }
  0x14   :  { %v96_v4 = vpack.c.bf16 %v1983_v3, %v1978_v2  ;;  %v1718_v5 = vld [vmem:[%s2417_s28] ss:$0 sm:$0xff]  ;;  %s2406_s27 = smov 24   ;;  %s2419_s28 = sld [smem:[#allocation10_spill]] }
  0x15   :  { %s2421_s3 = sld [smem:[#allocation11_spill]] }
  0x17   :  { %123 = vmatpush.bf16.msra.mxu0 %v1656_v1 }
  0x1a   :  { %1560 = vmatmul.msk.bf16.vlgmr.msra.gmra.mxu0 %vm112_vm0, %v96_v4 }
  0x97   :  { %v125_v6 = vpop.f32.mrf.mxu0 }
  0x98   :  { %v126_v7 = vadd.f32 %v1718_v5, %v125_v6 }
  0x9a   :  { %v1991_v8 = vpack.c.bf16 %v126_v7, %v126_v7 }
  0x9c   :  { %303 = vrot.lane.b32.xlu2 %v1991_v8, %s1836_s29  ;;  %189 = vrot.lane.b32.xlu1 %v1991_v8, %s1837_s30 }
  0x9d   :  { %132 = vrot.lane.b32.xlu0 %v1991_v8, %s1838_s4 }
  0x9f   :  { %v127_v9 = vpop.f32.mrf.mxu0 }
  0xa0   :  { %v128_v10 = vadd.f32 %v1718_v5, %v127_v9 }
  0xa2   :  { %v2005_v11 = vpack.c.bf16 %v128_v10, %v128_v10 }
  0xa4   :  { %248 = vrot.lane.b32.xlu2 %v1991_v8, %s1839_s0  ;;  %305 = vrot.lane.b32.xlu1 %v1991_v8, %s1840_s23 }
  0xa5   :  { %191 = vrot.lane.b32.xlu0 %v1991_v8, %s1841_s1 }
  0xac   :  { %434 = vrot.lane.b32.xlu2 %v2005_v11, %s1837_s30  ;;  %246 = vrot.lane.b32.xlu1 %v1991_v8, %s1842_s5 }
  0xad   :  { %436 = vrot.lane.b32.xlu0 %v2005_v11, %s1841_s1 }
  0xb4   :  { %548 = vrot.lane.b32.xlu2 %v2005_v11, %s1836_s29  ;;  %550 = vrot.lane.b32.xlu1 %v2005_v11, %s1840_s23 }
  0xb5   :  { %379 = vrot.lane.b32.xlu0 %v2005_v11, %s1838_s4 }
  0xbc   :  { %491 = vrot.lane.b32.xlu1 %v2005_v11, %s1842_s5 }
  0xbd   :  { %493 = vrot.lane.b32.xlu0 %v2005_v11, %s1839_s0 }
  0xc4   :  { %225 = vrot.lane.b32.xlu1 %v1991_v8, %s1843_s24 }
  0xf6   :  { %v304_v12 = vpop.permute.xlu2 %303 }
  0xfe   :  { %v249_v13 = vpop.permute.xlu2 %248 }
  0xff   :  { %v254_v14 = vsel %vm134_vm1, %v249_v13, 0 }
 0x100   :  { %263 = vmatpush.bf16.xpose.msrb.mxu0 %v254_v14 }
 0x106   :  { %v435_v31 = vpop.permute.xlu2 %434 }
 0x10e   :  { %v190_v15 = vpop.permute.xlu1 %189  ;;  %v549_v33 = vpop.permute.xlu2 %548 }
 0x10f   :  { %v133_v16 = vpop.permute.xlu0 %132 }
 0x110   :  { %v139_v17 = vsel %vm134_vm1, %v133_v16, 0 }
 0x111   :  { %148 = vmatpush.bf16.xpose.msra.mxu1 %v139_v17 }
 0x116   :  { %v306_v18 = vpop.permute.xlu1 %305 }
 0x117   :  { %v192_v19 = vpop.permute.xlu0 %191  ;;  %v311_v20 = vsel %vm134_vm1, %v306_v18, 0 }
 0x118   :  { %1561 = vmatmul.msk.bf16.vlgmr.msra.gmra.mxu1 %vm134_vm1, %v1991_v8  ;;  %v197_v21 = vsel %vm134_vm1, %v192_v19, 0 }
 0x119   :  { %206 = vmatpush.bf16.xpose.msra.mxu3 %v197_v21 }
 0x11e   :  { %v247_v22 = vpop.permute.xlu1 %246 }
 0x11f   :  { %v437_v23 = vpop.permute.xlu0 %436  ;;  %1565 = vmatmul.msk.bf16.vlgmr.msrb.gmra.mxu0 %vm134_vm1, %v247_v22 }
 0x120   :  { %v442_v24 = vsel %vm134_vm1, %v437_v23, 0  ;;  %1563 = vmatmul.msk.bf16.vlgmr.msra.gmra.mxu3 %vm134_vm1, %v190_v15 }
 0x121   :  { %320 = vmatpush.bf16.xpose.msrb.mxu3 %v311_v20 }
 0x126   :  { %v551_v27 = vpop.permute.xlu1 %550 }
 0x127   :  { %v380_v25 = vpop.permute.xlu0 %379  ;;  %v556_v29 = vsel %vm134_vm1, %v551_v27, 0 }
 0x128   :  { %v385_v26 = vsel %vm134_vm1, %v380_v25, 0 }
 0x129   :  { %451 = vmatpush.bf16.xpose.msra.mxu3 %v442_v24  ;;  %394 = vmatpush.bf16.xpose.msra.mxu0 %v385_v26 }
 0x12e   :  { %v492_v32 = vpop.permute.xlu1 %491 }
 0x12f   :  { %v494_v28 = vpop.permute.xlu0 %493 }
 0x130   :  { %v499_v30 = vsel %vm134_vm1, %v494_v28, 0  ;;  %1567 = vmatmul.msk.bf16.vlgmr.msrb.gmra.mxu3 %vm134_vm1, %v304_v12  ;;  %1569 = vmatmul.msk.bf16.vlgmr.msra.gmra.mxu0 %vm134_vm1, %v2005_v11 }
 0x131   :  { %565 = vmatpush.bf16.xpose.msrb.mxu3 %v556_v29  ;;  %508 = vmatpush.bf16.xpose.msrb.mxu0 %v499_v30 }
 0x136   :  { %v226_v15 = vpop.permute.xlu1 %225 }
 0x137   :  { %v231_v20 = vsel %vm172_vm2, %v226_v15, 0 }
 0x140   :  { %1571 = vmatmul.msk.bf16.vlgmr.msra.gmra.mxu3 %vm134_vm1, %v435_v31  ;;  %1573 = vmatmul.msk.bf16.vlgmr.msrb.gmra.mxu0 %vm134_vm1, %v492_v32 }
 0x150   :  { %1575 = vmatmul.msk.bf16.vlgmr.msrb.gmra.mxu3 %vm134_vm1, %v549_v33 }
 0x195   :  { %v150_v34 = vpop.f32.mrf.mxu1 }
 0x196   :  { %v154_v35 = vmul.f32 0.35355338, %v150_v34 }
 0x198   :  { %v155_v36 = vsel %vm134_vm1, %v154_v35, -inf }
 0x199   :  { %156 = vmax.xlane.f32.xlu2 %v155_v36 }
 0x19c   :  { %v265_v37 = vpop.f32.mrf.mxu0 }
 0x19d   :  { %v152_v38 = vpop.f32.mrf.mxu1  ;;  %v269_v39 = vmul.f32 0.35355338, %v265_v37 }
 0x19f   :  { %v270_v40 = vsel %vm134_vm1, %v269_v39, -inf }
 0x1a1   :  { %271 = vmax.xlane.f32.xlu2 %v270_v40 }
 0x1a3   :  { %v208_v41 = vpop.f32.mrf.mxu3 }
 0x1a4   :  { %v212_v42 = vmul.f32 0.35355338, %v208_v41  ;;  %v267_v43 = vpop.f32.mrf.mxu0 }
 0x1a6   :  { %v213_v44 = vsel %vm134_vm1, %v212_v42, -inf }
 0x1a7   :  { %214 = vmax.xlane.f32.xlu0 %v213_v44 }
 0x1ab   :  { %v210_v45 = vpop.f32.mrf.mxu3 }
 0x1ad   :  { %v396_v46 = vpop.f32.mrf.mxu0 }
 0x1ae   :  { %v2046_v47 = vmul.f32 0.35355338, %v396_v46 }
 0x1b0   :  { %v401_v48 = vsel %vm134_vm1, %v2046_v47, -inf }
 0x1b1   :  { %402 = vmax.xlane.f32.xlu1 %v401_v48 }
 0x1b3   :  { %v322_v49 = vpop.f32.mrf.mxu3 }
 0x1b4   :  { %v2050_v50 = vmul.f32 0.35355338, %v322_v49 }
 0x1b5   :  { %v398_v51 = vpop.f32.mrf.mxu0 }
 0x1b6   :  { %v327_v52 = vsel %vm134_vm1, %v2050_v50, -inf }
 0x1b9   :  { %167 = vrot.lane.b32.xlu2 %v1991_v8, %s1844_s6  ;;  %328 = vmax.xlane.f32.xlu1 %v327_v52 }
 0x1bb   :  { %v324_v53 = vpop.f32.mrf.mxu3 }
 0x1bd   :  { %v510_v54 = vpop.f32.mrf.mxu0 }
 0x1be   :  { %v514_v55 = vmul.f32 0.35355338, %v510_v54 }
 0x1c0   :  { %v515_v56 = vsel %vm134_vm1, %v514_v55, -inf }
 0x1c1   :  { %516 = vmax.xlane.f32.xlu0 %v515_v56 }
 0x1c3   :  { %v453_v57 = vpop.f32.mrf.mxu3 }
 0x1c4   :  { %v457_v0 = vmul.f32 0.35355338, %v453_v57 }
 0x1c5   :  { %v512_v58 = vpop.f32.mrf.mxu0 }
 0x1c6   :  { %v458_v1 = vsel %vm134_vm1, %v457_v0, -inf }
 0x1cb   :  { %v455_v59 = vpop.f32.mrf.mxu3 }
 0x1d2   :  { %282 = vrot.lane.b32.xlu1 %v1991_v8, %s1845_s25 }
 0x1d3   :  { %v567_v60 = vpop.f32.mrf.mxu3 }
 0x1d4   :  { %v571_v61 = vmul.f32 0.35355338, %v567_v60 }
 0x1d6   :  { %v572_v62 = vsel %vm134_vm1, %v571_v61, -inf }
 0x1d7   :  { %573 = vmax.xlane.f32.xlu0 %v572_v62 }
 0x1db   :  { %v569_v63 = vpop.f32.mrf.mxu3 }
 0x1e2   :  { %459 = vmax.xlane.f32.xlu2 %v458_v1 }
 0x20c   :  { %v157_v4 = vpop.xlane.xlu2 %156 }
 0x20d   :  { %v158_v5 = vsub.f32 %v154_v35, %v157_v4 }
 0x20f   :  { %v159_v6 = vmul.f32 1.442695, %v158_v5 }
 0x211   :  { %1731 = vpow2.f32 %v159_v6 }
 0x214   :  { %v272_v7 = vpop.xlane.xlu2 %271 }
 0x215   :  { %v273_v9 = vsub.f32 %v269_v39, %v272_v7 }
 0x217   :  { %v2061_v10 = vpop.eup %1731  ;;  %v274_v12 = vmul.f32 1.442695, %v273_v9 }
 0x218   :  { %v161_v13 = vsel %vm134_vm1, %v2061_v10, 0.0 }
 0x219   :  { %1733 = vpow2.f32 %v274_v12  ;;  %162 = vadd.xlane.f32.xlu0 %v161_v13 }
 0x21a   :  { %v215_v14 = vpop.xlane.xlu0 %214 }
 0x21b   :  { %v216_v16 = vsub.f32 %v212_v42, %v215_v14 }
 0x21c   :  { %v168_v17 = vpop.permute.xlu2 %167 }
 0x21d   :  { %v217_v18 = vmul.f32 1.442695, %v216_v16  ;;  %v174_v19 = vsel %vm172_vm2, %v168_v17, 0 }
 0x21e   :  { %183 = vmatpush.bf16.msra.mxu2 %v174_v19 }
 0x21f   :  { %v2067_v21 = vpop.eup %1733  ;;  %1735 = vpow2.f32 %v217_v18 }
 0x220   :  { %v276_v22 = vsel %vm134_vm1, %v2067_v21, 0.0 }
 0x221   :  { %277 = vadd.xlane.f32.xlu2 %v276_v22 }
 0x222   :  { %240 = vmatpush.bf16.msrb.mxu2 %v231_v20 }
 0x224   :  { %v403_v25 = vpop.xlane.xlu1 %402 }
 0x225   :  { %v2071_v23 = vpop.eup %1735  ;;  %v404_v28 = vsub.f32 %v2046_v47, %v403_v25 }
 0x226   :  { %v219_v24 = vsel %vm134_vm1, %v2071_v23, 0.0 }
 0x227   :  { %220 = vadd.xlane.f32.xlu1 %v219_v24  ;;  %v405_v30 = vmul.f32 1.442695, %v404_v28 }
 0x229   :  { %1737 = vpow2.f32 %v405_v30 }
 0x22c   :  { %v329_v26 = vpop.xlane.xlu1 %328 }
 0x22d   :  { %339 = vrot.lane.b32.xlu0 %v1991_v8, %s1846_s26  ;;  %v330_v32 = vsub.f32 %v2050_v50, %v329_v26 }
 0x22f   :  { %v331_v33 = vmul.f32 1.442695, %v330_v32  ;;  %v1738_v35 = vpop.eup %1737 }
 0x230   :  { %v407_v39 = vsel %vm134_vm1, %v1738_v35, 0.0 }
 0x231   :  { %1739 = vpow2.f32 %v331_v33 }
 0x234   :  { %v517_v31 = vpop.xlane.xlu0 %516 }
 0x235   :  { %v518_v8 = vsub.f32 %v514_v55, %v517_v31 }
 0x237   :  { %v519_v36 = vmul.f32 1.442695, %v518_v8  ;;  %v1740_v42 = vpop.eup %1739 }
 0x238   :  { %v333_v45 = vsel %vm134_vm1, %v1740_v42, 0.0 }
 0x239   :  { %470 = vrot.lane.b32.xlu2 %v2005_v11, %s1843_s24  ;;  %1741 = vpow2.f32 %v519_v36  ;;  %s2418_s24 = sld [smem:[#allocation9_spill]] }
 0x23f   :  { %v2085_v44 = vpop.eup %1741 }
 0x240   :  { %413 = vrot.lane.b32.xlu1 %v2005_v11, %s1844_s6  ;;  %v521_v46 = vsel %vm134_vm1, %v2085_v44, 0.0 }
 0x244   :  { %v283_v27 = vpop.permute.xlu1 %282 }
 0x245   :  { %v288_v29 = vsel %vm172_vm2, %v283_v27, 0 }
 0x246   :  { %297 = vmatpush.bf16.msrb.mxu1 %v288_v29 }
 0x24a   :  { %v574_v34 = vpop.xlane.xlu0 %573 }
 0x24b   :  { %v575_v37 = vsub.f32 %v571_v61, %v574_v34 }
 0x24d   :  { %v576_v41 = vmul.f32 1.442695, %v575_v37 }
 0x24f   :  { %1743 = vpow2.f32 %v576_v41 }
 0x255   :  { %v460_v38 = vpop.xlane.xlu2 %459  ;;  %v2090_v47 = vpop.eup %1743 }
 0x256   :  { %v461_v40 = vsub.f32 %v457_v0, %v460_v38  ;;  %v578_v49 = vsel %vm134_vm1, %v2090_v47, 0.0 }
 0x257   :  { %408 = vadd.xlane.f32.xlu0 %v407_v39 }
 0x258   :  { %v462_v43 = vmul.f32 1.442695, %v461_v40 }
 0x25a   :  { %1745 = vpow2.f32 %v462_v43 }
 0x25f   :  { %334 = vadd.xlane.f32.xlu0 %v333_v45 }
 0x260   :  { %v1746_v48 = vpop.eup %1745 }
 0x261   :  { %v464_v50 = vsel %vm134_vm1, %v1746_v48, 0.0 }
 0x262   :  { %522 = vadd.xlane.f32.xlu2 %v521_v46 }
 0x267   :  { %579 = vadd.xlane.f32.xlu0 %v578_v49 }
 0x26a   :  { %465 = vadd.xlane.f32.xlu1 %v464_v50  ;;  %v1659_v50 = vld [vmem:[%s2418_s24 + $0x8] sm:$0xff] }
 0x26b   :  { %650 = vmatpush.bf16.msra.mxu0 %v1659_v50 }
 0x27b   :  { %584 = vrot.lane.b32.xlu0 %v2005_v11, %s1846_s26 }
 0x283   :  { %527 = vrot.lane.b32.xlu1 %v2005_v11, %s1845_s25 }
 0x28c   :  { %v163_v51 = vpop.xlane.xlu0 %162 }
 0x28d   :  { %1747 = vrcp.f32 %v163_v51  ;;  %v1658_v51 = vld [vmem:[%s2418_s24] sm:$0xff] }
 0x28e   :  { %651 = vmatpush.bf16.msra.mxu0 %v1658_v51 }
 0x293   :  { %v1748_v52 = vpop.eup %1747 }
 0x294   :  { %v278_v53 = vpop.xlane.xlu2 %277  ;;  %v165_v54 = vmul.f32 %v1748_v52, %v2061_v10 }
 0x295   :  { %1749 = vrcp.f32 %v278_v53 }
 0x296   :  { %v166_v55 = vpack.c.bf16 %v165_v54, %v165_v54 }
 0x298   :  { %1562 = vmatmul.msk.bf16.vlgmr.msra.gmra.mxu2 %vm134_vm1, %v166_v55 }
 0x29a   :  { %v221_v56 = vpop.xlane.xlu1 %220 }
 0x29b   :  { %v1750_v57 = vpop.eup %1749  ;;  %1751 = vrcp.f32 %v221_v56 }
 0x29c   :  { %v280_v58 = vmul.f32 %v1750_v57, %v2067_v21  ;;  %v471_v63 = vpop.permute.xlu2 %470 }
 0x29d   :  { %v476_v1 = vsel %vm172_vm2, %v471_v63, 0 }
 0x29e   :  { %v281_v59 = vpack.c.bf16 %v280_v58, %v280_v58 }
 0x29f   :  { %v340_v60 = vpop.permute.xlu0 %339 }
 0x2a0   :  { %v345_v61 = vsel %vm172_vm2, %v340_v60, 0  ;;  %1566 = vmatmul.msk.bf16.vlgmr.msrb.gmra.mxu1 %vm134_vm1, %v281_v59 }
 0x2a1   :  { %v1752_v11 = vpop.eup %1751  ;;  %354 = vmatpush.bf16.msra.mxu2 %v345_v61 }
 0x2a2   :  { %v223_v62 = vmul.f32 %v1752_v11, %v2071_v23 }
 0x2a4   :  { %v224_v0 = vpack.c.bf16 %v223_v62, %v223_v62 }
 0x2a8   :  { %1564 = vmatmul.msk.bf16.vlgmr.msrb.gmra.mxu2 %vm134_vm1, %v224_v0 }
 0x2a9   :  { %485 = vmatpush.bf16.msrb.mxu2 %v476_v1 }
 0x2b2   :  { %v414_v4 = vpop.permute.xlu1 %413 }
 0x2b3   :  { %v419_v5 = vsel %vm172_vm2, %v414_v4, 0 }
 0x2b4   :  { %428 = vmatpush.bf16.msra.mxu1 %v419_v5  ;;  %v1719_v5 = vld [vmem:[%s2419_s28] ss:$0 sm:$0xff] }
 0x2ca   :  { %v409_v6 = vpop.xlane.xlu0 %408 }
 0x2cb   :  { %1753 = vrcp.f32 %v409_v6 }
 0x2d1   :  { %v1754_v7 = vpop.eup %1753 }
 0x2d2   :  { %v411_v9 = vmul.f32 %v1754_v7, %v1738_v35  ;;  %v335_v10 = vpop.xlane.xlu0 %334 }
 0x2d3   :  { %1755 = vrcp.f32 %v335_v10 }
 0x2d4   :  { %v412_v12 = vpack.c.bf16 %v411_v9, %v411_v9 }
 0x2d5   :  { %v523_v19 = vpop.xlane.xlu2 %522 }
 0x2d6   :  { %1570 = vmatmul.msk.bf16.vlgmr.msra.gmra.mxu1 %vm134_vm1, %v412_v12 }
 0x2d9   :  { %v1756_v13 = vpop.eup %1755 }
 0x2da   :  { %v337_v14 = vmul.f32 %v1756_v13, %v1740_v42  ;;  %v580_v18 = vpop.xlane.xlu0 %579 }
 0x2dc   :  { %v338_v15 = vpack.c.bf16 %v337_v14, %v337_v14 }
 0x2dd   :  { %v466_v16 = vpop.xlane.xlu1 %465 }
 0x2de   :  { %1568 = vmatmul.msk.bf16.vlgmr.msra.gmra.mxu2 %vm134_vm1, %v338_v15  ;;  %1757 = vrcp.f32 %v466_v16  ;;  %v1850_v16 = vmov 32.0  }
 0x2df   :  { %1759 = vrcp.f32 %v523_v19  ;;  %v1663_v19 = vld [vmem:[%s2388_s10 + $0x8] sm:$0xff] }
 0x2e0   :  { %1761 = vrcp.f32 %v580_v18  ;;  %795 = vmatpush.bf16.msra.mxu3 %v1663_v19 }
 0x2e1   :  { %1763 = vrcp.f32 %v1850_v16  ;;  %v1723_v16 = vld [vmem:[%s2387_s9] ss:$0 sm:$0xff]  ;;  %s2422_s9 = smov 8  }
 0x2e4   :  { %v1758_v17 = vpop.eup %1757 }
 0x2e5   :  { %v468_v20 = vmul.f32 %v1758_v17, %v1746_v48  ;;  %v1760_v24 = vpop.eup %1759 }
 0x2e6   :  { %v525_v25 = vmul.f32 %v1760_v24, %v2085_v44  ;;  %v1762_v26 = vpop.eup %1761 }
 0x2e7   :  { %v469_v21 = vpack.c.bf16 %v468_v20, %v468_v20  ;;  %v582_v30 = vmul.f32 %v1762_v26, %v2090_v47  ;;  %v1764_v17 = vpop.eup %1763 }
 0x2e8   :  { %v526_v29 = vpack.c.bf16 %v525_v25, %v525_v25  ;;  %v669_v18 = vmul.f32 32.0, %v1764_v17  ;;  %vm673_vm5 = vweird.f32 %v1764_v17 }
 0x2e9   :  { %v583_v31 = vpack.c.bf16 %v582_v30, %v582_v30 }
 0x2ea   :  { %v670_v20 = vsub.f32 1.0, %v669_v18 }
 0x2ed   :  { %v585_v22 = vpop.permute.xlu0 %584 }
 0x2ee   :  { %v590_v23 = vsel %vm172_vm2, %v585_v22, 0  ;;  %1572 = vmatmul.msk.bf16.vlgmr.msrb.gmra.mxu2 %vm134_vm1, %v469_v21 }
 0x2ef   :  { %599 = vmatpush.bf16.msra.mxu2 %v590_v23  ;;  %v671_v23 = vmul.f32 %v1764_v17, %v670_v20 }
 0x2f1   :  { %v672_v24 = vadd.f32 %v1764_v17, %v671_v23 }
 0x2f3   :  { %v2153_v25 = vsel %vm673_vm5, %v1764_v17, %v672_v24  ;;  %vm1469_vm5 = vcmask 523264  }
 0x2f5   :  { %v528_v27 = vpop.permute.xlu1 %527 }
 0x2f6   :  { %v533_v28 = vsel %vm172_vm2, %v528_v27, 0 }
 0x2f7   :  { %542 = vmatpush.bf16.msrb.mxu1 %v533_v28 }
 0x2fa   :  { %1574 = vmatmul.msk.bf16.vlgmr.msrb.gmra.mxu1 %vm134_vm1, %v526_v29 }
 0x2fe   :  { %1576 = vmatmul.msk.bf16.vlgmr.msra.gmra.mxu2 %vm134_vm1, %v583_v31 }
 0x31b   :  { %v185_v32 = vpop.f32.mrf.mxu2 }
 0x31d   :  { %v299_v8 = vpop.f32.mrf.mxu1 }
 0x323   :  { %v187_v33 = vpop.f32.mrf.mxu2 }
 0x325   :  { %v301_v34 = vpop.f32.mrf.mxu1 }
 0x32b   :  { %v242_v35 = vpop.f32.mrf.mxu2 }
 0x333   :  { %v244_v36 = vpop.f32.mrf.mxu2 }
 0x353   :  { %v430_v37 = vpop.f32.mrf.mxu1 }
 0x35b   :  { %v432_v38 = vpop.f32.mrf.mxu1 }
 0x361   :  { %v356_v39 = vpop.f32.mrf.mxu2 }
 0x369   :  { %v358_v40 = vpop.f32.mrf.mxu2 }
 0x371   :  { %v487_v41 = vpop.f32.mrf.mxu2 }
 0x372   :  { %v1693_v42 = vpack.i.bf16 %v487_v41, %v242_v35  ;;  %v1660_v41 = vld [vmem:[%s2386_s8] sm:$0xff] }
 0x374   :  { %1694 = vrot.lane.b32.xlu0 %v1693_v42, %s2407_s21 }
 0x377   :  { %v544_v43 = vpop.f32.mrf.mxu1 }
 0x378   :  { %v1688_v44 = vpack.i.bf16 %v544_v43, %v299_v8 }
 0x379   :  { %v489_v45 = vpop.f32.mrf.mxu2 }
 0x37a   :  { %1689 = vrot.lane.b32.xlu1 %v1688_v44, %s2405_s2  ;;  %s2420_s2 = sld [smem:[#allocation6_spill]]  ;;  %v1722_v45 = vld [vmem:[%s2389_s11] ss:$0 sm:$0xff] }
 0x37f   :  { %v546_v46 = vpop.f32.mrf.mxu1 }
 0x380   :  { %v89_v21 = vld [vmem:[%s2420_s2 + $0x8] sm:$0xff]  ;;  %v90_v35 = vld [vmem:[%s2420_s2 + $0x10] sm:$0xf] }
 0x381   :  { %v601_v47 = vpop.f32.mrf.mxu2  ;;  %v767_v36 = vpack.c.bf16 %v90_v35, %v90_v35 }
 0x382   :  { %v1698_v48 = vpack.i.bf16 %v601_v47, %v356_v39 }
 0x384   :  { %1699 = vrot.lane.b32.xlu0 %v1698_v48, %s2406_s27 }
 0x389   :  { %v603_v49 = vpop.f32.mrf.mxu2 }
 0x3e6   :  { %v1695_v52 = vpop.permute.xlu0 %1694 }
 0x3e7   :  { %v1697_v54 = vunpack.i.h.bf16 %v1695_v52  ;;  %v1696_v55 = vunpack.i.l.bf16 %v1695_v52 }
 0x3e9   :  { %v617_v59 = vsel %vm134_vm1, %v430_v37, %v1697_v54  ;;  %v372_v60 = vsel %vm134_vm1, %v185_v32, %v1696_v55  ;;  %v1661_v37 = vld [vmem:[%s2386_s8 + $0x8] sm:$0xff] }
 0x3ea   :  { %753 = vmatpush.bf16.msra.mxu1 %v1661_v37 }
 0x3ec   :  { %v1690_v53 = vpop.permute.xlu1 %1689 }
 0x3ed   :  { %v1692_v56 = vunpack.i.h.bf16 %v1690_v53  ;;  %v1691_v57 = vunpack.i.l.bf16 %v1690_v53 }
 0x3ee   :  { %754 = vmatpush.bf16.msra.mxu1 %v1660_v41 }
 0x3ef   :  { %v374_v62 = vsel %vm373_vm3, %v372_v60, %v1691_v57  ;;  %v618_v63 = vsel %vm373_vm3, %v617_v59, %v1692_v56 }
 0x3f6   :  { %v1700_v58 = vpop.permute.xlu0 %1699 }
 0x3f7   :  { %v1702_v61 = vunpack.i.h.bf16 %v1700_v58  ;;  %v1701_v11 = vunpack.i.l.bf16 %v1700_v58 }
 0x3f9   :  { %v376_v0 = vsel %vm375_vm4, %v374_v62, %v1701_v11  ;;  %v619_v1 = vsel %vm375_vm4, %v618_v63, %v1702_v61  ;;  %v1720_v62 = vld [vmem:[%s2421_s3] ss:$0 sm:$0xff] }
 0x3fa   :  { %v625_v4 = vpack.c.bf16 %v619_v1, %v376_v0 }
 0x3fc   :  { %1585 = vmatmul.msk.bf16.vlgmr.msra.gmra.mxu0 %vm112_vm0, %v625_v4  ;;  %v1721_v4 = vld [vmem:[%s2385_s7] ss:$0 sm:$0xff] }
 0x479   :  { %v653_v6 = vpop.f32.mrf.mxu0 }
 0x47a   :  { %v654_v7 = vadd.f32 %v1719_v5, %v653_v6 }
 0x47c   :  { %v658_v9 = vadd.f32 %v654_v7, %v1978_v2  ;;  %v1662_v2 = vld [vmem:[%s2388_s10] sm:$0xff] }
 0x47d   :  { %796 = vmatpush.bf16.msra.mxu3 %v1662_v2 }
 0x47e   :  { %v662_v10 = vsel %vm112_vm0, %v658_v9, 0.0 }
 0x47f   :  { %663 = vadd.xlane.f32.xlu1 %v662_v10 }
 0x481   :  { %v655_v12 = vpop.f32.mrf.mxu0 }
 0x482   :  { %v656_v13 = vadd.f32 %v1719_v5, %v655_v12 }
 0x484   :  { %v659_v14 = vadd.f32 %v656_v13, %v1983_v3  ;;  %v88_v3 = vld [vmem:[%s2420_s2] sm:$0xff] }
 0x485   :  { %v766_v22 = vpack.c.bf16 %v89_v21, %v88_v3 }
 0x486   :  { %v665_v15 = vsel %vm112_vm0, %v659_v14, 0.0 }
 0x487   :  { %666 = vadd.xlane.f32.xlu2 %v665_v15  ;;  %1603 = vmatmul.msk.bf16.vlgmr.msra.gmra.mxu3 %vm112_vm0, %v766_v22 }
 0x497   :  { %1604 = vmatmul.msk.bf16.gmra.mxu3 %vm112_vm0, %v767_v36 }
 0x4f2   :  { %v664_v26 = vpop.xlane.xlu1 %663 }
 0x4f3   :  { %v675_v27 = vmul.f32 %v2153_v25, %v664_v26 }
 0x4f5   :  { %v677_v28 = vsub.f32 %v658_v9, %v675_v27 }
 0x4f7   :  { %v679_v29 = vmul.f32 %v677_v28, %v677_v28 }
 0x4f9   :  { %v681_v30 = vsel %vm112_vm0, %v679_v29, 0.0 }
 0x4fa   :  { %v667_v31 = vpop.xlane.xlu2 %666  ;;  %682 = vadd.xlane.f32.xlu0 %v681_v30 }
 0x4fb   :  { %v676_v32 = vmul.f32 %v2153_v25, %v667_v31 }
 0x4fd   :  { %v678_v8 = vsub.f32 %v659_v14, %v676_v32 }
 0x4ff   :  { %v680_v33 = vmul.f32 %v678_v8, %v678_v8 }
 0x501   :  { %v684_v34 = vsel %vm112_vm0, %v680_v33, 0.0 }
 0x502   :  { %685 = vadd.xlane.f32.xlu2 %v684_v34 }
 0x50a   :  { %v798_v42 = vpop.f32.mrf.mxu3 }
 0x50b   :  { %v799_v50 = vadd.f32 %v1722_v45, %v798_v42 }
 0x512   :  { %v800_v51 = vpop.f32.mrf.mxu3 }
 0x513   :  { %v801_v53 = vadd.f32 %v1722_v45, %v800_v51 }
 0x515   :  { %v2174_v55 = vpack.c.bf16 %v801_v53, %v799_v50 }
 0x517   :  { %843 = vrot.lane.b32.xlu1 %v2174_v55, %s1838_s4  ;;  %v813_v13 = vsel %vm134_vm1, %v2174_v55, 0 }
 0x518   :  { %822 = vmatpush.bf16.xpose.msrb.mxu2 %v813_v13 }
 0x51a   :  { %v803_v14 = vpop.f32.mrf.mxu3 }
 0x51b   :  { %v804_v22 = vadd.f32 %v1722_v45, %v803_v14 }
 0x51d   :  { %v1053_v24 = vpack.c.bf16 %v804_v22, %v801_v53 }
 0x51f   :  { %v2205_v26 = vrot.slane %v1053_v24, 1 }
 0x522   :  { %v805_v15 = vpop.f32.mrf.mxu3 }
 0x56d   :  { %v683_v38 = vpop.xlane.xlu0 %682 }
 0x56e   :  { %v687_v39 = vmul.f32 %v683_v38, %v2153_v25 }
 0x570   :  { %v689_v40 = vadd.f32 1e-05, %v687_v39 }
 0x572   :  { %1765 = vrsqrt.f32 %v689_v40  ;;  %vm697_vm7 = vweird.f32 %v689_v40 }
 0x575   :  { %v686_v43 = vpop.xlane.xlu2 %685 }
 0x576   :  { %v688_v44 = vmul.f32 %v686_v43, %v2153_v25 }
 0x578   :  { %v1766_v46 = vpop.eup %1765  ;;  %v690_v47 = vadd.f32 1e-05, %v688_v44 }
 0x579   :  { %v692_v48 = vmul.f32 %v1766_v46, %v689_v40  ;;  %vm698_vm6 = vweird.f32 %v1766_v46 }
 0x57a   :  { %1767 = vrsqrt.f32 %v690_v47  ;;  %vm699_vm8 = vmor %vm697_vm7, %vm698_vm6  ;;  %vm707_vm10 = vweird.f32 %v690_v47 }
 0x57b   :  { %v693_v49 = vmul.f32 %v1766_v46, %v692_v48 }
 0x57d   :  { %v694_v52 = vmul.f32 0.5, %v693_v49 }
 0x57f   :  { %v695_v54 = vsub.f32 1.5, %v694_v52  ;;  %v1060_v52 = vsel %vm134_vm1, %v2205_v26, 0 }
 0x580   :  { %v1768_v56 = vpop.eup %1767 }
 0x581   :  { %v696_v57 = vmul.f32 %v1766_v46, %v695_v54  ;;  %v702_v58 = vmul.f32 %v1768_v56, %v690_v47  ;;  %vm708_vm9 = vweird.f32 %v1768_v56 }
 0x582   :  { %vm709_vm11 = vmor %vm707_vm10, %vm708_vm9 }
 0x583   :  { %v703_v59 = vmul.f32 %v1768_v56, %v702_v58  ;;  %v700_v60 = vsel %vm699_vm8, %v1766_v46, %v696_v57 }
 0x584   :  { %v711_v63 = vmul.f32 %v700_v60, %v677_v28 }
 0x585   :  { %v704_v61 = vmul.f32 0.5, %v703_v59 }
 0x586   :  { %v716_v5 = vmul.f32 %v1720_v62, %v711_v63 }
 0x587   :  { %v705_v11 = vsub.f32 1.5, %v704_v61 }
 0x588   :  { %v2184_v9 = vadd.f32 %v1721_v4, %v716_v5 }
 0x589   :  { %v706_v0 = vmul.f32 %v1768_v56, %v705_v11  ;;  %v844_v17 = vpop.permute.xlu1 %843 }
 0x58a   :  { %v850_v18 = vsel %vm848_vm12, %v844_v17, 0 }
 0x58b   :  { %v710_v1 = vsel %vm709_vm11, %v1768_v56, %v706_v0  ;;  %859 = vmatpush.bf16.msrb.mxu0 %v850_v18 }
 0x58c   :  { %v712_v6 = vmul.f32 %v710_v1, %v678_v8 }
 0x58e   :  { %v717_v7 = vmul.f32 %v1720_v62, %v712_v6 }
 0x590   :  { %v2186_v10 = vadd.f32 %v1721_v4, %v717_v7 }
 0x592   :  { %v728_v12 = vpack.c.bf16 %v2186_v10, %v2184_v9 }
 0x594   :  { %1594 = vmatmul.msk.bf16.vlgmr.msra.gmra.mxu1 %vm112_vm0, %v728_v12 }
 0x611   :  { %v756_v19 = vpop.f32.mrf.mxu1 }
 0x612   :  { %v757_v20 = vadd.f32 %v1723_v16, %v756_v19 }
 0x614   :  { %v807_v2 = vpack.c.bf16 %v757_v20, %v757_v20 }
 0x616   :  { %866 = vrot.lane.b32.xlu0 %v807_v2, %s1837_s30  ;;  %1605 = vmatmul.msk.bf16.vlgmr.msrb.gmra.mxu2 %vm134_vm1, %v807_v2 }
 0x619   :  { %v758_v3 = vpop.f32.mrf.mxu1 }
 0x61a   :  { %v759_v21 = vadd.f32 %v1723_v16, %v758_v3 }
 0x61c   :  { %v2201_v23 = vpack.c.bf16 %v759_v21, %v759_v21 }
 0x61e   :  { %925 = vrot.lane.b32.xlu0 %v2174_v55, %s1842_s5 }
 0x626   :  { %1110 = vrot.lane.b32.xlu0 %v2201_v23, %s1837_s30 }
 0x62e   :  { %1169 = vrot.lane.b32.xlu0 %v2205_v26, %s1842_s5 }
 0x688   :  { %v867_v27 = vpop.permute.xlu0 %866 }
 0x690   :  { %v926_v28 = vpop.permute.xlu0 %925 }
 0x691   :  { %v931_v29 = vsel %vm134_vm1, %v926_v28, 0 }
 0x692   :  { %940 = vmatpush.bf16.xpose.msra.mxu0 %v931_v29 }
 0x698   :  { %v1111_v45 = vpop.permute.xlu0 %1110 }
 0x699   :  { %v824_v30 = vpop.f32.mrf.mxu2 }
 0x69a   :  { %v828_v31 = vmul.f32 0.35355338, %v824_v30 }
 0x69c   :  { %v830_v32 = vsel %vm829_vm13, %v828_v31, -inf }
 0x69d   :  { %831 = vmax.xlane.f32.xlu2 %v830_v32 }
 0x6a0   :  { %v1170_v59 = vpop.permute.xlu0 %1169 }
 0x6a1   :  { %v826_v8 = vpop.f32.mrf.mxu2  ;;  %v1175_v60 = vsel %vm134_vm1, %v1170_v59, 0 }
 0x6b5   :  { %868 = vrot.lane.b32.xlu2 %v2174_v55, %s1837_s30 }
 0x6bd   :  { %982 = vrot.lane.b32.xlu2 %v2174_v55, %s1836_s29 }
 0x6c5   :  { %980 = vrot.lane.b32.xlu2 %v807_v2, %s1836_s29 }
 0x6cd   :  { %1112 = vrot.lane.b32.xlu2 %v2205_v26, %s1837_s30  ;;  %s2424_s30 = smov 16  }
 0x6d5   :  { %1226 = vrot.lane.b32.xlu2 %v2205_v26, %s1836_s29 }
 0x6dd   :  { %1167 = vrot.lane.b32.xlu2 %v2201_v23, %s1842_s5 }
 0x710   :  { %v832_v33 = vpop.xlane.xlu2 %831 }
 0x711   :  { %v833_v34 = vsub.f32 %v828_v31, %v832_v33 }
 0x713   :  { %v834_v35 = vmul.f32 1.442695, %v833_v34 }
 0x715   :  { %1769 = vpow2.f32 %v834_v35 }
 0x718   :  { %v869_v36 = vpop.permute.xlu2 %868 }
 0x719   :  { %v874_v37 = vsel %vm134_vm1, %v869_v36, 0 }
 0x71a   :  { %883 = vmatpush.bf16.xpose.msrb.mxu1 %v874_v37 }
 0x71b   :  { %v1770_v38 = vpop.eup %1769 }
 0x71c   :  { %v836_v39 = vsel %vm829_vm13, %v1770_v38, 0.0 }
 0x71d   :  { %837 = vadd.xlane.f32.xlu1 %v836_v39 }
 0x720   :  { %v983_v40 = vpop.permute.xlu2 %982 }
 0x721   :  { %v988_v41 = vsel %vm134_vm1, %v983_v40, 0  ;;  %1607 = vmatmul.msk.bf16.vlgmr.msrb.gmra.mxu1 %vm134_vm1, %v867_v27 }
 0x722   :  { %997 = vmatpush.bf16.xpose.msrb.mxu3 %v988_v41 }
 0x728   :  { %v981_v42 = vpop.permute.xlu2 %980 }
 0x729   :  { %1611 = vmatmul.msk.bf16.vlgmr.msrb.gmra.mxu3 %vm134_vm1, %v981_v42 }
 0x730   :  { %v1113_v43 = vpop.permute.xlu2 %1112 }
 0x731   :  { %v1118_v44 = vsel %vm134_vm1, %v1113_v43, 0 }
 0x732   :  { %1127 = vmatpush.bf16.xpose.msra.mxu3 %v1118_v44 }
 0x736   :  { %923 = vrot.lane.b32.xlu1 %v807_v2, %s1842_s5 }
 0x738   :  { %v1227_v46 = vpop.permute.xlu2 %1226 }
 0x739   :  { %v1232_v47 = vsel %vm134_vm1, %v1227_v46, 0  ;;  %1615 = vmatmul.msk.bf16.vlgmr.msra.gmra.mxu3 %vm134_vm1, %v1111_v45 }
 0x73a   :  { %1241 = vmatpush.bf16.xpose.msrb.mxu3 %v1232_v47 }
 0x73e   :  { %1224 = vrot.lane.b32.xlu1 %v2201_v23, %s1836_s29  ;;  %s2423_s29 = smov 24  }
 0x740   :  { %v1168_v7 = vpop.permute.xlu2 %1167 }
 0x790   :  { %v838_v48 = vpop.xlane.xlu1 %837 }
 0x791   :  { %1771 = vrcp.f32 %v838_v48 }
 0x797   :  { %v1772_v49 = vpop.eup %1771 }
 0x798   :  { %v840_v50 = vmul.f32 %v1772_v49, %v1770_v38 }
 0x79a   :  { %v841_v51 = vpack.c.bf16 %v840_v50, %v840_v50 }
 0x79c   :  { %1606 = vmatmul.msk.bf16.vlgmr.msrb.gmra.mxu0 %vm829_vm13, %v841_v51 }
 0x79d   :  { %1069 = vmatpush.bf16.xpose.msrb.mxu0 %v1060_v52 }
 0x79e   :  { %v885_v53 = vpop.f32.mrf.mxu1 }
 0x79f   :  { %v889_v54 = vmul.f32 0.35355338, %v885_v53 }
 0x7a1   :  { %v890_v56 = vsel %vm829_vm13, %v889_v54, -inf }
 0x7a2   :  { %891 = vmax.xlane.f32.xlu1 %v890_v56 }
 0x7a6   :  { %v887_v57 = vpop.f32.mrf.mxu1 }
 0x7a8   :  { %v924_v58 = vpop.permute.xlu1 %923 }
 0x7ac   :  { %1609 = vmatmul.msk.bf16.vlgmr.msra.gmra.mxu0 %vm134_vm1, %v924_v58  ;;  %v999_v61 = vpop.f32.mrf.mxu3 }
 0x7ad   :  { %v1003_v11 = vmul.f32 0.35355338, %v999_v61  ;;  %1184 = vmatpush.bf16.xpose.msra.mxu0 %v1175_v60 }
 0x7af   :  { %v1004_v62 = vsel %vm829_vm13, %v1003_v11, -inf }
 0x7b0   :  { %1005 = vmax.xlane.f32.xlu0 %v1004_v62  ;;  %v1225_v63 = vpop.permute.xlu1 %1224 }
 0x7b1   :  { %1619 = vmatmul.msk.bf16.vlgmr.msrb.gmra.mxu3 %vm134_vm1, %v1225_v63 }
 0x7b4   :  { %v1001_v0 = vpop.f32.mrf.mxu3 }
 0x7bc   :  { %1613 = vmatmul.msk.bf16.vlgmr.msrb.gmra.mxu0 %vm134_vm1, %v2201_v23  ;;  %v1129_v1 = vpop.f32.mrf.mxu3 }
 0x7bd   :  { %v1133_v4 = vmul.f32 0.35355338, %v1129_v1 }
 0x7bf   :  { %v1134_v5 = vsel %vm829_vm13, %v1133_v4, -inf }
 0x7c0   :  { %1135 = vmax.xlane.f32.xlu1 %v1134_v5 }
 0x7c4   :  { %v1131_v6 = vpop.f32.mrf.mxu3 }
 0x7cc   :  { %1617 = vmatmul.msk.bf16.vlgmr.msra.gmra.mxu0 %vm134_vm1, %v1168_v7 }
 0x815   :  { %v892_v12 = vpop.xlane.xlu1 %891 }
 0x816   :  { %v893_v13 = vsub.f32 %v889_v54, %v892_v12 }
 0x818   :  { %v894_v14 = vmul.f32 1.442695, %v893_v13 }
 0x819   :  { %v2245_v15 = vpop.f32.mrf.mxu0 }
 0x81a   :  { %1773 = vpow2.f32 %v894_v14 }
 0x820   :  { %v1774_v16 = vpop.eup %1773 }
 0x821   :  { %v863_v17 = vpop.f32.mrf.mxu0  ;;  %v896_v18 = vsel %vm829_vm13, %v1774_v16, 0.0 }
 0x822   :  { %897 = vadd.xlane.f32.xlu1 %v896_v18 }
 0x823   :  { %v1006_v19 = vpop.xlane.xlu0 %1005 }
 0x824   :  { %v1007_v20 = vsub.f32 %v1003_v11, %v1006_v19 }
 0x826   :  { %v1008_v2 = vmul.f32 1.442695, %v1007_v20 }
 0x828   :  { %1775 = vpow2.f32 %v1008_v2 }
 0x829   :  { %v942_v3 = vpop.f32.mrf.mxu0 }
 0x82a   :  { %v946_v31 = vmul.f32 0.35355338, %v942_v3 }
 0x82c   :  { %v947_v33 = vsel %vm829_vm13, %v946_v31, -inf }
 0x82e   :  { %v2248_v21 = vpop.eup %1775 }
 0x82f   :  { %v1010_v22 = vsel %vm829_vm13, %v2248_v21, 0.0 }
 0x830   :  { %1011 = vadd.xlane.f32.xlu1 %v1010_v22 }
 0x831   :  { %v944_v23 = vpop.f32.mrf.mxu0 }
 0x833   :  { %v1136_v39 = vpop.xlane.xlu1 %1135 }
 0x834   :  { %v1243_v24 = vpop.f32.mrf.mxu3  ;;  %v1137_v40 = vsub.f32 %v1133_v4, %v1136_v39 }
 0x835   :  { %v1247_v27 = vmul.f32 0.35355338, %v1243_v24 }
 0x836   :  { %v1138_v41 = vmul.f32 1.442695, %v1137_v40 }
 0x837   :  { %v1248_v28 = vsel %vm829_vm13, %v1247_v27, -inf }
 0x838   :  { %1249 = vmax.xlane.f32.xlu2 %v1248_v28  ;;  %1777 = vpow2.f32 %v1138_v41 }
 0x839   :  { %v1071_v29 = vpop.f32.mrf.mxu0 }
 0x83a   :  { %v1075_v30 = vmul.f32 0.35355338, %v1071_v29 }
 0x83c   :  { %v1245_v32 = vpop.f32.mrf.mxu3  ;;  %v1076_v8 = vsel %vm829_vm13, %v1075_v30, -inf }
 0x83d   :  { %1077 = vmax.xlane.f32.xlu0 %v1076_v8 }
 0x83e   :  { %v2266_v42 = vpop.eup %1777 }
 0x83f   :  { %v1140_v43 = vsel %vm829_vm13, %v2266_v42, 0.0 }
 0x840   :  { %948 = vmax.xlane.f32.xlu2 %v947_v33 }
 0x841   :  { %v1073_v34 = vpop.f32.mrf.mxu0 }
 0x849   :  { %v1186_v35 = vpop.f32.mrf.mxu0  ;;  %1016 = vrot.lane.b32.xlu1 %v2174_v55, %s1840_s23 }
 0x84a   :  { %v1190_v36 = vmul.f32 0.35355338, %v1186_v35 }
 0x84c   :  { %v1191_v37 = vsel %vm829_vm13, %v1190_v36, -inf }
 0x84d   :  { %1192 = vmax.xlane.f32.xlu0 %v1191_v37 }
 0x851   :  { %v1188_v38 = vpop.f32.mrf.mxu0  ;;  %1146 = vrot.lane.b32.xlu1 %v2205_v26, %s1841_s1 }
 0x858   :  { %902 = vrot.lane.b32.xlu2 %v2174_v55, %s1841_s1 }
 0x859   :  { %1088 = vrot.lane.b32.xlu1 %v2205_v26, %s1838_s4 }
 0x861   :  { %959 = vrot.lane.b32.xlu0 %v2174_v55, %s1839_s0 }
 0x881   :  { %1141 = vadd.xlane.f32.xlu2 %v1140_v43 }
 0x895   :  { %v898_v44 = vpop.xlane.xlu1 %897 }
 0x8a3   :  { %v1012_v48 = vpop.xlane.xlu1 %1011 }
 0x8ab   :  { %v1250_v45 = vpop.xlane.xlu2 %1249 }
 0x8ac   :  { %v1251_v46 = vsub.f32 %v1247_v27, %v1250_v45 }
 0x8ae   :  { %v1252_v47 = vmul.f32 1.442695, %v1251_v46 }
 0x8b0   :  { %1779 = vpow2.f32 %v1252_v47  ;;  %v1078_v49 = vpop.xlane.xlu0 %1077 }
 0x8b1   :  { %1781 = vrcp.f32 %v898_v44  ;;  %v1079_v52 = vsub.f32 %v1075_v30, %v1078_v49 }
 0x8b3   :  { %v949_v50 = vpop.xlane.xlu2 %948  ;;  %v1080_v58 = vmul.f32 1.442695, %v1079_v52 }
 0x8b4   :  { %v950_v55 = vsub.f32 %v946_v31, %v949_v50 }
 0x8b6   :  { %v2270_v51 = vpop.eup %1779  ;;  %v951_v53 = vmul.f32 1.442695, %v950_v55 }
 0x8b7   :  { %v1782_v54 = vpop.eup %1781  ;;  %v1254_v56 = vsel %vm829_vm13, %v2270_v51, 0.0 }
 0x8b8   :  { %1783 = vpow2.f32 %v951_v53  ;;  %1255 = vadd.xlane.f32.xlu1 %v1254_v56  ;;  %v900_v57 = vmul.f32 %v1782_v54, %v1774_v16 }
 0x8b9   :  { %1785 = vpow2.f32 %v1080_v58 }
 0x8ba   :  { %v901_v63 = vpack.c.bf16 %v900_v57, %v900_v57  ;;  %1787 = vrcp.f32 %v1012_v48 }
 0x8bb   :  { %v903_v59 = vpop.permute.xlu2 %902  ;;  %v1017_v60 = vpop.permute.xlu1 %1016 }
 0x8bc   :  { %v908_v61 = vsel %vm848_vm12, %v903_v59, 0  ;;  %v1022_v11 = vsel %vm848_vm12, %v1017_v60, 0 }
 0x8bd   :  { %917 = vmatpush.bf16.msra.mxu2 %v908_v61 }
 0x8be   :  { %v1784_v62 = vpop.eup %1783 }
 0x8bf   :  { %v953_v0 = vsel %vm829_vm13, %v1784_v62, 0.0  ;;  %v1786_v7 = vpop.eup %1785 }
 0x8c0   :  { %v1193_v1 = vpop.xlane.xlu0 %1192  ;;  %954 = vadd.xlane.f32.xlu0 %v953_v0  ;;  %1608 = vmatmul.msk.bf16.vlgmr.msra.gmra.mxu2 %vm829_vm13, %v901_v63  ;;  %v1788_v13 = vpop.eup %1787  ;;  %v1082_v14 = vsel %vm829_vm13, %v1786_v7, 0.0  ;;  %v1664_v63 = vld [vmem:[%s2390_s12] sm:$0xff] }
 0x8c1   :  { %1031 = vmatpush.bf16.msrb.mxu2 %v1022_v11  ;;  %v1194_v4 = vsub.f32 %v1190_v36, %v1193_v1  ;;  %v1014_v16 = vmul.f32 %v1788_v13, %v2248_v21 }
 0x8c3   :  { %v1195_v5 = vmul.f32 1.442695, %v1194_v4  ;;  %v1147_v6 = vpop.permute.xlu1 %1146  ;;  %v1015_v19 = vpack.c.bf16 %v1014_v16, %v1014_v16 }
 0x8c4   :  { %v1152_v12 = vsel %vm848_vm12, %v1147_v6, 0 }
 0x8c5   :  { %1789 = vpow2.f32 %v1195_v5  ;;  %1161 = vmatpush.bf16.msra.mxu2 %v1152_v12 }
 0x8c8   :  { %1083 = vadd.xlane.f32.xlu0 %v1082_v14 }
 0x8cb   :  { %v1790_v17 = vpop.eup %1789  ;;  %v1089_v20 = vpop.permute.xlu1 %1088 }
 0x8cc   :  { %v1197_v18 = vsel %vm829_vm13, %v1790_v17, 0.0  ;;  %v1094_v22 = vsel %vm848_vm12, %v1089_v20, 0 }
 0x8cd   :  { %1198 = vadd.xlane.f32.xlu2 %v1197_v18 }
 0x8d0   :  { %1612 = vmatmul.msk.bf16.vlgmr.msrb.gmra.mxu2 %vm829_vm13, %v1015_v19 }
 0x8d3   :  { %v960_v2 = vpop.permute.xlu0 %959 }
 0x8d4   :  { %v965_v3 = vsel %vm848_vm12, %v960_v2, 0 }
 0x8d5   :  { %974 = vmatpush.bf16.msra.mxu1 %v965_v3 }
 0x8d9   :  { %1103 = vmatpush.bf16.msrb.mxu1 %v1094_v22  ;;  %v1724_v22 = vld [vmem:[%s2391_s13] ss:$0 sm:$0xff] }
 0x8dc   :  { %1203 = vrot.lane.b32.xlu0 %v2205_v26, %s1839_s0 }
 0x8e5   :  { %1260 = vrot.lane.b32.xlu2 %v2205_v26, %s1840_s23 }
 0x8f4   :  { %v1142_v21 = vpop.xlane.xlu2 %1141 }
 0x8f5   :  { %1791 = vrcp.f32 %v1142_v21 }
 0x8fb   :  { %v1792_v23 = vpop.eup %1791 }
 0x8fc   :  { %v1144_v24 = vmul.f32 %v1792_v23, %v2266_v42 }
 0x8fe   :  { %v1145_v27 = vpack.c.bf16 %v1144_v24, %v1144_v24 }
 0x900   :  { %1616 = vmatmul.msk.bf16.vlgmr.msra.gmra.mxu2 %vm829_vm13, %v1145_v27 }
 0x92b   :  { %v1256_v30 = vpop.xlane.xlu1 %1255 }
 0x933   :  { %v955_v28 = vpop.xlane.xlu0 %954 }
 0x934   :  { %1793 = vrcp.f32 %v955_v28 }
 0x935   :  { %1795 = vrcp.f32 %v1256_v30 }
 0x93a   :  { %v1794_v29 = vpop.eup %1793 }
 0x93b   :  { %v957_v31 = vmul.f32 %v1794_v29, %v1784_v62  ;;  %v1084_v8 = vpop.xlane.xlu0 %1083  ;;  %v1796_v34 = vpop.eup %1795  ;;  %v1665_v62 = vld [vmem:[%s2390_s12 + $0x8] sm:$0xff] }
 0x93c   :  { %1797 = vrcp.f32 %v1084_v8  ;;  %v1258_v36 = vmul.f32 %v1796_v34, %v2270_v51  ;;  %1326 = vmatpush.bf16.msrb.mxu0 %v1665_v62 }
 0x93d   :  { %v958_v32 = vpack.c.bf16 %v957_v31, %v957_v31 }
 0x93e   :  { %v1259_v40 = vpack.c.bf16 %v1258_v36, %v1258_v36 }
 0x93f   :  { %1610 = vmatmul.msk.bf16.vlgmr.msra.gmra.mxu1 %vm829_vm13, %v958_v32 }
 0x940   :  { %v1199_v26 = vpop.xlane.xlu2 %1198  ;;  %1327 = vmatpush.bf16.msrb.mxu0 %v1664_v63 }
 0x941   :  { %1799 = vrcp.f32 %v1199_v26 }
 0x942   :  { %v1798_v35 = vpop.eup %1797 }
 0x943   :  { %v919_v33 = vpop.f32.mrf.mxu2  ;;  %v1086_v38 = vmul.f32 %v1798_v35, %v1786_v7 }
 0x945   :  { %v1087_v42 = vpack.c.bf16 %v1086_v38, %v1086_v38 }
 0x947   :  { %v1800_v46 = vpop.eup %1799 }
 0x948   :  { %v1261_v37 = vpop.permute.xlu2 %1260  ;;  %v1201_v47 = vmul.f32 %v1800_v46, %v1790_v17 }
 0x949   :  { %v1266_v39 = vsel %vm848_vm12, %v1261_v37, 0 }
 0x94a   :  { %1275 = vmatpush.bf16.msrb.mxu2 %v1266_v39  ;;  %v1202_v49 = vpack.c.bf16 %v1201_v47, %v1201_v47 }
 0x94b   :  { %v921_v41 = vpop.f32.mrf.mxu2 }
 0x94c   :  { %v1666_v41 = vld [vmem:[%s2394_s16] sm:$0xff] }
 0x94d   :  { %1620 = vmatmul.msk.bf16.vlgmr.msrb.gmra.mxu2 %vm829_vm13, %v1259_v40 }
 0x94e   :  { %v1204_v43 = vpop.permute.xlu0 %1203 }
 0x94f   :  { %v1209_v44 = vsel %vm848_vm12, %v1204_v43, 0  ;;  %1614 = vmatmul.msk.bf16.vlgmr.msrb.gmra.mxu1 %vm829_vm13, %v1087_v42 }
 0x950   :  { %1218 = vmatpush.bf16.msra.mxu1 %v1209_v44 }
 0x953   :  { %v1033_v45 = vpop.f32.mrf.mxu2 }
 0x95b   :  { %v1035_v48 = vpop.f32.mrf.mxu2 }
 0x95f   :  { %1618 = vmatmul.msk.bf16.vlgmr.msra.gmra.mxu1 %vm829_vm13, %v1202_v49 }
 0x983   :  { %v1163_v50 = vpop.f32.mrf.mxu2 }
 0x984   :  { %v1703_v55 = vpack.i.bf16 %v1163_v50, %v919_v33 }
 0x986   :  { %1704 = vrot.lane.b32.xlu2 %v1703_v55, %s2422_s9 }
 0x98b   :  { %v1165_v51 = vpop.f32.mrf.mxu2 }
 0x9bc   :  { %v976_v52 = vpop.f32.mrf.mxu1 }
 0x9c4   :  { %v978_v53 = vpop.f32.mrf.mxu1 }
 0x9cc   :  { %v1105_v54 = vpop.f32.mrf.mxu1 }
 0x9d0   :  { %v1277_v56 = vpop.f32.mrf.mxu2 }
 0x9d1   :  { %v1713_v57 = vpack.i.bf16 %v1277_v56, %v1033_v45 }
 0x9d3   :  { %1714 = vrot.lane.b32.xlu1 %v1713_v57, %s2423_s29  ;;  %v1725_v57 = vld [vmem:[%s2392_s14] ss:$0 sm:$0xff] }
 0x9d4   :  { %v1107_v58 = vpop.f32.mrf.mxu1 }
 0x9d8   :  { %v1279_v59 = vpop.f32.mrf.mxu2 }
 0x9dc   :  { %v1220_v60 = vpop.f32.mrf.mxu1 }
 0x9dd   :  { %v1708_v61 = vpack.i.bf16 %v1220_v60, %v976_v52 }
 0x9df   :  { %1709 = vrot.lane.b32.xlu0 %v1708_v61, %s2424_s30  ;;  %v1726_v61 = vld [vmem:[%s2393_s15] ss:$0 sm:$0xff] }
 0x9e0   :  { %v1705_v0 = vpop.permute.xlu2 %1704 }
 0x9e1   :  { %v1707_v1 = vunpack.i.h.bf16 %v1705_v0  ;;  %v1706_v4 = vunpack.i.l.bf16 %v1705_v0 }
 0x9e3   :  { %v1049_v13 = vsel %vm134_vm1, %v2245_v15, %v1706_v4  ;;  %v1293_v14 = vsel %vm134_vm1, %v1105_v54, %v1707_v1 }
 0x9e4   :  { %v1222_v11 = vpop.f32.mrf.mxu1 }
 0xa45   :  { %v1715_v5 = vpop.permute.xlu1 %1714 }
 0xa46   :  { %v1717_v16 = vunpack.i.h.bf16 %v1715_v5  ;;  %v1716_v17 = vunpack.i.l.bf16 %v1715_v5  ;;  %v1671_v5 = vld [vmem:[%s2396_s18 + $0x18] sm:$0xff] }
 0xa47   :  { %1477 = vmatpush.bf16.msra.mxu3 %v1671_v5 }
 0xa51   :  { %v1710_v6 = vpop.permute.xlu0 %1709 }
 0xa52   :  { %v1712_v7 = vunpack.i.h.bf16 %v1710_v6  ;;  %v1711_v12 = vunpack.i.l.bf16 %v1710_v6  ;;  %v1670_v6 = vld [vmem:[%s2396_s18 + $0x10] sm:$0xff] }
 0xa53   :  { %1478 = vmatpush.bf16.msra.mxu3 %v1670_v6 }
 0xa54   :  { %v1294_v18 = vsel %vm373_vm3, %v1293_v14, %v1712_v7  ;;  %v1050_v19 = vsel %vm373_vm3, %v1049_v13, %v1711_v12  ;;  %v1669_v7 = vld [vmem:[%s2396_s18 + $0x8] sm:$0xff]  ;;  %v1668_v12 = vld [vmem:[%s2396_s18] sm:$0xff] }
 0xa55   :  { %v1051_v20 = vsel %vm375_vm4, %v1050_v19, %v1716_v17  ;;  %v1295_v2 = vsel %vm375_vm4, %v1294_v18, %v1717_v16  ;;  %v1727_v14 = vld [vmem:[%s2395_s17] ss:$0 sm:$0xff] }
 0xa56   :  { %v1301_v3 = vpack.c.bf16 %v1295_v2, %v1051_v20 }
 0xa57   :  { %1479 = vmatpush.bf16.msra.mxu3 %v1669_v7 }
 0xa58   :  { %1629 = vmatmul.msk.bf16.vlgmr.msrb.gmra.mxu0 %vm112_vm0, %v1301_v3  ;;  %v1728_v3 = vld [vmem:[%s2397_s19] ss:$0 sm:$0xff] }
 0xa5b   :  { %1480 = vmatpush.bf16.msra.mxu3 %v1668_v12 }
 0xad5   :  { %v1329_v15 = vpop.f32.mrf.mxu0 }
 0xad6   :  { %v1330_v21 = vadd.f32 %v1724_v22, %v1329_v15 }
 0xad8   :  { %v1334_v23 = vadd.f32 %v1330_v21, %v2184_v9 }
 0xada   :  { %v1338_v24 = vsel %vm112_vm0, %v1334_v23, 0.0 }
 0xadb   :  { %1339 = vadd.xlane.f32.xlu2 %v1338_v24 }
 0xadd   :  { %v1331_v27 = vpop.f32.mrf.mxu0 }
 0xade   :  { %v1332_v28 = vadd.f32 %v1724_v22, %v1331_v27 }
 0xae0   :  { %v1335_v29 = vadd.f32 %v1332_v28, %v2186_v10  ;;  %v1667_v10 = vld [vmem:[%s2394_s16 + $0x8] sm:$0xff] }
 0xae1   :  { %1422 = vmatpush.bf16.msrb.mxu1 %v1667_v10 }
 0xae2   :  { %v1341_v30 = vsel %vm112_vm0, %v1335_v29, 0.0 }
 0xae3   :  { %1342 = vadd.xlane.f32.xlu0 %v1341_v30 }
 0xae5   :  { %1423 = vmatpush.bf16.msrb.mxu1 %v1666_v41 }
 0xb4e   :  { %v1340_v31 = vpop.xlane.xlu2 %1339 }
 0xb4f   :  { %v1344_v32 = vmul.f32 %v1340_v31, %v2153_v25 }
 0xb51   :  { %v1346_v8 = vsub.f32 %v1334_v23, %v1344_v32 }
 0xb53   :  { %v1348_v26 = vmul.f32 %v1346_v8, %v1346_v8 }
 0xb55   :  { %v1350_v33 = vsel %vm112_vm0, %v1348_v26, 0.0 }
 0xb56   :  { %v1343_v34 = vpop.xlane.xlu0 %1342  ;;  %1351 = vadd.xlane.f32.xlu1 %v1350_v33 }
 0xb57   :  { %v1345_v9 = vmul.f32 %v1343_v34, %v2153_v25 }
 0xb59   :  { %v1347_v35 = vsub.f32 %v1335_v29, %v1345_v9 }
 0xb5b   :  { %v1349_v36 = vmul.f32 %v1347_v35, %v1347_v35 }
 0xb5d   :  { %v1353_v37 = vsel %vm112_vm0, %v1349_v36, 0.0 }
 0xb5e   :  { %1354 = vadd.xlane.f32.xlu2 %v1353_v37 }
 0xbc9   :  { %v1352_v38 = vpop.xlane.xlu1 %1351 }
 0xbca   :  { %v1356_v39 = vmul.f32 %v1352_v38, %v2153_v25 }
 0xbcc   :  { %v1358_v40 = vadd.f32 1e-05, %v1356_v39 }
 0xbce   :  { %1801 = vrsqrt.f32 %v1358_v40  ;;  %vm1366_vm15 = vweird.f32 %v1358_v40 }
 0xbd1   :  { %v1355_v42 = vpop.xlane.xlu2 %1354 }
 0xbd2   :  { %v1357_v43 = vmul.f32 %v1355_v42, %v2153_v25 }
 0xbd4   :  { %v1802_v44 = vpop.eup %1801  ;;  %v1359_v45 = vadd.f32 1e-05, %v1357_v43 }
 0xbd5   :  { %v1361_v46 = vmul.f32 %v1802_v44, %v1358_v40  ;;  %vm1367_vm14 = vweird.f32 %v1802_v44 }
 0xbd6   :  { %1803 = vrsqrt.f32 %v1359_v45  ;;  %vm1368_vm1 = vmor %vm1366_vm15, %vm1367_vm14  ;;  %vm1376_vm3 = vweird.f32 %v1359_v45 }
 0xbd7   :  { %v1362_v47 = vmul.f32 %v1802_v44, %v1361_v46 }
 0xbd9   :  { %v1363_v48 = vmul.f32 0.5, %v1362_v47 }
 0xbdb   :  { %v1364_v49 = vsub.f32 1.5, %v1363_v48 }
 0xbdc   :  { %v1804_v50 = vpop.eup %1803 }
 0xbdd   :  { %v1365_v55 = vmul.f32 %v1802_v44, %v1364_v49  ;;  %v1371_v51 = vmul.f32 %v1804_v50, %v1359_v45  ;;  %vm1377_vm2 = vweird.f32 %v1804_v50 }
 0xbde   :  { %vm1378_vm4 = vmor %vm1376_vm3, %vm1377_vm2 }
 0xbdf   :  { %v1372_v52 = vmul.f32 %v1804_v50, %v1371_v51  ;;  %v1369_v53 = vsel %vm1368_vm1, %v1802_v44, %v1365_v55 }
 0xbe0   :  { %v1380_v58 = vmul.f32 %v1369_v53, %v1346_v8 }
 0xbe1   :  { %v1373_v54 = vmul.f32 0.5, %v1372_v52 }
 0xbe2   :  { %v1385_v11 = vmul.f32 %v1725_v57, %v1380_v58 }
 0xbe3   :  { %v1374_v56 = vsub.f32 1.5, %v1373_v54 }
 0xbe4   :  { %v1390_v0 = vadd.f32 %v1726_v61, %v1385_v11 }
 0xbe5   :  { %v1375_v59 = vmul.f32 %v1804_v50, %v1374_v56 }
 0xbe7   :  { %v1379_v60 = vsel %vm1378_vm4, %v1804_v50, %v1375_v59  ;;  %v1729_v50 = vld [vmem:[%s2398_s20] ss:$0 sm:$0xff] }
 0xbe8   :  { %v1381_v62 = vmul.f32 %v1379_v60, %v1347_v35 }
 0xbea   :  { %v1386_v63 = vmul.f32 %v1725_v57, %v1381_v62 }
 0xbec   :  { %v1391_v1 = vadd.f32 %v1726_v61, %v1386_v63 }
 0xbee   :  { %v1397_v4 = vpack.c.bf16 %v1391_v1, %v1390_v0 }
 0xbf0   :  { %1638 = vmatmul.msk.bf16.vlgmr.msrb.gmra.mxu1 %vm112_vm0, %v1397_v4 }
 0xc6d   :  { %v1425_v13 = vpop.f32.mrf.mxu1 }
 0xc6e   :  { %v1426_v16 = vadd.f32 %v1727_v14, %v1425_v13 }
 0xc70   :  { %v1430_v19 = vmax.f32 %v1426_v16, 0.0 }
 0xc75   :  { %v1427_v17 = vpop.f32.mrf.mxu1 }
 0xc76   :  { %v1428_v18 = vadd.f32 %v1727_v14, %v1427_v17 }
 0xc78   :  { %v1431_v20 = vmax.f32 %v1428_v18, 0.0 }
 0xc7a   :  { %v1441_v2 = vpack.c.bf16 %v1431_v20, %v1430_v19 }
 0xc7c   :  { %1655 = vmatmul.msk.bf16.vlgmr.msra.gmra.mxu3 %vm1469_vm5, %v1441_v2 }
 0xcff   :  { %v1482_v22 = vpop.f32.mrf.mxu3 }
 0xd00   :  { %v1483_v15 = vadd.f32 %v1728_v3, %v1482_v22 }
 0xd02   :  { %v1487_v21 = vadd.f32 %v1483_v15, %v1390_v0 }
 0xd04   :  { %v1491_v23 = vsel %vm112_vm0, %v1487_v21, 0.0 }
 0xd05   :  { %1492 = vadd.xlane.f32.xlu0 %v1491_v23 }
 0xd07   :  { %v1484_v24 = vpop.f32.mrf.mxu3 }
 0xd08   :  { %v1485_v27 = vadd.f32 %v1728_v3, %v1484_v24 }
 0xd0a   :  { %v1488_v28 = vadd.f32 %v1485_v27, %v1391_v1 }
 0xd0c   :  { %v1494_v29 = vsel %vm112_vm0, %v1488_v28, 0.0 }
 0xd0d   :  { %1495 = vadd.xlane.f32.xlu2 %v1494_v29 }
 0xd78   :  { %v1493_v30 = vpop.xlane.xlu0 %1492 }
 0xd79   :  { %v1497_v31 = vmul.f32 %v1493_v30, %v2153_v25 }
 0xd7b   :  { %v1499_v32 = vsub.f32 %v1487_v21, %v1497_v31 }
 0xd7d   :  { %v1501_v8 = vmul.f32 %v1499_v32, %v1499_v32 }
 0xd7f   :  { %v1503_v26 = vsel %vm112_vm0, %v1501_v8, 0.0 }
 0xd80   :  { %v1496_v33 = vpop.xlane.xlu2 %1495  ;;  %1504 = vadd.xlane.f32.xlu0 %v1503_v26 }
 0xd81   :  { %v1498_v34 = vmul.f32 %v1496_v33, %v2153_v25 }
 0xd83   :  { %v1500_v9 = vsub.f32 %v1488_v28, %v1498_v34 }
 0xd85   :  { %v1502_v35 = vmul.f32 %v1500_v9, %v1500_v9 }
 0xd87   :  { %v1506_v36 = vsel %vm112_vm0, %v1502_v35, 0.0 }
 0xd88   :  { %1507 = vadd.xlane.f32.xlu2 %v1506_v36 }
 0xdf3   :  { %v1505_v37 = vpop.xlane.xlu0 %1504 }
 0xdf4   :  { %v1509_v10 = vmul.f32 %v1505_v37, %v2153_v25 }
 0xdf6   :  { %v1511_v38 = vadd.f32 1e-05, %v1509_v10 }
 0xdf8   :  { %1805 = vrsqrt.f32 %v1511_v38  ;;  %vm1519_vm7 = vweird.f32 %v1511_v38 }
 0xdfb   :  { %v1508_v39 = vpop.xlane.xlu2 %1507 }
 0xdfc   :  { %v1510_v40 = vmul.f32 %v1508_v39, %v2153_v25  ;;  %v1730_v25 = vld [vmem:[#allocation2] ss:$0 sm:$0xff] }
 0xdfe   :  { %v1806_v41 = vpop.eup %1805  ;;  %v1512_v42 = vadd.f32 1e-05, %v1510_v40 }
 0xdff   :  { %v1514_v43 = vmul.f32 %v1806_v41, %v1511_v38  ;;  %vm1520_vm6 = vweird.f32 %v1806_v41 }
 0xe00   :  { %1807 = vrsqrt.f32 %v1512_v42  ;;  %vm1521_vm8 = vmor %vm1519_vm7, %vm1520_vm6  ;;  %vm1529_vm10 = vweird.f32 %v1512_v42 }
 0xe01   :  { %v1515_v44 = vmul.f32 %v1806_v41, %v1514_v43 }
 0xe03   :  { %v1516_v45 = vmul.f32 0.5, %v1515_v44 }
 0xe05   :  { %v1517_v46 = vsub.f32 1.5, %v1516_v45 }
 0xe06   :  { %v1808_v47 = vpop.eup %1807 }
 0xe07   :  { %v1518_v48 = vmul.f32 %v1806_v41, %v1517_v46  ;;  %v1524_v49 = vmul.f32 %v1808_v47, %v1512_v42  ;;  %vm1530_vm9 = vweird.f32 %v1808_v47 }
 0xe08   :  { %vm1531_vm11 = vmor %vm1529_vm10, %vm1530_vm9 }
 0xe09   :  { %v1522_v55 = vsel %vm1521_vm8, %v1806_v41, %v1518_v48  ;;  %v1525_v51 = vmul.f32 %v1808_v47, %v1524_v49 }
 0xe0a   :  { %v1533_v52 = vmul.f32 %v1522_v55, %v1499_v32 }
 0xe0b   :  { %v1526_v53 = vmul.f32 0.5, %v1525_v51 }
 0xe0c   :  { %v1538_v54 = vmul.f32 %v1729_v50, %v1533_v52 }
 0xe0d   :  { %v1527_v56 = vsub.f32 1.5, %v1526_v53 }
 0xe0e   :  { %v1543_v57 = vadd.f32 %v1730_v25, %v1538_v54 }
 0xe0f   :  { %v1528_v58 = vmul.f32 %v1808_v47, %v1527_v56 }
 0xe10   :  { %1545 = vst.msk [vmem:[%s2400_s22] sm:$0xff] %vm112_vm0, %v1543_v57 }
 0xe11   :  { %v1532_v59 = vsel %vm1531_vm11, %v1808_v47, %v1528_v58 }
 0xe12   :  { %v1534_v60 = vmul.f32 %v1532_v59, %v1500_v9 }
 0xe14   :  { %v1539_v61 = vmul.f32 %v1729_v50, %v1534_v60 }
 0xe16   :  { %v1544_v11 = vadd.f32 %v1730_v25, %v1539_v61 }
 0xe18   :  { %1546 = vst.msk [vmem:[%s2400_s22 + $0x8] sm:$0xff] %vm112_vm0, %v1544_v11 }
 0xe19   :  { %1551 = vsyncpa [#allocation3], 1 }

</bundles_post_ra>
